<compile_context>
chip_gen: v6e
topology: v6e:2x2x1
jax: 0.10.0
libtpu: 0.0.40
codegen_flags: <defaults>
</compile_context>

<pallas_src>
import functools
import math

import jax
import jax.numpy as jnp
from jax.experimental import pallas as pl
from jax.experimental.pallas import tpu as pltpu


# ------------------------------ Pallas kernel ------------------------------

def _block_kernel(x_ref, up_w_ref, up_b_ref, w_ref, b_ref, wt_ref, o_ref,
                  pa, pb, pc, *, H, W, Cin, C, KS, L, use_res, matmul_dtype):
    """Entire Block for one batch element, activations resident in VMEM.

    x_ref:    (H, W, Cin)        input image (NHWC slice)
    up_w_ref: (Cin, C)           1x1 conv weight
    up_b_ref: (1, C)             1x1 conv bias
    w_ref:    (L, KS, KS, C, C)  stacked 3x3 conv weights (HWIO per layer)
    b_ref:    (L, 1, C)          stacked 3x3 conv biases
    wt_ref:   (1,) in SMEM       residual weight
    o_ref:    (H, W, C)          output
    pa/pb/pc: (Hp, Wp, C) f32    padded VMEM scratch (pa holds x_up for the
                                 residual; pb/pc ping-pong between layers)
    """
    pad = KS // 2
    HW = H * W

    # Zero the padded scratch every grid step: only interiors are written
    # below, so borders provide the "same" zero padding. Re-zeroing per step
    # keeps this correct when the batch axis is sharded across TensorCores,
    # and costs ~nothing next to the 27 matmuls.
    pa[...] = jnp.zeros_like(pa)
    pb[...] = jnp.zeros_like(pb)
    pc[...] = jnp.zeros_like(pc)

    # ---- 1x1 upchannel: Cin is tiny (4), so use VPU broadcast-FMAs and keep
    # the MXU for the 3x3 convs.
    x2 = x_ref[...].reshape(HW, Cin)                       # (HW, Cin) f32
    x_up = jnp.zeros((HW, C), jnp.float32) + up_b_ref[...]
    for ci in range(Cin):                                  # static unroll
        x_up = x_up + x2[:, ci:ci + 1] * up_w_ref[ci:ci + 1, :]

    # Store the upchannel result into the interior of pa (padded); pa is kept
    # untouched afterwards so it also serves as the residual source.
    pa[pl.ds(pad, H), pl.ds(pad, W), :] = x_up.reshape(H, W, C)

    # ---- num_convs x (3x3 same conv + bias + ReLU), statically unrolled.
    # Each layer is KS*KS whole-image shifted-patch matmuls (HW, C) @ (C, C),
    # accumulated in f32.
    src = pa
    ping_pong = (pb, pc)
    for layer in range(L):
        acc = jnp.zeros((HW, C), jnp.float32) + b_ref[layer]        # (HW, C)
        for kh in range(KS):
            for kw in range(KS):
                patch = src[pl.ds(kh, H), pl.ds(kw, W), :].reshape(HW, C)
                wtap = w_ref[layer, kh, kw]                          # (C, C)
                if matmul_dtype != jnp.float32:
                    patch = patch.astype(matmul_dtype)
                acc = acc + jnp.dot(patch, wtap,
                                    preferred_element_type=jnp.float32)
        acc = jnp.maximum(acc, 0.0)                                  # ReLU

        if layer < L - 1:
            dst = ping_pong[layer % 2]
            dst[pl.ds(pad, H), pl.ds(pad, W), :] = acc.reshape(H, W, C)
            src = dst
        else:
            if use_res:
                rw = wt_ref[0]                                       # one SMEM read
                res = pa[pl.ds(pad, H), pl.ds(pad, W), :].reshape(HW, C)
                acc = acc + rw * res                                 # out + weight*x
            o_ref[...] = acc.reshape(H, W, C)


# ------------------------------- JAX wrapper --------------------------------

def block_forward(x_nchw, params, use_weight=True, use_res=True,
                  matmul_dtype=jnp.float32):
    """Fused Block forward. x_nchw: (N, Cin, H, W) -> (N, C, H, W)."""
    N, Cin, H, W = x_nchw.shape
    C = params["up_w"].shape[1]
    L = len(params["conv_w"])
    KS = params["conv_w"][0].shape[0]
    pad = KS // 2
    Hp, Wp = H + 2 * pad, W + 2 * pad

    x = jnp.transpose(x_nchw, (0, 2, 3, 1))                 # NCHW -> NHWC (tiny)

    w_all = jnp.stack(params["conv_w"])                     # (L, KS, KS, C, C)
    if matmul_dtype != jnp.float32:
        w_all = w_all.astype(matmul_dtype)
    b_all = jnp.stack(params["conv_b"]).reshape(L, 1, C)    # (L, 1, C)
    up_b = params["up_b"].reshape(1, C)
    rw = (params["res_weight"] if use_weight
          else jnp.ones((1,), jnp.float32)).astype(jnp.float32)

    kernel = functools.partial(
        _block_kernel, H=H, W=W, Cin=Cin, C=C, KS=KS, L=L,
        use_res=use_res, matmul_dtype=matmul_dtype)

    out = pl.pallas_call(
        kernel,
        out_shape=jax.ShapeDtypeStruct((N, H, W, C), jnp.float32),
        grid=(N,),
        in_specs=[
            pl.BlockSpec((None, H, W, Cin), lambda n: (n, 0, 0, 0)),   # x
            pl.BlockSpec((Cin, C), lambda n: (0, 0)),                  # up_w
            pl.BlockSpec((1, C), lambda n: (0, 0)),                    # up_b
            pl.BlockSpec((L, KS, KS, C, C), lambda n: (0, 0, 0, 0, 0)),# conv w
            pl.BlockSpec((L, 1, C), lambda n: (0, 0, 0)),              # conv b
            pl.BlockSpec(memory_space=pltpu.MemorySpace.SMEM),         # res wt
        ],
        out_specs=pl.BlockSpec((None, H, W, C), lambda n: (n, 0, 0, 0)),
        scratch_shapes=[pltpu.VMEM((Hp, Wp, C), jnp.float32)
                        for _ in range(3)],
        compiler_params=pltpu.CompilerParams(
            dimension_semantics=("parallel",)),   # 2 TCs on v7x get work
    )(x, params["up_w"], up_b, w_all, b_all, rw)

    return jnp.transpose(out, (0, 3, 1, 2))                 # NHWC -> NCHW


# ------------------------------ Parameters etc ------------------------------

def init_block_params(key, in_channels, channels, num_convs=3, kernel_size=3):
    keys = jax.random.split(key, 2 * num_convs + 3)
    params = {
        "up_w": 0.5 * jax.random.normal(keys[0], (in_channels, channels),
                                        jnp.float32),
        "up_b": 0.1 * jax.random.normal(keys[1], (channels,), jnp.float32),
        "conv_w": [],
        "conv_b": [],
        "res_weight": jax.random.normal(keys[2], (1,), jnp.float32),  # randn(1)
    }
    scale = 1.0 / math.sqrt(kernel_size * kernel_size * channels)
    for i in range(num_convs):
        params["conv_w"].append(
            scale * jax.random.normal(
                keys[3 + 2 * i],
                (kernel_size, kernel_size, channels, channels), jnp.float32))
        params["conv_b"].append(
            0.1 * jax.random.normal(keys[4 + 2 * i], (channels,), jnp.float32))
    return params


def block_forward_reference(x_nchw, params, use_weight=True, use_res=True):
    """Pure-JAX (XLA) reference for validation."""
    x = jnp.transpose(x_nchw, (0, 2, 3, 1))
    x = jnp.einsum("nhwc,cd->nhwd", x, params["up_w"]) + params["up_b"]
    out = x
    for w, b in zip(params["conv_w"], params["conv_b"]):
        pad = w.shape[0] // 2
        out = jax.lax.conv_general_dilated(
            out, w, window_strides=(1, 1),
            padding=((pad, pad), (pad, pad)),
            dimension_numbers=("NHWC", "HWIO", "NHWC"))
        out = jnp.maximum(out + b, 0.0)
    if use_res:
        out = out + (params["res_weight"][0] if use_weight else 1.0) * x
    return jnp.transpose(out, (0, 3, 1, 2))


# ----------------------------------- main -----------------------------------

if __name__ == "__main__":
    N, Cin, C, H, W = 2, 4, 32, 16, 16
    key = jax.random.PRNGKey(0)
    kx, kp = jax.random.split(key)

    x = jax.random.normal(kx, (N, Cin, H, W), jnp.float32)    # NCHW input
    params = init_block_params(kp, Cin, C, num_convs=3, kernel_size=3)

    fwd = jax.jit(block_forward)
    y = jax.block_until_ready(fwd(x, params))
    y_ref = jax.block_until_ready(block_forward_reference(x, params))

    assert y.shape == (N, C, H, W), y.shape
    err = float(jnp.max(jnp.abs(y - y_ref)))
    if not (err < 2e-3):
        raise AssertionError(f"Pallas result mismatch, max abs err = {err}")
    print("KERNEL_OK")
</pallas_src>

<mosaic_0001>
module attributes {stable_mosaic.version = 11 : i64} {
  func.func @_block_kernel(%arg0: i32, %arg1: memref<1x16x16x4xf32, #tpu.memory_space<vmem>>, %arg2: memref<4x32xf32, #tpu.memory_space<vmem>>, %arg3: memref<1x32xf32, #tpu.memory_space<vmem>>, %arg4: memref<3x3x3x32x32xf32, #tpu.memory_space<vmem>>, %arg5: memref<3x1x32xf32, #tpu.memory_space<vmem>>, %arg6: memref<1xf32, #tpu.memory_space<smem>>, %arg7: memref<1x16x16x32xf32, #tpu.memory_space<vmem>>, %arg8: memref<18x18x32xf32, #tpu.memory_space<vmem>>, %arg9: memref<18x18x32xf32, #tpu.memory_space<vmem>>, %arg10: memref<18x18x32xf32, #tpu.memory_space<vmem>>) attributes {dimension_semantics = [#tpu.dimension_semantics<parallel>], iteration_bounds = array<i64: 2>, scalar_prefetch = 0 : i64, scratch_operands = 3 : i64, tpu.core_type = #tpu.core_type<tc>, window_params = [{transform_indices = @transform_0, window_bounds = array<i64: 1, 16, 16, 4>}, {pipeline_mode = #tpu.pipeline_mode<synchronous>, transform_indices = @transform_1, window_bounds = array<i64: 4, 32>}, {pipeline_mode = #tpu.pipeline_mode<synchronous>, transform_indices = @transform_2, window_bounds = array<i64: 1, 32>}, {pipeline_mode = #tpu.pipeline_mode<synchronous>, transform_indices = @transform_3, window_bounds = array<i64: 3, 3, 3, 32, 32>}, {pipeline_mode = #tpu.pipeline_mode<synchronous>, transform_indices = @transform_4, window_bounds = array<i64: 3, 1, 32>}, {transform_indices = @transform_5, window_bounds = array<i64: 1>}, {transform_indices = @transform_6, window_bounds = array<i64: 1, 16, 16, 32>}]} {
    %cst = arith.constant 0.000000e+00 : f32
    %0 = vector.broadcast %cst : f32 to vector<18x18x32xf32>
    %c0 = arith.constant 0 : index
    %c0_0 = arith.constant 0 : index
    %c0_1 = arith.constant 0 : index
    %1 = vector.load %arg8[%c0, %c0_0, %c0_1] : memref<18x18x32xf32, #tpu.memory_space<vmem>>, vector<18x18x32xf32>
    tpu.vector_store %arg8[%c0, %c0_0, %c0_1], %0 {strides = array<i32>} : memref<18x18x32xf32, #tpu.memory_space<vmem>>, vector<18x18x32xf32>,
    %cst_2 = arith.constant 0.000000e+00 : f32
    %2 = vector.broadcast %cst_2 : f32 to vector<18x18x32xf32>
    %c0_3 = arith.constant 0 : index
    %c0_4 = arith.constant 0 : index
    %c0_5 = arith.constant 0 : index
    %3 = vector.load %arg9[%c0_3, %c0_4, %c0_5] : memref<18x18x32xf32, #tpu.memory_space<vmem>>, vector<18x18x32xf32>
    tpu.vector_store %arg9[%c0_3, %c0_4, %c0_5], %2 {strides = array<i32>} : memref<18x18x32xf32, #tpu.memory_space<vmem>>, vector<18x18x32xf32>,
    %cst_6 = arith.constant 0.000000e+00 : f32
    %4 = vector.broadcast %cst_6 : f32 to vector<18x18x32xf32>
    %c0_7 = arith.constant 0 : index
    %c0_8 = arith.constant 0 : index
    %c0_9 = arith.constant 0 : index
    %5 = vector.load %arg10[%c0_7, %c0_8, %c0_9] : memref<18x18x32xf32, #tpu.memory_space<vmem>>, vector<18x18x32xf32>
    tpu.vector_store %arg10[%c0_7, %c0_8, %c0_9], %4 {strides = array<i32>} : memref<18x18x32xf32, #tpu.memory_space<vmem>>, vector<18x18x32xf32>,
    %c0_10 = arith.constant 0 : index
    %c0_11 = arith.constant 0 : index
    %c0_12 = arith.constant 0 : index
    %c0_13 = arith.constant 0 : index
    %6 = vector.load %arg1[%c0_10, %c0_11, %c0_12, %c0_13] : memref<1x16x16x4xf32, #tpu.memory_space<vmem>>, vector<1x16x16x4xf32>
    %7 = vector.shape_cast %6 : vector<1x16x16x4xf32> to vector<16x16x4xf32>
    %8 = vector.shape_cast %7 : vector<16x16x4xf32> to vector<256x4xf32>
    %cst_14 = arith.constant 0.000000e+00 : f32
    %9 = vector.broadcast %cst_14 : f32 to vector<256x32xf32>
    %c0_15 = arith.constant 0 : index
    %c0_16 = arith.constant 0 : index
    %10 = vector.load %arg3[%c0_15, %c0_16] : memref<1x32xf32, #tpu.memory_space<vmem>>, vector<1x32xf32>
    %11 = vector.broadcast %10 : vector<1x32xf32> to vector<256x32xf32>
    %12 = arith.addf %9, %11 : vector<256x32xf32>
    %13 = vector.extract_strided_slice %8 {offsets = [0, 0], sizes = [256, 1], strides = [1, 1]} : vector<256x4xf32> to vector<256x1xf32>
    %c0_17 = arith.constant 0 : index
    %c0_18 = arith.constant 0 : index
    %14 = vector.load %arg2[%c0_17, %c0_18] : memref<4x32xf32, #tpu.memory_space<vmem>>, vector<1x32xf32>
    %15 = vector.broadcast %13 : vector<256x1xf32> to vector<256x32xf32>
    %16 = vector.broadcast %14 : vector<1x32xf32> to vector<256x32xf32>
    %17 = arith.mulf %15, %16 : vector<256x32xf32>
    %18 = arith.addf %12, %17 : vector<256x32xf32>
    %19 = vector.extract_strided_slice %8 {offsets = [0, 1], sizes = [256, 1], strides = [1, 1]} : vector<256x4xf32> to vector<256x1xf32>
    %c1 = arith.constant 1 : index
    %c0_19 = arith.constant 0 : index
    %20 = vector.load %arg2[%c1, %c0_19] : memref<4x32xf32, #tpu.memory_space<vmem>>, vector<1x32xf32>
    %21 = vector.broadcast %19 : vector<256x1xf32> to vector<256x32xf32>
    %22 = vector.broadcast %20 : vector<1x32xf32> to vector<256x32xf32>
    %23 = arith.mulf %21, %22 : vector<256x32xf32>
    %24 = arith.addf %18, %23 : vector<256x32xf32>
    %25 = vector.extract_strided_slice %8 {offsets = [0, 2], sizes = [256, 1], strides = [1, 1]} : vector<256x4xf32> to vector<256x1xf32>
    %c2 = arith.constant 2 : index
    %c0_20 = arith.constant 0 : index
    %26 = vector.load %arg2[%c2, %c0_20] : memref<4x32xf32, #tpu.memory_space<vmem>>, vector<1x32xf32>
    %27 = vector.broadcast %25 : vector<256x1xf32> to vector<256x32xf32>
    %28 = vector.broadcast %26 : vector<1x32xf32> to vector<256x32xf32>
    %29 = arith.mulf %27, %28 : vector<256x32xf32>
    %30 = arith.addf %24, %29 : vector<256x32xf32>
    %31 = vector.extract_strided_slice %8 {offsets = [0, 3], sizes = [256, 1], strides = [1, 1]} : vector<256x4xf32> to vector<256x1xf32>
    %c3 = arith.constant 3 : index
    %c0_21 = arith.constant 0 : index
    %32 = vector.load %arg2[%c3, %c0_21] : memref<4x32xf32, #tpu.memory_space<vmem>>, vector<1x32xf32>
    %33 = vector.broadcast %31 : vector<256x1xf32> to vector<256x32xf32>
    %34 = vector.broadcast %32 : vector<1x32xf32> to vector<256x32xf32>
    %35 = arith.mulf %33, %34 : vector<256x32xf32>
    %36 = arith.addf %30, %35 : vector<256x32xf32>
    %37 = vector.shape_cast %36 : vector<256x32xf32> to vector<16x16x32xf32>
    %c1_22 = arith.constant 1 : index
    %c1_23 = arith.constant 1 : index
    %c0_24 = arith.constant 0 : index
    %38 = vector.load %arg8[%c1_22, %c1_23, %c0_24] : memref<18x18x32xf32, #tpu.memory_space<vmem>>, vector<16x16x32xf32>
    tpu.vector_store %arg8[%c1_22, %c1_23, %c0_24], %37 {strides = array<i32>} : memref<18x18x32xf32, #tpu.memory_space<vmem>>, vector<16x16x32xf32>,
    %cst_25 = arith.constant 0.000000e+00 : f32
    %39 = vector.broadcast %cst_25 : f32 to vector<256x32xf32>
    %c0_26 = arith.constant 0 : index
    %c0_27 = arith.constant 0 : index
    %c0_28 = arith.constant 0 : index
    %40 = vector.load %arg5[%c0_26, %c0_27, %c0_28] : memref<3x1x32xf32, #tpu.memory_space<vmem>>, vector<1x1x32xf32>
    %41 = vector.shape_cast %40 : vector<1x1x32xf32> to vector<1x32xf32>
    %42 = vector.broadcast %41 : vector<1x32xf32> to vector<256x32xf32>
    %43 = arith.addf %39, %42 : vector<256x32xf32>
    %c0_29 = arith.constant 0 : index
    %c0_30 = arith.constant 0 : index
    %c0_31 = arith.constant 0 : index
    %44 = vector.load %arg8[%c0_29, %c0_30, %c0_31] : memref<18x18x32xf32, #tpu.memory_space<vmem>>, vector<16x16x32xf32>
    %45 = vector.shape_cast %44 : vector<16x16x32xf32> to vector<256x32xf32>
    %c0_32 = arith.constant 0 : index
    %c0_33 = arith.constant 0 : index
    %c0_34 = arith.constant 0 : index
    %c0_35 = arith.constant 0 : index
    %c0_36 = arith.constant 0 : index
    %46 = vector.load %arg4[%c0_32, %c0_33, %c0_34, %c0_35, %c0_36] : memref<3x3x3x32x32xf32, #tpu.memory_space<vmem>>, vector<1x1x1x32x32xf32>
    %47 = vector.shape_cast %46 : vector<1x1x1x32x32xf32> to vector<32x32xf32>
    %cst_37 = arith.constant dense<0.000000e+00> : vector<256x32xf32>
    %48 = tpu.matmul %45, %47, %cst_37 {dimension_numbers = #tpu.dot_dimension_numbers<[1], [0], [0], [1], [0, 0, 1, 1], [], []>} : vector<256x32xf32>, vector<32x32xf32>, vector<256x32xf32> -> vector<256x32xf32>
    %49 = arith.addf %43, %48 : vector<256x32xf32>
    %c0_38 = arith.constant 0 : index
    %c1_39 = arith.constant 1 : index
    %c0_40 = arith.constant 0 : index
    %50 = vector.load %arg8[%c0_38, %c1_39, %c0_40] : memref<18x18x32xf32, #tpu.memory_space<vmem>>, vector<16x16x32xf32>
    %51 = vector.shape_cast %50 : vector<16x16x32xf32> to vector<256x32xf32>
    %c0_41 = arith.constant 0 : index
    %c0_42 = arith.constant 0 : index
    %c1_43 = arith.constant 1 : index
    %c0_44 = arith.constant 0 : index
    %c0_45 = arith.constant 0 : index
    %52 = vector.load %arg4[%c0_41, %c0_42, %c1_43, %c0_44, %c0_45] : memref<3x3x3x32x32xf32, #tpu.memory_space<vmem>>, vector<1x1x1x32x32xf32>
    %53 = vector.shape_cast %52 : vector<1x1x1x32x32xf32> to vector<32x32xf32>
    %cst_46 = arith.constant dense<0.000000e+00> : vector<256x32xf32>
    %54 = tpu.matmul %51, %53, %cst_46 {dimension_numbers = #tpu.dot_dimension_numbers<[1], [0], [0], [1], [0, 0, 1, 1], [], []>} : vector<256x32xf32>, vector<32x32xf32>, vector<256x32xf32> -> vector<256x32xf32>
    %55 = arith.addf %49, %54 : vector<256x32xf32>
    %c0_47 = arith.constant 0 : index
    %c2_48 = arith.constant 2 : index
    %c0_49 = arith.constant 0 : index
    %56 = vector.load %arg8[%c0_47, %c2_48, %c0_49] : memref<18x18x32xf32, #tpu.memory_space<vmem>>, vector<16x16x32xf32>
    %57 = vector.shape_cast %56 : vector<16x16x32xf32> to vector<256x32xf32>
    %c0_50 = arith.constant 0 : index
    %c0_51 = arith.constant 0 : index
    %c2_52 = arith.constant 2 : index
    %c0_53 = arith.constant 0 : index
    %c0_54 = arith.constant 0 : index
    %58 = vector.load %arg4[%c0_50, %c0_51, %c2_52, %c0_53, %c0_54] : memref<3x3x3x32x32xf32, #tpu.memory_space<vmem>>, vector<1x1x1x32x32xf32>
    %59 = vector.shape_cast %58 : vector<1x1x1x32x32xf32> to vector<32x32xf32>
    %cst_55 = arith.constant dense<0.000000e+00> : vector<256x32xf32>
    %60 = tpu.matmul %57, %59, %cst_55 {dimension_numbers = #tpu.dot_dimension_numbers<[1], [0], [0], [1], [0, 0, 1, 1], [], []>} : vector<256x32xf32>, vector<32x32xf32>, vector<256x32xf32> -> vector<256x32xf32>
    %61 = arith.addf %55, %60 : vector<256x32xf32>
    %c1_56 = arith.constant 1 : index
    %c0_57 = arith.constant 0 : index
    %c0_58 = arith.constant 0 : index
    %62 = vector.load %arg8[%c1_56, %c0_57, %c0_58] : memref<18x18x32xf32, #tpu.memory_space<vmem>>, vector<16x16x32xf32>
    %63 = vector.shape_cast %62 : vector<16x16x32xf32> to vector<256x32xf32>
    %c0_59 = arith.constant 0 : index
    %c1_60 = arith.constant 1 : index
    %c0_61 = arith.constant 0 : index
    %c0_62 = arith.constant 0 : index
    %c0_63 = arith.constant 0 : index
    %64 = vector.load %arg4[%c0_59, %c1_60, %c0_61, %c0_62, %c0_63] : memref<3x3x3x32x32xf32, #tpu.memory_space<vmem>>, vector<1x1x1x32x32xf32>
    %65 = vector.shape_cast %64 : vector<1x1x1x32x32xf32> to vector<32x32xf32>
    %cst_64 = arith.constant dense<0.000000e+00> : vector<256x32xf32>
    %66 = tpu.matmul %63, %65, %cst_64 {dimension_numbers = #tpu.dot_dimension_numbers<[1], [0], [0], [1], [0, 0, 1, 1], [], []>} : vector<256x32xf32>, vector<32x32xf32>, vector<256x32xf32> -> vector<256x32xf32>
    %67 = arith.addf %61, %66 : vector<256x32xf32>
    %c1_65 = arith.constant 1 : index
    %c1_66 = arith.constant 1 : index
    %c0_67 = arith.constant 0 : index
    %68 = vector.load %arg8[%c1_65, %c1_66, %c0_67] : memref<18x18x32xf32, #tpu.memory_space<vmem>>, vector<16x16x32xf32>
    %69 = vector.shape_cast %68 : vector<16x16x32xf32> to vector<256x32xf32>
    %c0_68 = arith.constant 0 : index
    %c1_69 = arith.constant 1 : index
    %c1_70 = arith.constant 1 : index
    %c0_71 = arith.constant 0 : index
    %c0_72 = arith.constant 0 : index
    %70 = vector.load %arg4[%c0_68, %c1_69, %c1_70, %c0_71, %c0_72] : memref<3x3x3x32x32xf32, #tpu.memory_space<vmem>>, vector<1x1x1x32x32xf32>
    %71 = vector.shape_cast %70 : vector<1x1x1x32x32xf32> to vector<32x32xf32>
    %cst_73 = arith.constant dense<0.000000e+00> : vector<256x32xf32>
    %72 = tpu.matmul %69, %71, %cst_73 {dimension_numbers = #tpu.dot_dimension_numbers<[1], [0], [0], [1], [0, 0, 1, 1], [], []>} : vector<256x32xf32>, vector<32x32xf32>, vector<256x32xf32> -> vector<256x32xf32>
    %73 = arith.addf %67, %72 : vector<256x32xf32>
    %c1_74 = arith.constant 1 : index
    %c2_75 = arith.constant 2 : index
    %c0_76 = arith.constant 0 : index
    %74 = vector.load %arg8[%c1_74, %c2_75, %c0_76] : memref<18x18x32xf32, #tpu.memory_space<vmem>>, vector<16x16x32xf32>
    %75 = vector.shape_cast %74 : vector<16x16x32xf32> to vector<256x32xf32>
    %c0_77 = arith.constant 0 : index
    %c1_78 = arith.constant 1 : index
    %c2_79 = arith.constant 2 : index
    %c0_80 = arith.constant 0 : index
    %c0_81 = arith.constant 0 : index
    %76 = vector.load %arg4[%c0_77, %c1_78, %c2_79, %c0_80, %c0_81] : memref<3x3x3x32x32xf32, #tpu.memory_space<vmem>>, vector<1x1x1x32x32xf32>
    %77 = vector.shape_cast %76 : vector<1x1x1x32x32xf32> to vector<32x32xf32>
    %cst_82 = arith.constant dense<0.000000e+00> : vector<256x32xf32>
    %78 = tpu.matmul %75, %77, %cst_82 {dimension_numbers = #tpu.dot_dimension_numbers<[1], [0], [0], [1], [0, 0, 1, 1], [], []>} : vector<256x32xf32>, vector<32x32xf32>, vector<256x32xf32> -> vector<256x32xf32>
    %79 = arith.addf %73, %78 : vector<256x32xf32>
    %c2_83 = arith.constant 2 : index
    %c0_84 = arith.constant 0 : index
    %c0_85 = arith.constant 0 : index
    %80 = vector.load %arg8[%c2_83, %c0_84, %c0_85] : memref<18x18x32xf32, #tpu.memory_space<vmem>>, vector<16x16x32xf32>
    %81 = vector.shape_cast %80 : vector<16x16x32xf32> to vector<256x32xf32>
    %c0_86 = arith.constant 0 : index
    %c2_87 = arith.constant 2 : index
    %c0_88 = arith.constant 0 : index
    %c0_89 = arith.constant 0 : index
    %c0_90 = arith.constant 0 : index
    %82 = vector.load %arg4[%c0_86, %c2_87, %c0_88, %c0_89, %c0_90] : memref<3x3x3x32x32xf32, #tpu.memory_space<vmem>>, vector<1x1x1x32x32xf32>
    %83 = vector.shape_cast %82 : vector<1x1x1x32x32xf32> to vector<32x32xf32>
    %cst_91 = arith.constant dense<0.000000e+00> : vector<256x32xf32>
    %84 = tpu.matmul %81, %83, %cst_91 {dimension_numbers = #tpu.dot_dimension_numbers<[1], [0], [0], [1], [0, 0, 1, 1], [], []>} : vector<256x32xf32>, vector<32x32xf32>, vector<256x32xf32> -> vector<256x32xf32>
    %85 = arith.addf %79, %84 : vector<256x32xf32>
    %c2_92 = arith.constant 2 : index
    %c1_93 = arith.constant 1 : index
    %c0_94 = arith.constant 0 : index
    %86 = vector.load %arg8[%c2_92, %c1_93, %c0_94] : memref<18x18x32xf32, #tpu.memory_space<vmem>>, vector<16x16x32xf32>
    %87 = vector.shape_cast %86 : vector<16x16x32xf32> to vector<256x32xf32>
    %c0_95 = arith.constant 0 : index
    %c2_96 = arith.constant 2 : index
    %c1_97 = arith.constant 1 : index
    %c0_98 = arith.constant 0 : index
    %c0_99 = arith.constant 0 : index
    %88 = vector.load %arg4[%c0_95, %c2_96, %c1_97, %c0_98, %c0_99] : memref<3x3x3x32x32xf32, #tpu.memory_space<vmem>>, vector<1x1x1x32x32xf32>
    %89 = vector.shape_cast %88 : vector<1x1x1x32x32xf32> to vector<32x32xf32>
    %cst_100 = arith.constant dense<0.000000e+00> : vector<256x32xf32>
    %90 = tpu.matmul %87, %89, %cst_100 {dimension_numbers = #tpu.dot_dimension_numbers<[1], [0], [0], [1], [0, 0, 1, 1], [], []>} : vector<256x32xf32>, vector<32x32xf32>, vector<256x32xf32> -> vector<256x32xf32>
    %91 = arith.addf %85, %90 : vector<256x32xf32>
    %c2_101 = arith.constant 2 : index
    %c2_102 = arith.constant 2 : index
    %c0_103 = arith.constant 0 : index
    %92 = vector.load %arg8[%c2_101, %c2_102, %c0_103] : memref<18x18x32xf32, #tpu.memory_space<vmem>>, vector<16x16x32xf32>
    %93 = vector.shape_cast %92 : vector<16x16x32xf32> to vector<256x32xf32>
    %c0_104 = arith.constant 0 : index
    %c2_105 = arith.constant 2 : index
    %c2_106 = arith.constant 2 : index
    %c0_107 = arith.constant 0 : index
    %c0_108 = arith.constant 0 : index
    %94 = vector.load %arg4[%c0_104, %c2_105, %c2_106, %c0_107, %c0_108] : memref<3x3x3x32x32xf32, #tpu.memory_space<vmem>>, vector<1x1x1x32x32xf32>
    %95 = vector.shape_cast %94 : vector<1x1x1x32x32xf32> to vector<32x32xf32>
    %cst_109 = arith.constant dense<0.000000e+00> : vector<256x32xf32>
    %96 = tpu.matmul %93, %95, %cst_109 {dimension_numbers = #tpu.dot_dimension_numbers<[1], [0], [0], [1], [0, 0, 1, 1], [], []>} : vector<256x32xf32>, vector<32x32xf32>, vector<256x32xf32> -> vector<256x32xf32>
    %97 = arith.addf %91, %96 : vector<256x32xf32>
    %cst_110 = arith.constant 0.000000e+00 : f32
    %98 = vector.broadcast %cst_110 : f32 to vector<256x32xf32>
    %99 = arith.maximumf %97, %98 : vector<256x32xf32>
    %100 = vector.shape_cast %99 : vector<256x32xf32> to vector<16x16x32xf32>
    %c1_111 = arith.constant 1 : index
    %c1_112 = arith.constant 1 : index
    %c0_113 = arith.constant 0 : index
    %101 = vector.load %arg9[%c1_111, %c1_112, %c0_113] : memref<18x18x32xf32, #tpu.memory_space<vmem>>, vector<16x16x32xf32>
    tpu.vector_store %arg9[%c1_111, %c1_112, %c0_113], %100 {strides = array<i32>} : memref<18x18x32xf32, #tpu.memory_space<vmem>>, vector<16x16x32xf32>,
    %cst_114 = arith.constant 0.000000e+00 : f32
    %102 = vector.broadcast %cst_114 : f32 to vector<256x32xf32>
    %c1_115 = arith.constant 1 : index
    %c0_116 = arith.constant 0 : index
    %c0_117 = arith.constant 0 : index
    %103 = vector.load %arg5[%c1_115, %c0_116, %c0_117] : memref<3x1x32xf32, #tpu.memory_space<vmem>>, vector<1x1x32xf32>
    %104 = vector.shape_cast %103 : vector<1x1x32xf32> to vector<1x32xf32>
    %105 = vector.broadcast %104 : vector<1x32xf32> to vector<256x32xf32>
    %106 = arith.addf %102, %105 : vector<256x32xf32>
    %c0_118 = arith.constant 0 : index
    %c0_119 = arith.constant 0 : index
    %c0_120 = arith.constant 0 : index
    %107 = vector.load %arg9[%c0_118, %c0_119, %c0_120] : memref<18x18x32xf32, #tpu.memory_space<vmem>>, vector<16x16x32xf32>
    %108 = vector.shape_cast %107 : vector<16x16x32xf32> to vector<256x32xf32>
    %c1_121 = arith.constant 1 : index
    %c0_122 = arith.constant 0 : index
    %c0_123 = arith.constant 0 : index
    %c0_124 = arith.constant 0 : index
    %c0_125 = arith.constant 0 : index
    %109 = vector.load %arg4[%c1_121, %c0_122, %c0_123, %c0_124, %c0_125] : memref<3x3x3x32x32xf32, #tpu.memory_space<vmem>>, vector<1x1x1x32x32xf32>
    %110 = vector.shape_cast %109 : vector<1x1x1x32x32xf32> to vector<32x32xf32>
    %cst_126 = arith.constant dense<0.000000e+00> : vector<256x32xf32>
    %111 = tpu.matmul %108, %110, %cst_126 {dimension_numbers = #tpu.dot_dimension_numbers<[1], [0], [0], [1], [0, 0, 1, 1], [], []>} : vector<256x32xf32>, vector<32x32xf32>, vector<256x32xf32> -> vector<256x32xf32>
    %112 = arith.addf %106, %111 : vector<256x32xf32>
    %c0_127 = arith.constant 0 : index
    %c1_128 = arith.constant 1 : index
    %c0_129 = arith.constant 0 : index
    %113 = vector.load %arg9[%c0_127, %c1_128, %c0_129] : memref<18x18x32xf32, #tpu.memory_space<vmem>>, vector<16x16x32xf32>
    %114 = vector.shape_cast %113 : vector<16x16x32xf32> to vector<256x32xf32>
    %c1_130 = arith.constant 1 : index
    %c0_131 = arith.constant 0 : index
    %c1_132 = arith.constant 1 : index
    %c0_133 = arith.constant 0 : index
    %c0_134 = arith.constant 0 : index
    %115 = vector.load %arg4[%c1_130, %c0_131, %c1_132, %c0_133, %c0_134] : memref<3x3x3x32x32xf32, #tpu.memory_space<vmem>>, vector<1x1x1x32x32xf32>
    %116 = vector.shape_cast %115 : vector<1x1x1x32x32xf32> to vector<32x32xf32>
    %cst_135 = arith.constant dense<0.000000e+00> : vector<256x32xf32>
    %117 = tpu.matmul %114, %116, %cst_135 {dimension_numbers = #tpu.dot_dimension_numbers<[1], [0], [0], [1], [0, 0, 1, 1], [], []>} : vector<256x32xf32>, vector<32x32xf32>, vector<256x32xf32> -> vector<256x32xf32>
    %118 = arith.addf %112, %117 : vector<256x32xf32>
    %c0_136 = arith.constant 0 : index
    %c2_137 = arith.constant 2 : index
    %c0_138 = arith.constant 0 : index
    %119 = vector.load %arg9[%c0_136, %c2_137, %c0_138] : memref<18x18x32xf32, #tpu.memory_space<vmem>>, vector<16x16x32xf32>
    %120 = vector.shape_cast %119 : vector<16x16x32xf32> to vector<256x32xf32>
    %c1_139 = arith.constant 1 : index
    %c0_140 = arith.constant 0 : index
    %c2_141 = arith.constant 2 : index
    %c0_142 = arith.constant 0 : index
    %c0_143 = arith.constant 0 : index
    %121 = vector.load %arg4[%c1_139, %c0_140, %c2_141, %c0_142, %c0_143] : memref<3x3x3x32x32xf32, #tpu.memory_space<vmem>>, vector<1x1x1x32x32xf32>
    %122 = vector.shape_cast %121 : vector<1x1x1x32x32xf32> to vector<32x32xf32>
    %cst_144 = arith.constant dense<0.000000e+00> : vector<256x32xf32>
    %123 = tpu.matmul %120, %122, %cst_144 {dimension_numbers = #tpu.dot_dimension_numbers<[1], [0], [0], [1], [0, 0, 1, 1], [], []>} : vector<256x32xf32>, vector<32x32xf32>, vector<256x32xf32> -> vector<256x32xf32>
    %124 = arith.addf %118, %123 : vector<256x32xf32>
    %c1_145 = arith.constant 1 : index
    %c0_146 = arith.constant 0 : index
    %c0_147 = arith.constant 0 : index
    %125 = vector.load %arg9[%c1_145, %c0_146, %c0_147] : memref<18x18x32xf32, #tpu.memory_space<vmem>>, vector<16x16x32xf32>
    %126 = vector.shape_cast %125 : vector<16x16x32xf32> to vector<256x32xf32>
    %c1_148 = arith.constant 1 : index
    %c1_149 = arith.constant 1 : index
    %c0_150 = arith.constant 0 : index
    %c0_151 = arith.constant 0 : index
    %c0_152 = arith.constant 0 : index
    %127 = vector.load %arg4[%c1_148, %c1_149, %c0_150, %c0_151, %c0_152] : memref<3x3x3x32x32xf32, #tpu.memory_space<vmem>>, vector<1x1x1x32x32xf32>
    %128 = vector.shape_cast %127 : vector<1x1x1x32x32xf32> to vector<32x32xf32>
    %cst_153 = arith.constant dense<0.000000e+00> : vector<256x32xf32>
    %129 = tpu.matmul %126, %128, %cst_153 {dimension_numbers = #tpu.dot_dimension_numbers<[1], [0], [0], [1], [0, 0, 1, 1], [], []>} : vector<256x32xf32>, vector<32x32xf32>, vector<256x32xf32> -> vector<256x32xf32>
    %130 = arith.addf %124, %129 : vector<256x32xf32>
    %c1_154 = arith.constant 1 : index
    %c1_155 = arith.constant 1 : index
    %c0_156 = arith.constant 0 : index
    %131 = vector.load %arg9[%c1_154, %c1_155, %c0_156] : memref<18x18x32xf32, #tpu.memory_space<vmem>>, vector<16x16x32xf32>
    %132 = vector.shape_cast %131 : vector<16x16x32xf32> to vector<256x32xf32>
    %c1_157 = arith.constant 1 : index
    %c1_158 = arith.constant 1 : index
    %c1_159 = arith.constant 1 : index
    %c0_160 = arith.constant 0 : index
    %c0_161 = arith.constant 0 : index
    %133 = vector.load %arg4[%c1_157, %c1_158, %c1_159, %c0_160, %c0_161] : memref<3x3x3x32x32xf32, #tpu.memory_space<vmem>>, vector<1x1x1x32x32xf32>
    %134 = vector.shape_cast %133 : vector<1x1x1x32x32xf32> to vector<32x32xf32>
    %cst_162 = arith.constant dense<0.000000e+00> : vector<256x32xf32>
    %135 = tpu.matmul %132, %134, %cst_162 {dimension_numbers = #tpu.dot_dimension_numbers<[1], [0], [0], [1], [0, 0, 1, 1], [], []>} : vector<256x32xf32>, vector<32x32xf32>, vector<256x32xf32> -> vector<256x32xf32>
    %136 = arith.addf %130, %135 : vector<256x32xf32>
    %c1_163 = arith.constant 1 : index
    %c2_164 = arith.constant 2 : index
    %c0_165 = arith.constant 0 : index
    %137 = vector.load %arg9[%c1_163, %c2_164, %c0_165] : memref<18x18x32xf32, #tpu.memory_space<vmem>>, vector<16x16x32xf32>
    %138 = vector.shape_cast %137 : vector<16x16x32xf32> to vector<256x32xf32>
    %c1_166 = arith.constant 1 : index
    %c1_167 = arith.constant 1 : index
    %c2_168 = arith.constant 2 : index
    %c0_169 = arith.constant 0 : index
    %c0_170 = arith.constant 0 : index
    %139 = vector.load %arg4[%c1_166, %c1_167, %c2_168, %c0_169, %c0_170] : memref<3x3x3x32x32xf32, #tpu.memory_space<vmem>>, vector<1x1x1x32x32xf32>
    %140 = vector.shape_cast %139 : vector<1x1x1x32x32xf32> to vector<32x32xf32>
    %cst_171 = arith.constant dense<0.000000e+00> : vector<256x32xf32>
    %141 = tpu.matmul %138, %140, %cst_171 {dimension_numbers = #tpu.dot_dimension_numbers<[1], [0], [0], [1], [0, 0, 1, 1], [], []>} : vector<256x32xf32>, vector<32x32xf32>, vector<256x32xf32> -> vector<256x32xf32>
    %142 = arith.addf %136, %141 : vector<256x32xf32>
    %c2_172 = arith.constant 2 : index
    %c0_173 = arith.constant 0 : index
    %c0_174 = arith.constant 0 : index
    %143 = vector.load %arg9[%c2_172, %c0_173, %c0_174] : memref<18x18x32xf32, #tpu.memory_space<vmem>>, vector<16x16x32xf32>
    %144 = vector.shape_cast %143 : vector<16x16x32xf32> to vector<256x32xf32>
    %c1_175 = arith.constant 1 : index
    %c2_176 = arith.constant 2 : index
    %c0_177 = arith.constant 0 : index
    %c0_178 = arith.constant 0 : index
    %c0_179 = arith.constant 0 : index
    %145 = vector.load %arg4[%c1_175, %c2_176, %c0_177, %c0_178, %c0_179] : memref<3x3x3x32x32xf32, #tpu.memory_space<vmem>>, vector<1x1x1x32x32xf32>
    %146 = vector.shape_cast %145 : vector<1x1x1x32x32xf32> to vector<32x32xf32>
    %cst_180 = arith.constant dense<0.000000e+00> : vector<256x32xf32>
    %147 = tpu.matmul %144, %146, %cst_180 {dimension_numbers = #tpu.dot_dimension_numbers<[1], [0], [0], [1], [0, 0, 1, 1], [], []>} : vector<256x32xf32>, vector<32x32xf32>, vector<256x32xf32> -> vector<256x32xf32>
    %148 = arith.addf %142, %147 : vector<256x32xf32>
    %c2_181 = arith.constant 2 : index
    %c1_182 = arith.constant 1 : index
    %c0_183 = arith.constant 0 : index
    %149 = vector.load %arg9[%c2_181, %c1_182, %c0_183] : memref<18x18x32xf32, #tpu.memory_space<vmem>>, vector<16x16x32xf32>
    %150 = vector.shape_cast %149 : vector<16x16x32xf32> to vector<256x32xf32>
    %c1_184 = arith.constant 1 : index
    %c2_185 = arith.constant 2 : index
    %c1_186 = arith.constant 1 : index
    %c0_187 = arith.constant 0 : index
    %c0_188 = arith.constant 0 : index
    %151 = vector.load %arg4[%c1_184, %c2_185, %c1_186, %c0_187, %c0_188] : memref<3x3x3x32x32xf32, #tpu.memory_space<vmem>>, vector<1x1x1x32x32xf32>
    %152 = vector.shape_cast %151 : vector<1x1x1x32x32xf32> to vector<32x32xf32>
    %cst_189 = arith.constant dense<0.000000e+00> : vector<256x32xf32>
    %153 = tpu.matmul %150, %152, %cst_189 {dimension_numbers = #tpu.dot_dimension_numbers<[1], [0], [0], [1], [0, 0, 1, 1], [], []>} : vector<256x32xf32>, vector<32x32xf32>, vector<256x32xf32> -> vector<256x32xf32>
    %154 = arith.addf %148, %153 : vector<256x32xf32>
    %c2_190 = arith.constant 2 : index
    %c2_191 = arith.constant 2 : index
    %c0_192 = arith.constant 0 : index
    %155 = vector.load %arg9[%c2_190, %c2_191, %c0_192] : memref<18x18x32xf32, #tpu.memory_space<vmem>>, vector<16x16x32xf32>
    %156 = vector.shape_cast %155 : vector<16x16x32xf32> to vector<256x32xf32>
    %c1_193 = arith.constant 1 : index
    %c2_194 = arith.constant 2 : index
    %c2_195 = arith.constant 2 : index
    %c0_196 = arith.constant 0 : index
    %c0_197 = arith.constant 0 : index
    %157 = vector.load %arg4[%c1_193, %c2_194, %c2_195, %c0_196, %c0_197] : memref<3x3x3x32x32xf32, #tpu.memory_space<vmem>>, vector<1x1x1x32x32xf32>
    %158 = vector.shape_cast %157 : vector<1x1x1x32x32xf32> to vector<32x32xf32>
    %cst_198 = arith.constant dense<0.000000e+00> : vector<256x32xf32>
    %159 = tpu.matmul %156, %158, %cst_198 {dimension_numbers = #tpu.dot_dimension_numbers<[1], [0], [0], [1], [0, 0, 1, 1], [], []>} : vector<256x32xf32>, vector<32x32xf32>, vector<256x32xf32> -> vector<256x32xf32>
    %160 = arith.addf %154, %159 : vector<256x32xf32>
    %cst_199 = arith.constant 0.000000e+00 : f32
    %161 = vector.broadcast %cst_199 : f32 to vector<256x32xf32>
    %162 = arith.maximumf %160, %161 : vector<256x32xf32>
    %163 = vector.shape_cast %162 : vector<256x32xf32> to vector<16x16x32xf32>
    %c1_200 = arith.constant 1 : index
    %c1_201 = arith.constant 1 : index
    %c0_202 = arith.constant 0 : index
    %164 = vector.load %arg10[%c1_200, %c1_201, %c0_202] : memref<18x18x32xf32, #tpu.memory_space<vmem>>, vector<16x16x32xf32>
    tpu.vector_store %arg10[%c1_200, %c1_201, %c0_202], %163 {strides = array<i32>} : memref<18x18x32xf32, #tpu.memory_space<vmem>>, vector<16x16x32xf32>,
    %cst_203 = arith.constant 0.000000e+00 : f32
    %165 = vector.broadcast %cst_203 : f32 to vector<256x32xf32>
    %c2_204 = arith.constant 2 : index
    %c0_205 = arith.constant 0 : index
    %c0_206 = arith.constant 0 : index
    %166 = vector.load %arg5[%c2_204, %c0_205, %c0_206] : memref<3x1x32xf32, #tpu.memory_space<vmem>>, vector<1x1x32xf32>
    %167 = vector.shape_cast %166 : vector<1x1x32xf32> to vector<1x32xf32>
    %168 = vector.broadcast %167 : vector<1x32xf32> to vector<256x32xf32>
    %169 = arith.addf %165, %168 : vector<256x32xf32>
    %c0_207 = arith.constant 0 : index
    %c0_208 = arith.constant 0 : index
    %c0_209 = arith.constant 0 : index
    %170 = vector.load %arg10[%c0_207, %c0_208, %c0_209] : memref<18x18x32xf32, #tpu.memory_space<vmem>>, vector<16x16x32xf32>
    %171 = vector.shape_cast %170 : vector<16x16x32xf32> to vector<256x32xf32>
    %c2_210 = arith.constant 2 : index
    %c0_211 = arith.constant 0 : index
    %c0_212 = arith.constant 0 : index
    %c0_213 = arith.constant 0 : index
    %c0_214 = arith.constant 0 : index
    %172 = vector.load %arg4[%c2_210, %c0_211, %c0_212, %c0_213, %c0_214] : memref<3x3x3x32x32xf32, #tpu.memory_space<vmem>>, vector<1x1x1x32x32xf32>
    %173 = vector.shape_cast %172 : vector<1x1x1x32x32xf32> to vector<32x32xf32>
    %cst_215 = arith.constant dense<0.000000e+00> : vector<256x32xf32>
    %174 = tpu.matmul %171, %173, %cst_215 {dimension_numbers = #tpu.dot_dimension_numbers<[1], [0], [0], [1], [0, 0, 1, 1], [], []>} : vector<256x32xf32>, vector<32x32xf32>, vector<256x32xf32> -> vector<256x32xf32>
    %175 = arith.addf %169, %174 : vector<256x32xf32>
    %c0_216 = arith.constant 0 : index
    %c1_217 = arith.constant 1 : index
    %c0_218 = arith.constant 0 : index
    %176 = vector.load %arg10[%c0_216, %c1_217, %c0_218] : memref<18x18x32xf32, #tpu.memory_space<vmem>>, vector<16x16x32xf32>
    %177 = vector.shape_cast %176 : vector<16x16x32xf32> to vector<256x32xf32>
    %c2_219 = arith.constant 2 : index
    %c0_220 = arith.constant 0 : index
    %c1_221 = arith.constant 1 : index
    %c0_222 = arith.constant 0 : index
    %c0_223 = arith.constant 0 : index
    %178 = vector.load %arg4[%c2_219, %c0_220, %c1_221, %c0_222, %c0_223] : memref<3x3x3x32x32xf32, #tpu.memory_space<vmem>>, vector<1x1x1x32x32xf32>
    %179 = vector.shape_cast %178 : vector<1x1x1x32x32xf32> to vector<32x32xf32>
    %cst_224 = arith.constant dense<0.000000e+00> : vector<256x32xf32>
    %180 = tpu.matmul %177, %179, %cst_224 {dimension_numbers = #tpu.dot_dimension_numbers<[1], [0], [0], [1], [0, 0, 1, 1], [], []>} : vector<256x32xf32>, vector<32x32xf32>, vector<256x32xf32> -> vector<256x32xf32>
    %181 = arith.addf %175, %180 : vector<256x32xf32>
    %c0_225 = arith.constant 0 : index
    %c2_226 = arith.constant 2 : index
    %c0_227 = arith.constant 0 : index
    %182 = vector.load %arg10[%c0_225, %c2_226, %c0_227] : memref<18x18x32xf32, #tpu.memory_space<vmem>>, vector<16x16x32xf32>
    %183 = vector.shape_cast %182 : vector<16x16x32xf32> to vector<256x32xf32>
    %c2_228 = arith.constant 2 : index
    %c0_229 = arith.constant 0 : index
    %c2_230 = arith.constant 2 : index
    %c0_231 = arith.constant 0 : index
    %c0_232 = arith.constant 0 : index
    %184 = vector.load %arg4[%c2_228, %c0_229, %c2_230, %c0_231, %c0_232] : memref<3x3x3x32x32xf32, #tpu.memory_space<vmem>>, vector<1x1x1x32x32xf32>
    %185 = vector.shape_cast %184 : vector<1x1x1x32x32xf32> to vector<32x32xf32>
    %cst_233 = arith.constant dense<0.000000e+00> : vector<256x32xf32>
    %186 = tpu.matmul %183, %185, %cst_233 {dimension_numbers = #tpu.dot_dimension_numbers<[1], [0], [0], [1], [0, 0, 1, 1], [], []>} : vector<256x32xf32>, vector<32x32xf32>, vector<256x32xf32> -> vector<256x32xf32>
    %187 = arith.addf %181, %186 : vector<256x32xf32>
    %c1_234 = arith.constant 1 : index
    %c0_235 = arith.constant 0 : index
    %c0_236 = arith.constant 0 : index
    %188 = vector.load %arg10[%c1_234, %c0_235, %c0_236] : memref<18x18x32xf32, #tpu.memory_space<vmem>>, vector<16x16x32xf32>
    %189 = vector.shape_cast %188 : vector<16x16x32xf32> to vector<256x32xf32>
    %c2_237 = arith.constant 2 : index
    %c1_238 = arith.constant 1 : index
    %c0_239 = arith.constant 0 : index
    %c0_240 = arith.constant 0 : index
    %c0_241 = arith.constant 0 : index
    %190 = vector.load %arg4[%c2_237, %c1_238, %c0_239, %c0_240, %c0_241] : memref<3x3x3x32x32xf32, #tpu.memory_space<vmem>>, vector<1x1x1x32x32xf32>
    %191 = vector.shape_cast %190 : vector<1x1x1x32x32xf32> to vector<32x32xf32>
    %cst_242 = arith.constant dense<0.000000e+00> : vector<256x32xf32>
    %192 = tpu.matmul %189, %191, %cst_242 {dimension_numbers = #tpu.dot_dimension_numbers<[1], [0], [0], [1], [0, 0, 1, 1], [], []>} : vector<256x32xf32>, vector<32x32xf32>, vector<256x32xf32> -> vector<256x32xf32>
    %193 = arith.addf %187, %192 : vector<256x32xf32>
    %c1_243 = arith.constant 1 : index
    %c1_244 = arith.constant 1 : index
    %c0_245 = arith.constant 0 : index
    %194 = vector.load %arg10[%c1_243, %c1_244, %c0_245] : memref<18x18x32xf32, #tpu.memory_space<vmem>>, vector<16x16x32xf32>
    %195 = vector.shape_cast %194 : vector<16x16x32xf32> to vector<256x32xf32>
    %c2_246 = arith.constant 2 : index
    %c1_247 = arith.constant 1 : index
    %c1_248 = arith.constant 1 : index
    %c0_249 = arith.constant 0 : index
    %c0_250 = arith.constant 0 : index
    %196 = vector.load %arg4[%c2_246, %c1_247, %c1_248, %c0_249, %c0_250] : memref<3x3x3x32x32xf32, #tpu.memory_space<vmem>>, vector<1x1x1x32x32xf32>
    %197 = vector.shape_cast %196 : vector<1x1x1x32x32xf32> to vector<32x32xf32>
    %cst_251 = arith.constant dense<0.000000e+00> : vector<256x32xf32>
    %198 = tpu.matmul %195, %197, %cst_251 {dimension_numbers = #tpu.dot_dimension_numbers<[1], [0], [0], [1], [0, 0, 1, 1], [], []>} : vector<256x32xf32>, vector<32x32xf32>, vector<256x32xf32> -> vector<256x32xf32>
    %199 = arith.addf %193, %198 : vector<256x32xf32>
    %c1_252 = arith.constant 1 : index
    %c2_253 = arith.constant 2 : index
    %c0_254 = arith.constant 0 : index
    %200 = vector.load %arg10[%c1_252, %c2_253, %c0_254] : memref<18x18x32xf32, #tpu.memory_space<vmem>>, vector<16x16x32xf32>
    %201 = vector.shape_cast %200 : vector<16x16x32xf32> to vector<256x32xf32>
    %c2_255 = arith.constant 2 : index
    %c1_256 = arith.constant 1 : index
    %c2_257 = arith.constant 2 : index
    %c0_258 = arith.constant 0 : index
    %c0_259 = arith.constant 0 : index
    %202 = vector.load %arg4[%c2_255, %c1_256, %c2_257, %c0_258, %c0_259] : memref<3x3x3x32x32xf32, #tpu.memory_space<vmem>>, vector<1x1x1x32x32xf32>
    %203 = vector.shape_cast %202 : vector<1x1x1x32x32xf32> to vector<32x32xf32>
    %cst_260 = arith.constant dense<0.000000e+00> : vector<256x32xf32>
    %204 = tpu.matmul %201, %203, %cst_260 {dimension_numbers = #tpu.dot_dimension_numbers<[1], [0], [0], [1], [0, 0, 1, 1], [], []>} : vector<256x32xf32>, vector<32x32xf32>, vector<256x32xf32> -> vector<256x32xf32>
    %205 = arith.addf %199, %204 : vector<256x32xf32>
    %c2_261 = arith.constant 2 : index
    %c0_262 = arith.constant 0 : index
    %c0_263 = arith.constant 0 : index
    %206 = vector.load %arg10[%c2_261, %c0_262, %c0_263] : memref<18x18x32xf32, #tpu.memory_space<vmem>>, vector<16x16x32xf32>
    %207 = vector.shape_cast %206 : vector<16x16x32xf32> to vector<256x32xf32>
    %c2_264 = arith.constant 2 : index
    %c2_265 = arith.constant 2 : index
    %c0_266 = arith.constant 0 : index
    %c0_267 = arith.constant 0 : index
    %c0_268 = arith.constant 0 : index
    %208 = vector.load %arg4[%c2_264, %c2_265, %c0_266, %c0_267, %c0_268] : memref<3x3x3x32x32xf32, #tpu.memory_space<vmem>>, vector<1x1x1x32x32xf32>
    %209 = vector.shape_cast %208 : vector<1x1x1x32x32xf32> to vector<32x32xf32>
    %cst_269 = arith.constant dense<0.000000e+00> : vector<256x32xf32>
    %210 = tpu.matmul %207, %209, %cst_269 {dimension_numbers = #tpu.dot_dimension_numbers<[1], [0], [0], [1], [0, 0, 1, 1], [], []>} : vector<256x32xf32>, vector<32x32xf32>, vector<256x32xf32> -> vector<256x32xf32>
    %211 = arith.addf %205, %210 : vector<256x32xf32>
    %c2_270 = arith.constant 2 : index
    %c1_271 = arith.constant 1 : index
    %c0_272 = arith.constant 0 : index
    %212 = vector.load %arg10[%c2_270, %c1_271, %c0_272] : memref<18x18x32xf32, #tpu.memory_space<vmem>>, vector<16x16x32xf32>
    %213 = vector.shape_cast %212 : vector<16x16x32xf32> to vector<256x32xf32>
    %c2_273 = arith.constant 2 : index
    %c2_274 = arith.constant 2 : index
    %c1_275 = arith.constant 1 : index
    %c0_276 = arith.constant 0 : index
    %c0_277 = arith.constant 0 : index
    %214 = vector.load %arg4[%c2_273, %c2_274, %c1_275, %c0_276, %c0_277] : memref<3x3x3x32x32xf32, #tpu.memory_space<vmem>>, vector<1x1x1x32x32xf32>
    %215 = vector.shape_cast %214 : vector<1x1x1x32x32xf32> to vector<32x32xf32>
    %cst_278 = arith.constant dense<0.000000e+00> : vector<256x32xf32>
    %216 = tpu.matmul %213, %215, %cst_278 {dimension_numbers = #tpu.dot_dimension_numbers<[1], [0], [0], [1], [0, 0, 1, 1], [], []>} : vector<256x32xf32>, vector<32x32xf32>, vector<256x32xf32> -> vector<256x32xf32>
    %217 = arith.addf %211, %216 : vector<256x32xf32>
    %c2_279 = arith.constant 2 : index
    %c2_280 = arith.constant 2 : index
    %c0_281 = arith.constant 0 : index
    %218 = vector.load %arg10[%c2_279, %c2_280, %c0_281] : memref<18x18x32xf32, #tpu.memory_space<vmem>>, vector<16x16x32xf32>
    %219 = vector.shape_cast %218 : vector<16x16x32xf32> to vector<256x32xf32>
    %c2_282 = arith.constant 2 : index
    %c2_283 = arith.constant 2 : index
    %c2_284 = arith.constant 2 : index
    %c0_285 = arith.constant 0 : index
    %c0_286 = arith.constant 0 : index
    %220 = vector.load %arg4[%c2_282, %c2_283, %c2_284, %c0_285, %c0_286] : memref<3x3x3x32x32xf32, #tpu.memory_space<vmem>>, vector<1x1x1x32x32xf32>
    %221 = vector.shape_cast %220 : vector<1x1x1x32x32xf32> to vector<32x32xf32>
    %cst_287 = arith.constant dense<0.000000e+00> : vector<256x32xf32>
    %222 = tpu.matmul %219, %221, %cst_287 {dimension_numbers = #tpu.dot_dimension_numbers<[1], [0], [0], [1], [0, 0, 1, 1], [], []>} : vector<256x32xf32>, vector<32x32xf32>, vector<256x32xf32> -> vector<256x32xf32>
    %223 = arith.addf %217, %222 : vector<256x32xf32>
    %cst_288 = arith.constant 0.000000e+00 : f32
    %224 = vector.broadcast %cst_288 : f32 to vector<256x32xf32>
    %225 = arith.maximumf %223, %224 : vector<256x32xf32>
    %c0_289 = arith.constant 0 : index
    %226 = memref.load %arg6[%c0_289] : memref<1xf32, #tpu.memory_space<smem>>
    %c1_290 = arith.constant 1 : index
    %c1_291 = arith.constant 1 : index
    %c0_292 = arith.constant 0 : index
    %227 = vector.load %arg8[%c1_290, %c1_291, %c0_292] : memref<18x18x32xf32, #tpu.memory_space<vmem>>, vector<16x16x32xf32>
    %228 = vector.shape_cast %227 : vector<16x16x32xf32> to vector<256x32xf32>
    %229 = vector.broadcast %226 : f32 to vector<256x32xf32>
    %230 = arith.mulf %229, %228 : vector<256x32xf32>
    %231 = arith.addf %225, %230 : vector<256x32xf32>
    %232 = vector.shape_cast %231 : vector<256x32xf32> to vector<16x16x32xf32>
    %c0_293 = arith.constant 0 : index
    %c0_294 = arith.constant 0 : index
    %c0_295 = arith.constant 0 : index
    %c0_296 = arith.constant 0 : index
    %233 = vector.load %arg7[%c0_293, %c0_294, %c0_295, %c0_296] : memref<1x16x16x32xf32, #tpu.memory_space<vmem>>, vector<1x16x16x32xf32>
    %234 = vector.shape_cast %233 : vector<1x16x16x32xf32> to vector<16x16x32xf32>
    %235 = vector.shape_cast %232 : vector<16x16x32xf32> to vector<1x16x16x32xf32>
    tpu.vector_store %arg7[%c0_293, %c0_294, %c0_295, %c0_296], %235 {strides = array<i32>} : memref<1x16x16x32xf32, #tpu.memory_space<vmem>>, vector<1x16x16x32xf32>,
    return
  }
  func.func @transform_0(%arg0: i32) -> (i32, i32, i32, i32) {
    %c0_i32 = arith.constant 0 : i32
    %c0_i32_0 = arith.constant 0 : i32
    %c0_i32_1 = arith.constant 0 : i32
    %c0_i32_2 = arith.constant 0 : i32
    return %arg0, %c0_i32, %c0_i32_0, %c0_i32_1 : i32, i32, i32, i32
  }
  func.func @transform_1(%arg0: i32) -> (i32, i32) {
    %c0_i32 = arith.constant 0 : i32
    %c0_i32_0 = arith.constant 0 : i32
    %c0_i32_1 = arith.constant 0 : i32
    return %c0_i32, %c0_i32_0 : i32, i32
  }
  func.func @transform_2(%arg0: i32) -> (i32, i32) {
    %c0_i32 = arith.constant 0 : i32
    %c0_i32_0 = arith.constant 0 : i32
    %c0_i32_1 = arith.constant 0 : i32
    return %c0_i32, %c0_i32_0 : i32, i32
  }
  func.func @transform_3(%arg0: i32) -> (i32, i32, i32, i32, i32) {
    %c0_i32 = arith.constant 0 : i32
    %c0_i32_0 = arith.constant 0 : i32
    %c0_i32_1 = arith.constant 0 : i32
    %c0_i32_2 = arith.constant 0 : i32
    %c0_i32_3 = arith.constant 0 : i32
    %c0_i32_4 = arith.constant 0 : i32
    return %c0_i32, %c0_i32_0, %c0_i32_1, %c0_i32_2, %c0_i32_3 : i32, i32, i32, i32, i32
  }
  func.func @transform_4(%arg0: i32) -> (i32, i32, i32) {
    %c0_i32 = arith.constant 0 : i32
    %c0_i32_0 = arith.constant 0 : i32
    %c0_i32_1 = arith.constant 0 : i32
    %c0_i32_2 = arith.constant 0 : i32
    return %c0_i32, %c0_i32_0, %c0_i32_1 : i32, i32, i32
  }
  func.func @transform_5(%arg0: i32) -> i32 {
    %c0_i32 = arith.constant 0 : i32
    %c0_i32_0 = arith.constant 0 : i32
    return %c0_i32 : i32
  }
  func.func @transform_6(%arg0: i32) -> (i32, i32, i32, i32) {
    %c0_i32 = arith.constant 0 : i32
    %c0_i32_0 = arith.constant 0 : i32
    %c0_i32_1 = arith.constant 0 : i32
    %c0_i32_2 = arith.constant 0 : i32
    return %arg0, %c0_i32, %c0_i32_0, %c0_i32_1 : i32, i32, i32, i32
  }
}

</mosaic_0001>

<bundles_post_ra>
// kernel: block_forward.1
= control target key start
LH: loop header
LB: loop body
LE: loop exit
PB: predicated region body
PF: predicated region fallthrough
CT: control target
= control target key end

     0   :  { %s21529_s0 = inlined_call_operand.vmem [shape: f32[2,16,16,4], index: 0, kind: input, shape index: {}]   ;;  %s21530_s1 = inlined_call_operand.vmem [shape: f32[4,32], index: 1, kind: input, shape index: {}]   ;;  %s21531_s2 = inlined_call_operand.vmem [shape: f32[1,32], index: 2, kind: input, shape index: {}]   ;;  %s21532_s3 = inlined_call_operand.vmem [shape: f32[3,3,3,32,32], index: 3, kind: input, shape index: {}]   ;;  %s21533_s4 = inlined_call_operand.vmem [shape: f32[3,1,32], index: 4, kind: input, shape index: {}]   ;;  %s21534_s5 = inlined_call_operand.<no memory space> [shape: f32[1], index: 5, kind: input, shape index: {}]   ;;  %s21535_s6 = inlined_call_operand.hbm [shape: f32[2,16,16,32], index: 6, kind: output, shape index: {}]  }
   0x1   :  { %11 = sst [smem:[#allocation5]] %s21534_s5 }
   0x2   :  { %12 = vsyncpa [#allocation7], 0 }
   0x3   :  { %14 = vsyncpa [#allocation7 + $0x1], 0  ;;  %s15966_s23 = smov 0   ;;  %s15968_s24 = smov 0  }
   0x4   :  { %s15970_s25 = smov 0   ;;  %s15972_s26 = smov 0  }
   0x5 LB: > { %s15987_s5 = sadd.s32 4294967295, %s15918_s26   ;;  %s12234_s27 = sadd.s32 4294967294, %s15918_s26   ;;  %s15918_s26 = sphi %s15972_s26, %s22117_s26   ;;  %s15914_s25 = sphi %s15970_s25, %s22116_s25   ;;  %s15910_s24 = sphi %s15968_s24, %s22115_s24   ;;  %s15906_s23 = sphi %s15966_s23, %s22114_s23  }
   0x6   : > { %s15991_s28 = sadd.s32 1, %s15918_s26   ;;  %s158_s29 = sadd.s32 1, %s15914_s25 }
   0x7   : > { %s155_s30 = ssub.s32 %s15918_s26, %s15991_s28  ;;  %p168_p0 = scmp.ne.s32.totalorder %s15914_s25, %s15910_s24 }
   0x8   : > { %p156_p1 = scmp.eq.s32.totalorder %s155_s30, 0  ;;  %p169_p2 = scmp.eq.s32.totalorder %s15987_s5, 1 }
   0x9   : > { %p174_p3 = scmp.ne.s32.totalorder %s15910_s24, %s15906_s23  ;;  %p175_p4 = scmp.eq.s32.totalorder %s12234_s27, 1 }
   0xa   : > { %s16002_s7 = scalar_select %p156_p1, %s15914_s25, %s158_s29  }
   0xb   : > { %p16004_p5 = por %p169_p2, %p168_p0  ;;  %p16008_p6 = por %p175_p4, %p174_p3 }
   0xc   : > { %p12237_p7 = scmp.ge.s32.totalorder %s15918_s26, 1  ;;  %p216_p8 = scmp.lt.s32.totalorder %s15918_s26, 3 }
   0xe   : > { %p217_p9 = pnand %p12237_p7, %p216_p8 }
  0x10   : > { %220 = sbr.rel (%p217_p9) target bundleno = 1938 (0x792), region = 44 }
  0x15   : > { %p246_p10 = scmp.lt.s32.totalorder %s15987_s5, 1  ;;  %v15920_v0 = vmov 1   ;;  %v15921_v6 = vmov 2   ;;  %v15922_v12 = vmov 0   ;;  %vm251_vm0 = vcmask 261120   ;;  %v1351_v23 = vld [vmem:[%s21532_s3 + $0x18] sm:$0xff] }
  0x16   : > { %15770 = vset.pattern.permute.xlu0 %v15920_v0  ;;  %15764 = vset.pattern.permute.xlu1 %v15920_v0  ;;  %vm254_vm1 = vcmask 254976   ;;  %v15923_v19 = vmov 0.0   ;;  %v15924_v20 = vmov 3   ;;  %v1350_v24 = vld [vmem:[%s21532_s3 + $0x10] sm:$0xff]  ;;  %v1349_v25 = vld [vmem:[%s21532_s3 + $0x8] sm:$0xff]  ;;  %v1348_v26 = vld [vmem:[%s21532_s3] sm:$0xff] }
  0x17   : > { %s247_s10 = scalar_select %p246_p10, %s15987_s5, 1  ;;  %281 = vst.msk [vmem:[#allocation2 + $0xe0] sm:$0xff] %vm251_vm0, %v15923_v19  ;;  %252 = vst.msk [vmem:[#allocation2] sm:$0xff] %vm251_vm0, %v15923_v19  ;;  %14198 = vmatprep.subr.mxu0 %v1351_v23  ;;  %15710 = vmatprep.subr.mxu1 %v1351_v23  ;;  %v16592_v61 = vld [vmem:[%s21530_s1 + $0x1] ss:$0 sm:$0xff] }
  0x18   : > { %282 = vst.msk [vmem:[#allocation2 + $0xe8] sm:$0x3] %vm254_vm1, %v15923_v19  ;;  %255 = vst.msk [vmem:[#allocation2 + $0x10] sm:$0x3] %vm254_vm1, %v15923_v19  ;;  %14199 = vmatpush3.msra.mxu0 %v1351_v23  ;;  %15714 = vmatpush3.msra.mxu1 %v1351_v23  ;;  %v16597_v62 = vld [vmem:[%s21530_s1] ss:$0 sm:$0xff] }
  0x19   : > { %s13224_s11 = sshll.u32 %s247_s10, 8  ;;  %253 = vst.msk [vmem:[#allocation2 + $0x8] sm:$0xff] %vm251_vm0, %v15923_v19  ;;  %256 = vst.msk [vmem:[#allocation2 + $0x18] sm:$0xff] %vm251_vm0, %v15923_v19  ;;  %14200 = vmatprep.subr.mxu0 %v1350_v24  ;;  %15711 = vmatprep.subr.mxu1 %v1350_v24  ;;  %s12028_s22 = sld [smem:[#allocation5]] }
  0x1a   : > { %s16021_s14 = scalar_lea.vmem %s21529_s0, %s13224_s11  ;;  %257 = vst.msk [vmem:[#allocation2 + $0x20] sm:$0xff] %vm251_vm0, %v15923_v19  ;;  %259 = vst.msk [vmem:[#allocation2 + $0x30] sm:$0xff] %vm251_vm0, %v15923_v19  ;;  %14201 = vmatpush3.msra.mxu0 %v1350_v24  ;;  %15715 = vmatpush3.msra.mxu1 %v1350_v24  ;;  %s243_s27 = sand.u32 1, %s15910_s24  }
  0x1b   : > { %v16024_v1 = vld [vmem:[%s16021_s14 + $0x70] sm:$0xff]  ;;  %v16027_v2 = vld [vmem:[%s16021_s14] sm:$0xff]  ;;  %v16032_v3 = vld [vmem:[%s16021_s14 + $0x78] sm:$0xff]  ;;  %258 = vst.msk [vmem:[#allocation2 + $0x28] sm:$0x3] %vm254_vm1, %v15923_v19  ;;  %14202 = vmatprep.subr.mxu0 %v1349_v25  ;;  %15712 = vmatprep.subr.mxu1 %v1349_v25  ;;  %s12238_s29 = sshll.u32 %s243_s27, 8 }
  0x1c   : > { %742 = vperm.xlu1 %15764, %v16024_v1   ;;  %686 = vperm.xlu0 %15770, %v16027_v2   ;;  %v16035_v4 = vld [vmem:[%s16021_s14 + $0x8] sm:$0xff]  ;;  %v16040_v5 = vld [vmem:[%s16021_s14 + $0x10] sm:$0xff]  ;;  %v16054_v9 = vld [vmem:[%s16021_s14 + $0x80] sm:$0xff]  ;;  %260 = vst.msk [vmem:[#allocation2 + $0x38] sm:$0xff] %vm251_vm0, %v15923_v19  ;;  %s21276_s30 = scalar_lea.vmem [#allocation6], %s12238_s29  ;;  %s13225_s10 = sshll.u32 %s15987_s5, 12 }
  0x1d   : > { %v16046_v7 = vld [vmem:[%s16021_s14 + $0xa8] sm:$0xff]  ;;  %v16051_v8 = vld [vmem:[%s16021_s14 + $0xb0] sm:$0xff]  ;;  %v16059_v10 = vld [vmem:[%s16021_s14 + $0x38] sm:$0xff]  ;;  %261 = vst.msk [vmem:[#allocation2 + $0x40] sm:$0x3] %vm254_vm1, %v15923_v19  ;;  %14203 = vmatpush3.msra.mxu0 %v1349_v25  ;;  %15716 = vmatpush3.msra.mxu1 %v1349_v25  ;;  %s12172_s11 = sshll.u32 %s21276_s30, 4  ;;  %s21479_s15 = scalar_lea.hbm %s21535_s6, %s13225_s10  ;;  %s21481_s11 = int_to_ptr.vmem [resolvable:$true] %s12172_s11 }
  0x1e   : > { %v16064_v11 = vld [vmem:[%s16021_s14 + $0x40] sm:$0xff]  ;;  %v16070_v13 = vld [vmem:[%s16021_s14 + $0x88] sm:$0xff]  ;;  %v16073_v14 = vld [vmem:[%s16021_s14 + $0xd8] sm:$0xff]  ;;  %262 = vst.msk [vmem:[#allocation2 + $0x48] sm:$0xff] %vm251_vm0, %v15923_v19  ;;  %14204 = vmatprep.subr.mxu0 %v1348_v26  ;;  %15713 = vmatprep.subr.mxu1 %v1348_v26  ;;  %s21489_s5 = scalar_lea.sflag [#allocation7], %s243_s27  ;;  %s15858_s16 = scalar_lea.vmem %s21481_s11, 4096 }
  0x1f   : > { %v16079_v15 = vld [vmem:[%s16021_s14 + $0xe0] sm:$0xff]  ;;  %v16082_v16 = vld [vmem:[%s16021_s14 + $0x90] sm:$0xff]  ;;  %v16092_v17 = vld [vmem:[%s16021_s14 + $0x98] sm:$0xff]  ;;  %263 = vst.msk [vmem:[#allocation2 + $0x50] sm:$0xff] %vm251_vm0, %v15923_v19  ;;  %14205 = vmatpush3.msra.mxu0 %v1348_v26  ;;  %15717 = vmatpush3.msra.mxu1 %v1348_v26  ;;  %p15859_p11 = scmp.ne.s32.totalorder %s21481_s11, %s15858_s16  ;;  %s15925_s17 = smov [#allocation6]  }
  0x20   : > { %746 = vperm.xlu1 %15764, %v16032_v3   ;;  %690 = vperm.xlu0 %15770, %v16035_v4   ;;  %v16108_v18 = vld [vmem:[%s16021_s14 + $0x18] sm:$0xff]  ;;  %264 = vst.msk [vmem:[#allocation2 + $0x58] sm:$0x3] %vm254_vm1, %v15923_v19  ;;  %267 = vst.msk [vmem:[#allocation2 + $0x70] sm:$0x3] %vm254_vm1, %v15923_v19  ;;  %v16445_v21 = vld [vmem:[%s16021_s14 + $0xa0] sm:$0xff] }
  0x21   : > { %265 = vst.msk [vmem:[#allocation2 + $0x60] sm:$0xff] %vm251_vm0, %v15923_v19  ;;  %266 = vst.msk [vmem:[#allocation2 + $0x68] sm:$0xff] %vm251_vm0, %v15923_v19  ;;  %v16453_v22 = vld [vmem:[%s16021_s14 + $0x68] sm:$0xff]  ;;  %v1316_v27 = vld [vmem:[#allocation2] sm:$0xff]  ;;  %p15860_p12 = pnand %p15859_p11, %p16004_p5  ;;  %s15862_s18 = sshll.u32 %s15925_s17, 4  ;;  %s15863_s18 = int_to_ptr.vmem [resolvable:$false] %s15862_s18 }
  0x22   : > { %268 = vst.msk [vmem:[#allocation2 + $0x78] sm:$0xff] %vm251_vm0, %v15923_v19  ;;  %269 = vst.msk [vmem:[#allocation2 + $0x80] sm:$0xff] %vm251_vm0, %v15923_v19  ;;  %v1317_v28 = vld [vmem:[#allocation2 + $0x8] sm:$0xff]  ;;  %14206 = vmatprep.mubr.msk.f32.mxu0 %vm251_vm0, %v1316_v27  ;;  %v16482_v29 = vld [vmem:[%s16021_s14 + $0x20] sm:$0xff]  ;;  %p15865_p0 = scmp.lt.s32.totalorder %s21481_s11, %s15863_s18 }
  0x23   : > { %270 = vst.msk [vmem:[#allocation2 + $0x88] sm:$0x3] %vm254_vm1, %v15923_v19  ;;  %273 = vst.msk [vmem:[#allocation2 + $0xa0] sm:$0x3] %vm254_vm1, %v15923_v19  ;;  %14207 = vmatmul.mubr.msk.f32.vlgmr.msra.gmra.mxu0 %vm251_vm0, %v1317_v28  ;;  %v16495_v30 = vld [vmem:[%s16021_s14 + $0x28] sm:$0xff]  ;;  %v16532_v41 = vld [vmem:[%s16021_s14 + $0xb8] sm:$0xff]  ;;  %p15861_p13 = pneg %p15860_p12 }
  0x24   : > { %15765 = vset.pattern.permute.xlu1 %v15921_v6  ;;  %694 = vperm.xlu0 %15770, %v16040_v5   ;;  %271 = vst.msk [vmem:[#allocation2 + $0x90] sm:$0xff] %vm251_vm0, %v15923_v19  ;;  %272 = vst.msk [vmem:[#allocation2 + $0x98] sm:$0xff] %vm251_vm0, %v15923_v19  ;;  %v16498_v31 = vld [vmem:[%s16021_s14 + $0xe8] sm:$0xff]  ;;  %v16556_v49 = vld [vmem:[%s16021_s14 + $0x30] sm:$0xff] }
  0x25   : > { %939 = vperm.xlu1 %15765, %v16024_v1   ;;  %274 = vst.msk [vmem:[#allocation2 + $0xa8] sm:$0xff] %vm251_vm0, %v15923_v19  ;;  %275 = vst.msk [vmem:[#allocation2 + $0xb0] sm:$0xff] %vm251_vm0, %v15923_v19  ;;  %v16570_v53 = vld [vmem:[%s16021_s14 + $0x50] sm:$0xff]  ;;  %v16631_v23 = vld [vmem:[%s16021_s14 + $0x60] sm:$0xff] }
  0x26   : > { %276 = vst.msk [vmem:[#allocation2 + $0xb8] sm:$0x3] %vm254_vm1, %v15923_v19  ;;  %279 = vst.msk [vmem:[#allocation2 + $0xd0] sm:$0x3] %vm254_vm1, %v15923_v19 }
  0x27   : > { %277 = vst.msk [vmem:[#allocation2 + $0xc0] sm:$0xff] %vm251_vm0, %v15923_v19  ;;  %278 = vst.msk [vmem:[#allocation2 + $0xc8] sm:$0xff] %vm251_vm0, %v15923_v19 }
  0x28   : > { %770 = vperm.xlu0 %15770, %v16046_v7   ;;  %280 = vst.msk [vmem:[#allocation2 + $0xd8] sm:$0xff] %vm251_vm0, %v15923_v19  ;;  %283 = vst.msk [vmem:[#allocation2 + $0xf0] sm:$0xff] %vm251_vm0, %v15923_v19 }
  0x29   : > { %943 = vperm.xlu1 %15765, %v16032_v3   ;;  %284 = vst.msk [vmem:[#allocation2 + $0xf8] sm:$0xff] %vm251_vm0, %v15923_v19  ;;  %286 = vst.msk [vmem:[#allocation2 + $0x108] sm:$0xff] %vm251_vm0, %v15923_v19 }
  0x2a   : > { %285 = vst.msk [vmem:[#allocation2 + $0x100] sm:$0x3] %vm254_vm1, %v15923_v19  ;;  %288 = vst.msk [vmem:[#allocation2 + $0x118] sm:$0x3] %vm254_vm1, %v15923_v19 }
  0x2b   : > { %287 = vst.msk [vmem:[#allocation2 + $0x110] sm:$0xff] %vm251_vm0, %v15923_v19  ;;  %289 = vst.msk [vmem:[#allocation2 + $0x120] sm:$0xff] %vm251_vm0, %v15923_v19 }
  0x2c   : > { %774 = vperm.xlu0 %15770, %v16051_v8   ;;  %290 = vst.msk [vmem:[#allocation2 + $0x128] sm:$0xff] %vm251_vm0, %v15923_v19  ;;  %292 = vst.msk [vmem:[#allocation2 + $0x138] sm:$0xff] %vm251_vm0, %v15923_v19 }
  0x2d   : > { %15766 = vset.pattern.permute.xlu1 %v15920_v0  ;;  %291 = vst.msk [vmem:[#allocation2 + $0x130] sm:$0x3] %vm254_vm1, %v15923_v19  ;;  %294 = vst.msk [vmem:[#allocation2 + $0x148] sm:$0x3] %vm254_vm1, %v15923_v19 }
  0x2e   : > { %750 = vperm.xlu1 %15766, %v16054_v9   ;;  %293 = vst.msk [vmem:[#allocation2 + $0x140] sm:$0xff] %vm251_vm0, %v15923_v19  ;;  %295 = vst.msk [vmem:[#allocation2 + $0x150] sm:$0xff] %vm251_vm0, %v15923_v19 }
  0x2f   : > { %296 = vst.msk [vmem:[#allocation2 + $0x158] sm:$0xff] %vm251_vm0, %v15923_v19  ;;  %298 = vst.msk [vmem:[#allocation2 + $0x168] sm:$0xff] %vm251_vm0, %v15923_v19 }
  0x30   : > { %714 = vperm.xlu0 %15770, %v16059_v10   ;;  %297 = vst.msk [vmem:[#allocation2 + $0x160] sm:$0x3] %vm254_vm1, %v15923_v19  ;;  %300 = vst.msk [vmem:[#allocation2 + $0x178] sm:$0x3] %vm254_vm1, %v15923_v19 }
  0x31   : > { %299 = vst.msk [vmem:[#allocation2 + $0x170] sm:$0xff] %vm251_vm0, %v15923_v19  ;;  %301 = vst.msk [vmem:[#allocation2 + $0x180] sm:$0xff] %vm251_vm0, %v15923_v19 }
  0x32   : > { %15767 = vset.pattern.permute.xlu1 %v15922_v12  ;;  %302 = vst.msk [vmem:[#allocation2 + $0x188] sm:$0xff] %vm251_vm0, %v15923_v19  ;;  %304 = vst.msk [vmem:[#allocation2 + $0x198] sm:$0xff] %vm251_vm0, %v15923_v19 }
  0x33   : > { %463 = vperm.xlu1 %15767, %v16035_v4   ;;  %303 = vst.msk [vmem:[#allocation2 + $0x190] sm:$0x3] %vm254_vm1, %v15923_v19  ;;  %306 = vst.msk [vmem:[#allocation2 + $0x1a8] sm:$0x3] %vm254_vm1, %v15923_v19 }
  0x34   : > { %718 = vperm.xlu0 %15770, %v16064_v11   ;;  %305 = vst.msk [vmem:[#allocation2 + $0x1a0] sm:$0xff] %vm251_vm0, %v15923_v19  ;;  %307 = vst.msk [vmem:[#allocation3] sm:$0xff] %vm251_vm0, %v15923_v19 }
  0x35   : > { %308 = vst.msk [vmem:[#allocation3 + $0x8] sm:$0xff] %vm251_vm0, %v15923_v19  ;;  %310 = vst.msk [vmem:[#allocation3 + $0x18] sm:$0xff] %vm251_vm0, %v15923_v19 }
  0x36   : > { %309 = vst.msk [vmem:[#allocation3 + $0x10] sm:$0x3] %vm254_vm1, %v15923_v19  ;;  %312 = vst.msk [vmem:[#allocation3 + $0x28] sm:$0x3] %vm254_vm1, %v15923_v19 }
  0x37   : > { %15768 = vset.pattern.permute.xlu1 %v15920_v0  ;;  %311 = vst.msk [vmem:[#allocation3 + $0x20] sm:$0xff] %vm251_vm0, %v15923_v19  ;;  %313 = vst.msk [vmem:[#allocation3 + $0x30] sm:$0xff] %vm251_vm0, %v15923_v19 }
  0x38   : > { %754 = vperm.xlu1 %15768, %v16070_v13   ;;  %794 = vperm.xlu0 %15770, %v16073_v14   ;;  %314 = vst.msk [vmem:[#allocation3 + $0x38] sm:$0xff] %vm251_vm0, %v15923_v19  ;;  %316 = vst.msk [vmem:[#allocation3 + $0x48] sm:$0xff] %vm251_vm0, %v15923_v19 }
  0x39   : > { %315 = vst.msk [vmem:[#allocation3 + $0x40] sm:$0x3] %vm254_vm1, %v15923_v19  ;;  %318 = vst.msk [vmem:[#allocation3 + $0x58] sm:$0x3] %vm254_vm1, %v15923_v19 }
  0x3a   : > { %317 = vst.msk [vmem:[#allocation3 + $0x50] sm:$0xff] %vm251_vm0, %v15923_v19  ;;  %319 = vst.msk [vmem:[#allocation3 + $0x60] sm:$0xff] %vm251_vm0, %v15923_v19 }
  0x3b   : > { %320 = vst.msk [vmem:[#allocation3 + $0x68] sm:$0xff] %vm251_vm0, %v15923_v19  ;;  %322 = vst.msk [vmem:[#allocation3 + $0x78] sm:$0xff] %vm251_vm0, %v15923_v19 }
  0x3c   : > { %15769 = vset.pattern.permute.xlu1 %v15922_v12  ;;  %798 = vperm.xlu0 %15770, %v16079_v15   ;;  %321 = vst.msk [vmem:[#allocation3 + $0x70] sm:$0x3] %vm254_vm1, %v15923_v19  ;;  %324 = vst.msk [vmem:[#allocation3 + $0x88] sm:$0x3] %vm254_vm1, %v15923_v19 }
  0x3d   : > { %548 = vperm.xlu1 %15769, %v16082_v16   ;;  %323 = vst.msk [vmem:[#allocation3 + $0x80] sm:$0xff] %vm251_vm0, %v15923_v19  ;;  %325 = vst.msk [vmem:[#allocation3 + $0x90] sm:$0xff] %vm251_vm0, %v15923_v19 }
  0x3e   : > { %326 = vst.msk [vmem:[#allocation3 + $0x98] sm:$0xff] %vm251_vm0, %v15923_v19  ;;  %328 = vst.msk [vmem:[#allocation3 + $0xa8] sm:$0xff] %vm251_vm0, %v15923_v19 }
  0x3f   : > { %327 = vst.msk [vmem:[#allocation3 + $0xa0] sm:$0x3] %vm254_vm1, %v15923_v19  ;;  %330 = vst.msk [vmem:[#allocation3 + $0xb8] sm:$0x3] %vm254_vm1, %v15923_v19 }
  0x40   : > { %15828 = vset.pattern.permute.xlu0 %v15922_v12  ;;  %329 = vst.msk [vmem:[#allocation3 + $0xb0] sm:$0xff] %vm251_vm0, %v15923_v19  ;;  %331 = vst.msk [vmem:[#allocation3 + $0xc0] sm:$0xff] %vm251_vm0, %v15923_v19 }
  0x41   : > { %15771 = vset.pattern.permute.xlu1 %v15921_v6  ;;  %528 = vperm.xlu0 %15828, %v16024_v1   ;;  %332 = vst.msk [vmem:[#allocation3 + $0xc8] sm:$0xff] %vm251_vm0, %v15923_v19  ;;  %334 = vst.msk [vmem:[#allocation3 + $0xd8] sm:$0xff] %vm251_vm0, %v15923_v19 }
  0x42   : > { %947 = vperm.xlu1 %15771, %v16054_v9   ;;  %333 = vst.msk [vmem:[#allocation3 + $0xd0] sm:$0x3] %vm254_vm1, %v15923_v19  ;;  %336 = vst.msk [vmem:[#allocation3 + $0xe8] sm:$0x3] %vm254_vm1, %v15923_v19 }
  0x43   : > { %335 = vst.msk [vmem:[#allocation3 + $0xe0] sm:$0xff] %vm251_vm0, %v15923_v19  ;;  %337 = vst.msk [vmem:[#allocation3 + $0xf0] sm:$0xff] %vm251_vm0, %v15923_v19 }
  0x44   : > { %338 = vst.msk [vmem:[#allocation3 + $0xf8] sm:$0xff] %vm251_vm0, %v15923_v19  ;;  %340 = vst.msk [vmem:[#allocation3 + $0x108] sm:$0xff] %vm251_vm0, %v15923_v19 }
  0x45   : > { %533 = vperm.xlu0 %15828, %v16032_v3   ;;  %339 = vst.msk [vmem:[#allocation3 + $0x100] sm:$0x3] %vm254_vm1, %v15923_v19  ;;  %342 = vst.msk [vmem:[#allocation3 + $0x118] sm:$0x3] %vm254_vm1, %v15923_v19 }
  0x46   : > { %15772 = vset.pattern.permute.xlu1 %v15922_v12  ;;  %341 = vst.msk [vmem:[#allocation3 + $0x110] sm:$0xff] %vm251_vm0, %v15923_v19  ;;  %343 = vst.msk [vmem:[#allocation3 + $0x120] sm:$0xff] %vm251_vm0, %v15923_v19 }
  0x47   : > { %553 = vperm.xlu1 %15772, %v16092_v17   ;;  %344 = vst.msk [vmem:[#allocation3 + $0x128] sm:$0xff] %vm251_vm0, %v15923_v19  ;;  %346 = vst.msk [vmem:[#allocation3 + $0x138] sm:$0xff] %vm251_vm0, %v15923_v19 }
  0x48   : > { %345 = vst.msk [vmem:[#allocation3 + $0x130] sm:$0x3] %vm254_vm1, %v15923_v19  ;;  %348 = vst.msk [vmem:[#allocation3 + $0x148] sm:$0x3] %vm254_vm1, %v15923_v19 }
  0x49   : > { %538 = vperm.xlu0 %15828, %v16054_v9   ;;  %347 = vst.msk [vmem:[#allocation3 + $0x140] sm:$0xff] %vm251_vm0, %v15923_v19  ;;  %349 = vst.msk [vmem:[#allocation3 + $0x150] sm:$0xff] %vm251_vm0, %v15923_v19 }
  0x4a   : > { %350 = vst.msk [vmem:[#allocation3 + $0x158] sm:$0xff] %vm251_vm0, %v15923_v19  ;;  %352 = vst.msk [vmem:[#allocation3 + $0x168] sm:$0xff] %vm251_vm0, %v15923_v19 }
  0x4b   : > { %15773 = vset.pattern.permute.xlu1 %v15921_v6  ;;  %351 = vst.msk [vmem:[#allocation3 + $0x160] sm:$0x3] %vm254_vm1, %v15923_v19  ;;  %354 = vst.msk [vmem:[#allocation3 + $0x178] sm:$0x3] %vm254_vm1, %v15923_v19 }
  0x4c   : > { %951 = vperm.xlu1 %15773, %v16070_v13   ;;  %353 = vst.msk [vmem:[#allocation3 + $0x170] sm:$0xff] %vm251_vm0, %v15923_v19  ;;  %355 = vst.msk [vmem:[#allocation3 + $0x180] sm:$0xff] %vm251_vm0, %v15923_v19 }
  0x4d   : > { %543 = vperm.xlu0 %15828, %v16070_v13   ;;  %356 = vst.msk [vmem:[#allocation3 + $0x188] sm:$0xff] %vm251_vm0, %v15923_v19  ;;  %358 = vst.msk [vmem:[#allocation3 + $0x198] sm:$0xff] %vm251_vm0, %v15923_v19 }
  0x4e   : > { %357 = vst.msk [vmem:[#allocation3 + $0x190] sm:$0x3] %vm254_vm1, %v15923_v19  ;;  %360 = vst.msk [vmem:[#allocation3 + $0x1a8] sm:$0x3] %vm254_vm1, %v15923_v19 }
  0x4f   : > { %359 = vst.msk [vmem:[#allocation3 + $0x1a0] sm:$0xff] %vm251_vm0, %v15923_v19  ;;  %361 = vst.msk [vmem:[#allocation4] sm:$0xff] %vm251_vm0, %v15923_v19 }
  0x50   : > { %15774 = vset.pattern.permute.xlu1 %v15920_v0  ;;  %362 = vst.msk [vmem:[#allocation4 + $0x8] sm:$0xff] %vm251_vm0, %v15923_v19  ;;  %364 = vst.msk [vmem:[#allocation4 + $0x18] sm:$0xff] %vm251_vm0, %v15923_v19 }
  0x51   : > { %758 = vperm.xlu1 %15774, %v16082_v16   ;;  %458 = vperm.xlu0 %15828, %v16027_v2   ;;  %363 = vst.msk [vmem:[#allocation4 + $0x10] sm:$0x3] %vm254_vm1, %v15923_v19  ;;  %366 = vst.msk [vmem:[#allocation4 + $0x28] sm:$0x3] %vm254_vm1, %v15923_v19 }
  0x52   : > { %365 = vst.msk [vmem:[#allocation4 + $0x20] sm:$0xff] %vm251_vm0, %v15923_v19  ;;  %367 = vst.msk [vmem:[#allocation4 + $0x30] sm:$0xff] %vm251_vm0, %v15923_v19 }
  0x53   : > { %368 = vst.msk [vmem:[#allocation4 + $0x38] sm:$0xff] %vm251_vm0, %v15923_v19  ;;  %370 = vst.msk [vmem:[#allocation4 + $0x48] sm:$0xff] %vm251_vm0, %v15923_v19 }
  0x54   : > { %369 = vst.msk [vmem:[#allocation4 + $0x40] sm:$0x3] %vm254_vm1, %v15923_v19  ;;  %372 = vst.msk [vmem:[#allocation4 + $0x58] sm:$0x3] %vm254_vm1, %v15923_v19 }
  0x55   : > { %15775 = vset.pattern.permute.xlu1 %v15921_v6  ;;  %468 = vperm.xlu0 %15828, %v16040_v5   ;;  %371 = vst.msk [vmem:[#allocation4 + $0x50] sm:$0xff] %vm251_vm0, %v15923_v19  ;;  %373 = vst.msk [vmem:[#allocation4 + $0x60] sm:$0xff] %vm251_vm0, %v15923_v19 }
  0x56   : > { %883 = vperm.xlu1 %15775, %v16027_v2   ;;  %374 = vst.msk [vmem:[#allocation4 + $0x68] sm:$0xff] %vm251_vm0, %v15923_v19  ;;  %376 = vst.msk [vmem:[#allocation4 + $0x78] sm:$0xff] %vm251_vm0, %v15923_v19 }
  0x57   : > { %375 = vst.msk [vmem:[#allocation4 + $0x70] sm:$0x3] %vm254_vm1, %v15923_v19  ;;  %378 = vst.msk [vmem:[#allocation4 + $0x88] sm:$0x3] %vm254_vm1, %v15923_v19 }
  0x58   : > { %377 = vst.msk [vmem:[#allocation4 + $0x80] sm:$0xff] %vm251_vm0, %v15923_v19  ;;  %379 = vst.msk [vmem:[#allocation4 + $0x90] sm:$0xff] %vm251_vm0, %v15923_v19 }
  0x59   : > { %563 = vperm.xlu0 %15828, %v16046_v7   ;;  %380 = vst.msk [vmem:[#allocation4 + $0x98] sm:$0xff] %vm251_vm0, %v15923_v19  ;;  %382 = vst.msk [vmem:[#allocation4 + $0xa8] sm:$0xff] %vm251_vm0, %v15923_v19 }
  0x5a   : > { %15776 = vset.pattern.permute.xlu1 %v15922_v12  ;;  %381 = vst.msk [vmem:[#allocation4 + $0xa0] sm:$0x3] %vm254_vm1, %v15923_v19  ;;  %384 = vst.msk [vmem:[#allocation4 + $0xb8] sm:$0x3] %vm254_vm1, %v15923_v19 }
  0x5b   : > { %473 = vperm.xlu1 %15776, %v16108_v18   ;;  %383 = vst.msk [vmem:[#allocation4 + $0xb0] sm:$0xff] %vm251_vm0, %v15923_v19  ;;  %385 = vst.msk [vmem:[#allocation4 + $0xc0] sm:$0xff] %vm251_vm0, %v15923_v19 }
  0x5c   : > { %386 = vst.msk [vmem:[#allocation4 + $0xc8] sm:$0xff] %vm251_vm0, %v15923_v19  ;;  %388 = vst.msk [vmem:[#allocation4 + $0xd8] sm:$0xff] %vm251_vm0, %v15923_v19 }
  0x5d   : > { %568 = vperm.xlu0 %15828, %v16051_v8   ;;  %387 = vst.msk [vmem:[#allocation4 + $0xd0] sm:$0x3] %vm254_vm1, %v15923_v19  ;;  %390 = vst.msk [vmem:[#allocation4 + $0xe8] sm:$0x3] %vm254_vm1, %v15923_v19 }
  0x5e   : > { %389 = vst.msk [vmem:[#allocation4 + $0xe0] sm:$0xff] %vm251_vm0, %v15923_v19  ;;  %391 = vst.msk [vmem:[#allocation4 + $0xf0] sm:$0xff] %vm251_vm0, %v15923_v19 }
  0x5f   : > { %15777 = vset.pattern.permute.xlu1 %v15920_v0  ;;  %392 = vst.msk [vmem:[#allocation4 + $0xf8] sm:$0xff] %vm251_vm0, %v15923_v19  ;;  %394 = vst.msk [vmem:[#allocation4 + $0x108] sm:$0xff] %vm251_vm0, %v15923_v19 }
  0x60   : > { %762 = vperm.xlu1 %15777, %v16092_v17   ;;  %393 = vst.msk [vmem:[#allocation4 + $0x100] sm:$0x3] %vm254_vm1, %v15923_v19  ;;  %396 = vst.msk [vmem:[#allocation4 + $0x118] sm:$0x3] %vm254_vm1, %v15923_v19 }
  0x61   : > { %395 = vst.msk [vmem:[#allocation4 + $0x110] sm:$0xff] %vm251_vm0, %v15923_v19  ;;  %397 = vst.msk [vmem:[#allocation4 + $0x120] sm:$0xff] %vm251_vm0, %v15923_v19  ;;  %493 = vperm.xlu0 %15828, %v16059_v10  }
  0x62   : > { %398 = vst.msk [vmem:[#allocation4 + $0x128] sm:$0xff] %vm251_vm0, %v15923_v19  ;;  %400 = vst.msk [vmem:[#allocation4 + $0x138] sm:$0xff] %vm251_vm0, %v15923_v19 }
  0x63   : > { %399 = vst.msk [vmem:[#allocation4 + $0x130] sm:$0x3] %vm254_vm1, %v15923_v19  ;;  %402 = vst.msk [vmem:[#allocation4 + $0x148] sm:$0x3] %vm254_vm1, %v15923_v19 }
  0x64   : > { %401 = vst.msk [vmem:[#allocation4 + $0x140] sm:$0xff] %vm251_vm0, %v15923_v19  ;;  %403 = vst.msk [vmem:[#allocation4 + $0x150] sm:$0xff] %vm251_vm0, %v15923_v19  ;;  %15778 = vset.pattern.permute.xlu1 %v15924_v20 }
  0x65   : > { %404 = vst.msk [vmem:[#allocation4 + $0x158] sm:$0xff] %vm251_vm0, %v15923_v19  ;;  %406 = vst.msk [vmem:[#allocation4 + $0x168] sm:$0xff] %vm251_vm0, %v15923_v19  ;;  %1148 = vperm.xlu1 %15778, %v16070_v13   ;;  %498 = vperm.xlu0 %15828, %v16064_v11  }
  0x66   : > { %405 = vst.msk [vmem:[#allocation4 + $0x160] sm:$0x3] %vm254_vm1, %v15923_v19  ;;  %408 = vst.msk [vmem:[#allocation4 + $0x178] sm:$0x3] %vm254_vm1, %v15923_v19 }
  0x67   : > { %407 = vst.msk [vmem:[#allocation4 + $0x170] sm:$0xff] %vm251_vm0, %v15923_v19  ;;  %409 = vst.msk [vmem:[#allocation4 + $0x180] sm:$0xff] %vm251_vm0, %v15923_v19 }
  0x68   : > { %410 = vst.msk [vmem:[#allocation4 + $0x188] sm:$0xff] %vm251_vm0, %v15923_v19  ;;  %412 = vst.msk [vmem:[#allocation4 + $0x198] sm:$0xff] %vm251_vm0, %v15923_v19 }
  0x69   : > { %411 = vst.msk [vmem:[#allocation4 + $0x190] sm:$0x3] %vm254_vm1, %v15923_v19  ;;  %414 = vst.msk [vmem:[#allocation4 + $0x1a8] sm:$0x3] %vm254_vm1, %v15923_v19  ;;  %15779 = vset.pattern.permute.xlu1 %v15922_v12  ;;  %593 = vperm.xlu0 %15828, %v16073_v14  }
  0x6a   : > { %413 = vst.msk [vmem:[#allocation4 + $0x1a0] sm:$0xff] %vm251_vm0, %v15923_v19  ;;  %558 = vperm.xlu1 %15779, %v16445_v21  }
  0x6d   : > { %598 = vperm.xlu0 %15828, %v16079_v15  }
  0x6e   : > { %15780 = vset.pattern.permute.xlu1 %v15921_v6 }
  0x6f   : > { %955 = vperm.xlu1 %15780, %v16082_v16  }
  0x71   : > { %523 = vperm.xlu0 %15828, %v16453_v22  }
  0x73   : > { %15781 = vset.pattern.permute.xlu1 %v15924_v20 }
  0x74   : > { %1080 = vperm.xlu1 %15781, %v16027_v2  }
  0x75   : > { %15831 = vset.pattern.permute.xlu0 %v15921_v6 }
  0x76   : > { %887 = vperm.xlu0 %15831, %v16035_v4  }
  0x78   : > { %15782 = vset.pattern.permute.xlu1 %v15920_v0 }
  0x79   : > { %698 = vperm.xlu1 %15782, %v16108_v18  }
  0x7a   : > { %891 = vperm.xlu0 %15831, %v16040_v5  }
  0x7d   : > { %15783 = vset.pattern.permute.xlu1 %v15921_v6 }
  0x7e   : > { %959 = vperm.xlu1 %15783, %v16092_v17   ;;  %967 = vperm.xlu0 %15831, %v16046_v7  }
  0x82   : > { %15784 = vset.pattern.permute.xlu1 %v15922_v12  ;;  %971 = vperm.xlu0 %15831, %v16051_v8  }
  0x83   : > { %478 = vperm.xlu1 %15784, %v16482_v29  }
  0x86   : > { %911 = vperm.xlu0 %15831, %v16059_v10  }
  0x87   : > { %15785 = vset.pattern.permute.xlu1 %v15920_v0 }
  0x88   : > { %766 = vperm.xlu1 %15785, %v16445_v21  }
  0x8a   : > { %915 = vperm.xlu0 %15831, %v16064_v11  }
  0x8c   : > { %15786 = vset.pattern.permute.xlu1 %v15924_v20 }
  0x8d   : > { %1152 = vperm.xlu1 %15786, %v16082_v16  }
  0x8e   : > { %991 = vperm.xlu0 %15831, %v16073_v14  }
  0x91   : > { %15787 = vset.pattern.permute.xlu1 %v15922_v12 }
  0x92   : > { %483 = vperm.xlu1 %15787, %v16495_v30   ;;  %999 = vperm.xlu0 %15831, %v16498_v31  }
  0x96   : > { %15788 = vset.pattern.permute.xlu1 %v15921_v6  ;;  %15837 = vset.pattern.permute.xlu0 %v15924_v20 }
  0x97   : > { %v16505_v32 = vpop.permute.xlu1 %742  ;;  %895 = vperm.xlu1 %15788, %v16108_v18   ;;  %1136 = vperm.xlu0 %15837, %v16024_v1   ;;  %v16509_v33 = vpop.permute.xlu0 %686  ;;  %v16600_v1 = vld [vmem:[%s16021_s14 + $0xc0] sm:$0xff] }
  0x9b   : > { %v16511_v34 = vpop.permute.xlu1 %746  ;;  %15789 = vset.pattern.permute.xlu1 %v15924_v20  ;;  %1140 = vperm.xlu0 %15837, %v16032_v3   ;;  %v16515_v35 = vpop.permute.xlu0 %690 }
  0x9c   : > { %1156 = vperm.xlu1 %15789, %v16092_v17  }
  0x9f   : > { %1144 = vperm.xlu0 %15837, %v16054_v9   ;;  %v695_v36 = vpop.permute.xlu0 %694 }
  0xa0   : > { %v16519_v37 = vpop.permute.xlu1 %939  ;;  %15790 = vset.pattern.permute.xlu1 %v15920_v0  ;;  %v819_v2 = vmul.f32 %v16592_v61, %v695_v36 }
  0xa1   : > { %702 = vperm.xlu1 %15790, %v16482_v29  }
  0xa3   : > { %1084 = vperm.xlu0 %15837, %v16035_v4   ;;  %v771_v38 = vpop.permute.xlu0 %770 }
  0xa4   : > { %v16524_v39 = vpop.permute.xlu1 %943  ;;  %v838_v9 = vmul.f32 %v16592_v61, %v771_v38 }
  0xa5   : > { %15791 = vset.pattern.permute.xlu1 %v15921_v6 }
  0xa6   : > { %963 = vperm.xlu1 %15791, %v16445_v21  }
  0xa7   : > { %v16528_v40 = vpop.permute.xlu0 %774  ;;  %1088 = vperm.xlu0 %15837, %v16040_v5   ;;  %v16609_v5 = vld [vmem:[%s21531_s2] ss:$0 sm:$0xff] }
  0xa8   : > { %v839_v17 = vmul.f32 %v16592_v61, %v16528_v40 }
  0xa9   : > { %v16534_v42 = vpop.permute.xlu1 %750 }
  0xaa   : > { %15792 = vset.pattern.permute.xlu1 %v15922_v12 }
  0xab   : > { %573 = vperm.xlu1 %15792, %v16532_v41   ;;  %v16538_v43 = vpop.permute.xlu0 %714  ;;  %1164 = vperm.xlu0 %15837, %v16046_v7  }
  0xac   : > { %v824_v28 = vmul.f32 %v16592_v61, %v16538_v43 }
  0xae   : > { %v16541_v44 = vpop.permute.xlu1 %463 }
  0xaf   : > { %15793 = vset.pattern.permute.xlu1 %v15920_v0  ;;  %v16544_v45 = vpop.permute.xlu0 %718  ;;  %1168 = vperm.xlu0 %15837, %v16051_v8  }
  0xb0   : > { %706 = vperm.xlu1 %15793, %v16495_v30  }
  0xb3   : > { %v755_v46 = vpop.permute.xlu1 %754  ;;  %v16548_v47 = vpop.permute.xlu0 %794  ;;  %1108 = vperm.xlu0 %15837, %v16059_v10  }
  0xb4   : > { %15794 = vset.pattern.permute.xlu1 %v15924_v20  ;;  %v834_v24 = vmul.f32 %v16592_v61, %v755_v46  ;;  %v16648_v46 = vld [vmem:[%s21530_s1 + $0x2] ss:$0 sm:$0xff] }
  0xb5   : > { %1092 = vperm.xlu1 %15794, %v16108_v18  }
  0xb7   : > { %v16553_v48 = vpop.permute.xlu0 %798  ;;  %1112 = vperm.xlu0 %15837, %v16064_v11  }
  0xb8   : > { %v16559_v50 = vpop.permute.xlu1 %548 }
  0xb9   : > { %15795 = vset.pattern.permute.xlu1 %v15922_v12 }
  0xba   : > { %488 = vperm.xlu1 %15795, %v16556_v49  }
  0xbb   : > { %1188 = vperm.xlu0 %15837, %v16073_v14  }
  0xbc   : > { %v16564_v51 = vpop.permute.xlu0 %528 }
  0xbd   : > { %v16566_v52 = vpop.permute.xlu1 %947 }
  0xbe   : > { %15796 = vset.pattern.permute.xlu1 %v15921_v6 }
  0xbf   : > { %899 = vperm.xlu1 %15796, %v16482_v29   ;;  %1120 = vperm.xlu0 %15837, %v16570_v53  }
  0xc0   : > { %v16574_v54 = vpop.permute.xlu0 %533 }
  0xc2   : > { %v16576_v55 = vpop.permute.xlu1 %553 }
  0xc3   : > { %15797 = vset.pattern.permute.xlu1 %v15924_v20  ;;  %1192 = vperm.xlu0 %15837, %v16079_v15  }
  0xc4   : > { %1160 = vperm.xlu1 %15797, %v16445_v21   ;;  %v16581_v56 = vpop.permute.xlu0 %538 }
  0xc7   : > { %v952_v57 = vpop.permute.xlu1 %951  ;;  %1128 = vperm.xlu0 %15837, %v16631_v23  }
  0xc8   : > { %15798 = vset.pattern.permute.xlu1 %v15920_v0  ;;  %v544_v58 = vpop.permute.xlu0 %543  ;;  %v1031_v43 = vmul.f32 %v16648_v46, %v952_v57 }
  0xc9   : > { %778 = vperm.xlu1 %15798, %v16532_v41   ;;  %v637_v10 = vmul.f32 %v16597_v62, %v544_v58  ;;  %v16653_v58 = vld [vmem:[%s21530_s1 + $0x3] ss:$0 sm:$0xff] }
  0xcb   : > { %v669_v18 = vadd.f32 %v16609_v5, %v637_v10  ;;  %15841 = vset.pattern.permute.xlu0 %v15922_v12 }
  0xcc   : > { %v16585_v59 = vpop.permute.xlu1 %758  ;;  %v459_v60 = vpop.permute.xlu0 %458 }
  0xcd   : > { %15799 = vset.pattern.permute.xlu1 %v15921_v6  ;;  %v866_v36 = vadd.f32 %v834_v24, %v669_v18 }
  0xce   : > { %903 = vperm.xlu1 %15799, %v16495_v30  }
  0xd0   : > { %v469_v63 = vpop.permute.xlu0 %468 }
  0xd1   : > { %v16603_v3 = vpop.permute.xlu1 %883  ;;  %v622_v4 = vmul.f32 %v16597_v62, %v469_v63  ;;  %v16659_v63 = vld [vmem:[%s16021_s14 + $0xc8] sm:$0xff] }
  0xd2   : > { %15800 = vset.pattern.permute.xlu1 %v15922_v12 }
  0xd3   : > { %v654_v7 = vadd.f32 %v16609_v5, %v622_v4  ;;  %578 = vperm.xlu1 %15800, %v16600_v1  }
  0xd4   : > { %v564_v8 = vpop.permute.xlu0 %563 }
  0xd5   : > { %v641_v11 = vmul.f32 %v16597_v62, %v564_v8  ;;  %v16617_v13 = vadd.f32 %v819_v2, %v654_v7  ;;  %v825_v2 = vmul.f32 %v16592_v61, %v16544_v45  ;;  %v1063_v8 = vadd.f32 %v1031_v43, %v866_v36 }
  0xd6   : > { %v16619_v14 = vpop.permute.xlu1 %473  ;;  %v844_v45 = vmul.f32 %v16592_v61, %v16548_v47 }
  0xd7   : > { %v673_v15 = vadd.f32 %v16609_v5, %v641_v11  ;;  %15801 = vset.pattern.permute.xlu1 %v15920_v0 }
  0xd8   : > { %710 = vperm.xlu1 %15801, %v16556_v49   ;;  %v569_v16 = vpop.permute.xlu0 %568 }
  0xd9   : > { %v642_v19 = vmul.f32 %v16597_v62, %v569_v16  ;;  %v16628_v21 = vadd.f32 %v838_v9, %v673_v15  ;;  %v620_v16 = vmul.f32 %v16597_v62, %v459_v60  ;;  %v817_v60 = vmul.f32 %v16592_v61, %v16509_v33 }
  0xdb   : > { %v674_v25 = vadd.f32 %v16609_v5, %v642_v19  ;;  %v16636_v26 = vpop.permute.xlu1 %762 }
  0xdc   : > { %15802 = vset.pattern.permute.xlu1 %v15924_v20  ;;  %v494_v27 = vpop.permute.xlu0 %493 }
  0xdd   : > { %1096 = vperm.xlu1 %15802, %v16482_v29   ;;  %v627_v38 = vmul.f32 %v16597_v62, %v494_v27  ;;  %v16643_v40 = vadd.f32 %v839_v17, %v674_v25  ;;  %v652_v27 = vadd.f32 %v16609_v5, %v620_v16 }
  0xdf   : > { %v659_v29 = vadd.f32 %v16609_v5, %v627_v38 }
  0xe0   : > { %v1149_v4 = vpop.permute.xlu1 %1148  ;;  %v499_v7 = vpop.permute.xlu0 %498 }
  0xe1   : > { %v1228_v9 = vmul.f32 %v16653_v58, %v1149_v4  ;;  %15803 = vset.pattern.permute.xlu1 %v15922_v12  ;;  %v628_v10 = vmul.f32 %v16597_v62, %v499_v7  ;;  %v16666_v11 = vadd.f32 %v824_v28, %v659_v29  ;;  %v845_v28 = vmul.f32 %v16592_v61, %v16553_v48 }
  0xe2   : > { %583 = vperm.xlu1 %15803, %v16659_v63   ;;  %v1014_v4 = vmul.f32 %v16648_v46, %v16603_v3 }
  0xe3   : > { %v1260_v57 = vadd.f32 %v1228_v9, %v1063_v8  ;;  %v660_v15 = vadd.f32 %v16609_v5, %v628_v10 }
  0xe4   : > { %v594_v17 = vpop.permute.xlu0 %593 }
  0xe5   : > { %1293 = vst.msk [vmem:[#allocation2 + $0xe1] sm:$0xff] %vm251_vm0, %v1260_v57  ;;  %v16674_v18 = vpop.permute.xlu1 %558  ;;  %v647_v19 = vmul.f32 %v16597_v62, %v594_v17  ;;  %v16677_v24 = vadd.f32 %v825_v2, %v660_v15  ;;  %v849_v2 = vadd.f32 %v817_v60, %v652_v27  ;;  %v16712_v15 = vld [vmem:[%s16021_s14 + $0x48] sm:$0xff]  ;;  %v638_v60 = vmul.f32 %v16597_v62, %v16559_v50 }
  0xe6   : > { %15804 = vset.pattern.permute.xlu1 %v15921_v6  ;;  %v634_v50 = vmul.f32 %v16597_v62, %v16564_v51  ;;  %v831_v51 = vmul.f32 %v16592_v61, %v16505_v32  ;;  %v832_v32 = vmul.f32 %v16592_v61, %v16511_v34 }
  0xe7   : > { %v679_v25 = vadd.f32 %v16609_v5, %v647_v19  ;;  %975 = vperm.xlu1 %15804, %v16532_v41   ;;  %v1046_v8 = vadd.f32 %v1014_v4, %v849_v2 }
  0xe8   : > { %v599_v47 = vpop.permute.xlu0 %598 }
  0xe9   : > { %v648_v36 = vmul.f32 %v16597_v62, %v599_v47  ;;  %v16688_v38 = vadd.f32 %v844_v45, %v679_v25  ;;  %v835_v47 = vmul.f32 %v16592_v61, %v16585_v59 }
  0xea   : > { %v956_v43 = vpop.permute.xlu1 %955 }
  0xeb   : > { %v680_v29 = vadd.f32 %v16609_v5, %v648_v36  ;;  %15805 = vset.pattern.permute.xlu1 %v15924_v20  ;;  %v670_v36 = vadd.f32 %v16609_v5, %v638_v60 }
  0xec   : > { %1100 = vperm.xlu1 %15805, %v16495_v30   ;;  %v16695_v33 = vpop.permute.xlu0 %523 }
  0xed   : > { %v16697_v7 = vadd.f32 %v845_v28, %v680_v29  ;;  %v1032_v29 = vmul.f32 %v16648_v46, %v956_v43  ;;  %v867_v4 = vadd.f32 %v835_v47, %v670_v36  ;;  %v635_v43 = vmul.f32 %v16597_v62, %v16574_v54 }
  0xee   : > { %v639_v54 = vmul.f32 %v16597_v62, %v16576_v55 }
  0xef   : > { %v1081_v48 = vpop.permute.xlu1 %1080  ;;  %v1064_v59 = vadd.f32 %v1032_v29, %v867_v4  ;;  %v667_v29 = vadd.f32 %v16609_v5, %v635_v43  ;;  %v1028_v4 = vmul.f32 %v16648_v46, %v16519_v37  ;;  %v1029_v37 = vmul.f32 %v16648_v46, %v16524_v39 }
  0xf0   : > { %v1211_v9 = vmul.f32 %v16653_v58, %v1081_v48  ;;  %15806 = vset.pattern.permute.xlu1 %v15920_v0  ;;  %v16742_v48 = vld [vmem:[%s16021_s14 + $0xd0] sm:$0xff]  ;;  %v671_v55 = vadd.f32 %v16609_v5, %v639_v54  ;;  %v818_v39 = vmul.f32 %v16592_v61, %v16515_v35 }
  0xf1   : > { %782 = vperm.xlu1 %15806, %v16600_v1   ;;  %v16702_v10 = vpop.permute.xlu0 %887 }
  0xf2   : > { %v1243_v57 = vadd.f32 %v1211_v9, %v1046_v8 }
  0xf4   : > { %1276 = vst.msk [vmem:[#allocation2 + $0x19] sm:$0xff] %vm251_vm0, %v1243_v57  ;;  %v16705_v3 = vpop.permute.xlu1 %698 }
  0xf5   : > { %15807 = vset.pattern.permute.xlu1 %v15921_v6  ;;  %v16708_v30 = vpop.permute.xlu0 %891 }
  0xf6   : > { %907 = vperm.xlu1 %15807, %v16556_v49  }
  0xf9   : > { %v960_v16 = vpop.permute.xlu1 %959  ;;  %v16714_v17 = vpop.permute.xlu0 %967 }
  0xfa   : > { %15808 = vset.pattern.permute.xlu1 %v15922_v12  ;;  %v1033_v34 = vmul.f32 %v16648_v46, %v960_v16 }
  0xfb   : > { %503 = vperm.xlu1 %15808, %v16712_v15   ;;  %v1318_v45 = vld [vmem:[#allocation2 + $0x18] sm:$0xff] }
  0xfc   : > { %14209 = vmatprep.mubr.msk.f32.mxu0 %vm251_vm0, %v1318_v45 }
  0xfd   : > { %v16719_v19 = vpop.permute.xlu0 %971 }
  0xfe   : > { %v16721_v25 = vpop.permute.xlu1 %478 }
  0xff   : > { %15809 = vset.pattern.permute.xlu1 %v15920_v0 }
 0x100   : > { %786 = vperm.xlu1 %15809, %v16659_v63  }
 0x101   : > { %v16727_v27 = vpop.permute.xlu0 %911 }
 0x103   : > { %v16731_v28 = vpop.permute.xlu1 %766 }
 0x104   : > { %15810 = vset.pattern.permute.xlu1 %v15924_v20 }
 0x105   : > { %1172 = vperm.xlu1 %15810, %v16532_v41   ;;  %v16737_v2 = vpop.permute.xlu0 %915  ;;  %v666_v41 = vadd.f32 %v16609_v5, %v634_v50  ;;  %v636_v50 = vmul.f32 %v16597_v62, %v16581_v56 }
 0x107   : > { %v863_v36 = vadd.f32 %v831_v51, %v666_v41  ;;  %v864_v41 = vadd.f32 %v832_v32, %v667_v29  ;;  %v668_v56 = vadd.f32 %v16609_v5, %v636_v50  ;;  %v621_v51 = vmul.f32 %v16597_v62, %v16541_v44 }
 0x108   : > { %v1153_v8 = vpop.permute.xlu1 %1152  ;;  %v1030_v44 = vmul.f32 %v16648_v46, %v16566_v52  ;;  %v1016_v52 = vmul.f32 %v16648_v46, %v16708_v30 }
 0x109   : > { %v1229_v9 = vmul.f32 %v16653_v58, %v1153_v8  ;;  %15811 = vset.pattern.permute.xlu1 %v15922_v12  ;;  %v16746_v57 = vpop.permute.xlu0 %991  ;;  %v836_v8 = vmul.f32 %v16592_v61, %v16636_v26  ;;  %v1060_v43 = vadd.f32 %v1028_v4, %v863_v36  ;;  %v833_v26 = vmul.f32 %v16592_v61, %v16534_v42 }
 0x10a   : > { %588 = vperm.xlu1 %15811, %v16742_v48   ;;  %v1061_v54 = vadd.f32 %v1029_v37, %v864_v41  ;;  %v653_v42 = vadd.f32 %v16609_v5, %v621_v51 }
 0x10b   : > { %v1261_v45 = vadd.f32 %v1229_v9, %v1064_v59  ;;  %v868_v29 = vadd.f32 %v836_v8, %v671_v55  ;;  %v865_v32 = vadd.f32 %v833_v26, %v668_v56 }
 0x10d   : > { %1294 = vst.msk [vmem:[#allocation2 + $0xf1] sm:$0xff] %vm251_vm0, %v1261_v45  ;;  %v16755_v60 = vpop.permute.xlu1 %483  ;;  %v16757_v47 = vpop.permute.xlu0 %999 }
 0x10e   : > { %15812 = vset.pattern.permute.xlu1 %v15921_v6 }
 0x10f   : > { %979 = vperm.xlu1 %15812, %v16600_v1  }
 0x112   : > { %v16772_v59 = vpop.permute.xlu1 %895  ;;  %v1137_v9 = vpop.permute.xlu0 %1136 }
 0x113   : > { %v1225_v45 = vmul.f32 %v16653_v58, %v1137_v9  ;;  %15813 = vset.pattern.permute.xlu1 %v15924_v20 }
 0x114   : > { %1104 = vperm.xlu1 %15813, %v16556_v49   ;;  %v1065_v49 = vadd.f32 %v1033_v34, %v868_v29  ;;  %v850_v34 = vadd.f32 %v818_v39, %v653_v42  ;;  %v1048_v29 = vadd.f32 %v1016_v52, %v16617_v13 }
 0x115   : > { %v1257_v36 = vadd.f32 %v1225_v45, %v1060_v43  ;;  %v1015_v43 = vmul.f32 %v16648_v46, %v16702_v10  ;;  %v1062_v45 = vadd.f32 %v1030_v44, %v865_v32 }
 0x116   : > { %v1141_v50 = vpop.permute.xlu0 %1140 }
 0x117   : > { %1290 = vst.msk [vmem:[#allocation2 + $0xc1] sm:$0xff] %vm251_vm0, %v1257_v36  ;;  %v1226_v16 = vmul.f32 %v16653_v58, %v1141_v50  ;;  %v1157_v4 = vpop.permute.xlu1 %1156  ;;  %v1047_v51 = vadd.f32 %v1015_v43, %v850_v34  ;;  %v1035_v50 = vmul.f32 %v16648_v46, %v16714_v17  ;;  %v1036_v17 = vmul.f32 %v16648_v46, %v16719_v19 }
 0x118   : > { %v1230_v9 = vmul.f32 %v16653_v58, %v1157_v4  ;;  %15814 = vset.pattern.permute.xlu1 %v15920_v0  ;;  %v623_v19 = vmul.f32 %v16597_v62, %v16619_v14  ;;  %v820_v34 = vmul.f32 %v16592_v61, %v16705_v3 }
 0x119   : > { %v1258_v8 = vadd.f32 %v1226_v16, %v1061_v54  ;;  %722 = vperm.xlu1 %15814, %v16712_v15   ;;  %v1067_v13 = vadd.f32 %v1035_v50, %v16628_v21  ;;  %v1336_v21 = vld [vmem:[#allocation2 + $0xf0] sm:$0xff]  ;;  %v16854_v50 = vld [vmem:[%s16021_s14 + $0x58] sm:$0xff] }
 0x11a   : > { %v1262_v41 = vadd.f32 %v1230_v9, %v1065_v49  ;;  %v1145_v56 = vpop.permute.xlu0 %1144 }
 0x11b   : > { %1291 = vst.msk [vmem:[#allocation2 + $0xc9] sm:$0xff] %vm251_vm0, %v1258_v8  ;;  %v1227_v55 = vmul.f32 %v16653_v58, %v1145_v56  ;;  %v1021_v56 = vmul.f32 %v16648_v46, %v16727_v27  ;;  %v655_v27 = vadd.f32 %v16609_v5, %v623_v19 }
 0x11c   : > { %1295 = vst.msk [vmem:[#allocation2 + $0xf9] sm:$0xff] %vm251_vm0, %v1262_v41  ;;  %v16801_v35 = vpop.permute.xlu1 %702  ;;  %v1068_v41 = vadd.f32 %v1036_v17, %v16643_v40  ;;  %v1022_v40 = vmul.f32 %v16648_v46, %v16737_v2 }
 0x11d   : > { %v1259_v37 = vadd.f32 %v1227_v55, %v1062_v45  ;;  %15815 = vset.pattern.permute.xlu1 %v15921_v6  ;;  %v1053_v3 = vadd.f32 %v1021_v56, %v16666_v11 }
 0x11e   : > { %983 = vperm.xlu1 %15815, %v16659_v63   ;;  %v1085_v26 = vpop.permute.xlu0 %1084  ;;  %v1332_v10 = vld [vmem:[#allocation2 + $0xc0] sm:$0xff] }
 0x11f   : > { %1292 = vst.msk [vmem:[#allocation2 + $0xd9] sm:$0xff] %vm251_vm0, %v1259_v37  ;;  %v1212_v36 = vmul.f32 %v16653_v58, %v1085_v26  ;;  %14230 = vmatprep.mubr.msk.f32.mxu1 %vm251_vm0, %v1332_v10  ;;  %v1017_v26 = vmul.f32 %v16648_v46, %v16772_v59  ;;  %v1041_v59 = vmul.f32 %v16648_v46, %v16746_v57 }
 0x121   : > { %v1244_v30 = vadd.f32 %v1212_v36, %v1047_v51  ;;  %v16813_v32 = vpop.permute.xlu1 %963 }
 0x122   : > { %15816 = vset.pattern.permute.xlu1 %v15922_v12  ;;  %v1333_v54 = vld [vmem:[#allocation2 + $0xc8] sm:$0xff]  ;;  %v1089_v16 = vpop.permute.xlu0 %1088 }
 0x123   : > { %1277 = vst.msk [vmem:[#allocation2 + $0x21] sm:$0xff] %vm251_vm0, %v1244_v30  ;;  %508 = vperm.xlu1 %15816, %v16570_v53   ;;  %14231 = vmatmul.mubr.msk.f32.vlgmr.msra.gmra.mxu1 %vm251_vm0, %v1333_v54  ;;  %v1213_v4 = vmul.f32 %v16653_v58, %v1089_v16  ;;  %v1337_v37 = vld [vmem:[#allocation2 + $0xf8] sm:$0xff]  ;;  %v1054_v30 = vadd.f32 %v1022_v40, %v16677_v24 }
 0x124   : > { %v1073_v24 = vadd.f32 %v1041_v59, %v16688_v38  ;;  %v837_v38 = vmul.f32 %v16592_v61, %v16731_v28 }
 0x125   : > { %v1245_v49 = vadd.f32 %v1213_v4, %v1048_v29  ;;  %v852_v29 = vadd.f32 %v820_v34, %v655_v27  ;;  %v624_v27 = vmul.f32 %v16597_v62, %v16721_v25 }
 0x126   : > { %v16823_v9 = vpop.permute.xlu1 %573  ;;  %v1334_v39 = vld [vmem:[#allocation2 + $0xd8] sm:$0xff]  ;;  %v1335_v42 = vld [vmem:[#allocation2 + $0xe0] sm:$0xff]  ;;  %v1165_v44 = vpop.permute.xlu0 %1164 }
 0x127   : > { %15817 = vset.pattern.permute.xlu1 %v15920_v0  ;;  %14233 = vmatprep.mubr.msk.f32.mxu1 %vm251_vm0, %v1334_v39  ;;  %1278 = vst.msk [vmem:[#allocation2 + $0x31] sm:$0xff] %vm251_vm0, %v1245_v49  ;;  %v1232_v8 = vmul.f32 %v16653_v58, %v1165_v44  ;;  %v1049_v54 = vadd.f32 %v1017_v26, %v852_v29 }
 0x128   : > { %790 = vperm.xlu1 %15817, %v16742_v48   ;;  %14234 = vmatmul.mubr.msk.f32.gmra.mxu1 %vm251_vm0, %v1335_v42  ;;  %v640_v44 = vmul.f32 %v16597_v62, %v16674_v18 }
 0x129   : > { %14236 = vmatprep.mubr.msk.f32.mxu1 %vm251_vm0, %v1336_v21  ;;  %v1264_v43 = vadd.f32 %v1232_v8, %v1067_v13 }
 0x12a   : > { %v1319_v45 = vld [vmem:[#allocation2 + $0x20] sm:$0xff]  ;;  %v1169_v55 = vpop.permute.xlu0 %1168  ;;  %v672_v19 = vadd.f32 %v16609_v5, %v640_v44  ;;  %v643_v44 = vmul.f32 %v16597_v62, %v16823_v9  ;;  %v16973_v9 = vld [vmem:[%s16021_s14 + $0xf8] sm:$0xff] }
 0x12b   : > { %v16839_v52 = vpop.permute.xlu1 %706  ;;  %14210 = vmatmul.mubr.msk.f32.gmra.mxu0 %vm251_vm0, %v1319_v45  ;;  %1297 = vst.msk [vmem:[#allocation2 + $0x111] sm:$0xff] %vm251_vm0, %v1264_v43  ;;  %v1233_v14 = vmul.f32 %v16653_v58, %v1169_v55 }
 0x12c   : > { %15818 = vset.pattern.permute.xlu1 %v15924_v20  ;;  %14237 = vmatmul.mubr.msk.f32.gmra.mxu1 %vm251_vm0, %v1337_v37  ;;  %v869_v18 = vadd.f32 %v837_v38, %v672_v19  ;;  %v675_v19 = vadd.f32 %v16609_v5, %v643_v44 }
 0x12d   : > { %1176 = vperm.xlu1 %15818, %v16600_v1   ;;  %v1265_v10 = vadd.f32 %v1233_v14, %v1068_v41  ;;  %v1034_v41 = vmul.f32 %v16648_v46, %v16813_v32 }
 0x12e   : > { %v1320_v51 = vld [vmem:[#allocation2 + $0x30] sm:$0xff]  ;;  %v1109_v36 = vpop.permute.xlu0 %1108 }
 0x12f   : > { %14212 = vmatprep.mubr.msk.f32.mxu0 %vm251_vm0, %v1320_v51  ;;  %1298 = vst.msk [vmem:[#allocation2 + $0x121] sm:$0xff] %vm251_vm0, %v1265_v10  ;;  %v1218_v2 = vmul.f32 %v16653_v58, %v1109_v36  ;;  %v1066_v28 = vadd.f32 %v1034_v41, %v869_v18  ;;  %v656_v10 = vadd.f32 %v16609_v5, %v624_v27 }
 0x130   : > { %v1093_v11 = vpop.permute.xlu1 %1092 }
 0x131   : > { %v1214_v1 = vmul.f32 %v16653_v58, %v1093_v11  ;;  %15819 = vset.pattern.permute.xlu1 %v15922_v12  ;;  %v1250_v16 = vadd.f32 %v1218_v2, %v1053_v3  ;;  %v821_v3 = vmul.f32 %v16592_v61, %v16801_v35  ;;  %v822_v11 = vmul.f32 %v16592_v61, %v16839_v52 }
 0x132   : > { %513 = vperm.xlu1 %15819, %v16854_v50   ;;  %v1113_v4 = vpop.permute.xlu0 %1112 }
 0x133   : > { %v1246_v13 = vadd.f32 %v1214_v1, %v1049_v54  ;;  %1283 = vst.msk [vmem:[#allocation2 + $0x69] sm:$0xff] %vm251_vm0, %v1250_v16  ;;  %v1219_v17 = vmul.f32 %v16653_v58, %v1113_v4  ;;  %v853_v36 = vadd.f32 %v821_v3, %v656_v10 }
 0x135   : > { %1279 = vst.msk [vmem:[#allocation2 + $0x39] sm:$0xff] %vm251_vm0, %v1246_v13  ;;  %v16869_v49 = vpop.permute.xlu1 %488  ;;  %v1251_v57 = vadd.f32 %v1219_v17, %v1054_v30 }
 0x136   : > { %15820 = vset.pattern.permute.xlu1 %v15921_v6  ;;  %v1189_v39 = vpop.permute.xlu0 %1188  ;;  %v1340_v14 = vld [vmem:[#allocation2 + $0x120] sm:$0xff] }
 0x137   : > { %919 = vperm.xlu1 %15820, %v16712_v15   ;;  %1284 = vst.msk [vmem:[#allocation2 + $0x79] sm:$0xff] %vm251_vm0, %v1251_v57  ;;  %v1238_v42 = vmul.f32 %v16653_v58, %v1189_v39  ;;  %v16953_v39 = vld [vmem:[%s16021_s14 + $0xf0] sm:$0xff] }
 0x138   : > { %608 = vperm.xlu0 %15841, %v16953_v39  }
 0x139   : > { %v1270_v8 = vadd.f32 %v1238_v42, %v1073_v24  ;;  %v15848_v42 = vld [vmem:[%s16021_s14 + $0xe0] sm:$0xff] }
 0x13a   : > { %v900_v21 = vpop.permute.xlu1 %899 }
 0x13b   : > { %15821 = vset.pattern.permute.xlu1 %v15924_v20  ;;  %1303 = vst.msk [vmem:[#allocation2 + $0x159] sm:$0xff] %vm251_vm0, %v1270_v8  ;;  %v1018_v51 = vmul.f32 %v16648_v46, %v900_v21  ;;  %v12282_v21 = vld [vmem:[%s21532_s3 + $0x38] sm:$0xff] }
 0x13c   : > { %1180 = vperm.xlu1 %15821, %v16659_v63   ;;  %v16885_v56 = vld [vmem:[#allocation2 + $0x38] sm:$0xff]  ;;  %15844 = vset.pattern.permute.xlu0 %v15920_v0 }
 0x13d   : > { %14213 = vmatmul.mubr.msk.f32.gmra.mxu0 %vm251_vm0, %v16885_v56  ;;  %v1050_v2 = vadd.f32 %v1018_v51, %v853_v36  ;;  %14254 = vmatprep.subr.mxu1 %v12282_v21 }
 0x13e   : > { %14255 = vmatpush3.msra.mxu1 %v12282_v21  ;;  %810 = vperm.xlu0 %15844, %v16973_v9  }
 0x13f   : > { %v1161_v43 = vpop.permute.xlu1 %1160 }
 0x140   : > { %v1231_v45 = vmul.f32 %v16653_v58, %v1161_v43  ;;  %15822 = vset.pattern.permute.xlu1 %v15920_v0 }
 0x141   : > { %726 = vperm.xlu1 %15822, %v16570_v53  }
 0x142   : > { %v1263_v55 = vadd.f32 %v1231_v45, %v1066_v28  ;;  %15846 = vset.pattern.permute.xlu0 %v15924_v20 }
 0x143   : > { %1200 = vperm.xlu0 %15846, %v16953_v39  }
 0x144   : > { %1296 = vst.msk [vmem:[#allocation2 + $0x109] sm:$0xff] %vm251_vm0, %v1263_v55  ;;  %v16893_v32 = vpop.permute.xlu1 %778  ;;  %v12318_v55 = vld [vmem:[%s21532_s3 + $0x58] sm:$0xff] }
 0x145   : > { %15823 = vset.pattern.permute.xlu1 %v15921_v6  ;;  %v840_v8 = vmul.f32 %v16592_v61, %v16893_v32  ;;  %14310 = vmatprep.subr.mxu0 %v12318_v55 }
 0x146   : > { %987 = vperm.xlu1 %15823, %v16742_v48   ;;  %14311 = vmatpush3.msra.mxu0 %v12318_v55 }
 0x147   : > { %v872_v18 = vadd.f32 %v840_v8, %v675_v19 }
 0x149   : > { %v904_v63 = vpop.permute.xlu1 %903 }
 0x14a   : > { %15824 = vset.pattern.permute.xlu1 %v15922_v12  ;;  %v1019_v1 = vmul.f32 %v16648_v46, %v904_v63 }
 0x14b   : > { %603 = vperm.xlu1 %15824, %v16498_v31   ;;  %v1338_v34 = vld [vmem:[#allocation2 + $0x108] sm:$0xff]  ;;  %v1339_v37 = vld [vmem:[#allocation2 + $0x110] sm:$0xff] }
 0x14c   : > { %14239 = vmatprep.mubr.msk.f32.mxu1 %vm251_vm0, %v1338_v34  ;;  %v12281_v34 = vld [vmem:[%s21532_s3 + $0x30] sm:$0xff] }
 0x14d   : > { %14240 = vmatmul.mubr.msk.f32.gmra.mxu1 %vm251_vm0, %v1339_v37  ;;  %v12317_v37 = vld [vmem:[%s21532_s3 + $0x50] sm:$0xff]  ;;  %14256 = vmatprep.subr.mxu1 %v12281_v34 }
 0x14e   : > { %v16901_v40 = vpop.permute.xlu1 %578  ;;  %14242 = vmatprep.mubr.msk.f32.mxu1 %vm251_vm0, %v1340_v14  ;;  %14312 = vmatprep.subr.mxu0 %v12317_v37 }
 0x14f   : > { %15825 = vset.pattern.permute.xlu1 %v15920_v0  ;;  %14257 = vmatpush3.msra.mxu1 %v12281_v34 }
 0x150   : > { %730 = vperm.xlu1 %15825, %v16854_v50   ;;  %14313 = vmatpush3.msra.mxu0 %v12317_v37 }
 0x153   : > { %v16910_v26 = vpop.permute.xlu1 %710 }
 0x154   : > { %15826 = vset.pattern.permute.xlu1 %v15924_v20  ;;  %v823_v14 = vmul.f32 %v16592_v61, %v16910_v26 }
 0x155   : > { %1116 = vperm.xlu1 %15826, %v16712_v15   ;;  %v625_v15 = vmul.f32 %v16597_v62, %v16755_v60 }
 0x157   : > { %v657_v54 = vadd.f32 %v16609_v5, %v625_v15  ;;  %v12315_v15 = vld [vmem:[%s21532_s3 + $0x40] sm:$0xff] }
 0x158   : > { %v1097_v29 = vpop.permute.xlu1 %1096 }
 0x159   : > { %v1215_v30 = vmul.f32 %v16653_v58, %v1097_v29  ;;  %15827 = vset.pattern.permute.xlu1 %v15922_v12  ;;  %v12316_v29 = vld [vmem:[%s21532_s3 + $0x48] sm:$0xff] }
 0x15a   : > { %518 = vperm.xlu1 %15827, %v16631_v23   ;;  %14314 = vmatprep.subr.mxu0 %v12316_v29 }
 0x15b   : > { %v1247_v25 = vadd.f32 %v1215_v30, %v1050_v2  ;;  %14315 = vmatpush3.msra.mxu0 %v12316_v29  ;;  %v15849_v30 = vld [vmem:[%s16021_s14 + $0x68] sm:$0xff]  ;;  %s15864_s14 = scalar_lea.vmem %s15863_s18, 8192 }
 0x15c   : > { %14316 = vmatprep.subr.mxu0 %v12315_v15  ;;  %p15866_p1 = scmp.lt.s32.totalorder %s15864_s14, %s15858_s16 }
 0x15d   : > { %1280 = vst.msk [vmem:[#allocation2 + $0x49] sm:$0xff] %vm251_vm0, %v1247_v25  ;;  %v16920_v35 = vpop.permute.xlu1 %583  ;;  %14317 = vmatpush3.msra.mxu0 %v12315_v15 }
 0x15e   : > { %15829 = vset.pattern.permute.xlu1 %v15921_v6  ;;  %p15867_p2 = por %p15866_p1, %p15865_p0 }
 0x15f   : > { %923 = vperm.xlu1 %15829, %v16570_v53   ;;  %v854_v53 = vadd.f32 %v822_v11, %v657_v54 }
 0x160   : > { %p15868_p3 = pnand %p15867_p2, %p15861_p13 }
 0x161   : > { %v1051_v60 = vadd.f32 %v1019_v1, %v854_v53  ;;  %v17033_v1 = vld [vmem:[#allocation2 + $0x78] sm:$0xff] }
 0x162   : > { %v976_v59 = vpop.permute.xlu1 %975 }
 0x163   : > { %15830 = vset.pattern.permute.xlu1 %v15924_v20  ;;  %v1037_v41 = vmul.f32 %v16648_v46, %v976_v59 }
 0x164   : > { %1184 = vperm.xlu1 %15830, %v16742_v48   ;;  %v16932_v16 = vld [vmem:[#allocation2 + $0x48] sm:$0xff] }
 0x165   : > { %14215 = vmatprep.mubr.msk.f32.mxu0 %vm251_vm0, %v16932_v16  ;;  %v1069_v28 = vadd.f32 %v1037_v41, %v872_v18 }
 0x167   : > { %v1101_v4 = vpop.permute.xlu1 %1100 }
 0x168   : > { %v1216_v52 = vmul.f32 %v16653_v58, %v1101_v4  ;;  %15832 = vset.pattern.permute.xlu1 %v15920_v0  ;;  %v17047_v4 = vld [vmem:[%s21532_s3 + $0x98] sm:$0xff] }
 0x169   : > { %802 = vperm.xlu1 %15832, %v16498_v31   ;;  %14422 = vmatprep.subr.mxu0 %v17047_v4 }
 0x16a   : > { %v1248_v13 = vadd.f32 %v1216_v52, %v1051_v60 }
 0x16c   : > { %1281 = vst.msk [vmem:[#allocation2 + $0x51] sm:$0xff] %vm251_vm0, %v1248_v13  ;;  %v16940_v48 = vpop.permute.xlu1 %782 }
 0x16d   : > { %15833 = vset.pattern.permute.xlu1 %v15921_v6  ;;  %v841_v60 = vmul.f32 %v16592_v61, %v16940_v48  ;;  %v645_v48 = vmul.f32 %v16597_v62, %v16920_v35 }
 0x16e   : > { %927 = vperm.xlu1 %15833, %v16854_v50  }
 0x16f   : > { %v677_v41 = vadd.f32 %v16609_v5, %v645_v48 }
 0x171   : > { %v908_v17 = vpop.permute.xlu1 %907 }
 0x172   : > { %15834 = vset.pattern.permute.xlu1 %v15920_v0 }
 0x173   : > { %734 = vperm.xlu1 %15834, %v16631_v23   ;;  %v16946_v24 = vld [vmem:[#allocation2 + $0x50] sm:$0xff] }
 0x174   : > { %14216 = vmatmul.mubr.msk.f32.gmra.mxu0 %vm251_vm0, %v16946_v24 }
 0x176   : > { %v16950_v57 = vpop.permute.xlu1 %503 }
 0x177   : > { %15835 = vset.pattern.permute.xlu1 %v15921_v6  ;;  %v629_v34 = vmul.f32 %v16597_v62, %v16950_v57 }
 0x178   : > { %995 = vperm.xlu1 %15835, %v15848_v42  }
 0x17b   : > { %v16962_v38 = vpop.permute.xlu1 %786 }
 0x17c   : > { %15836 = vset.pattern.permute.xlu1 %v15920_v0 }
 0x17d   : > { %738 = vperm.xlu1 %15836, %v16453_v22  }
 0x180   : > { %v1173_v43 = vpop.permute.xlu1 %1172 }
 0x181   : > { %v1234_v45 = vmul.f32 %v16653_v58, %v1173_v43  ;;  %15838 = vset.pattern.permute.xlu1 %v15924_v20 }
 0x182   : > { %1124 = vperm.xlu1 %15838, %v16854_v50   ;;  %v626_v50 = vmul.f32 %v16597_v62, %v16869_v49  ;;  %v1020_v49 = vmul.f32 %v16648_v46, %v908_v17 }
 0x183   : > { %v1266_v32 = vadd.f32 %v1234_v45, %v1069_v28 }
 0x185   : > { %1299 = vst.msk [vmem:[#allocation2 + $0x129] sm:$0xff] %vm251_vm0, %v1266_v32  ;;  %v16985_v63 = vpop.permute.xlu1 %588 }
 0x186   : > { %15839 = vset.pattern.permute.xlu1 %v15921_v6 }
 0x187   : > { %931 = vperm.xlu1 %15839, %v16631_v23   ;;  %v658_v23 = vadd.f32 %v16609_v5, %v626_v50 }
 0x189   : > { %v855_v10 = vadd.f32 %v823_v14, %v658_v23 }
 0x18a   : > { %v980_v27 = vpop.permute.xlu1 %979 }
 0x18b   : > { %935 = vperm.xlu1 %15839, %v16453_v22   ;;  %v1052_v51 = vadd.f32 %v1020_v49, %v855_v10  ;;  %v12280_v22 = vld [vmem:[%s21532_s3 + $0x28] sm:$0xff]  ;;  %v1038_v17 = vmul.f32 %v16648_v46, %v980_v27  ;;  %v661_v27 = vadd.f32 %v16609_v5, %v629_v34 }
 0x18c   : > { %v17002_v3 = vld [vmem:[#allocation2 + $0x128] sm:$0xff]  ;;  %14258 = vmatprep.subr.mxu1 %v12280_v22 }
 0x18d   : > { %14243 = vmatmul.mubr.msk.f32.gmra.mxu1 %vm251_vm0, %v17002_v3 }
 0x18e   : > { %14259 = vmatpush3.msra.mxu1 %v12280_v22 }
 0x18f   : > { %15840 = vset.pattern.permute.xlu1 %v15924_v20  ;;  %v1105_v26 = vpop.permute.xlu1 %1104 }
 0x190   : > { %v1217_v36 = vmul.f32 %v16653_v58, %v1105_v26  ;;  %1196 = vperm.xlu1 %15840, %v16498_v31   ;;  %v12279_v31 = vld [vmem:[%s21532_s3 + $0x20] sm:$0xff] }
 0x191   : > { %14260 = vmatprep.subr.mxu1 %v12279_v31 }
 0x192   : > { %v1249_v2 = vadd.f32 %v1217_v36, %v1052_v51  ;;  %14261 = vmatpush3.msra.mxu1 %v12279_v31  ;;  %v1121_v31 = vpop.permute.xlu0 %1120 }
 0x194   : > { %1282 = vst.msk [vmem:[#allocation2 + $0x61] sm:$0xff] %vm251_vm0, %v1249_v2  ;;  %1132 = vperm.xlu1 %15840, %v15849_v30   ;;  %v723_v25 = vpop.permute.xlu1 %722  ;;  %v646_v2 = vmul.f32 %v16597_v62, %v16985_v63 }
 0x195   : > { %v826_v37 = vmul.f32 %v16592_v61, %v723_v25 }
 0x197   : > { %v858_v49 = vadd.f32 %v826_v37, %v661_v27 }
 0x198   : > { %15842 = vset.pattern.permute.xlu1 %v15922_v12  ;;  %v17039_v12 = vld [vmem:[%s21532_s3 + $0x78] sm:$0xff] }
 0x199   : > { %v984_v11 = vpop.permute.xlu1 %983  ;;  %613 = vperm.xlu1 %15842, %v16973_v9   ;;  %14366 = vmatprep.subr.mxu1 %v17039_v12 }
 0x19a   : > { %v1039_v18 = vmul.f32 %v16648_v46, %v984_v11 }
 0x19b   : > { %v17025_v59 = vld [vmem:[#allocation2 + $0x60] sm:$0xff]  ;;  %v17027_v54 = vld [vmem:[#allocation2 + $0x68] sm:$0xff] }
 0x19c   : > { %14218 = vmatprep.mubr.msk.f32.mxu0 %vm251_vm0, %v17025_v59 }
 0x19d   : > { %14219 = vmatmul.mubr.msk.f32.gmra.mxu0 %vm251_vm0, %v17027_v54  ;;  %15843 = vset.pattern.permute.xlu1 %v15920_v0  ;;  %v644_v0 = vmul.f32 %v16597_v62, %v16901_v40 }
 0x19e   : > { %v509_v53 = vpop.permute.xlu1 %508  ;;  %14221 = vmatprep.mubr.msk.f32.mxu0 %vm251_vm0, %v17033_v1  ;;  %806 = vperm.xlu1 %15843, %v16953_v39  }
 0x19f   : > { %v676_v13 = vadd.f32 %v16609_v5, %v644_v0  ;;  %v630_v22 = vmul.f32 %v16597_v62, %v509_v53  ;;  %v1221_v0 = vmul.f32 %v16653_v58, %v1121_v31  ;;  %v678_v53 = vadd.f32 %v16609_v5, %v646_v2 }
 0x1a1   : > { %v873_v42 = vadd.f32 %v841_v60, %v676_v13  ;;  %v662_v30 = vadd.f32 %v16609_v5, %v630_v22 }
 0x1a2   : > { %15845 = vset.pattern.permute.xlu1 %v15921_v6 }
 0x1a3   : > { %v791_v52 = vpop.permute.xlu1 %790  ;;  %1003 = vperm.xlu1 %15845, %v16953_v39   ;;  %v1070_v8 = vadd.f32 %v1038_v17, %v873_v42  ;;  %v842_v39 = vmul.f32 %v16592_v61, %v16962_v38 }
 0x1a4   : > { %v843_v25 = vmul.f32 %v16592_v61, %v791_v52 }
 0x1a6   : > { %v875_v63 = vadd.f32 %v843_v25, %v678_v53 }
 0x1a7   : > { %1007 = vperm.xlu1 %15845, %v16973_v9  }
 0x1a8   : > { %v1177_v44 = vpop.permute.xlu1 %1176 }
 0x1a9   : > { %v1235_v21 = vmul.f32 %v16653_v58, %v1177_v44 }
 0x1ab   : > { %v1267_v40 = vadd.f32 %v1235_v21, %v1070_v8  ;;  %15847 = vset.pattern.permute.xlu1 %v15924_v20  ;;  %v874_v20 = vadd.f32 %v842_v39, %v677_v41 }
 0x1ac   : > { %1204 = vperm.xlu1 %15847, %v16973_v9  }
 0x1ad   : > { %1300 = vst.msk [vmem:[#allocation2 + $0x139] sm:$0xff] %vm251_vm0, %v1267_v40  ;;  %v17064_v6 = vpop.permute.xlu1 %513  ;;  %v1071_v28 = vadd.f32 %v1039_v18, %v874_v20 }
 0x1b2   : > { %v920_v19 = vpop.permute.xlu1 %919 }
 0x1b3   : > { %v1023_v23 = vmul.f32 %v16648_v46, %v920_v19 }
 0x1b4   : > { %v17072_v43 = vld [vmem:[#allocation2 + $0x138] sm:$0xff] }
 0x1b5   : > { %14245 = vmatprep.mubr.msk.f32.mxu1 %vm251_vm0, %v17072_v43  ;;  %v1055_v26 = vadd.f32 %v1023_v23, %v858_v49 }
 0x1b7   : > { %v1181_v9 = vpop.permute.xlu1 %1180 }
 0x1b8   : > { %v1236_v45 = vmul.f32 %v16653_v58, %v1181_v9 }
 0x1ba   : > { %v1268_v55 = vadd.f32 %v1236_v45, %v1071_v28  ;;  %v1193_v45 = vpop.permute.xlu0 %1192 }
 0x1bc   : > { %1301 = vst.msk [vmem:[#allocation2 + $0x141] sm:$0xff] %vm251_vm0, %v1268_v55  ;;  %v727_v35 = vpop.permute.xlu1 %726  ;;  %v631_v55 = vmul.f32 %v16597_v62, %v17064_v6 }
 0x1bd   : > { %v827_v57 = vmul.f32 %v16592_v61, %v727_v35  ;;  %v1239_v35 = vmul.f32 %v16653_v58, %v1193_v45 }
 0x1be   : > { %v663_v23 = vadd.f32 %v16609_v5, %v631_v55  ;;  %v1129_v2 = vpop.permute.xlu0 %1128 }
 0x1bf   : > { %v859_v11 = vadd.f32 %v827_v57, %v662_v30 }
 0x1c1   : > { %v988_v38 = vpop.permute.xlu1 %987 }
 0x1c2   : > { %v1040_v13 = vmul.f32 %v16648_v46, %v988_v38 }
 0x1c3   : > { %v17078_v32 = vld [vmem:[#allocation2 + $0x140] sm:$0xff] }
 0x1c4   : > { %14246 = vmatmul.mubr.msk.f32.gmra.mxu1 %vm251_vm0, %v17078_v32  ;;  %v1072_v8 = vadd.f32 %v1040_v13, %v875_v63 }
 0x1c6   : > { %v17082_v50 = vpop.permute.xlu1 %603 }
 0x1cb   : > { %v731_v14 = vpop.permute.xlu1 %730 }
 0x1cc   : > { %v828_v34 = vmul.f32 %v16592_v61, %v731_v14 }
 0x1d0   : > { %v1117_v10 = vpop.permute.xlu1 %1116 }
 0x1d1   : > { %v1220_v51 = vmul.f32 %v16653_v58, %v1117_v10  ;;  %v860_v10 = vadd.f32 %v828_v34, %v663_v23  ;;  %v1705_v34 = vld [vmem:[#allocation2 + $0x1] sm:$0xff]  ;;  %v1706_v23 = vld [vmem:[#allocation2 + $0x9] sm:$0xff] }
 0x1d3   : > { %v1252_v36 = vadd.f32 %v1220_v51, %v1055_v26 }
 0x1d5   : > { %1285 = vst.msk [vmem:[#allocation2 + $0x81] sm:$0xff] %vm251_vm0, %v1252_v36  ;;  %v519_v29 = vpop.permute.xlu1 %518 }
 0x1d6   : > { %v632_v26 = vmul.f32 %v16597_v62, %v519_v29  ;;  %v15851_v62 = vld [vmem:[%s21530_s1] ss:$0 sm:$0xff] }
 0x1d7   : > { %v649_v29 = vmul.f32 %v15851_v62, %v17082_v50  ;;  %v633_v13 = vmul.f32 %v15851_v62, %v16695_v33 }
 0x1d8   : > { %v664_v22 = vadd.f32 %v16609_v5, %v632_v26 }
 0x1da   : > { %v924_v15 = vpop.permute.xlu1 %923 }
 0x1db   : > { %v1024_v60 = vmul.f32 %v16648_v46, %v924_v15  ;;  %v1223_v15 = vmul.f32 %v16653_v58, %v1129_v2 }
 0x1dc   : > { %v17101_v17 = vld [vmem:[#allocation2 + $0x80] sm:$0xff] }
 0x1dd   : > { %v1056_v42 = vadd.f32 %v1024_v60, %v859_v11  ;;  %14222 = vmatmul.mubr.msk.f32.gmra.mxu0 %vm251_vm0, %v17101_v17 }
 0x1df   : > { %v1253_v44 = vadd.f32 %v1221_v0, %v1056_v42  ;;  %v1185_v52 = vpop.permute.xlu1 %1184  ;;  %v15852_v0 = vld [vmem:[%s21531_s2] ss:$0 sm:$0xff] }
 0x1e0   : > { %v1237_v21 = vmul.f32 %v16653_v58, %v1185_v52  ;;  %v681_v50 = vadd.f32 %v15852_v0, %v649_v29 }
 0x1e1   : > { %1286 = vst.msk [vmem:[#allocation2 + $0x91] sm:$0xff] %vm251_vm0, %v1253_v44  ;;  %v1043_v44 = vmul.f32 %v16648_v46, %v16757_v47  ;;  %v17168_v47 = vld [vmem:[%s21530_s1 + $0x3] ss:$0 sm:$0xff] }
 0x1e2   : > { %v1269_v40 = vadd.f32 %v1237_v21, %v1072_v8  ;;  %v665_v21 = vadd.f32 %v15852_v0, %v633_v13 }
 0x1e4   : > { %1302 = vst.msk [vmem:[#allocation2 + $0x151] sm:$0xff] %vm251_vm0, %v1269_v40  ;;  %v803_v48 = vpop.permute.xlu1 %802 }
 0x1e8   : > { %v17108_v39 = vld [vmem:[#allocation2 + $0x90] sm:$0xff] }
 0x1e9   : > { %v928_v19 = vpop.permute.xlu1 %927  ;;  %14224 = vmatprep.mubr.msk.f32.mxu0 %vm251_vm0, %v17108_v39 }
 0x1ea   : > { %v1025_v49 = vmul.f32 %v16648_v46, %v928_v19 }
 0x1eb   : > { %v17112_v41 = vld [vmem:[#allocation2 + $0x150] sm:$0xff]  ;;  %v17114_v18 = vld [vmem:[#allocation2 + $0x158] sm:$0xff] }
 0x1ec   : > { %14248 = vmatprep.mubr.msk.f32.mxu1 %vm251_vm0, %v17112_v41  ;;  %v1057_v36 = vadd.f32 %v1025_v49, %v860_v10 }
 0x1ed   : > { %14249 = vmatmul.mubr.msk.f32.gmra.mxu1 %vm251_vm0, %v17114_v18 }
 0x1ee   : > { %v735_v20 = vpop.permute.xlu1 %734 }
 0x1f3   : > { %v996_v9 = vpop.permute.xlu1 %995 }
 0x1f4   : > { %v1042_v28 = vmul.f32 %v16648_v46, %v996_v9 }
 0x1f6   : > { %v1074_v38 = vadd.f32 %v1042_v28, %v16697_v7  ;;  %v17134_v7 = vld [vmem:[%s21530_s1 + $0x1] ss:$0 sm:$0xff] }
 0x1f7   : > { %v829_v61 = vmul.f32 %v17134_v7, %v735_v20  ;;  %v846_v5 = vmul.f32 %v17134_v7, %v803_v48 }
 0x1f8   : > { %v1271_v37 = vadd.f32 %v1239_v35, %v1074_v38  ;;  %v739_v27 = vpop.permute.xlu1 %738  ;;  %v609_v35 = vpop.permute.xlu0 %608 }
 0x1f9   : > { %v861_v25 = vadd.f32 %v829_v61, %v664_v22  ;;  %v878_v42 = vadd.f32 %v846_v5, %v681_v50  ;;  %v830_v52 = vmul.f32 %v17134_v7, %v739_v27  ;;  %v650_v38 = vmul.f32 %v15851_v62, %v609_v35  ;;  %v12353_v61 = vld [vmem:[%s21532_s3 + $0x70] sm:$0xff]  ;;  %v17217_v50 = vld [vmem:[#allocation2 + $0x1a] sm:$0xff] }
 0x1fa   : > { %1304 = vst.msk [vmem:[#allocation2 + $0x169] sm:$0xff] %vm251_vm0, %v1271_v37  ;;  %v12389_v5 = vld [vmem:[%s21532_s3 + $0x90] sm:$0xff] }
 0x1fb   : > { %v1075_v48 = vadd.f32 %v1043_v44, %v878_v42  ;;  %v862_v19 = vadd.f32 %v830_v52, %v665_v21  ;;  %v682_v10 = vadd.f32 %v15852_v0, %v650_v38  ;;  %v17221_v42 = vld [vmem:[#allocation2 + $0x39] sm:$0xff]  ;;  %v17223_v44 = vld [vmem:[#allocation2 + $0x22] sm:$0xff]  ;;  %v17257_v35 = vld [vmem:[#allocation2 + $0x4a] sm:$0xff] }
 0x1fc   : > { %v811_v37 = vpop.permute.xlu0 %810  ;;  %v17232_v21 = vld [vmem:[#allocation2 + $0x49] sm:$0xff] }
 0x1fd   : > { %v1125_v51 = vpop.permute.xlu1 %1124 }
 0x1fe   : > { %v1222_v6 = vmul.f32 %v16653_v58, %v1125_v51 }
 0x200   : > { %v1254_v14 = vadd.f32 %v1222_v6, %v1057_v36  ;;  %v2095_v6 = vld [vmem:[#allocation2 + $0x2] sm:$0xff]  ;;  %v1201_v22 = vpop.permute.xlu0 %1200 }
 0x201   : > { %v17138_v57 = vld [vmem:[#allocation2 + $0x168] sm:$0xff] }
 0x202   : > { %1287 = vst.msk [vmem:[#allocation2 + $0x99] sm:$0xff] %vm251_vm0, %v1254_v14  ;;  %v932_v30 = vpop.permute.xlu1 %931  ;;  %14251 = vmatprep.mubr.msk.f32.mxu1 %vm251_vm0, %v17138_v57  ;;  %v17190_v14 = vld [vmem:[#allocation2 + $0x19] sm:$0xff] }
 0x203   : > { %v1026_v31 = vmul.f32 %v16648_v46, %v932_v30 }
 0x205   : > { %v1058_v11 = vadd.f32 %v1026_v31, %v861_v25  ;;  %v848_v25 = vmul.f32 %v17134_v7, %v811_v37  ;;  %v17197_v31 = vld [vmem:[#allocation2 + $0x21] sm:$0xff]  ;;  %v17271_v37 = vld [vmem:[#allocation2 + $0x52] sm:$0xff] }
 0x206   : > { %v936_v60 = vpop.permute.xlu1 %935 }
 0x207   : > { %v1255_v53 = vadd.f32 %v1223_v15, %v1058_v11  ;;  %v1027_v40 = vmul.f32 %v16648_v46, %v936_v60  ;;  %v1241_v11 = vmul.f32 %v17168_v47, %v1201_v22  ;;  %v17311_v22 = vld [vmem:[#allocation2 + $0x82] sm:$0xff] }
 0x208   : > { %21571 = vst [vmem:[#allocation10_spill] sm:$0xff] %v17311_v22 }
 0x209   : > { %1288 = vst.msk [vmem:[#allocation2 + $0xa9] sm:$0xff] %vm251_vm0, %v1255_v53  ;;  %v17155_v63 = vld [vmem:[#allocation2 + $0x98] sm:$0xff]  ;;  %v1059_v28 = vadd.f32 %v1027_v40, %v862_v19 }
 0x20a   : > { %14225 = vmatmul.mubr.msk.f32.gmra.mxu0 %vm251_vm0, %v17155_v63  ;;  %v17234_v40 = vld [vmem:[#allocation2 + $0x32] sm:$0xff] }
 0x20b   : > { %v1197_v8 = vpop.permute.xlu1 %1196  ;;  %v17244_v19 = vld [vmem:[#allocation2 + $0x51] sm:$0xff] }
 0x20c   : > { %v1240_v33 = vmul.f32 %v16653_v58, %v1197_v8 }
 0x20e   : > { %v1272_v20 = vadd.f32 %v1240_v33, %v1075_v48  ;;  %v12351_v48 = vld [vmem:[%s21532_s3 + $0x60] sm:$0xff] }
 0x20f   : > { %v1133_v9 = vpop.permute.xlu1 %1132 }
 0x210   : > { %1305 = vst.msk [vmem:[#allocation2 + $0x171] sm:$0xff] %vm251_vm0, %v1272_v20  ;;  %v1224_v45 = vmul.f32 %v17168_v47, %v1133_v9  ;;  %v17171_v55 = vld [vmem:[#allocation2 + $0xa8] sm:$0xff]  ;;  %v17246_v20 = vld [vmem:[#allocation2 + $0x3a] sm:$0xff] }
 0x211   : > { %14227 = vmatprep.mubr.msk.f32.mxu0 %vm251_vm0, %v17171_v55  ;;  %v12387_v9 = vld [vmem:[%s21532_s3 + $0x80] sm:$0xff] }
 0x212   : > { %v1256_v46 = vadd.f32 %v1224_v45, %v1059_v28  ;;  %v17255_v45 = vld [vmem:[#allocation2 + $0x61] sm:$0xff] }
 0x214   : > { %1289 = vst.msk [vmem:[#allocation2 + $0xb1] sm:$0xff] %vm251_vm0, %v1256_v46  ;;  %v614_v58 = vpop.permute.xlu1 %613  ;;  %v17262_v46 = vld [vmem:[%s21532_s3 + $0xb8] sm:$0xff] }
 0x215   : > { %v651_v26 = vmul.f32 %v15851_v62, %v614_v58  ;;  %v2096_v62 = vld [vmem:[#allocation2 + $0xa] sm:$0xff] }
 0x217   : > { %v17176_v27 = vld [vmem:[#allocation2 + $0x170] sm:$0xff]  ;;  %v683_v2 = vadd.f32 %v15852_v0, %v651_v26  ;;  %v12352_v0 = vld [vmem:[%s21532_s3 + $0x68] sm:$0xff] }
 0x218   : > { %14252 = vmatmul.mubr.msk.f32.gmra.mxu1 %vm251_vm0, %v17176_v27  ;;  %v17295_v26 = vld [vmem:[#allocation2 + $0x6a] sm:$0xff] }
 0x219   : > { %14262 = vmatprep.mubr.msk.f32.mxu1 %vm251_vm0, %v1705_v34  ;;  %v807_v49 = vpop.permute.xlu1 %806  ;;  %v880_v13 = vadd.f32 %v848_v25, %v683_v2  ;;  %v17269_v34 = vld [vmem:[#allocation2 + $0x69] sm:$0xff]  ;;  %v17333_v25 = vld [vmem:[#allocation2 + $0xc1] sm:$0xff] }
 0x21a   : > { %v847_v51 = vmul.f32 %v17134_v7, %v807_v49  ;;  %v17209_v7 = vld [vmem:[#allocation2 + $0x31] sm:$0xff]  ;;  %v17285_v49 = vld [vmem:[#allocation2 + $0x62] sm:$0xff] }
 0x21b   : > { %v17182_v36 = vld [vmem:[#allocation2 + $0xb0] sm:$0xff] }
 0x21c   : > { %14228 = vmatmul.mubr.msk.f32.gmra.mxu0 %vm251_vm0, %v17182_v36  ;;  %14263 = vmatmul.mubr.msk.f32.vlgmr.msra.gmra.mxu1 %vm251_vm0, %v1706_v23  ;;  %v879_v29 = vadd.f32 %v847_v51, %v682_v10  ;;  %v17283_v23 = vld [vmem:[#allocation2 + $0x79] sm:$0xff]  ;;  %v17293_v10 = vld [vmem:[#allocation2 + $0x81] sm:$0xff]  ;;  %v17301_v51 = vld [vmem:[#allocation2 + $0x91] sm:$0xff] }
 0x21d   : > { %14265 = vmatprep.mubr.msk.f32.mxu1 %vm251_vm0, %v17190_v14  ;;  %14367 = vmatpush3.msra.mxu1 %v17039_v12  ;;  %v15854_v12 = vld [vmem:[%s21530_s1 + $0x2] ss:$0 sm:$0xff]  ;;  %v17325_v2 = vld [vmem:[#allocation2 + $0xb1] sm:$0xff] }
 0x21e   : > { %14318 = vmatprep.mubr.msk.f32.mxu0 %vm251_vm0, %v2095_v6  ;;  %14368 = vmatprep.subr.mxu1 %v12353_v61  ;;  %v1004_v30 = vpop.permute.xlu1 %1003  ;;  %v17303_v6 = vld [vmem:[#allocation2 + $0x7a] sm:$0xff] }
 0x21f   : > { %14369 = vmatpush3.msra.mxu1 %v12353_v61  ;;  %v1044_v15 = vmul.f32 %v15854_v12, %v1004_v30  ;;  %21570 = vst [vmem:[#allocation9_spill] sm:$0xff] %v17303_v6  ;;  %v17309_v61 = vld [vmem:[#allocation2 + $0x99] sm:$0xff] }
 0x220   : > { %14266 = vmatmul.mubr.msk.f32.gmra.mxu1 %vm251_vm0, %v17197_v31  ;;  %14319 = vmatmul.mubr.msk.f32.vlgmr.msra.gmra.mxu0 %vm251_vm0, %v2096_v62  ;;  %v17317_v62 = vld [vmem:[#allocation2 + $0xa9] sm:$0xff]  ;;  %v17327_v30 = vld [vmem:[#allocation2 + $0x9a] sm:$0xff] }
 0x221   : > { %14423 = vmatpush3.msra.mxu0 %v17047_v4  ;;  %14268 = vmatprep.mubr.msk.f32.mxu1 %vm251_vm0, %v17209_v7  ;;  %v1076_v60 = vadd.f32 %v1044_v15, %v879_v29  ;;  %v12388_v4 = vld [vmem:[%s21532_s3 + $0x88] sm:$0xff]  ;;  %v17319_v29 = vld [vmem:[#allocation2 + $0x92] sm:$0xff]  ;;  %21573 = vst [vmem:[#allocation12_spill] sm:$0xff] %v17327_v30 }
 0x222   : > { %14321 = vmatprep.mubr.msk.f32.mxu0 %vm251_vm0, %v17217_v50  ;;  %14424 = vmatprep.subr.mxu0 %v12389_v5  ;;  %v1008_v53 = vpop.permute.xlu1 %1007  ;;  %21572 = vst [vmem:[#allocation11_spill] sm:$0xff] %v17319_v29  ;;  %v17343_v15 = vld [vmem:[#allocation2 + $0xb2] sm:$0xff] }
 0x223   : > { %14425 = vmatpush3.msra.mxu0 %v12389_v5  ;;  %14370 = vmatprep.subr.mxu1 %v12352_v0  ;;  %v1045_v52 = vmul.f32 %v15854_v12, %v1008_v53  ;;  %v1273_v8 = vadd.f32 %v1241_v11, %v1076_v60  ;;  %v17335_v5 = vld [vmem:[#allocation2 + $0xaa] sm:$0xff]  ;;  %21575 = vst [vmem:[#allocation14_spill] sm:$0xff] %v17343_v15  ;;  %v17349_v11 = vld [vmem:[#allocation2 + $0xd9] sm:$0xff]  ;;  %v17357_v60 = vld [vmem:[#allocation2 + $0xe1] sm:$0xff] }
 0x224   : > { %14269 = vmatmul.mubr.msk.f32.gmra.mxu1 %vm251_vm0, %v17221_v42  ;;  %14322 = vmatmul.mubr.msk.f32.gmra.mxu0 %vm251_vm0, %v17223_v44  ;;  %21574 = vst [vmem:[#allocation13_spill] sm:$0xff] %v17335_v5  ;;  %v17341_v12 = vld [vmem:[#allocation2 + $0xc9] sm:$0xff] }
 0x225   : > { %14271 = vmatprep.mubr.msk.f32.mxu1 %vm251_vm0, %v17232_v21  ;;  %14324 = vmatprep.mubr.msk.f32.mxu0 %vm251_vm0, %v17234_v40  ;;  %1306 = vst.msk [vmem:[#allocation2 + $0x181] sm:$0xff] %vm251_vm0, %v1273_v8  ;;  %v1077_v33 = vadd.f32 %v1045_v52, %v880_v13  ;;  %v17359_v53 = vld [vmem:[#allocation2 + $0xca] sm:$0xff]  ;;  %v17373_v52 = vld [vmem:[#allocation2 + $0xf9] sm:$0xff]  ;;  %v17375_v8 = vld [vmem:[#allocation2 + $0xe2] sm:$0xff] }
 0x226   : > { %14371 = vmatpush3.msra.mxu1 %v12352_v0  ;;  %14426 = vmatprep.subr.mxu0 %v12388_v4  ;;  %v17351_v0 = vld [vmem:[#allocation2 + $0xc2] sm:$0xff]  ;;  %21577 = vst [vmem:[#allocation16_spill] sm:$0xff] %v17359_v53  ;;  %v17365_v13 = vld [vmem:[#allocation2 + $0xf1] sm:$0xff]  ;;  %21579 = vst [vmem:[#allocation18_spill] sm:$0xff] %v17375_v8 }
 0x227   : > { %14427 = vmatpush3.msra.mxu0 %v12388_v4  ;;  %14372 = vmatprep.subr.mxu1 %v12351_v48  ;;  %v1205_v28 = vpop.permute.xlu1 %1204  ;;  %21576 = vst [vmem:[#allocation15_spill] sm:$0xff] %v17351_v0  ;;  %v17367_v4 = vld [vmem:[#allocation2 + $0xda] sm:$0xff] }
 0x228   : > { %14272 = vmatmul.mubr.msk.f32.gmra.mxu1 %vm251_vm0, %v17244_v19  ;;  %14325 = vmatmul.mubr.msk.f32.gmra.mxu0 %vm251_vm0, %v17246_v20  ;;  %v1242_v58 = vmul.f32 %v17168_v47, %v1205_v28  ;;  %v17277_v47 = vld [vmem:[%s21532_s3 + $0xd8] sm:$0xff]  ;;  %21578 = vst [vmem:[#allocation17_spill] sm:$0xff] %v17367_v4 }
 0x229   : > { %14274 = vmatprep.mubr.msk.f32.mxu1 %vm251_vm0, %v17255_v45  ;;  %14327 = vmatprep.mubr.msk.f32.mxu0 %vm251_vm0, %v17257_v35  ;;  %v17391_v28 = vld [vmem:[#allocation2 + $0xfa] sm:$0xff] }
 0x22a   : > { %14373 = vmatpush3.msra.mxu1 %v12351_v48  ;;  %14428 = vmatprep.subr.mxu0 %v12387_v9  ;;  %v1274_v38 = vadd.f32 %v1242_v58, %v1077_v33  ;;  %v17381_v48 = vld [vmem:[#allocation2 + $0x109] sm:$0xff]  ;;  %v17383_v33 = vld [vmem:[#allocation2 + $0xf2] sm:$0xff]  ;;  %21581 = vst [vmem:[#allocation20_spill] sm:$0xff] %v17391_v28  ;;  %v17397_v58 = vld [vmem:[#allocation2 + $0x121] sm:$0xff] }
 0x22b   : > { %14429 = vmatpush3.msra.mxu0 %v12387_v9  ;;  %14478 = vmatprep.subr.mxu1 %v17262_v46  ;;  %21580 = vst [vmem:[#allocation19_spill] sm:$0xff] %v17383_v33  ;;  %v17389_v9 = vld [vmem:[#allocation2 + $0x111] sm:$0xff] }
 0x22c   : > { %14275 = vmatmul.mubr.msk.f32.gmra.mxu1 %vm251_vm0, %v17269_v34  ;;  %14328 = vmatmul.mubr.msk.f32.gmra.mxu0 %vm251_vm0, %v17271_v37  ;;  %1307 = vst.msk [vmem:[#allocation2 + $0x189] sm:$0xff] %vm251_vm0, %v1274_v38  ;;  %v17399_v38 = vld [vmem:[#allocation2 + $0x10a] sm:$0xff] }
 0x22d   : > { %14277 = vmatprep.mubr.msk.f32.mxu1 %vm251_vm0, %v17283_v23  ;;  %14330 = vmatprep.mubr.msk.f32.mxu0 %vm251_vm0, %v17285_v49  ;;  %21582 = vst [vmem:[#allocation21_spill] sm:$0xff] %v17399_v38 }
 0x22e   : > { %14534 = vmatprep.subr.mxu0 %v17277_v47 }
 0x230   : > { %14278 = vmatmul.mubr.msk.f32.gmra.mxu1 %vm251_vm0, %v17293_v10  ;;  %14331 = vmatmul.mubr.msk.f32.gmra.mxu0 %vm251_vm0, %v17295_v26 }
 0x231   : > { %14280 = vmatprep.mubr.msk.f32.mxu1 %vm251_vm0, %v17301_v51  ;;  %14333 = vmatprep.mubr.msk.f32.mxu0 %vm251_vm0, %v17303_v6  ;;  %v15855_v6 = vld [vmem:[#allocation2 + $0x30] sm:$0xff] }
 0x234   : > { %14281 = vmatmul.mubr.msk.f32.gmra.mxu1 %vm251_vm0, %v17309_v61  ;;  %14334 = vmatmul.mubr.msk.f32.gmra.mxu0 %vm251_vm0, %v17311_v22  ;;  %v17466_v22 = vld [vmem:[#allocation2 + $0x172] sm:$0xff] }
 0x235   : > { %14283 = vmatprep.mubr.msk.f32.mxu1 %vm251_vm0, %v17317_v62  ;;  %14336 = vmatprep.mubr.msk.f32.mxu0 %vm251_vm0, %v17319_v29  ;;  %v2485_v29 = vld [vmem:[#allocation2 + $0x18] sm:$0xff] }
 0x238   : > { %14284 = vmatmul.mubr.msk.f32.gmra.mxu1 %vm251_vm0, %v17325_v2  ;;  %14337 = vmatmul.mubr.msk.f32.gmra.mxu0 %vm251_vm0, %v17327_v30  ;;  %v17455_v30 = vld [vmem:[#allocation2 + $0x15a] sm:$0xff] }
 0x239   : > { %14286 = vmatprep.mubr.msk.f32.mxu1 %vm251_vm0, %v17333_v25  ;;  %14339 = vmatprep.mubr.msk.f32.mxu0 %vm251_vm0, %v17335_v5  ;;  %v17447_v5 = vld [vmem:[#allocation2 + $0x152] sm:$0xff]  ;;  %21589 = vst [vmem:[#allocation28_spill] sm:$0xff] %v17455_v30 }
 0x23a   : > { %21588 = vst [vmem:[#allocation27_spill] sm:$0xff] %v17447_v5 }
 0x23c   : > { %14287 = vmatmul.mubr.msk.f32.gmra.mxu1 %vm251_vm0, %v17341_v12  ;;  %14340 = vmatmul.mubr.msk.f32.gmra.mxu0 %vm251_vm0, %v17343_v15  ;;  %v17439_v15 = vld [vmem:[#allocation2 + $0x142] sm:$0xff] }
 0x23d   : > { %14289 = vmatprep.mubr.msk.f32.mxu1 %vm251_vm0, %v17349_v11  ;;  %14342 = vmatprep.mubr.msk.f32.mxu0 %vm251_vm0, %v17351_v0  ;;  %v17431_v0 = vld [vmem:[#allocation2 + $0x13a] sm:$0xff]  ;;  %21587 = vst [vmem:[#allocation26_spill] sm:$0xff] %v17439_v15 }
 0x23e   : > { %21586 = vst [vmem:[#allocation25_spill] sm:$0xff] %v17431_v0 }
 0x240   : > { %14290 = vmatmul.mubr.msk.f32.gmra.mxu1 %vm251_vm0, %v17357_v60  ;;  %14343 = vmatmul.mubr.msk.f32.gmra.mxu0 %vm251_vm0, %v17359_v53  ;;  %v17423_v53 = vld [vmem:[#allocation2 + $0x12a] sm:$0xff] }
 0x241   : > { %14292 = vmatprep.mubr.msk.f32.mxu1 %vm251_vm0, %v17365_v13  ;;  %14345 = vmatprep.mubr.msk.f32.mxu0 %vm251_vm0, %v17367_v4  ;;  %v17415_v4 = vld [vmem:[#allocation2 + $0x122] sm:$0xff]  ;;  %21585 = vst [vmem:[#allocation24_spill] sm:$0xff] %v17423_v53 }
 0x242   : > { %21584 = vst [vmem:[#allocation23_spill] sm:$0xff] %v17415_v4 }
 0x244   : > { %14293 = vmatmul.mubr.msk.f32.gmra.mxu1 %vm251_vm0, %v17373_v52  ;;  %14346 = vmatmul.mubr.msk.f32.gmra.mxu0 %vm251_vm0, %v17375_v8  ;;  %v17407_v8 = vld [vmem:[#allocation2 + $0x112] sm:$0xff] }
 0x245   : > { %14295 = vmatprep.mubr.msk.f32.mxu1 %vm251_vm0, %v17381_v48  ;;  %14348 = vmatprep.mubr.msk.f32.mxu0 %vm251_vm0, %v17383_v33  ;;  %v17405_v33 = vld [vmem:[#allocation2 + $0x129] sm:$0xff]  ;;  %21583 = vst [vmem:[#allocation22_spill] sm:$0xff] %v17407_v8 }
 0x248   : > { %14296 = vmatmul.mubr.msk.f32.gmra.mxu1 %vm251_vm0, %v17389_v9  ;;  %14349 = vmatmul.mubr.msk.f32.gmra.mxu0 %vm251_vm0, %v17391_v28  ;;  %v17413_v28 = vld [vmem:[#allocation2 + $0x139] sm:$0xff] }
 0x249   : > { %14298 = vmatprep.mubr.msk.f32.mxu1 %vm251_vm0, %v17397_v58  ;;  %14351 = vmatprep.mubr.msk.f32.mxu0 %vm251_vm0, %v17399_v38  ;;  %v17421_v38 = vld [vmem:[#allocation2 + $0x141] sm:$0xff] }
 0x24c   : > { %14299 = vmatmul.mubr.msk.f32.gmra.mxu1 %vm251_vm0, %v17405_v33  ;;  %14352 = vmatmul.mubr.msk.f32.gmra.mxu0 %vm251_vm0, %v17407_v8  ;;  %v17429_v8 = vld [vmem:[#allocation2 + $0x151] sm:$0xff] }
 0x24d   : > { %14301 = vmatprep.mubr.msk.f32.mxu1 %vm251_vm0, %v17413_v28  ;;  %14354 = vmatprep.mubr.msk.f32.mxu0 %vm251_vm0, %v17415_v4  ;;  %v17437_v4 = vld [vmem:[#allocation2 + $0x159] sm:$0xff] }
 0x250   : > { %14302 = vmatmul.mubr.msk.f32.gmra.mxu1 %vm251_vm0, %v17421_v38  ;;  %14355 = vmatmul.mubr.msk.f32.gmra.mxu0 %vm251_vm0, %v17423_v53  ;;  %v17445_v53 = vld [vmem:[#allocation2 + $0x169] sm:$0xff] }
 0x251   : > { %14304 = vmatprep.mubr.msk.f32.mxu1 %vm251_vm0, %v17429_v8  ;;  %14357 = vmatprep.mubr.msk.f32.mxu0 %vm251_vm0, %v17431_v0  ;;  %v17453_v0 = vld [vmem:[#allocation2 + $0x171] sm:$0xff] }
 0x254   : > { %14305 = vmatmul.mubr.msk.f32.gmra.mxu1 %vm251_vm0, %v17437_v4  ;;  %14358 = vmatmul.mubr.msk.f32.gmra.mxu0 %vm251_vm0, %v17439_v15  ;;  %v17461_v15 = vld [vmem:[#allocation2 + $0x16a] sm:$0xff] }
 0x255   : > { %14307 = vmatprep.mubr.msk.f32.mxu1 %vm251_vm0, %v17445_v53  ;;  %14360 = vmatprep.mubr.msk.f32.mxu0 %vm251_vm0, %v17447_v5  ;;  %v2486_v5 = vld [vmem:[#allocation2 + $0x20] sm:$0xff] }
 0x258   : > { %14308 = vmatmul.mubr.msk.f32.gmra.mxu1 %vm251_vm0, %v17453_v0  ;;  %14361 = vmatmul.mubr.msk.f32.gmra.mxu0 %vm251_vm0, %v17455_v30  ;;  %v12425_v30 = vld [vmem:[%s21532_s3 + $0xb0] sm:$0xff] }
 0x259   : > { %14363 = vmatprep.mubr.msk.f32.mxu0 %vm251_vm0, %v17461_v15  ;;  %14374 = vmatprep.mubr.msk.f32.mxu1 %vm251_vm0, %v2485_v29  ;;  %v12461_v29 = vld [vmem:[%s21532_s3 + $0xd0] sm:$0xff] }
 0x25c   : > { %14364 = vmatmul.mubr.msk.f32.gmra.mxu0 %vm251_vm0, %v17466_v22  ;;  %14375 = vmatmul.mubr.msk.f32.vlgmr.msra.gmra.mxu1 %vm251_vm0, %v2486_v5  ;;  %v12532_v5 = vld [vmem:[%s21532_s3 + $0x108] sm:$0xff] }
 0x25d   : > { %14377 = vmatprep.mubr.msk.f32.mxu1 %vm251_vm0, %v15855_v6  ;;  %14430 = vmatprep.mubr.msk.f32.mxu0 %vm251_vm0, %v17190_v14  ;;  %v12424_v6 = vld [vmem:[%s21532_s3 + $0xa8] sm:$0xff]  ;;  %v17562_v14 = vld [vmem:[#allocation2 + $0xd8] sm:$0xff] }
 0x25e   : > { %14479 = vmatpush3.msra.mxu1 %v17262_v46  ;;  %v17574_v46 = vld [vmem:[#allocation2 + $0xf0] sm:$0xff] }
 0x25f   : > { %14480 = vmatprep.subr.mxu1 %v12425_v30 }
 0x260   : > { %14378 = vmatmul.mubr.msk.f32.gmra.mxu1 %vm251_vm0, %v16885_v56  ;;  %14431 = vmatmul.mubr.msk.f32.vlgmr.msra.gmra.mxu0 %vm251_vm0, %v17197_v31  ;;  %v12460_v56 = vld [vmem:[%s21532_s3 + $0xc8] sm:$0xff]  ;;  %v17568_v31 = vld [vmem:[#allocation2 + $0xe0] sm:$0xff] }
 0x261   : > { %14535 = vmatpush3.msra.mxu0 %v17277_v47  ;;  %14380 = vmatprep.mubr.msk.f32.mxu1 %vm251_vm0, %v16932_v16  ;;  %v12423_v16 = vld [vmem:[%s21532_s3 + $0xa0] sm:$0xff]  ;;  %v17580_v47 = vld [vmem:[#allocation2 + $0xf8] sm:$0xff] }
 0x262   : > { %14433 = vmatprep.mubr.msk.f32.mxu0 %vm251_vm0, %v17209_v7  ;;  %14481 = vmatpush3.msra.mxu1 %v12425_v30  ;;  %v3659_v30 = vld [vmem:[#allocation2 + $0x50] sm:$0xff] }
 0x263   : > { %14536 = vmatprep.subr.mxu0 %v12461_v29  ;;  %14482 = vmatprep.subr.mxu1 %v12424_v6 }
 0x264   : > { %14381 = vmatmul.mubr.msk.f32.gmra.mxu1 %vm251_vm0, %v16946_v24  ;;  %14434 = vmatmul.mubr.msk.f32.gmra.mxu0 %vm251_vm0, %v17221_v42  ;;  %v12459_v24 = vld [vmem:[%s21532_s3 + $0xc0] sm:$0xff] }
 0x265   : > { %14383 = vmatprep.mubr.msk.f32.mxu1 %vm251_vm0, %v17025_v59  ;;  %14436 = vmatprep.mubr.msk.f32.mxu0 %vm251_vm0, %v17232_v21  ;;  %v17517_v59 = vld [vmem:[%s21532_s3 + $0xf8] sm:$0xff] }
 0x266   : > { %14537 = vmatpush3.msra.mxu0 %v12461_v29  ;;  %14483 = vmatpush3.msra.mxu1 %v12424_v6  ;;  %v21599_v6 = vld [vmem:[#allocation17_spill] sm:$0xff] }
 0x267   : > { %14538 = vmatprep.subr.mxu0 %v12460_v56  ;;  %14484 = vmatprep.subr.mxu1 %v12423_v16 }
 0x268   : > { %14384 = vmatmul.mubr.msk.f32.gmra.mxu1 %vm251_vm0, %v17027_v54  ;;  %14437 = vmatmul.mubr.msk.f32.gmra.mxu0 %vm251_vm0, %v17244_v19  ;;  %v17531_v54 = vld [vmem:[%s21532_s3 + $0x118] sm:$0xff] }
 0x269   : > { %14386 = vmatprep.mubr.msk.f32.mxu1 %vm251_vm0, %v17033_v1  ;;  %14439 = vmatprep.mubr.msk.f32.mxu0 %vm251_vm0, %v17255_v45  ;;  %v17550_v1 = vld [vmem:[#allocation2 + $0xc0] sm:$0xff] }
 0x26a   : > { %14539 = vmatpush3.msra.mxu0 %v12460_v56  ;;  %14485 = vmatpush3.msra.mxu1 %v12423_v16  ;;  %v21600_v16 = vld [vmem:[#allocation18_spill] sm:$0xff] }
 0x26b   : > { %14540 = vmatprep.subr.mxu0 %v12459_v24  ;;  %14590 = vmatprep.subr.mxu1 %v17517_v59 }
 0x26c   : > { %14387 = vmatmul.mubr.msk.f32.gmra.mxu1 %vm251_vm0, %v17101_v17  ;;  %14440 = vmatmul.mubr.msk.f32.gmra.mxu0 %vm251_vm0, %v17269_v34  ;;  %v17556_v17 = vld [vmem:[#allocation2 + $0xc8] sm:$0xff] }
 0x26d   : > { %14389 = vmatprep.mubr.msk.f32.mxu1 %vm251_vm0, %v17108_v39  ;;  %14442 = vmatprep.mubr.msk.f32.mxu0 %vm251_vm0, %v17283_v23 }
 0x26e   : > { %14541 = vmatpush3.msra.mxu0 %v12459_v24  ;;  %v21601_v24 = vld [vmem:[#allocation19_spill] sm:$0xff] }
 0x26f   : > { %14646 = vmatprep.subr.mxu0 %v17531_v54 }
 0x270   : > { %14390 = vmatmul.mubr.msk.f32.gmra.mxu1 %vm251_vm0, %v17155_v63  ;;  %14443 = vmatmul.mubr.msk.f32.gmra.mxu0 %vm251_vm0, %v17293_v10  ;;  %v17586_v10 = vld [vmem:[#allocation2 + $0x108] sm:$0xff] }
 0x271   : > { %14392 = vmatprep.mubr.msk.f32.mxu1 %vm251_vm0, %v17171_v55  ;;  %14445 = vmatprep.mubr.msk.f32.mxu0 %vm251_vm0, %v17301_v51  ;;  %v17592_v51 = vld [vmem:[#allocation2 + $0x110] sm:$0xff] }
 0x274   : > { %14393 = vmatmul.mubr.msk.f32.gmra.mxu1 %vm251_vm0, %v17182_v36  ;;  %14446 = vmatmul.mubr.msk.f32.gmra.mxu0 %vm251_vm0, %v17309_v61  ;;  %v17598_v61 = vld [vmem:[#allocation2 + $0x120] sm:$0xff] }
 0x275   : > { %14395 = vmatprep.mubr.msk.f32.mxu1 %vm251_vm0, %v17550_v1  ;;  %14448 = vmatprep.mubr.msk.f32.mxu0 %vm251_vm0, %v17317_v62  ;;  %v12496_v62 = vld [vmem:[%s21532_s3 + $0xe8] sm:$0xff] }
 0x278   : > { %14396 = vmatmul.mubr.msk.f32.gmra.mxu1 %vm251_vm0, %v17556_v17  ;;  %14449 = vmatmul.mubr.msk.f32.gmra.mxu0 %vm251_vm0, %v17325_v2  ;;  %v3658_v2 = vld [vmem:[#allocation2 + $0x48] sm:$0xff] }
 0x279   : > { %14398 = vmatprep.mubr.msk.f32.mxu1 %vm251_vm0, %v17562_v14  ;;  %14451 = vmatprep.mubr.msk.f32.mxu0 %vm251_vm0, %v17333_v25  ;;  %v3660_v25 = vld [vmem:[#allocation2 + $0x60] sm:$0xff] }
 0x27c   : > { %14399 = vmatmul.mubr.msk.f32.gmra.mxu1 %vm251_vm0, %v17568_v31  ;;  %14452 = vmatmul.mubr.msk.f32.gmra.mxu0 %vm251_vm0, %v17341_v12  ;;  %v12495_v12 = vld [vmem:[%s21532_s3 + $0xe0] sm:$0xff] }
 0x27d   : > { %14401 = vmatprep.mubr.msk.f32.mxu1 %vm251_vm0, %v17574_v46  ;;  %14454 = vmatprep.mubr.msk.f32.mxu0 %vm251_vm0, %v17349_v11  ;;  %v3661_v11 = vld [vmem:[#allocation2 + $0x68] sm:$0xff] }
 0x280   : > { %14402 = vmatmul.mubr.msk.f32.gmra.mxu1 %vm251_vm0, %v17580_v47  ;;  %14455 = vmatmul.mubr.msk.f32.gmra.mxu0 %vm251_vm0, %v17357_v60  ;;  %v12531_v60 = vld [vmem:[%s21532_s3 + $0x100] sm:$0xff] }
 0x281   : > { %14404 = vmatprep.mubr.msk.f32.mxu1 %vm251_vm0, %v17586_v10  ;;  %14457 = vmatprep.mubr.msk.f32.mxu0 %vm251_vm0, %v17365_v13  ;;  %v17697_v13 = vpop.f32.mrf.mxu1 }
 0x284   : > { %14405 = vmatmul.mubr.msk.f32.gmra.mxu1 %vm251_vm0, %v17592_v51  ;;  %14458 = vmatmul.mubr.msk.f32.gmra.mxu0 %vm251_vm0, %v17373_v52  ;;  %v21591_v52 = vld [vmem:[#allocation10_spill] sm:$0xff] }
 0x285   : > { %14407 = vmatprep.mubr.msk.f32.mxu1 %vm251_vm0, %v17598_v61  ;;  %14460 = vmatprep.mubr.msk.f32.mxu0 %vm251_vm0, %v17381_v48  ;;  %v17708_v48 = vpop.f32.mrf.mxu0 }
 0x288   : > { %14408 = vmatmul.mubr.msk.f32.gmra.mxu1 %vm251_vm0, %v17002_v3  ;;  %14461 = vmatmul.mubr.msk.f32.gmra.mxu0 %vm251_vm0, %v17389_v9  ;;  %v17632_v3 = vld [vmem:[#allocation2 + $0x180] sm:$0xff]  ;;  %v21594_v9 = vld [vmem:[#allocation13_spill] sm:$0xff] }
 0x289   : > { %14410 = vmatprep.mubr.msk.f32.mxu1 %vm251_vm0, %v17072_v43  ;;  %14463 = vmatprep.mubr.msk.f32.mxu0 %vm251_vm0, %v17397_v58  ;;  %v17638_v43 = vld [vmem:[#allocation2 + $0x188] sm:$0xff]  ;;  %v21595_v58 = vld [vmem:[#allocation14_spill] sm:$0xff] }
 0x28c   : > { %14411 = vmatmul.mubr.msk.f32.gmra.mxu1 %vm251_vm0, %v17078_v32  ;;  %14464 = vmatmul.mubr.msk.f32.gmra.mxu0 %vm251_vm0, %v17405_v33  ;;  %v17644_v32 = vld [vmem:[#allocation2 + $0x181] sm:$0xff] }
 0x28d   : > { %14413 = vmatprep.mubr.msk.f32.mxu1 %vm251_vm0, %v17112_v41  ;;  %14466 = vmatprep.mubr.msk.f32.mxu0 %vm251_vm0, %v17413_v28  ;;  %v17650_v41 = vld [vmem:[#allocation2 + $0x189] sm:$0xff] }
 0x28e   : > { %v21593_v33 = vld [vmem:[#allocation12_spill] sm:$0xff] }
 0x290   : > { %14414 = vmatmul.mubr.msk.f32.gmra.mxu1 %vm251_vm0, %v17114_v18  ;;  %14467 = vmatmul.mubr.msk.f32.gmra.mxu0 %vm251_vm0, %v17421_v38  ;;  %v3656_v18 = vld [vmem:[#allocation2 + $0x30] sm:$0xff]  ;;  %v21596_v38 = vld [vmem:[#allocation15_spill] sm:$0xff] }
 0x291   : > { %14416 = vmatprep.mubr.msk.f32.mxu1 %vm251_vm0, %v17138_v57  ;;  %14469 = vmatprep.mubr.msk.f32.mxu0 %vm251_vm0, %v17429_v8  ;;  %v12497_v57 = vld [vmem:[%s21532_s3 + $0xf0] sm:$0xff]  ;;  %v17706_v8 = vpop.f32.mrf.mxu1 }
 0x293   : > { %v17718_v28 = vpop.f32.mrf.mxu1 }
 0x294   : > { %14417 = vmatmul.mubr.msk.f32.gmra.mxu1 %vm251_vm0, %v17176_v27  ;;  %14470 = vmatmul.mubr.msk.f32.gmra.mxu0 %vm251_vm0, %v17437_v4  ;;  %v3663_v4 = vld [vmem:[#allocation2 + $0x80] sm:$0xff] }
 0x295   : > { %14419 = vmatprep.mubr.msk.f32.mxu1 %vm251_vm0, %v17632_v3  ;;  %14472 = vmatprep.mubr.msk.f32.mxu0 %vm251_vm0, %v17445_v53  ;;  %v21590_v53 = vld [vmem:[#allocation9_spill] sm:$0xff] }
 0x298   : > { %14420 = vmatmul.mubr.msk.f32.gmra.mxu1 %vm251_vm0, %v17638_v43  ;;  %14473 = vmatmul.mubr.msk.f32.gmra.mxu0 %vm251_vm0, %v17453_v0  ;;  %v3662_v0 = vld [vmem:[#allocation2 + $0x78] sm:$0xff] }
 0x299   : > { %14475 = vmatprep.mubr.msk.f32.mxu0 %vm251_vm0, %v17644_v32  ;;  %14486 = vmatprep.mubr.msk.f32.mxu1 %vm251_vm0, %v17217_v50  ;;  %v3657_v50 = vld [vmem:[#allocation2 + $0x38] sm:$0xff] }
 0x29c   : > { %14476 = vmatmul.mubr.msk.f32.gmra.mxu0 %vm251_vm0, %v17650_v41  ;;  %14487 = vmatmul.mubr.msk.f32.vlgmr.msra.gmra.mxu1 %vm251_vm0, %v17223_v44  ;;  %v12533_v44 = vld [vmem:[%s21532_s3 + $0x110] sm:$0xff] }
 0x29d   : > { %14489 = vmatprep.mubr.msk.f32.mxu1 %vm251_vm0, %v17234_v40  ;;  %14542 = vmatprep.mubr.msk.f32.mxu0 %vm251_vm0, %v3656_v18 }
 0x29e   : > { %14591 = vmatpush3.msra.mxu1 %v17517_v59 }
 0x29f   : > { %14592 = vmatprep.subr.mxu1 %v12497_v57 }
 0x2a0   : > { %14490 = vmatmul.mubr.msk.f32.gmra.mxu1 %vm251_vm0, %v17246_v20  ;;  %14543 = vmatmul.mubr.msk.f32.vlgmr.msra.gmra.mxu0 %vm251_vm0, %v3657_v50  ;;  %v21607_v50 = vld [vmem:[#allocation23_spill] sm:$0xff] }
 0x2a1   : > { %14647 = vmatpush3.msra.mxu0 %v17531_v54  ;;  %14492 = vmatprep.mubr.msk.f32.mxu1 %vm251_vm0, %v17257_v35 }
 0x2a2   : > { %14545 = vmatprep.mubr.msk.f32.mxu0 %vm251_vm0, %v3658_v2  ;;  %14593 = vmatpush3.msra.mxu1 %v12497_v57  ;;  %v21606_v57 = vld [vmem:[#allocation22_spill] sm:$0xff] }
 0x2a3   : > { %14648 = vmatprep.subr.mxu0 %v12533_v44  ;;  %14594 = vmatprep.subr.mxu1 %v12496_v62  ;;  %v3678_v2 = vld [vmem:[#allocation2 + $0x138] sm:$0xff] }
 0x2a4   : > { %14493 = vmatmul.mubr.msk.f32.gmra.mxu1 %vm251_vm0, %v17271_v37  ;;  %14546 = vmatmul.mubr.msk.f32.gmra.mxu0 %vm251_vm0, %v3659_v30  ;;  %v21609_v30 = vld [vmem:[#allocation25_spill] sm:$0xff] }
 0x2a5   : > { %14495 = vmatprep.mubr.msk.f32.mxu1 %vm251_vm0, %v17285_v49  ;;  %14548 = vmatprep.mubr.msk.f32.mxu0 %vm251_vm0, %v3660_v25 }
 0x2a6   : > { %14649 = vmatpush3.msra.mxu0 %v12533_v44  ;;  %14595 = vmatpush3.msra.mxu1 %v12496_v62  ;;  %v21608_v62 = vld [vmem:[#allocation24_spill] sm:$0xff] }
 0x2a7   : > { %14650 = vmatprep.subr.mxu0 %v12532_v5  ;;  %14596 = vmatprep.subr.mxu1 %v12495_v12 }
 0x2a8   : > { %14496 = vmatmul.mubr.msk.f32.gmra.mxu1 %vm251_vm0, %v17295_v26  ;;  %14549 = vmatmul.mubr.msk.f32.gmra.mxu0 %vm251_vm0, %v3661_v11  ;;  %v21592_v26 = vld [vmem:[#allocation11_spill] sm:$0xff]  ;;  %v3680_v11 = vld [vmem:[#allocation2 + $0x150] sm:$0xff] }
 0x2a9   : > { %14498 = vmatprep.mubr.msk.f32.mxu1 %vm251_vm0, %v21590_v53  ;;  %14551 = vmatprep.mubr.msk.f32.mxu0 %vm251_vm0, %v3662_v0  ;;  %v21612_v0 = vld [vmem:[#allocation27_spill] sm:$0xff]  ;;  %v3681_v53 = vld [vmem:[#allocation2 + $0x158] sm:$0xff] }
 0x2aa   : > { %14651 = vmatpush3.msra.mxu0 %v12532_v5  ;;  %14597 = vmatpush3.msra.mxu1 %v12495_v12  ;;  %v21611_v12 = vld [vmem:[#allocation26_spill] sm:$0xff] }
 0x2ab   : > { %14652 = vmatprep.subr.mxu0 %v12531_v60 }
 0x2ac   : > { %14499 = vmatmul.mubr.msk.f32.gmra.mxu1 %vm251_vm0, %v21591_v52  ;;  %14552 = vmatmul.mubr.msk.f32.gmra.mxu0 %vm251_vm0, %v3663_v4 }
 0x2ad   : > { %14501 = vmatprep.mubr.msk.f32.mxu1 %vm251_vm0, %v21592_v26  ;;  %14554 = vmatprep.mubr.msk.f32.mxu0 %vm251_vm0, %v17108_v39  ;;  %v17720_v39 = vpop.f32.mrf.mxu0  ;;  %v21614_v26 = vld [vmem:[#allocation28_spill] sm:$0xff] }
 0x2ae   : > { %14653 = vmatpush3.msra.mxu0 %v12531_v60 }
 0x2af   : > { %v17732_v29 = vpop.f32.mrf.mxu0 }
 0x2b0   : > { %14502 = vmatmul.mubr.msk.f32.gmra.mxu1 %vm251_vm0, %v21593_v33  ;;  %14555 = vmatmul.mubr.msk.f32.gmra.mxu0 %vm251_vm0, %v17155_v63  ;;  %v17730_v63 = vpop.f32.mrf.mxu1  ;;  %v3682_v33 = vld [vmem:[#allocation2 + $0x168] sm:$0xff] }
 0x2b1   : > { %14504 = vmatprep.mubr.msk.f32.mxu1 %vm251_vm0, %v21594_v9  ;;  %14557 = vmatprep.mubr.msk.f32.mxu0 %vm251_vm0, %v17171_v55  ;;  %21597 = vst [vmem:[#allocation9_spill] sm:$0xff] %v17730_v63  ;;  %v21598_v55 = vld [vmem:[#allocation16_spill] sm:$0xff]  ;;  %v17744_v56 = vpop.f32.mrf.mxu0 }
 0x2b3   : > { %v17756_v54 = vpop.f32.mrf.mxu0 }
 0x2b4   : > { %14505 = vmatmul.mubr.msk.f32.gmra.mxu1 %vm251_vm0, %v21595_v58  ;;  %14558 = vmatmul.mubr.msk.f32.gmra.mxu0 %vm251_vm0, %v17182_v36  ;;  %v17742_v36 = vpop.f32.mrf.mxu1 }
 0x2b5   : > { %14507 = vmatprep.mubr.msk.f32.mxu1 %vm251_vm0, %v21596_v38  ;;  %14560 = vmatprep.mubr.msk.f32.mxu0 %vm251_vm0, %v17550_v1  ;;  %v17824_v38 = vld [vmem:[#allocation2 + $0x182] sm:$0xff] }
 0x2b6   : > { %v17754_v59 = vpop.f32.mrf.mxu1 }
 0x2b7   : > { %21602 = vst [vmem:[#allocation10_spill] sm:$0xff] %v17754_v59 }
 0x2b8   : > { %14508 = vmatmul.mubr.msk.f32.gmra.mxu1 %vm251_vm0, %v21598_v55  ;;  %14561 = vmatmul.mubr.msk.f32.gmra.mxu0 %vm251_vm0, %v17556_v17  ;;  %v17758_v1 = vpop.f32.mrf.mxu1  ;;  %v21603_v17 = vld [vmem:[#allocation20_spill] sm:$0xff] }
 0x2b9   : > { %14510 = vmatprep.mubr.msk.f32.mxu1 %vm251_vm0, %v21599_v6  ;;  %14563 = vmatprep.mubr.msk.f32.mxu0 %vm251_vm0, %v17562_v14  ;;  %v21604_v14 = vld [vmem:[#allocation21_spill] sm:$0xff]  ;;  %v3686_v6 = vld [vmem:[#allocation2 + $0x198] sm:$0xff] }
 0x2bc   : > { %14511 = vmatmul.mubr.msk.f32.gmra.mxu1 %vm251_vm0, %v21600_v16  ;;  %14564 = vmatmul.mubr.msk.f32.gmra.mxu0 %vm251_vm0, %v17568_v31  ;;  %v17768_v31 = vpop.f32.mrf.mxu0  ;;  %v17834_v16 = vld [vmem:[#allocation2 + $0x18a] sm:$0xff] }
 0x2bd   : > { %14513 = vmatprep.mubr.msk.f32.mxu1 %vm251_vm0, %v21601_v24  ;;  %14566 = vmatprep.mubr.msk.f32.mxu0 %vm251_vm0, %v17574_v46  ;;  %v17770_v46 = vpop.f32.mrf.mxu1 }
 0x2be   : > { %21605 = vst [vmem:[#allocation11_spill] sm:$0xff] %v17770_v46  ;;  %v17772_v18 = vpop.f32.mrf.mxu0 }
 0x2c0   : > { %14514 = vmatmul.mubr.msk.f32.gmra.mxu1 %vm251_vm0, %v21603_v17  ;;  %14567 = vmatmul.mubr.msk.f32.gmra.mxu0 %vm251_vm0, %v17580_v47  ;;  %v17782_v47 = vpop.f32.mrf.mxu1  ;;  %v17784_v44 = vpop.f32.mrf.mxu0 }
 0x2c1   : > { %14516 = vmatprep.mubr.msk.f32.mxu1 %vm251_vm0, %v21604_v14  ;;  %14569 = vmatprep.mubr.msk.f32.mxu0 %vm251_vm0, %v17586_v10  ;;  %v3677_v10 = vld [vmem:[#allocation2 + $0x128] sm:$0xff] }
 0x2c2   : > { %v17794_v25 = vpop.f32.mrf.mxu0 }
 0x2c4   : > { %14517 = vmatmul.mubr.msk.f32.gmra.mxu1 %vm251_vm0, %v21606_v57  ;;  %14570 = vmatmul.mubr.msk.f32.gmra.mxu0 %vm251_vm0, %v17592_v51  ;;  %v17792_v51 = vpop.f32.mrf.mxu1  ;;  %v17804_v60 = vpop.f32.mrf.mxu0 }
 0x2c5   : > { %14519 = vmatprep.mubr.msk.f32.mxu1 %vm251_vm0, %v21607_v50  ;;  %14572 = vmatprep.mubr.msk.f32.mxu0 %vm251_vm0, %v17598_v61  ;;  %21610 = vst [vmem:[#allocation12_spill] sm:$0xff] %v17792_v51  ;;  %v3679_v61 = vld [vmem:[#allocation2 + $0x140] sm:$0xff] }
 0x2c6   : > { %v17796_v5 = vpop.f32.mrf.mxu1  ;;  %v17808_v52 = vpop.f32.mrf.mxu0 }
 0x2c8   : > { %14520 = vmatmul.mubr.msk.f32.gmra.mxu1 %vm251_vm0, %v21608_v62  ;;  %14573 = vmatmul.mubr.msk.f32.gmra.mxu0 %vm251_vm0, %v3677_v10  ;;  %v17806_v4 = vpop.f32.mrf.mxu1  ;;  %v17818_v58 = vpop.f32.mrf.mxu0 }
 0x2c9   : > { %14522 = vmatprep.mubr.msk.f32.mxu1 %vm251_vm0, %v21609_v30  ;;  %14575 = vmatprep.mubr.msk.f32.mxu0 %vm251_vm0, %v3678_v2  ;;  %21613 = vst [vmem:[#allocation13_spill] sm:$0xff] %v17806_v4 }
 0x2ca   : > { %v17816_v9 = vpop.f32.mrf.mxu1  ;;  %v17832_v55 = vpop.f32.mrf.mxu0 }
 0x2cc   : > { %14523 = vmatmul.mubr.msk.f32.gmra.mxu1 %vm251_vm0, %v21611_v12  ;;  %14576 = vmatmul.mubr.msk.f32.gmra.mxu0 %vm251_vm0, %v3679_v61 }
 0x2cd   : > { %14525 = vmatprep.mubr.msk.f32.mxu1 %vm251_vm0, %v21612_v0  ;;  %14578 = vmatprep.mubr.msk.f32.mxu0 %vm251_vm0, %v3680_v11 }
 0x2d0   : > { %14526 = vmatmul.mubr.msk.f32.gmra.mxu1 %vm251_vm0, %v21614_v26  ;;  %14579 = vmatmul.mubr.msk.f32.gmra.mxu0 %vm251_vm0, %v3681_v53 }
 0x2d1   : > { %14528 = vmatprep.mubr.msk.f32.mxu1 %vm251_vm0, %v17461_v15  ;;  %14581 = vmatprep.mubr.msk.f32.mxu0 %vm251_vm0, %v3682_v33  ;;  %v17830_v15 = vpop.f32.mrf.mxu1  ;;  %v4441_v33 = vld [vmem:[#allocation2 + $0x6a] sm:$0xff] }
 0x2d2   : > { %21615 = vst [vmem:[#allocation14_spill] sm:$0xff] %v17830_v15 }
 0x2d4   : > { %14529 = vmatmul.mubr.msk.f32.gmra.mxu1 %vm251_vm0, %v17466_v22  ;;  %14582 = vmatmul.mubr.msk.f32.gmra.mxu0 %vm251_vm0, %v17176_v27  ;;  %v3687_v27 = vld [vmem:[#allocation2 + $0x1a0] sm:$0xff] }
 0x2d5   : > { %14531 = vmatprep.mubr.msk.f32.mxu1 %vm251_vm0, %v17824_v38  ;;  %14584 = vmatprep.mubr.msk.f32.mxu0 %vm251_vm0, %v17632_v3  ;;  %v17848_v22 = vld [vmem:[%s21533_s4] ss:$0 sm:$0xff]  ;;  %v17850_v3 = vpop.f32.mrf.mxu0 }
 0x2d6   : > { %v1674_v14 = vadd.f32 %v17708_v48, %v17848_v22  ;;  %v1673_v48 = vadd.f32 %v17848_v22, %v17720_v39  ;;  %v1676_v62 = vadd.f32 %v17732_v29, %v17848_v22  ;;  %v1675_v61 = vadd.f32 %v17848_v22, %v17744_v56 }
 0x2d7   : > { %v1677_v53 = vadd.f32 %v17848_v22, %v17768_v31 }
 0x2d8   : > { %v17836_v24 = vpop.f32.mrf.mxu1  ;;  %14532 = vmatmul.mubr.msk.f32.gmra.mxu1 %vm251_vm0, %v17834_v16  ;;  %14585 = vmatmul.mubr.msk.f32.gmra.mxu0 %vm251_vm0, %v17638_v43 }
 0x2d9   : > { %14598 = vmatprep.mubr.msk.f32.mxu1 %vm251_vm0, %v17209_v7  ;;  %14587 = vmatprep.mubr.msk.f32.mxu0 %vm251_vm0, %v3686_v6 }
 0x2da   : > { %v17852_v17 = vpop.f32.mrf.mxu1 }
 0x2db   : > { %21616 = vst [vmem:[#allocation15_spill] sm:$0xff] %v17852_v17 }
 0x2dc   : > { %v17856_v57 = vpop.f32.mrf.mxu0  ;;  %v14264_v43 = vpop.f32.mrf.mxu1  ;;  %14588 = vmatmul.mubr.msk.f32.gmra.mxu0 %vm251_vm0, %v3687_v27  ;;  %14599 = vmatmul.mubr.msk.f32.vlgmr.msra.gmra.mxu1 %vm251_vm0, %v17221_v42 }
 0x2dd   : > { %v2064_v7 = vadd.f32 %v14264_v43, %v1674_v14  ;;  %14601 = vmatprep.mubr.msk.f32.mxu1 %vm251_vm0, %v17232_v21  ;;  %14654 = vmatprep.mubr.msk.f32.mxu0 %vm251_vm0, %v17234_v40 }
 0x2de   : > { %v17865_v50 = vpop.f32.mrf.mxu0  ;;  %v1904_v10 = vpop.f32.mrf.mxu1 }
 0x2df   : > { %v2063_v42 = vadd.f32 %v1904_v10, %v1673_v48  ;;  %v1679_v10 = vadd.f32 %v17848_v22, %v17784_v44  ;;  %v1682_v48 = vadd.f32 %v17794_v25, %v17848_v22 }
 0x2e0   : > { %v14267_v2 = vpop.f32.mrf.mxu1  ;;  %v14320_v30 = vpop.f32.mrf.mxu0  ;;  %14602 = vmatmul.mubr.msk.f32.gmra.mxu1 %vm251_vm0, %v17244_v19  ;;  %14655 = vmatmul.mubr.msk.f32.vlgmr.msra.gmra.mxu0 %vm251_vm0, %v17246_v20  ;;  %v1678_v19 = vadd.f32 %v17756_v54, %v17848_v22 }
 0x2e1   : > { %v2066_v21 = vadd.f32 %v14267_v2, %v1676_v62  ;;  %v17875_v40 = vadd.f32 %v14320_v30, %v2064_v7  ;;  %14604 = vmatprep.mubr.msk.f32.mxu1 %vm251_vm0, %v17255_v45  ;;  %14657 = vmatprep.mubr.msk.f32.mxu0 %vm251_vm0, %v17257_v35  ;;  %v4055_v2 = vld [vmem:[#allocation2 + $0x99] sm:$0xff]  ;;  %v4443_v30 = vld [vmem:[#allocation2 + $0x82] sm:$0xff] }
 0x2e2   : > { %v1914_v39 = vpop.f32.mrf.mxu1  ;;  %v2294_v29 = vpop.f32.mrf.mxu0 }
 0x2e3   : > { %v17885_v12 = vadd.f32 %v2294_v29, %v2063_v42  ;;  %v2065_v45 = vadd.f32 %v1914_v39, %v1675_v61  ;;  %v12572_v42 = vld [vmem:[%s21532_s3 + $0x138] sm:$0xff]  ;;  %v4056_v29 = vld [vmem:[#allocation2 + $0xa9] sm:$0xff] }
 0x2e4   : > { %v14270_v20 = vpop.f32.mrf.mxu1  ;;  %v14323_v11 = vpop.f32.mrf.mxu0  ;;  %14605 = vmatmul.mubr.msk.f32.gmra.mxu1 %vm251_vm0, %v17269_v34  ;;  %14658 = vmatmul.mubr.msk.f32.gmra.mxu0 %vm251_vm0, %v17271_v37  ;;  %v1680_v34 = vadd.f32 %v17772_v18, %v17848_v22  ;;  %v4053_v37 = vld [vmem:[#allocation2 + $0x81] sm:$0xff]  ;;  %v4444_v61 = vld [vmem:[#allocation2 + $0x92] sm:$0xff] }
 0x2e5   : > { %v2068_v35 = vadd.f32 %v14270_v20, %v1678_v19  ;;  %v17891_v0 = vadd.f32 %v14323_v11, %v2066_v21  ;;  %14607 = vmatprep.mubr.msk.f32.mxu1 %vm251_vm0, %v17283_v23  ;;  %14660 = vmatprep.mubr.msk.f32.mxu0 %vm251_vm0, %v17285_v49  ;;  %v4054_v23 = vld [vmem:[#allocation2 + $0x91] sm:$0xff]  ;;  %v4442_v49 = vld [vmem:[#allocation2 + $0x7a] sm:$0xff] }
 0x2e6   : > { %v1924_v56 = vpop.f32.mrf.mxu1  ;;  %v2304_v54 = vpop.f32.mrf.mxu0  ;;  %14702 = vmatprep.subr.mxu1 %v12572_v42 }
 0x2e7   : > { %v17901_v26 = vadd.f32 %v2304_v54, %v2065_v45  ;;  %v2067_v14 = vadd.f32 %v1924_v56, %v1677_v53  ;;  %v1681_v45 = vadd.f32 %v17848_v22, %v17804_v60  ;;  %v4057_v54 = vld [vmem:[#allocation2 + $0xb1] sm:$0xff]  ;;  %v4445_v53 = vld [vmem:[#allocation2 + $0x9a] sm:$0xff]  ;;  %14703 = vmatpush3.msra.mxu1 %v12572_v42 }
 0x2e8   : > { %v14273_v6 = vpop.f32.mrf.mxu1  ;;  %v14326_v27 = vpop.f32.mrf.mxu0  ;;  %14608 = vmatmul.mubr.msk.f32.gmra.mxu1 %vm251_vm0, %v4053_v37  ;;  %14661 = vmatmul.mubr.msk.f32.gmra.mxu0 %vm251_vm0, %v4441_v33  ;;  %v4058_v33 = vld [vmem:[#allocation2 + $0xc1] sm:$0xff]  ;;  %v4060_v42 = vld [vmem:[#allocation2 + $0xd9] sm:$0xff] }
 0x2e9   : > { %v2070_v43 = vadd.f32 %v14273_v6, %v1680_v34  ;;  %v17905_v7 = vadd.f32 %v14326_v27, %v2068_v35  ;;  %14610 = vmatprep.mubr.msk.f32.mxu1 %vm251_vm0, %v4054_v23  ;;  %14663 = vmatprep.mubr.msk.f32.mxu0 %vm251_vm0, %v4442_v49  ;;  %v1684_v35 = vadd.f32 %v17808_v52, %v17848_v22  ;;  %v4446_v6 = vld [vmem:[#allocation2 + $0xaa] sm:$0xff] }
 0x2ea   : > { %v1934_v31 = vpop.f32.mrf.mxu1  ;;  %v2314_v18 = vpop.f32.mrf.mxu0 }
 0x2eb   : > { %v17913_v62 = vadd.f32 %v2314_v18, %v2067_v14  ;;  %v2069_v44 = vadd.f32 %v1934_v31, %v1679_v10  ;;  %v1683_v14 = vadd.f32 %v17848_v22, %v17818_v58  ;;  %v4059_v18 = vld [vmem:[#allocation2 + $0xc9] sm:$0xff]  ;;  %v4447_v10 = vld [vmem:[#allocation2 + $0xb2] sm:$0xff] }
 0x2ec   : > { %v14276_v21 = vpop.f32.mrf.mxu1  ;;  %v14329_v39 = vpop.f32.mrf.mxu0  ;;  %14611 = vmatmul.mubr.msk.f32.gmra.mxu1 %vm251_vm0, %v4055_v2  ;;  %14664 = vmatmul.mubr.msk.f32.gmra.mxu0 %vm251_vm0, %v4443_v30 }
 0x2ed   : > { %v2072_v19 = vadd.f32 %v14276_v21, %v1682_v48  ;;  %v17920_v20 = vadd.f32 %v14329_v39, %v2070_v43  ;;  %14613 = vmatprep.mubr.msk.f32.mxu1 %vm251_vm0, %v4056_v29  ;;  %14666 = vmatprep.mubr.msk.f32.mxu0 %vm251_vm0, %v4444_v61  ;;  %v1686_v43 = vadd.f32 %v17832_v55, %v17848_v22  ;;  %v4448_v21 = vld [vmem:[#allocation2 + $0xc2] sm:$0xff] }
 0x2ee   : > { %v1944_v25 = vpop.f32.mrf.mxu1  ;;  %v2324_v11 = vpop.f32.mrf.mxu0  ;;  %v1685_v48 = vadd.f32 %v17848_v22, %v17850_v3  ;;  %v1688_v3 = vadd.f32 %v17856_v57, %v17848_v22 }
 0x2ef   : > { %v17928_v56 = vadd.f32 %v2324_v11, %v2069_v44  ;;  %v2071_v27 = vadd.f32 %v1944_v25, %v1681_v45  ;;  %v4061_v25 = vld [vmem:[#allocation2 + $0xe1] sm:$0xff]  ;;  %v4449_v11 = vld [vmem:[#allocation2 + $0xca] sm:$0xff] }
 0x2f0   : > { %v14279_v34 = vpop.f32.mrf.mxu1  ;;  %v14332_v37 = vpop.f32.mrf.mxu0  ;;  %14614 = vmatmul.mubr.msk.f32.gmra.mxu1 %vm251_vm0, %v4057_v54  ;;  %14667 = vmatmul.mubr.msk.f32.gmra.mxu0 %vm251_vm0, %v4445_v53  ;;  %v4062_v54 = vld [vmem:[#allocation2 + $0xf1] sm:$0xff]  ;;  %v4450_v53 = vld [vmem:[#allocation2 + $0xda] sm:$0xff] }
 0x2f1   : > { %v2074_v23 = vadd.f32 %v14279_v34, %v1684_v35  ;;  %v17932_v49 = vadd.f32 %v14332_v37, %v2072_v19  ;;  %14616 = vmatprep.mubr.msk.f32.mxu1 %vm251_vm0, %v4058_v33  ;;  %14669 = vmatprep.mubr.msk.f32.mxu0 %vm251_vm0, %v4446_v6  ;;  %v1687_v34 = vadd.f32 %v17848_v22, %v17865_v50  ;;  %v12571_v50 = vld [vmem:[%s21532_s3 + $0x130] sm:$0xff] }
 0x2f2   : > { %v1954_v60 = vpop.f32.mrf.mxu1  ;;  %v2334_v52 = vpop.f32.mrf.mxu0  ;;  %14704 = vmatprep.subr.mxu1 %v12571_v50 }
 0x2f3   : > { %v17940_v31 = vadd.f32 %v2334_v52, %v2071_v27  ;;  %v2073_v39 = vadd.f32 %v1954_v60, %v1683_v14  ;;  %v1690_v27 = vadd.f32 %v17697_v13, %v17848_v22  ;;  %v4063_v52 = vld [vmem:[#allocation2 + $0xf9] sm:$0xff]  ;;  %v4451_v14 = vld [vmem:[#allocation2 + $0xe2] sm:$0xff]  ;;  %14705 = vmatpush3.msra.mxu1 %v12571_v50 }
 0x2f4   : > { %v14282_v2 = vpop.f32.mrf.mxu1  ;;  %v14335_v30 = vpop.f32.mrf.mxu0  ;;  %14617 = vmatmul.mubr.msk.f32.gmra.mxu1 %vm251_vm0, %v4059_v18  ;;  %14670 = vmatmul.mubr.msk.f32.gmra.mxu0 %vm251_vm0, %v4447_v10  ;;  %v4064_v10 = vld [vmem:[#allocation2 + $0x109] sm:$0xff] }
 0x2f5   : > { %v2076_v58 = vadd.f32 %v14282_v2, %v1686_v43  ;;  %v17946_v29 = vadd.f32 %v14335_v30, %v2074_v23  ;;  %14619 = vmatprep.mubr.msk.f32.mxu1 %vm251_vm0, %v4060_v42  ;;  %14672 = vmatprep.mubr.msk.f32.mxu0 %vm251_vm0, %v4448_v21  ;;  %v1689_v21 = vadd.f32 %v17848_v22, %v17706_v8 }
 0x2f6   : > { %v1964_v55 = vpop.f32.mrf.mxu1  ;;  %v2344_v61 = vpop.f32.mrf.mxu0 }
 0x2f7   : > { %v2075_v44 = vadd.f32 %v1964_v55, %v1685_v48  ;;  %v17952_v19 = vadd.f32 %v2344_v61, %v2073_v39  ;;  %v4452_v48 = vld [vmem:[#allocation2 + $0xf2] sm:$0xff]  ;;  %v1692_v39 = vadd.f32 %v17718_v28, %v17848_v22  ;;  %v4453_v61 = vld [vmem:[#allocation2 + $0xfa] sm:$0xff] }
 0x2f8   : > { %v14285_v45 = vpop.f32.mrf.mxu1  ;;  %v14338_v35 = vpop.f32.mrf.mxu0  ;;  %14620 = vmatmul.mubr.msk.f32.gmra.mxu1 %vm251_vm0, %v4061_v25  ;;  %14673 = vmatmul.mubr.msk.f32.gmra.mxu0 %vm251_vm0, %v4449_v11  ;;  %v4065_v55 = vld [vmem:[#allocation2 + $0x111] sm:$0xff]  ;;  %v4066_v25 = vld [vmem:[#allocation2 + $0x121] sm:$0xff] }
 0x2f9   : > { %v2078_v37 = vadd.f32 %v14285_v45, %v1688_v3  ;;  %v17958_v33 = vadd.f32 %v14338_v35, %v2076_v58  ;;  %14622 = vmatprep.mubr.msk.f32.mxu1 %vm251_vm0, %v4062_v54  ;;  %14675 = vmatprep.mubr.msk.f32.mxu0 %vm251_vm0, %v4450_v53  ;;  %v4454_v11 = vld [vmem:[#allocation2 + $0x10a] sm:$0xff]  ;;  %v1694_v53 = vadd.f32 %v17742_v36, %v17848_v22 }
 0x2fa   : > { %v1974_v57 = vpop.f32.mrf.mxu1  ;;  %v2354_v6 = vpop.f32.mrf.mxu0 }
 0x2fb   : > { %v2077_v23 = vadd.f32 %v1974_v57, %v1687_v34  ;;  %v17964_v60 = vadd.f32 %v2354_v6, %v2075_v44  ;;  %v4455_v57 = vld [vmem:[#allocation2 + $0x112] sm:$0xff] }
 0x2fc   : > { %v14288_v43 = vpop.f32.mrf.mxu1  ;;  %v14341_v18 = vpop.f32.mrf.mxu0  ;;  %14623 = vmatmul.mubr.msk.f32.gmra.mxu1 %vm251_vm0, %v4063_v52  ;;  %14676 = vmatmul.mubr.msk.f32.gmra.mxu0 %vm251_vm0, %v4451_v14  ;;  %v4456_v52 = vld [vmem:[#allocation2 + $0x122] sm:$0xff] }
 0x2fd   : > { %v2080_v2 = vadd.f32 %v14288_v43, %v1690_v27  ;;  %v17971_v30 = vadd.f32 %v14341_v18, %v2078_v37  ;;  %14625 = vmatprep.mubr.msk.f32.mxu1 %vm251_vm0, %v4064_v10  ;;  %14678 = vmatprep.mubr.msk.f32.mxu0 %vm251_vm0, %v4452_v48  ;;  %v4067_v37 = vld [vmem:[#allocation2 + $0x129] sm:$0xff]  ;;  %v1696_v18 = vadd.f32 %v17758_v1, %v17848_v22  ;;  %v4069_v10 = vld [vmem:[#allocation2 + $0x141] sm:$0xff] }
 0x2fe   : > { %v1984_v13 = vpop.f32.mrf.mxu1  ;;  %v2364_v42 = vpop.f32.mrf.mxu0  ;;  %v4457_v48 = vld [vmem:[#allocation2 + $0x12a] sm:$0xff] }
 0x2ff   : > { %v17979_v58 = vadd.f32 %v2364_v42, %v2077_v23  ;;  %v2079_v45 = vadd.f32 %v1984_v13, %v1689_v21  ;;  %v4068_v23 = vld [vmem:[#allocation2 + $0x139] sm:$0xff]  ;;  %v4070_v42 = vld [vmem:[#allocation2 + $0x151] sm:$0xff] }
 0x300   : > { %v14291_v3 = vpop.f32.mrf.mxu1  ;;  %v14344_v44 = vpop.f32.mrf.mxu0  ;;  %14626 = vmatmul.mubr.msk.f32.gmra.mxu1 %vm251_vm0, %v4065_v55  ;;  %14679 = vmatmul.mubr.msk.f32.gmra.mxu0 %vm251_vm0, %v4453_v61  ;;  %v4458_v21 = vld [vmem:[#allocation2 + $0x13a] sm:$0xff] }
 0x301   : > { %21617 = vst [vmem:[#allocation16_spill] sm:$0xff] %v17979_v58  ;;  %v2082_v35 = vadd.f32 %v14291_v3, %v1692_v39  ;;  %v17983_v54 = vadd.f32 %v14344_v44, %v2080_v2  ;;  %14628 = vmatprep.mubr.msk.f32.mxu1 %vm251_vm0, %v4066_v25  ;;  %14681 = vmatprep.mubr.msk.f32.mxu0 %vm251_vm0, %v4454_v11  ;;  %v4071_v44 = vld [vmem:[#allocation2 + $0x159] sm:$0xff]  ;;  %v4459_v25 = vld [vmem:[#allocation2 + $0x142] sm:$0xff] }
 0x302   : > { %v17987_v8 = vpop.f32.mrf.mxu1  ;;  %v2374_v28 = vpop.f32.mrf.mxu0  ;;  %v1698_v3 = vadd.f32 %v17782_v47, %v17848_v22  ;;  %v12570_v11 = vld [vmem:[%s21532_s3 + $0x128] sm:$0xff] }
 0x303   : > { %21618 = vst [vmem:[#allocation17_spill] sm:$0xff] %v17987_v8  ;;  %v17991_v34 = vadd.f32 %v2374_v28, %v2079_v45  ;;  %v4072_v28 = vld [vmem:[#allocation2 + $0x169] sm:$0xff]  ;;  %14706 = vmatprep.subr.mxu1 %v12570_v11 }
 0x304   : > { %v14294_v6 = vpop.f32.mrf.mxu1  ;;  %v14347_v27 = vpop.f32.mrf.mxu0  ;;  %14629 = vmatmul.mubr.msk.f32.gmra.mxu1 %vm251_vm0, %v4067_v37  ;;  %14682 = vmatmul.mubr.msk.f32.gmra.mxu0 %vm251_vm0, %v4455_v57 }
 0x305   : > { %21619 = vst [vmem:[#allocation18_spill] sm:$0xff] %v17991_v34  ;;  %v2084_v14 = vadd.f32 %v14294_v6, %v1694_v53  ;;  %v17995_v50 = vadd.f32 %v14347_v27, %v2082_v35  ;;  %14631 = vmatprep.mubr.msk.f32.mxu1 %vm251_vm0, %v4068_v23  ;;  %14684 = vmatprep.mubr.msk.f32.mxu0 %vm251_vm0, %v4456_v52  ;;  %v4460_v53 = vld [vmem:[#allocation2 + $0x152] sm:$0xff]  ;;  %v4461_v52 = vld [vmem:[#allocation2 + $0x15a] sm:$0xff] }
 0x306   : > { %v17999_v36 = vpop.f32.mrf.mxu1  ;;  %v18001_v43 = vpop.f32.mrf.mxu0  ;;  %v1700_v27 = vadd.f32 %v17796_v5, %v17848_v22  ;;  %v4073_v23 = vld [vmem:[#allocation2 + $0x171] sm:$0xff]  ;;  %14707 = vmatpush3.msra.mxu1 %v12570_v11  ;;  %v4077_v11 = vld [vmem:[#allocation2 + $0x1a1] sm:$0xff] }
 0x307   : > { %21620 = vst [vmem:[#allocation19_spill] sm:$0xff] %v17999_v36  ;;  %21621 = vst [vmem:[#allocation20_spill] sm:$0xff] %v18001_v43 }
 0x308   : > { %v14297_v2 = vpop.f32.mrf.mxu1  ;;  %v14350_v13 = vpop.f32.mrf.mxu0  ;;  %14632 = vmatmul.mubr.msk.f32.gmra.mxu1 %vm251_vm0, %v4069_v10  ;;  %14685 = vmatmul.mubr.msk.f32.gmra.mxu0 %vm251_vm0, %v4457_v48  ;;  %v4462_v10 = vld [vmem:[#allocation2 + $0x16a] sm:$0xff] }
 0x309   : > { %v2086_v39 = vadd.f32 %v14297_v2, %v1696_v18  ;;  %v18007_v55 = vadd.f32 %v14350_v13, %v2084_v14  ;;  %14634 = vmatprep.mubr.msk.f32.mxu1 %vm251_vm0, %v4070_v42  ;;  %14687 = vmatprep.mubr.msk.f32.mxu0 %vm251_vm0, %v4458_v21  ;;  %v4076_v42 = vld [vmem:[#allocation2 + $0x199] sm:$0xff]  ;;  %v1702_v21 = vadd.f32 %v17816_v9, %v17848_v22 }
 0x30a   : > { %v18011_v61 = vpop.f32.mrf.mxu1  ;;  %v18013_v1 = vpop.f32.mrf.mxu0 }
 0x30b   : > { %21622 = vst [vmem:[#allocation21_spill] sm:$0xff] %v18011_v61  ;;  %21623 = vst [vmem:[#allocation22_spill] sm:$0xff] %v18013_v1 }
 0x30c   : > { %v14300_v45 = vpop.f32.mrf.mxu1  ;;  %v14353_v35 = vpop.f32.mrf.mxu0  ;;  %14635 = vmatmul.mubr.msk.f32.gmra.mxu1 %vm251_vm0, %v4071_v44  ;;  %14688 = vmatmul.mubr.msk.f32.gmra.mxu0 %vm251_vm0, %v4459_v25 }
 0x30d   : > { %v2088_v37 = vadd.f32 %v14300_v45, %v1698_v3  ;;  %v18022_v57 = vadd.f32 %v14353_v35, %v2086_v39  ;;  %14637 = vmatprep.mubr.msk.f32.mxu1 %vm251_vm0, %v4072_v28  ;;  %14690 = vmatprep.mubr.msk.f32.mxu0 %vm251_vm0, %v4460_v53  ;;  %v4463_v39 = vld [vmem:[#allocation2 + $0x172] sm:$0xff]  ;;  %v4466_v35 = vld [vmem:[#allocation2 + $0x19a] sm:$0xff]  ;;  %v1704_v28 = vadd.f32 %v17836_v24, %v17848_v22 }
 0x30e   : > { %v18026_v47 = vpop.f32.mrf.mxu1  ;;  %v18028_v6 = vpop.f32.mrf.mxu0  ;;  %v12569_v24 = vld [vmem:[%s21532_s3 + $0x120] sm:$0xff] }
 0x30f   : > { %21624 = vst [vmem:[#allocation23_spill] sm:$0xff] %v18026_v47  ;;  %21625 = vst [vmem:[#allocation24_spill] sm:$0xff] %v18028_v6  ;;  %14708 = vmatprep.subr.mxu1 %v12569_v24 }
 0x310   : > { %v14303_v14 = vpop.f32.mrf.mxu1  ;;  %v14356_v18 = vpop.f32.mrf.mxu0  ;;  %14638 = vmatmul.mubr.msk.f32.gmra.mxu1 %vm251_vm0, %v4073_v23  ;;  %14691 = vmatmul.mubr.msk.f32.gmra.mxu0 %vm251_vm0, %v4461_v52 }
 0x311   : > { %v2090_v48 = vadd.f32 %v14303_v14, %v1700_v27  ;;  %v18034_v2 = vadd.f32 %v14356_v18, %v2088_v37  ;;  %14640 = vmatprep.mubr.msk.f32.mxu1 %vm251_vm0, %v17644_v32  ;;  %14693 = vmatprep.mubr.msk.f32.mxu0 %vm251_vm0, %v4462_v10  ;;  %v4467_v27 = vld [vmem:[#allocation2 + $0x1a2] sm:$0xff] }
 0x312   : > { %v18039_v13 = vpop.f32.mrf.mxu1  ;;  %v18041_v5 = vpop.f32.mrf.mxu0  ;;  %14709 = vmatpush3.msra.mxu1 %v12569_v24 }
 0x313   : > { %21626 = vst [vmem:[#allocation25_spill] sm:$0xff] %v18039_v13  ;;  %21627 = vst [vmem:[#allocation26_spill] sm:$0xff] %v18041_v5 }
 0x314   : > { %v14306_v3 = vpop.f32.mrf.mxu1  ;;  %v14359_v44 = vpop.f32.mrf.mxu0  ;;  %14641 = vmatmul.mubr.msk.f32.gmra.mxu1 %vm251_vm0, %v17650_v41  ;;  %14694 = vmatmul.mubr.msk.f32.gmra.mxu0 %vm251_vm0, %v4463_v39 }
 0x315   : > { %v2092_v25 = vadd.f32 %v14306_v3, %v1702_v21  ;;  %v18048_v32 = vadd.f32 %v14359_v44, %v2090_v48  ;;  %14696 = vmatprep.mubr.msk.f32.mxu0 %vm251_vm0, %v17824_v38  ;;  %14643 = vmatprep.mubr.msk.f32.mxu1 %vm251_vm0, %v4076_v42 }
 0x316   : > { %v18053_v45 = vpop.f32.mrf.mxu1  ;;  %v18055_v9 = vpop.f32.mrf.mxu0 }
 0x317   : > { %21628 = vst [vmem:[#allocation27_spill] sm:$0xff] %v18053_v45  ;;  %21629 = vst [vmem:[#allocation28_spill] sm:$0xff] %v18055_v9 }
 0x318   : > { %v14309_v41 = vpop.f32.mrf.mxu1  ;;  %v14362_v53 = vpop.f32.mrf.mxu0  ;;  %14644 = vmatmul.mubr.msk.f32.gmra.mxu1 %vm251_vm0, %v4077_v11  ;;  %14697 = vmatmul.mubr.msk.f32.gmra.mxu0 %vm251_vm0, %v17834_v16 }
 0x319   : > { %v2094_v37 = vadd.f32 %v14309_v41, %v1704_v28  ;;  %v18062_v38 = vadd.f32 %v14362_v53, %v2092_v25  ;;  %14699 = vmatprep.mubr.msk.f32.mxu0 %vm251_vm0, %v4466_v35 }
 0x31a   : > { %v18065_v23 = vpop.f32.mrf.mxu1  ;;  %v18067_v52 = vpop.f32.mrf.mxu0 }
 0x31b   : > { %21630 = vst [vmem:[#allocation29_spill] sm:$0xff] %v18065_v23  ;;  %21631 = vst [vmem:[#allocation30_spill] sm:$0xff] %v18067_v52 }
 0x31c   : > { %v14365_v22 = vpop.f32.mrf.mxu0  ;;  %v14376_v14 = vpop.f32.mrf.mxu1  ;;  %14700 = vmatmul.mubr.msk.f32.gmra.mxu0 %vm251_vm0, %v4467_v27 }
 0x31d   : > { %v18073_v16 = vadd.f32 %v14365_v22, %v2094_v37  ;;  %v2844_v18 = vadd.f32 %v14376_v14, %v17875_v40  ;;  %v12608_v22 = vld [vmem:[%s21532_s3 + $0x158] sm:$0xff] }
 0x31e   : > { %v18076_v10 = vpop.f32.mrf.mxu0  ;;  %v18078_v48 = vpop.f32.mrf.mxu1  ;;  %14758 = vmatprep.subr.mxu0 %v12608_v22 }
 0x31f   : > { %21632 = vst [vmem:[#allocation31_spill] sm:$0xff] %v18076_v10  ;;  %14759 = vmatpush3.msra.mxu0 %v12608_v22 }
 0x320   : > { %v14379_v42 = vpop.f32.mrf.mxu1  ;;  %v14432_v21 = vpop.f32.mrf.mxu0 }
 0x321   : > { %v2846_v39 = vadd.f32 %v14379_v42, %v17891_v0  ;;  %v18081_v3 = vadd.f32 %v14432_v21, %v2844_v18 }
 0x322   : > { %v18083_v44 = vpop.f32.mrf.mxu1  ;;  %v18085_v25 = vpop.f32.mrf.mxu0 }
 0x324   : > { %v14382_v11 = vpop.f32.mrf.mxu1  ;;  %v14435_v35 = vpop.f32.mrf.mxu0 }
 0x325   : > { %v2848_v28 = vadd.f32 %v14382_v11, %v17905_v7  ;;  %v18088_v40 = vadd.f32 %v14435_v35, %v2846_v39  ;;  %v12607_v7 = vld [vmem:[%s21532_s3 + $0x150] sm:$0xff]  ;;  %v12606_v11 = vld [vmem:[%s21532_s3 + $0x148] sm:$0xff] }
 0x326   : > { %v18090_v41 = vpop.f32.mrf.mxu1  ;;  %v18092_v53 = vpop.f32.mrf.mxu0  ;;  %14760 = vmatprep.subr.mxu0 %v12607_v7  ;;  %v4900_v35 = vld [vmem:[#allocation3] sm:$0xff] }
 0x327   : > { %14761 = vmatpush3.msra.mxu0 %v12607_v7  ;;  %14710 = vmatprep.mubr.msk.f32.mxu1 %vm251_vm0, %v4900_v35 }
 0x328   : > { %v14385_v37 = vpop.f32.mrf.mxu1  ;;  %v14438_v27 = vpop.f32.mrf.mxu0  ;;  %14762 = vmatprep.subr.mxu0 %v12606_v11 }
 0x329   : > { %v2850_v0 = vadd.f32 %v14385_v37, %v17920_v20  ;;  %v18095_v24 = vadd.f32 %v14438_v27, %v2848_v28  ;;  %14763 = vmatpush3.msra.mxu0 %v12606_v11  ;;  %v4901_v27 = vld [vmem:[#allocation3 + $0x8] sm:$0xff] }
 0x32a   : > { %v18100_v14 = vpop.f32.mrf.mxu1  ;;  %v18102_v18 = vpop.f32.mrf.mxu0  ;;  %14711 = vmatmul.mubr.msk.f32.vlgmr.msra.gmra.mxu1 %vm251_vm0, %v4901_v27  ;;  %v5291_v11 = vld [vmem:[#allocation3 + $0x9] sm:$0xff] }
 0x32c   : > { %v14388_v42 = vpop.f32.mrf.mxu1  ;;  %v14441_v21 = vpop.f32.mrf.mxu0 }
 0x32d   : > { %v2852_v20 = vadd.f32 %v14388_v42, %v17932_v49  ;;  %v18108_v39 = vadd.f32 %v14441_v21, %v2850_v0  ;;  %v12605_v49 = vld [vmem:[%s21532_s3 + $0x140] sm:$0xff]  ;;  %v5290_v0 = vld [vmem:[#allocation3 + $0x1] sm:$0xff] }
 0x32e   : > { %v18113_v28 = vpop.f32.mrf.mxu1  ;;  %v18115_v37 = vpop.f32.mrf.mxu0  ;;  %14764 = vmatprep.subr.mxu0 %v12605_v49  ;;  %v12644_v42 = vld [vmem:[%s21532_s3 + $0x178] sm:$0xff]  ;;  %14766 = vmatprep.mubr.msk.f32.mxu0 %vm251_vm0, %v5290_v0 }
 0x32f   : > { %14765 = vmatpush3.msra.mxu0 %v12605_v49  ;;  %14814 = vmatprep.subr.mxu1 %v12644_v42 }
 0x330   : > { %v14391_v22 = vpop.f32.mrf.mxu1  ;;  %v14444_v7 = vpop.f32.mrf.mxu0  ;;  %14767 = vmatmul.mubr.msk.f32.vlgmr.msra.gmra.mxu0 %vm251_vm0, %v5291_v11  ;;  %14815 = vmatpush3.msra.mxu1 %v12644_v42 }
 0x331   : > { %v2854_v21 = vadd.f32 %v14391_v22, %v17946_v29  ;;  %v18126_v10 = vadd.f32 %v14444_v7, %v2852_v20 }
 0x332   : > { %v18129_v35 = vpop.f32.mrf.mxu1  ;;  %v18131_v23 = vpop.f32.mrf.mxu0 }
 0x334   : > { %v14394_v27 = vpop.f32.mrf.mxu1  ;;  %v14447_v52 = vpop.f32.mrf.mxu0 }
 0x335   : > { %v2856_v17 = vadd.f32 %v14394_v27, %v17958_v33  ;;  %v18135_v45 = vadd.f32 %v14447_v52, %v2854_v21 }
 0x336   : > { %v18137_v29 = vpop.f32.mrf.mxu1  ;;  %v18139_v20 = vpop.f32.mrf.mxu0 }
 0x338   : > { %v14397_v49 = vpop.f32.mrf.mxu1  ;;  %v14450_v0 = vpop.f32.mrf.mxu0 }
 0x339   : > { %v2858_v22 = vadd.f32 %v14397_v49, %v17971_v30  ;;  %v18142_v7 = vadd.f32 %v14450_v0, %v2856_v17  ;;  %v12643_v30 = vld [vmem:[%s21532_s3 + $0x170] sm:$0xff] }
 0x33a   : > { %v18144_v9 = vpop.f32.mrf.mxu1  ;;  %v18146_v11 = vpop.f32.mrf.mxu0  ;;  %14816 = vmatprep.subr.mxu1 %v12643_v30 }
 0x33b   : > { %21633 = vst [vmem:[#allocation32_spill] sm:$0xff] %v18144_v9  ;;  %14817 = vmatpush3.msra.mxu1 %v12643_v30 }
 0x33c   : > { %v14400_v42 = vpop.f32.mrf.mxu1  ;;  %v14453_v15 = vpop.f32.mrf.mxu0 }
 0x33d   : > { %v2860_v33 = vadd.f32 %v14400_v42, %v17983_v54  ;;  %v18149_v52 = vadd.f32 %v14453_v15, %v2858_v22 }
 0x33e   : > { %v18151_v21 = vpop.f32.mrf.mxu1  ;;  %v18153_v27 = vpop.f32.mrf.mxu0 }
 0x33f   : > { %21634 = vst [vmem:[#allocation33_spill] sm:$0xff] %v18149_v52  ;;  %21635 = vst [vmem:[#allocation34_spill] sm:$0xff] %v18151_v21 }
 0x340   : > { %21636 = vst [vmem:[#allocation35_spill] sm:$0xff] %v18153_v27  ;;  %v14403_v17 = vpop.f32.mrf.mxu1  ;;  %v14456_v49 = vpop.f32.mrf.mxu0 }
 0x341   : > { %v2862_v0 = vadd.f32 %v14403_v17, %v17995_v50  ;;  %v18159_v13 = vadd.f32 %v14456_v49, %v2860_v33 }
 0x342   : > { %v18161_v5 = vpop.f32.mrf.mxu1  ;;  %v18163_v15 = vpop.f32.mrf.mxu0 }
 0x343   : > { %21637 = vst [vmem:[#allocation36_spill] sm:$0xff] %v18159_v13  ;;  %21638 = vst [vmem:[#allocation37_spill] sm:$0xff] %v18161_v5 }
 0x344   : > { %21639 = vst [vmem:[#allocation38_spill] sm:$0xff] %v18163_v15  ;;  %v14406_v54 = vpop.f32.mrf.mxu1  ;;  %v14459_v22 = vpop.f32.mrf.mxu0 }
 0x345   : > { %v2864_v42 = vadd.f32 %v14406_v54, %v18007_v55  ;;  %v18166_v4 = vadd.f32 %v14459_v22, %v2862_v0 }
 0x346   : > { %v18168_v47 = vpop.f32.mrf.mxu1  ;;  %v18170_v6 = vpop.f32.mrf.mxu0 }
 0x347   : > { %21640 = vst [vmem:[#allocation39_spill] sm:$0xff] %v18166_v4  ;;  %21641 = vst [vmem:[#allocation40_spill] sm:$0xff] %v18168_v47 }
 0x348   : > { %21642 = vst [vmem:[#allocation41_spill] sm:$0xff] %v18170_v6  ;;  %v14409_v51 = vpop.f32.mrf.mxu1  ;;  %v14462_v61 = vpop.f32.mrf.mxu0 }
 0x349   : > { %v2866_v50 = vadd.f32 %v14409_v51, %v18022_v57  ;;  %v18173_v33 = vadd.f32 %v14462_v61, %v2864_v42  ;;  %v12642_v51 = vld [vmem:[%s21532_s3 + $0x168] sm:$0xff] }
 0x34a   : > { %v18175_v30 = vpop.f32.mrf.mxu1  ;;  %v18177_v17 = vpop.f32.mrf.mxu0  ;;  %14818 = vmatprep.subr.mxu1 %v12642_v51 }
 0x34b   : > { %21643 = vst [vmem:[#allocation42_spill] sm:$0xff] %v18173_v33  ;;  %21644 = vst [vmem:[#allocation43_spill] sm:$0xff] %v18175_v30  ;;  %14819 = vmatpush3.msra.mxu1 %v12642_v51 }
 0x34c   : > { %21645 = vst [vmem:[#allocation44_spill] sm:$0xff] %v18177_v17  ;;  %v14412_v49 = vpop.f32.mrf.mxu1  ;;  %v14465_v1 = vpop.f32.mrf.mxu0 }
 0x34d   : > { %v2868_v55 = vadd.f32 %v14412_v49, %v18034_v2  ;;  %v18180_v0 = vadd.f32 %v14465_v1, %v2866_v50 }
 0x34e   : > { %v18182_v54 = vpop.f32.mrf.mxu1  ;;  %v18184_v22 = vpop.f32.mrf.mxu0 }
 0x34f   : > { %21646 = vst [vmem:[#allocation45_spill] sm:$0xff] %v18180_v0  ;;  %21647 = vst [vmem:[#allocation46_spill] sm:$0xff] %v18182_v54 }
 0x350   : > { %21648 = vst [vmem:[#allocation47_spill] sm:$0xff] %v18184_v22  ;;  %v14415_v61 = vpop.f32.mrf.mxu1  ;;  %v14468_v57 = vpop.f32.mrf.mxu0 }
 0x351   : > { %v2870_v42 = vadd.f32 %v14415_v61, %v18048_v32  ;;  %v18190_v30 = vadd.f32 %v14468_v57, %v2868_v55 }
 0x352   : > { %v18192_v33 = vpop.f32.mrf.mxu1  ;;  %v18194_v1 = vpop.f32.mrf.mxu0 }
 0x353   : > { %21649 = vst [vmem:[#allocation48_spill] sm:$0xff] %v18190_v30  ;;  %21650 = vst [vmem:[#allocation49_spill] sm:$0xff] %v18192_v33 }
 0x354   : > { %21651 = vst [vmem:[#allocation50_spill] sm:$0xff] %v18194_v1  ;;  %v14418_v2 = vpop.f32.mrf.mxu1  ;;  %v14471_v50 = vpop.f32.mrf.mxu0 }
 0x355   : > { %v2872_v49 = vadd.f32 %v14418_v2, %v18062_v38  ;;  %v18197_v54 = vadd.f32 %v14471_v50, %v2870_v42  ;;  %v12641_v50 = vld [vmem:[%s21532_s3 + $0x160] sm:$0xff] }
 0x356   : > { %v18199_v0 = vpop.f32.mrf.mxu1  ;;  %v18201_v22 = vpop.f32.mrf.mxu0  ;;  %14820 = vmatprep.subr.mxu1 %v12641_v50 }
 0x357   : > { %21652 = vst [vmem:[#allocation51_spill] sm:$0xff] %v18197_v54  ;;  %21653 = vst [vmem:[#allocation52_spill] sm:$0xff] %v18199_v0  ;;  %14821 = vmatpush3.msra.mxu1 %v12641_v50  ;;  %v12678_v0 = vld [vmem:[%s21532_s3 + $0x188] sm:$0xff]  ;;  %v12677_v54 = vld [vmem:[%s21532_s3 + $0x180] sm:$0xff] }
 0x358   : > { %21654 = vst [vmem:[#allocation53_spill] sm:$0xff] %v18201_v22  ;;  %v14421_v17 = vpop.f32.mrf.mxu1  ;;  %v14474_v47 = vpop.f32.mrf.mxu0  ;;  %v18256_v22 = vld [vmem:[%s21532_s3 + $0x1b8] sm:$0xff] }
 0x359   : > { %v2874_v32 = vadd.f32 %v14421_v17, %v18073_v16  ;;  %v18204_v55 = vadd.f32 %v14474_v47, %v2872_v49  ;;  %21660 = vst [vmem:[#allocation59_spill] sm:$0xff] %v18256_v22  ;;  %14926 = vmatprep.subr.mxu1 %v18256_v22 }
 0x35a   : > { %v18206_v51 = vpop.f32.mrf.mxu1  ;;  %v18208_v61 = vpop.f32.mrf.mxu0 }
 0x35b   : > { %21655 = vst [vmem:[#allocation54_spill] sm:$0xff] %v18204_v55  ;;  %21656 = vst [vmem:[#allocation55_spill] sm:$0xff] %v18206_v51 }
 0x35c   : > { %21657 = vst [vmem:[#allocation56_spill] sm:$0xff] %v18208_v61  ;;  %v14477_v57 = vpop.f32.mrf.mxu0  ;;  %v18210_v33 = vpop.f32.mrf.mxu1 }
 0x35d   : > { %v18212_v38 = vadd.f32 %v14477_v57, %v2874_v32 }
 0x35e   : > { %v18214_v42 = vpop.f32.mrf.mxu0  ;;  %v18216_v2 = vpop.f32.mrf.mxu1 }
 0x35f   : > { %21658 = vst [vmem:[#allocation57_spill] sm:$0xff] %v18212_v38  ;;  %21659 = vst [vmem:[#allocation58_spill] sm:$0xff] %v18214_v42  ;;  %v12680_v38 = vld [vmem:[%s21532_s3 + $0x198] sm:$0xff]  ;;  %v12679_v42 = vld [vmem:[%s21532_s3 + $0x190] sm:$0xff] }
 0x360   : > { %v18221_v16 = vpop.f32.mrf.mxu1  ;;  %v18223_v47 = vpop.f32.mrf.mxu0  ;;  %14870 = vmatprep.subr.mxu0 %v12680_v38 }
 0x361   : > { %14871 = vmatpush3.msra.mxu0 %v12680_v38 }
 0x362   : > { %v18225_v17 = vpop.f32.mrf.mxu1  ;;  %v18227_v49 = vpop.f32.mrf.mxu0  ;;  %14872 = vmatprep.subr.mxu0 %v12679_v42 }
 0x363   : > { %14873 = vmatpush3.msra.mxu0 %v12679_v42 }
 0x364   : > { %v18229_v32 = vpop.f32.mrf.mxu1  ;;  %v18231_v57 = vpop.f32.mrf.mxu0  ;;  %14874 = vmatprep.subr.mxu0 %v12678_v0 }
 0x365   : > { %14875 = vmatpush3.msra.mxu0 %v12678_v0 }
 0x366   : > { %v18239_v51 = vpop.f32.mrf.mxu1  ;;  %v18241_v50 = vpop.f32.mrf.mxu0  ;;  %14876 = vmatprep.subr.mxu0 %v12677_v54 }
 0x367   : > { %14877 = vmatpush3.msra.mxu0 %v12677_v54 }
 0x368   : > { %v18243_v55 = vpop.f32.mrf.mxu1  ;;  %v18245_v61 = vpop.f32.mrf.mxu0 }
 0x36a   : > { %v18258_v38 = vpop.f32.mrf.mxu1  ;;  %v18260_v30 = vpop.f32.mrf.mxu0 }
 0x36c   : > { %v18263_v42 = vpop.f32.mrf.mxu1  ;;  %v18265_v1 = vpop.f32.mrf.mxu0 }
 0x36e   : > { %v18267_v4 = vpop.f32.mrf.mxu1  ;;  %v18269_v6 = vpop.f32.mrf.mxu0 }
 0x370   : > { %v18271_v46 = vpop.f32.mrf.mxu1  ;;  %v18273_v5 = vpop.f32.mrf.mxu0 }
 0x372   : > { %v18275_v36 = vpop.f32.mrf.mxu1  ;;  %v18277_v13 = vpop.f32.mrf.mxu0 }
 0x374   : > { %v18279_v0 = vpop.f32.mrf.mxu1  ;;  %v18281_v22 = vpop.f32.mrf.mxu0 }
 0x376   : > { %v18283_v15 = vpop.f32.mrf.mxu1  ;;  %v18285_v43 = vpop.f32.mrf.mxu0 }
 0x377   : > { %21661 = vst [vmem:[#allocation60_spill] sm:$0xff] %v18283_v15 }
 0x378   : > { %v18287_v54 = vpop.f32.mrf.mxu1  ;;  %v18289_v59 = vpop.f32.mrf.mxu0 }
 0x379   : > { %21662 = vst [vmem:[#allocation61_spill] sm:$0xff] %v18287_v54  ;;  %21663 = vst [vmem:[#allocation62_spill] sm:$0xff] %v18289_v59 }
 0x37a   : > { %v18291_v21 = vpop.f32.mrf.mxu1  ;;  %v18293_v34 = vpop.f32.mrf.mxu0 }
 0x37b   : > { %21664 = vst [vmem:[#allocation63_spill] sm:$0xff] %v18291_v21  ;;  %21665 = vst [vmem:[#allocation64_spill] sm:$0xff] %v18293_v34 }
 0x37c   : > { %v18295_v8 = vpop.f32.mrf.mxu1  ;;  %v18297_v52 = vpop.f32.mrf.mxu0 }
 0x37d   : > { %21666 = vst [vmem:[#allocation65_spill] sm:$0xff] %v18295_v8  ;;  %21667 = vst [vmem:[#allocation66_spill] sm:$0xff] %v18297_v52 }
 0x37e   : > { %v18299_v27 = vpop.f32.mrf.mxu1  ;;  %v18301_v63 = vpop.f32.mrf.mxu0 }
 0x37f   : > { %21668 = vst [vmem:[#allocation67_spill] sm:$0xff] %v18299_v27  ;;  %21669 = vst [vmem:[#allocation68_spill] sm:$0xff] %v18301_v63 }
 0x380   : > { %v18303_v9 = vpop.f32.mrf.mxu1  ;;  %v18305_v15 = vpop.f32.mrf.mxu0 }
 0x381   : > { %21670 = vst [vmem:[#allocation69_spill] sm:$0xff] %v18303_v9  ;;  %21671 = vst [vmem:[#allocation70_spill] sm:$0xff] %v18305_v15 }
 0x382   : > { %v18307_v58 = vpop.f32.mrf.mxu1  ;;  %v18309_v54 = vpop.f32.mrf.mxu0 }
 0x383   : > { %21672 = vst [vmem:[#allocation71_spill] sm:$0xff] %v18307_v58  ;;  %21673 = vst [vmem:[#allocation72_spill] sm:$0xff] %v18309_v54 }
 0x384   : > { %v18311_v59 = vpop.f32.mrf.mxu1  ;;  %v18313_v21 = vpop.f32.mrf.mxu0 }
 0x385   : > { %21674 = vst [vmem:[#allocation73_spill] sm:$0xff] %v18311_v59  ;;  %21675 = vst [vmem:[#allocation74_spill] sm:$0xff] %v18313_v21 }
 0x386   : > { %v18315_v34 = vpop.f32.mrf.mxu1  ;;  %v18317_v8 = vpop.f32.mrf.mxu0 }
 0x387   : > { %21676 = vst [vmem:[#allocation75_spill] sm:$0xff] %v18315_v34  ;;  %21677 = vst [vmem:[#allocation76_spill] sm:$0xff] %v18317_v8 }
 0x388   : > { %v18319_v52 = vpop.f32.mrf.mxu1  ;;  %v18321_v27 = vpop.f32.mrf.mxu0 }
 0x389   : > { %21678 = vst [vmem:[#allocation77_spill] sm:$0xff] %v18319_v52  ;;  %21679 = vst [vmem:[#allocation78_spill] sm:$0xff] %v18321_v27 }
 0x38a   : > { %v18323_v63 = vpop.f32.mrf.mxu1  ;;  %v18325_v9 = vpop.f32.mrf.mxu0 }
 0x38b   : > { %21680 = vst [vmem:[#allocation79_spill] sm:$0xff] %v18323_v63  ;;  %21681 = vst [vmem:[#allocation80_spill] sm:$0xff] %v18325_v9 }
 0x38c   : > { %v18327_v15 = vpop.f32.mrf.mxu1  ;;  %v18329_v58 = vpop.f32.mrf.mxu0 }
 0x38d   : > { %21682 = vst [vmem:[#allocation81_spill] sm:$0xff] %v18327_v15  ;;  %21683 = vst [vmem:[#allocation82_spill] sm:$0xff] %v18329_v58 }
 0x38e   : > { %v18331_v54 = vpop.f32.mrf.mxu1  ;;  %v18333_v59 = vpop.f32.mrf.mxu0 }
 0x38f   : > { %21684 = vst [vmem:[#allocation83_spill] sm:$0xff] %v18331_v54 }
 0x390   : > { %v18335_v21 = vpop.f32.mrf.mxu1  ;;  %v18337_v34 = vpop.f32.mrf.mxu0 }
 0x391   : > { %21685 = vst [vmem:[#allocation84_spill] sm:$0xff] %v18335_v21  ;;  %21686 = vst [vmem:[#allocation85_spill] sm:$0xff] %v18337_v34  ;;  %v2843_v21 = vadd.f32 %v18078_v48, %v17885_v12 }
 0x392   : > { %v18339_v8 = vpop.f32.mrf.mxu1  ;;  %v18341_v52 = vpop.f32.mrf.mxu0 }
 0x393   : > { %21687 = vst [vmem:[#allocation86_spill] sm:$0xff] %v18339_v8  ;;  %21688 = vst [vmem:[#allocation87_spill] sm:$0xff] %v18341_v52  ;;  %v3233_v52 = vadd.f32 %v18085_v25, %v2843_v21  ;;  %v3626_v25 = vadd.f32 %v18221_v16, %v18088_v40 }
 0x394   : > { %v18343_v27 = vpop.f32.mrf.mxu1  ;;  %v18345_v63 = vpop.f32.mrf.mxu0 }
 0x395   : > { %21689 = vst [vmem:[#allocation88_spill] sm:$0xff] %v18343_v27  ;;  %21690 = vst [vmem:[#allocation89_spill] sm:$0xff] %v18345_v63  ;;  %v3624_v27 = vadd.f32 %v18210_v33, %v18081_v3  ;;  %v2847_v33 = vadd.f32 %v18090_v41, %v17913_v62  ;;  %v2849_v41 = vadd.f32 %v18100_v14, %v17928_v56 }
 0x396   : > { %v18347_v9 = vpop.f32.mrf.mxu1  ;;  %v18349_v15 = vpop.f32.mrf.mxu0  ;;  %v3630_v14 = vadd.f32 %v18243_v55, %v18108_v39 }
 0x397   : > { %21691 = vst [vmem:[#allocation90_spill] sm:$0xff] %v18347_v9  ;;  %21692 = vst [vmem:[#allocation91_spill] sm:$0xff] %v18349_v15  ;;  %v4015_v15 = vadd.f32 %v18223_v47, %v3624_v27  ;;  %v3237_v47 = vadd.f32 %v18102_v18, %v2847_v33  ;;  %v18390_v18 = vld [vmem:[%s21532_s3 + $0x1d8] sm:$0xff]  ;;  %v3239_v56 = vadd.f32 %v18115_v37, %v2849_v41 }
 0x398   : > { %v18351_v58 = vpop.f32.mrf.mxu1  ;;  %v18353_v54 = vpop.f32.mrf.mxu0  ;;  %14982 = vmatprep.subr.mxu0 %v18390_v18  ;;  %v4021_v37 = vadd.f32 %v18265_v1, %v3630_v14  ;;  %v2853_v1 = vadd.f32 %v18129_v35, %v17952_v19 }
 0x399   : > { %21693 = vst [vmem:[#allocation92_spill] sm:$0xff] %v18351_v58  ;;  %21694 = vst [vmem:[#allocation93_spill] sm:$0xff] %v18353_v54  ;;  %v2845_v58 = vadd.f32 %v18083_v44, %v17901_v26  ;;  %v3623_v54 = vadd.f32 %v18216_v2, %v3233_v52  ;;  %v4017_v52 = vadd.f32 %v18231_v57, %v3626_v25 }
 0x39a   : > { %v18357_v34 = vpop.f32.mrf.mxu1  ;;  %v18359_v8 = vpop.f32.mrf.mxu0 }
 0x39b   : > { %21695 = vst [vmem:[#allocation94_spill] sm:$0xff] %v18357_v34  ;;  %v3235_v34 = vadd.f32 %v18092_v53, %v2845_v58  ;;  %v4014_v3 = vadd.f32 %v18227_v49, %v3623_v54  ;;  %v3628_v58 = vadd.f32 %v18229_v32, %v18095_v24 }
 0x39c   : > { %v18364_v63 = vpop.f32.mrf.mxu0  ;;  %v14600_v9 = vpop.f32.mrf.mxu1 }
 0x39d   : > { %21696 = vst [vmem:[#allocation95_spill] sm:$0xff] %v18364_v63  ;;  %v4405_v21 = vadd.f32 %v14600_v9, %v4015_v15  ;;  %v3625_v44 = vadd.f32 %v18225_v17, %v3235_v34  ;;  %v3627_v34 = vadd.f32 %v18239_v51, %v3237_v47  ;;  %v4019_v24 = vadd.f32 %v18245_v61, %v3628_v58 }
 0x39e   : > { %v18370_v12 = vpop.f32.mrf.mxu0  ;;  %v4245_v48 = vpop.f32.mrf.mxu1 }
 0x39f   : > { %v4404_v27 = vadd.f32 %v4245_v48, %v4014_v3  ;;  %v4016_v9 = vadd.f32 %v18241_v50, %v3625_v44  ;;  %v4018_v54 = vadd.f32 %v18260_v30, %v3627_v34  ;;  %v2851_v3 = vadd.f32 %v18113_v28, %v17940_v31 }
 0x3a0   : > { %v14603_v63 = vpop.f32.mrf.mxu1  ;;  %v14656_v26 = vpop.f32.mrf.mxu0 }
 0x3a1   : > { %v4795_v2 = vadd.f32 %v14656_v26, %v4405_v21  ;;  %v4407_v15 = vadd.f32 %v14603_v63, %v4017_v52  ;;  %v3629_v21 = vadd.f32 %v18258_v38, %v3239_v56  ;;  %v3241_v30 = vadd.f32 %v18131_v23, %v2851_v3  ;;  %v21699_v3 = vld [vmem:[#allocation60_spill] sm:$0xff] }
 0x3a2   : > { %v4255_v40 = vpop.f32.mrf.mxu1  ;;  %v4635_v53 = vpop.f32.mrf.mxu0  ;;  %v3632_v52 = vadd.f32 %v18263_v42, %v18126_v10 }
 0x3a3   : > { %v4827_v16 = vmax.f32 %v4795_v2, 0.0  ;;  %v4794_v62 = vadd.f32 %v4635_v53, %v4404_v27  ;;  %v4406_v32 = vadd.f32 %v4255_v40, %v4016_v9  ;;  %v4020_v31 = vadd.f32 %v18269_v6, %v3629_v21 }
 0x3a4   : > { %v14606_v17 = vpop.f32.mrf.mxu1  ;;  %v14659_v49 = vpop.f32.mrf.mxu0  ;;  %v3631_v58 = vadd.f32 %v18267_v4, %v3241_v30  ;;  %v4023_v23 = vadd.f32 %v18273_v5, %v3632_v52  ;;  %v3243_v6 = vadd.f32 %v18139_v20, %v2853_v1  ;;  %v18470_v30 = vld [vmem:[%s21533_s4] ss:$0 sm:$0xff]  ;;  %v21701_v52 = vld [vmem:[#allocation9_spill] sm:$0xff] }
 0x3a5   : > { %4860 = vst.msk [vmem:[#allocation3 + $0x21] sm:$0xff] %vm251_vm0, %v4827_v16  ;;  %v4826_v63 = vmax.f32 %v4794_v62, 0.0  ;;  %v4797_v57 = vadd.f32 %v14659_v49, %v4407_v15  ;;  %v4409_v48 = vadd.f32 %v14606_v17, %v4019_v24  ;;  %v3634_v15 = vadd.f32 %v18271_v46, %v18135_v45 }
 0x3a6   : > { %v4265_v51 = vpop.f32.mrf.mxu1  ;;  %v4645_v50 = vpop.f32.mrf.mxu0  ;;  %v4022_v5 = vadd.f32 %v18277_v13, %v3631_v58  ;;  %v2855_v45 = vadd.f32 %v18137_v29, %v17964_v60  ;;  %v3633_v20 = vadd.f32 %v18275_v36, %v3243_v6  ;;  %v3636_v60 = vadd.f32 %v18279_v0, %v18142_v7  ;;  %v21698_v0 = vld [vmem:[#allocation32_spill] sm:$0xff] }
 0x3a7   : > { %4859 = vst.msk [vmem:[#allocation3 + $0x19] sm:$0xff] %vm251_vm0, %v4826_v63  ;;  %v4829_v61 = vmax.f32 %v4797_v57, 0.0  ;;  %v4796_v25 = vadd.f32 %v4645_v50, %v4406_v32  ;;  %v4408_v39 = vadd.f32 %v4265_v51, %v4018_v54  ;;  %v4025_v24 = vadd.f32 %v18281_v22, %v3634_v15 }
 0x3a8   : > { %v14609_v33 = vpop.f32.mrf.mxu1  ;;  %v14662_v26 = vpop.f32.mrf.mxu0  ;;  %v3245_v56 = vadd.f32 %v18146_v11, %v2855_v45  ;;  %v4024_v22 = vadd.f32 %v18285_v43, %v3633_v20  ;;  %v21697_v11 = vld [vmem:[#allocation16_spill] sm:$0xff]  ;;  %v21709_v45 = vld [vmem:[#allocation63_spill] sm:$0xff] }
 0x3a9   : > { %4862 = vst.msk [vmem:[#allocation3 + $0x39] sm:$0xff] %vm251_vm0, %v4829_v61  ;;  %v4828_v55 = vmax.f32 %v4796_v25, 0.0  ;;  %v4799_v44 = vadd.f32 %v14662_v26, %v4409_v48  ;;  %v4411_v28 = vadd.f32 %v14609_v33, %v4021_v37  ;;  %v2857_v25 = vadd.f32 %v21698_v0, %v21697_v11  ;;  %v21700_v26 = vld [vmem:[#allocation62_spill] sm:$0xff]  ;;  %v21715_v11 = vld [vmem:[#allocation65_spill] sm:$0xff] }
 0x3aa   : > { %v4275_v27 = vpop.f32.mrf.mxu1  ;;  %v4655_v2 = vpop.f32.mrf.mxu0  ;;  %v3635_v21 = vadd.f32 %v21699_v3, %v3245_v56  ;;  %v4027_v37 = vadd.f32 %v21700_v26, %v3636_v60  ;;  %v21711_v60 = vld [vmem:[#allocation10_spill] sm:$0xff]  ;;  %v21716_v26 = vld [vmem:[#allocation68_spill] sm:$0xff] }
 0x3ab   : > { %4861 = vst.msk [vmem:[#allocation3 + $0x31] sm:$0xff] %vm251_vm0, %v4828_v55  ;;  %v4831_v38 = vmax.f32 %v4799_v44, 0.0  ;;  %v4798_v47 = vadd.f32 %v4655_v2, %v4408_v39  ;;  %v4410_v10 = vadd.f32 %v4275_v27, %v4020_v31  ;;  %v1691_v27 = vadd.f32 %v18470_v30, %v21701_v52  ;;  %v21702_v2 = vld [vmem:[#allocation35_spill] sm:$0xff] }
 0x3ac   : > { %v14612_v40 = vpop.f32.mrf.mxu1  ;;  %v14665_v53 = vpop.f32.mrf.mxu0  ;;  %v18430_v46 = vld [vmem:[#allocation3 + $0x21] sm:$0xff]  ;;  %v3247_v31 = vadd.f32 %v21702_v2, %v2857_v25 }
 0x3ad   : > { %4864 = vst.msk [vmem:[#allocation3 + $0x51] sm:$0xff] %vm251_vm0, %v4831_v38  ;;  %v4830_v42 = vmax.f32 %v4798_v47, 0.0  ;;  %v4801_v9 = vadd.f32 %v14665_v53, %v4411_v28  ;;  %v4413_v35 = vadd.f32 %v14612_v40, %v4023_v23  ;;  %v21703_v28 = vld [vmem:[#allocation33_spill] sm:$0xff] }
 0x3ae   : > { %v4285_v16 = vpop.f32.mrf.mxu1  ;;  %v4665_v62 = vpop.f32.mrf.mxu0  ;;  %v18418_v41 = vld [vmem:[#allocation3 + $0x18] sm:$0xff]  ;;  %v18422_v4 = vld [vmem:[#allocation3 + $0x20] sm:$0xff]  ;;  %v3637_v20 = vadd.f32 %v21709_v45, %v3247_v31 }
 0x3af   : > { %v18420_v19 = vld [vmem:[#allocation3 + $0x19] sm:$0xff]  ;;  %4863 = vst.msk [vmem:[#allocation3 + $0x49] sm:$0xff] %vm251_vm0, %v4830_v42  ;;  %v4833_v34 = vmax.f32 %v4801_v9, 0.0  ;;  %v4800_v17 = vadd.f32 %v4665_v62, %v4410_v10  ;;  %14713 = vmatprep.mubr.msk.f32.mxu1 %vm251_vm0, %v18418_v41  ;;  %v4412_v32 = vadd.f32 %v4285_v16, %v4022_v5 }
 0x3b0   : > { %14769 = vmatprep.mubr.msk.f32.mxu0 %vm251_vm0, %v18420_v19  ;;  %v14615_v49 = vpop.f32.mrf.mxu1  ;;  %v14668_v13 = vpop.f32.mrf.mxu0  ;;  %14714 = vmatmul.mubr.msk.f32.gmra.mxu1 %vm251_vm0, %v18422_v4  ;;  %v18456_v7 = vld [vmem:[#allocation3 + $0x39] sm:$0xff] }
 0x3b1   : > { %14770 = vmatmul.mubr.msk.f32.gmra.mxu0 %vm251_vm0, %v18430_v46  ;;  %4866 = vst.msk [vmem:[#allocation3 + $0x69] sm:$0xff] %vm251_vm0, %v4833_v34  ;;  %v4832_v63 = vmax.f32 %v4800_v17, 0.0  ;;  %v4803_v57 = vadd.f32 %v14668_v13, %v4413_v35  ;;  %v4415_v54 = vadd.f32 %v14615_v49, %v4025_v24  ;;  %v21704_v38 = vld [vmem:[#allocation61_spill] sm:$0xff]  ;;  %v21705_v10 = vld [vmem:[#allocation64_spill] sm:$0xff]  ;;  %v21707_v35 = vld [vmem:[#allocation18_spill] sm:$0xff] }
 0x3b2   : > { %v4295_v36 = vpop.f32.mrf.mxu1  ;;  %v4675_v29 = vpop.f32.mrf.mxu0  ;;  %v18444_v14 = vld [vmem:[#allocation3 + $0x30] sm:$0xff]  ;;  %v18448_v50 = vld [vmem:[#allocation3 + $0x38] sm:$0xff]  ;;  %v3638_v47 = vadd.f32 %v21704_v38, %v21703_v28  ;;  %v4026_v42 = vadd.f32 %v21705_v10, %v3635_v21  ;;  %v21706_v62 = vld [vmem:[#allocation17_spill] sm:$0xff] }
 0x3b3   : > { %v18446_v51 = vld [vmem:[#allocation3 + $0x31] sm:$0xff]  ;;  %4865 = vst.msk [vmem:[#allocation3 + $0x61] sm:$0xff] %vm251_vm0, %v4832_v63  ;;  %v4835_v48 = vmax.f32 %v4803_v57, 0.0  ;;  %v4802_v61 = vadd.f32 %v4675_v29, %v4412_v32  ;;  %14716 = vmatprep.mubr.msk.f32.mxu1 %vm251_vm0, %v18444_v14  ;;  %v4414_v39 = vadd.f32 %v4295_v36, %v4024_v22  ;;  %v2081_v5 = vadd.f32 %v21706_v62, %v1691_v27  ;;  %v21708_v34 = vld [vmem:[#allocation34_spill] sm:$0xff]  ;;  %v21718_v31 = vld [vmem:[#allocation37_spill] sm:$0xff] }
 0x3b4   : > { %14772 = vmatprep.mubr.msk.f32.mxu0 %vm251_vm0, %v18446_v51  ;;  %v14618_v33 = vpop.f32.mrf.mxu1  ;;  %v14671_v43 = vpop.f32.mrf.mxu0  ;;  %14717 = vmatmul.mubr.msk.f32.gmra.mxu1 %vm251_vm0, %v18448_v50  ;;  %v18489_v16 = vld [vmem:[#allocation3 + $0x51] sm:$0xff]  ;;  %v2859_v17 = vadd.f32 %v21708_v34, %v21707_v35  ;;  %v21710_v24 = vld [vmem:[#allocation66_spill] sm:$0xff]  ;;  %v1693_v36 = vadd.f32 %v18470_v30, %v21711_v60 }
 0x3b5   : > { %14773 = vmatmul.mubr.msk.f32.gmra.mxu0 %vm251_vm0, %v18456_v7  ;;  %4868 = vst.msk [vmem:[#allocation3 + $0x81] sm:$0xff] %vm251_vm0, %v4835_v48  ;;  %v4834_v55 = vmax.f32 %v4802_v61, 0.0  ;;  %v4805_v44 = vadd.f32 %v14671_v43, %v4415_v54  ;;  %v4417_v9 = vadd.f32 %v14618_v33, %v4027_v37  ;;  %v4029_v32 = vadd.f32 %v21710_v24, %v3638_v47  ;;  %v21712_v29 = vld [vmem:[#allocation20_spill] sm:$0xff]  ;;  %v21713_v54 = vld [vmem:[#allocation38_spill] sm:$0xff]  ;;  %v21717_v27 = vld [vmem:[#allocation19_spill] sm:$0xff] }
 0x3b6   : > { %v4305_v1 = vpop.f32.mrf.mxu1  ;;  %v4685_v58 = vpop.f32.mrf.mxu0  ;;  %v18477_v40 = vld [vmem:[#allocation3 + $0x48] sm:$0xff]  ;;  %v18481_v23 = vld [vmem:[#allocation3 + $0x50] sm:$0xff]  ;;  %v2471_v22 = vadd.f32 %v21712_v29, %v2081_v5  ;;  %v3249_v48 = vadd.f32 %v21713_v54, %v2859_v17  ;;  %v21714_v61 = vld [vmem:[#allocation36_spill] sm:$0xff]  ;;  %v4028_v37 = vadd.f32 %v21716_v26, %v3637_v20  ;;  %v2083_v2 = vadd.f32 %v21717_v27, %v1693_v36 }
 0x3b7   : > { %v18479_v53 = vld [vmem:[#allocation3 + $0x49] sm:$0xff]  ;;  %4867 = vst.msk [vmem:[#allocation3 + $0x79] sm:$0xff] %vm251_vm0, %v4834_v55  ;;  %v4837_v6 = vmax.f32 %v4805_v44, 0.0  ;;  %v4804_v15 = vadd.f32 %v4685_v58, %v4414_v39  ;;  %14719 = vmatprep.mubr.msk.f32.mxu1 %vm251_vm0, %v18477_v40  ;;  %v4416_v63 = vadd.f32 %v4305_v1, %v4026_v42  ;;  %v3640_v0 = vadd.f32 %v21715_v11, %v21714_v61  ;;  %v21723_v17 = vld [vmem:[#allocation41_spill] sm:$0xff]  ;;  %v21726_v60 = vld [vmem:[#allocation72_spill] sm:$0xff] }
 0x3b8   : > { %14775 = vmatprep.mubr.msk.f32.mxu0 %vm251_vm0, %v18479_v53  ;;  %v14621_v49 = vpop.f32.mrf.mxu1  ;;  %v14674_v13 = vpop.f32.mrf.mxu0  ;;  %14720 = vmatmul.mubr.msk.f32.gmra.mxu1 %vm251_vm0, %v18481_v23  ;;  %v18519_v52 = vld [vmem:[#allocation3 + $0x69] sm:$0xff]  ;;  %v2861_v28 = vadd.f32 %v21718_v31, %v2471_v22  ;;  %v21727_v61 = vld [vmem:[#allocation21_spill] sm:$0xff] }
 0x3b9   : > { %14776 = vmatmul.mubr.msk.f32.gmra.mxu0 %vm251_vm0, %v18489_v16  ;;  %4870 = vst.msk [vmem:[#allocation3 + $0x99] sm:$0xff] %vm251_vm0, %v4837_v6  ;;  %v4836_v57 = vmax.f32 %v4804_v15, 0.0  ;;  %v4807_v56 = vadd.f32 %v14674_v13, %v4417_v9  ;;  %v4419_v39 = vadd.f32 %v14621_v49, %v4029_v32  ;;  %v21719_v38 = vld [vmem:[#allocation67_spill] sm:$0xff]  ;;  %v21720_v10 = vld [vmem:[#allocation70_spill] sm:$0xff]  ;;  %v21725_v49 = vld [vmem:[#allocation69_spill] sm:$0xff] }
 0x3ba   : > { %v4315_v25 = vpop.f32.mrf.mxu1  ;;  %v4695_v3 = vpop.f32.mrf.mxu0  ;;  %v18507_v21 = vld [vmem:[#allocation3 + $0x60] sm:$0xff]  ;;  %v18511_v43 = vld [vmem:[#allocation3 + $0x68] sm:$0xff]  ;;  %v3639_v47 = vadd.f32 %v21719_v38, %v3249_v48  ;;  %v4031_v42 = vadd.f32 %v21720_v10, %v3640_v0  ;;  %v21721_v62 = vld [vmem:[#allocation11_spill] sm:$0xff]  ;;  %v3251_v45 = vadd.f32 %v21723_v17, %v2861_v28 }
 0x3bb   : > { %v18509_v33 = vld [vmem:[#allocation3 + $0x61] sm:$0xff]  ;;  %4869 = vst.msk [vmem:[#allocation3 + $0x91] sm:$0xff] %vm251_vm0, %v4836_v57  ;;  %v4839_v55 = vmax.f32 %v4807_v56, 0.0  ;;  %v4806_v44 = vadd.f32 %v4695_v3, %v4416_v63  ;;  %14722 = vmatprep.mubr.msk.f32.mxu1 %vm251_vm0, %v18507_v21  ;;  %v4418_v9 = vadd.f32 %v4315_v25, %v4028_v37  ;;  %v1695_v5 = vadd.f32 %v18470_v30, %v21721_v62  ;;  %v21724_v20 = vld [vmem:[#allocation39_spill] sm:$0xff]  ;;  %v21728_v0 = vld [vmem:[#allocation40_spill] sm:$0xff] }
 0x3bc   : > { %14778 = vmatprep.mubr.msk.f32.mxu0 %vm251_vm0, %v18509_v33  ;;  %v14624_v1 = vpop.f32.mrf.mxu1  ;;  %v14677_v58 = vpop.f32.mrf.mxu0  ;;  %14723 = vmatmul.mubr.msk.f32.gmra.mxu1 %vm251_vm0, %v18511_v43  ;;  %v21722_v35 = vld [vmem:[#allocation22_spill] sm:$0xff]  ;;  %v3642_v13 = vadd.f32 %v21725_v49, %v21724_v20  ;;  %v4030_v36 = vadd.f32 %v21726_v60, %v3639_v47  ;;  %v21729_v3 = vld [vmem:[#allocation71_spill] sm:$0xff]  ;;  %v21731_v28 = vld [vmem:[#allocation12_spill] sm:$0xff] }
 0x3bd   : > { %14779 = vmatmul.mubr.msk.f32.gmra.mxu0 %vm251_vm0, %v18519_v52  ;;  %4872 = vst.msk [vmem:[#allocation3 + $0xb1] sm:$0xff] %vm251_vm0, %v4839_v55  ;;  %v4838_v6 = vmax.f32 %v4806_v44, 0.0  ;;  %v4809_v15 = vadd.f32 %v14677_v58, %v4419_v39  ;;  %v2473_v34 = vadd.f32 %v21722_v35, %v2083_v2  ;;  %v4421_v29 = vadd.f32 %v14624_v1, %v4031_v42  ;;  %v18548_v48 = vld [vmem:[#allocation3 + $0x81] sm:$0xff]  ;;  %v21732_v47 = vld [vmem:[#allocation24_spill] sm:$0xff] }
 0x3be   : > { %v4325_v24 = vpop.f32.mrf.mxu1  ;;  %v4705_v32 = vpop.f32.mrf.mxu0  ;;  %v18536_v63 = vld [vmem:[#allocation3 + $0x78] sm:$0xff]  ;;  %v18540_v56 = vld [vmem:[#allocation3 + $0x80] sm:$0xff]  ;;  %v2085_v11 = vadd.f32 %v21727_v61, %v1695_v5  ;;  %v3641_v26 = vadd.f32 %v21729_v3, %v3251_v45  ;;  %v21730_v55 = vld [vmem:[#allocation74_spill] sm:$0xff]  ;;  %v1697_v38 = vadd.f32 %v18470_v30, %v21731_v28 }
 0x3bf   : > { %v18538_v57 = vld [vmem:[#allocation3 + $0x79] sm:$0xff]  ;;  %4871 = vst.msk [vmem:[#allocation3 + $0xa9] sm:$0xff] %vm251_vm0, %v4838_v6  ;;  %v4841_v22 = vmax.f32 %v4809_v15, 0.0  ;;  %v4808_v54 = vadd.f32 %v4705_v32, %v4418_v9  ;;  %14725 = vmatprep.mubr.msk.f32.mxu1 %vm251_vm0, %v18536_v63  ;;  %v2863_v25 = vadd.f32 %v21728_v0, %v2473_v34  ;;  %v4033_v44 = vadd.f32 %v21730_v55, %v3642_v13  ;;  %v21734_v42 = vld [vmem:[#allocation42_spill] sm:$0xff]  ;;  %v21737_v32 = vld [vmem:[#allocation23_spill] sm:$0xff] }
 0x3c0   : > { %14781 = vmatprep.mubr.msk.f32.mxu0 %vm251_vm0, %v18538_v57  ;;  %v14627_v37 = vpop.f32.mrf.mxu1  ;;  %v14680_v39 = vpop.f32.mrf.mxu0  ;;  %14726 = vmatmul.mubr.msk.f32.gmra.mxu1 %vm251_vm0, %v18540_v56  ;;  %v4420_v27 = vadd.f32 %v4325_v24, %v4030_v36  ;;  %v2475_v1 = vadd.f32 %v21732_v47, %v2085_v11  ;;  %v21733_v58 = vld [vmem:[#allocation44_spill] sm:$0xff]  ;;  %v21735_v9 = vld [vmem:[#allocation73_spill] sm:$0xff]  ;;  %v2087_v60 = vadd.f32 %v21737_v32, %v1697_v38  ;;  %v21738_v36 = vld [vmem:[#allocation43_spill] sm:$0xff] }
 0x3c1   : > { %14782 = vmatmul.mubr.msk.f32.gmra.mxu0 %vm251_vm0, %v18548_v48  ;;  %4874 = vst.msk [vmem:[#allocation3 + $0xc9] sm:$0xff] %vm251_vm0, %v4841_v22  ;;  %v4840_v2 = vmax.f32 %v4808_v54, 0.0  ;;  %v4811_v31 = vadd.f32 %v14680_v39, %v4421_v29  ;;  %v3253_v10 = vadd.f32 %v21733_v58, %v2863_v25  ;;  %v3644_v6 = vadd.f32 %v21735_v9, %v21734_v42  ;;  %v21736_v17 = vld [vmem:[#allocation76_spill] sm:$0xff]  ;;  %v21739_v22 = vld [vmem:[#allocation75_spill] sm:$0xff]  ;;  %v21740_v0 = vld [vmem:[#allocation78_spill] sm:$0xff] }
 0x3c2   : > { %v4335_v15 = vpop.f32.mrf.mxu1  ;;  %v4715_v62 = vpop.f32.mrf.mxu0  ;;  %v18565_v5 = vld [vmem:[#allocation3 + $0x90] sm:$0xff]  ;;  %v18569_v34 = vld [vmem:[#allocation3 + $0x98] sm:$0xff]  ;;  %v4032_v45 = vadd.f32 %v21736_v17, %v3641_v26  ;;  %v4423_v20 = vadd.f32 %v14627_v37, %v4033_v44  ;;  %v2865_v29 = vadd.f32 %v21738_v36, %v2475_v1  ;;  %v21741_v39 = vld [vmem:[#allocation13_spill] sm:$0xff] }
 0x3c3   : > { %v18567_v35 = vld [vmem:[#allocation3 + $0x91] sm:$0xff]  ;;  %4873 = vst.msk [vmem:[#allocation3 + $0xc1] sm:$0xff] %vm251_vm0, %v4840_v2  ;;  %v4843_v49 = vmax.f32 %v4811_v31, 0.0  ;;  %v4810_v13 = vadd.f32 %v4715_v62, %v4420_v27  ;;  %14728 = vmatprep.mubr.msk.f32.mxu1 %vm251_vm0, %v18565_v5  ;;  %v18577_v24 = vld [vmem:[#allocation3 + $0x99] sm:$0xff]  ;;  %v3643_v54 = vadd.f32 %v21739_v22, %v3253_v10  ;;  %v4035_v25 = vadd.f32 %v21740_v0, %v3644_v6  ;;  %v21742_v44 = vld [vmem:[#allocation26_spill] sm:$0xff] }
 0x3c4   : > { %14784 = vmatprep.mubr.msk.f32.mxu0 %vm251_vm0, %v18567_v35  ;;  %v14630_v61 = vpop.f32.mrf.mxu1  ;;  %v14683_v11 = vpop.f32.mrf.mxu0  ;;  %14729 = vmatmul.mubr.msk.f32.gmra.mxu1 %vm251_vm0, %v18569_v34  ;;  %v4422_v3 = vadd.f32 %v4335_v15, %v4032_v45  ;;  %v1699_v55 = vadd.f32 %v18470_v30, %v21741_v39  ;;  %v2477_v27 = vadd.f32 %v21742_v44, %v2087_v60  ;;  %v21743_v2 = vld [vmem:[#allocation47_spill] sm:$0xff]  ;;  %v21744_v28 = vld [vmem:[#allocation45_spill] sm:$0xff]  ;;  %v21746_v6 = vld [vmem:[#allocation80_spill] sm:$0xff] }
 0x3c5   : > { %14785 = vmatmul.mubr.msk.f32.gmra.mxu0 %vm251_vm0, %v18577_v24  ;;  %4876 = vst.msk [vmem:[#allocation3 + $0xe1] sm:$0xff] %vm251_vm0, %v4843_v49  ;;  %v4842_v26 = vmax.f32 %v4810_v13, 0.0  ;;  %v4813_v37 = vadd.f32 %v14683_v11, %v4423_v20  ;;  %v3255_v31 = vadd.f32 %v21743_v2, %v2865_v29  ;;  %v21745_v38 = vld [vmem:[#allocation77_spill] sm:$0xff]  ;;  %v4034_v15 = vadd.f32 %v21746_v6, %v3643_v54  ;;  %v18606_v20 = vld [vmem:[#allocation3 + $0xb1] sm:$0xff]  ;;  %v21748_v32 = vld [vmem:[#allocation46_spill] sm:$0xff] }
 0x3c6   : > { %v3646_v47 = vadd.f32 %v21745_v38, %v21744_v28  ;;  %v4345_v1 = vpop.f32.mrf.mxu1  ;;  %v4725_v58 = vpop.f32.mrf.mxu0  ;;  %v18594_v10 = vld [vmem:[#allocation3 + $0xa8] sm:$0xff]  ;;  %v18598_v9 = vld [vmem:[#allocation3 + $0xb0] sm:$0xff]  ;;  %v4425_v62 = vadd.f32 %v14630_v61, %v4035_v25  ;;  %v21747_v49 = vld [vmem:[#allocation25_spill] sm:$0xff]  ;;  %v2867_v60 = vadd.f32 %v21748_v32, %v2477_v27 }
 0x3c7   : > { %v18596_v42 = vld [vmem:[#allocation3 + $0xa9] sm:$0xff]  ;;  %4875 = vst.msk [vmem:[#allocation3 + $0xd9] sm:$0xff] %vm251_vm0, %v4842_v26  ;;  %v4845_v17 = vmax.f32 %v4813_v37, 0.0  ;;  %v4812_v45 = vadd.f32 %v4725_v58, %v4422_v3  ;;  %14731 = vmatprep.mubr.msk.f32.mxu1 %vm251_vm0, %v18594_v10  ;;  %v2089_v13 = vadd.f32 %v21747_v49, %v1699_v55  ;;  %v4424_v0 = vadd.f32 %v4345_v1, %v4034_v15  ;;  %v21752_v39 = vld [vmem:[#allocation28_spill] sm:$0xff] }
 0x3c8   : > { %14787 = vmatprep.mubr.msk.f32.mxu0 %vm251_vm0, %v18596_v42  ;;  %v21749_v36 = vld [vmem:[#allocation79_spill] sm:$0xff]  ;;  %v14633_v22 = vpop.f32.mrf.mxu1  ;;  %v14686_v54 = vpop.f32.mrf.mxu0  ;;  %14732 = vmatmul.mubr.msk.f32.gmra.mxu1 %vm251_vm0, %v18598_v9  ;;  %v21750_v61 = vld [vmem:[#allocation82_spill] sm:$0xff]  ;;  %v21754_v2 = vld [vmem:[#allocation48_spill] sm:$0xff] }
 0x3c9   : > { %v3645_v29 = vadd.f32 %v21749_v36, %v3255_v31  ;;  %14788 = vmatmul.mubr.msk.f32.gmra.mxu0 %vm251_vm0, %v18606_v20  ;;  %v4037_v11 = vadd.f32 %v21750_v61, %v3646_v47  ;;  %4878 = vst.msk [vmem:[#allocation3 + $0xf9] sm:$0xff] %vm251_vm0, %v4845_v17  ;;  %v4844_v25 = vmax.f32 %v4812_v45, 0.0  ;;  %v4815_v3 = vadd.f32 %v14686_v54, %v4425_v62  ;;  %v21751_v26 = vld [vmem:[#allocation14_spill] sm:$0xff]  ;;  %v21755_v31 = vld [vmem:[#allocation81_spill] sm:$0xff]  ;;  %v21759_v54 = vld [vmem:[#allocation83_spill] sm:$0xff] }
 0x3ca   : > { %v1701_v37 = vadd.f32 %v18470_v30, %v21751_v26  ;;  %v2479_v55 = vadd.f32 %v21752_v39, %v2089_v13  ;;  %v21753_v44 = vld [vmem:[#allocation50_spill] sm:$0xff]  ;;  %v3648_v28 = vadd.f32 %v21755_v31, %v21754_v2  ;;  %v4355_v38 = vpop.f32.mrf.mxu1  ;;  %v4735_v58 = vpop.f32.mrf.mxu0  ;;  %v18623_v6 = vld [vmem:[#allocation3 + $0xc0] sm:$0xff]  ;;  %v21757_v13 = vld [vmem:[#allocation27_spill] sm:$0xff] }
 0x3cb   : > { %v3257_v27 = vadd.f32 %v21753_v44, %v2867_v60  ;;  %v18625_v47 = vld [vmem:[#allocation3 + $0xc1] sm:$0xff]  ;;  %v4036_v1 = vadd.f32 %v18333_v59, %v3645_v29  ;;  %4877 = vst.msk [vmem:[#allocation3 + $0xf1] sm:$0xff] %vm251_vm0, %v4844_v25  ;;  %v4427_v15 = vadd.f32 %v14633_v22, %v4037_v11  ;;  %v4847_v62 = vmax.f32 %v4815_v3, 0.0  ;;  %14734 = vmatprep.mubr.msk.f32.mxu1 %vm251_vm0, %v18623_v6  ;;  %v18635_v49 = vld [vmem:[#allocation3 + $0xc9] sm:$0xff]  ;;  %v21765_v31 = vld [vmem:[#allocation84_spill] sm:$0xff] }
 0x3cc   : > { %v18627_v17 = vld [vmem:[#allocation3 + $0xc8] sm:$0xff]  ;;  %v4814_v45 = vadd.f32 %v4735_v58, %v4424_v0  ;;  %14790 = vmatprep.mubr.msk.f32.mxu0 %vm251_vm0, %v18625_v47  ;;  %21756 = vst [vmem:[#allocation16_spill] sm:$0xff] %v18635_v49  ;;  %v2091_v32 = vadd.f32 %v21757_v13, %v1701_v37  ;;  %v21758_v60 = vld [vmem:[#allocation49_spill] sm:$0xff]  ;;  %v14636_v59 = vpop.f32.mrf.mxu1  ;;  %v14689_v29 = vpop.f32.mrf.mxu0  ;;  %v21761_v26 = vld [vmem:[#allocation15_spill] sm:$0xff] }
 0x3cd   : > { %v2869_v36 = vadd.f32 %v21758_v60, %v2479_v55  ;;  %v3647_v61 = vadd.f32 %v21759_v54, %v3257_v27  ;;  %14735 = vmatmul.mubr.msk.f32.gmra.mxu1 %vm251_vm0, %v18627_v17  ;;  %14791 = vmatmul.mubr.msk.f32.gmra.mxu0 %vm251_vm0, %v18635_v49  ;;  %v21760_v22 = vld [vmem:[#allocation85_spill] sm:$0xff]  ;;  %4880 = vst.msk [vmem:[#allocation3 + $0x111] sm:$0xff] %vm251_vm0, %v4847_v62  ;;  %v21762_v39 = vld [vmem:[#allocation30_spill] sm:$0xff]  ;;  %v21764_v2 = vld [vmem:[#allocation51_spill] sm:$0xff] }
 0x3ce   : > { %v4039_v11 = vadd.f32 %v21760_v22, %v3648_v28  ;;  %v4426_v0 = vadd.f32 %v4355_v38, %v4036_v1  ;;  %v4846_v25 = vmax.f32 %v4814_v45, 0.0  ;;  %v4817_v3 = vadd.f32 %v14689_v29, %v4427_v15  ;;  %v21763_v44 = vld [vmem:[#allocation53_spill] sm:$0xff]  ;;  %v4365_v13 = vpop.f32.mrf.mxu1  ;;  %v4745_v60 = vpop.f32.mrf.mxu0  ;;  %v18652_v54 = vld [vmem:[#allocation3 + $0xd8] sm:$0xff]  ;;  %v21767_v38 = vld [vmem:[#allocation87_spill] sm:$0xff] }
 0x3cf   : > { %v1703_v37 = vadd.f32 %v18470_v30, %v21761_v26  ;;  %v2481_v55 = vadd.f32 %v21762_v39, %v2091_v32  ;;  %v3259_v27 = vadd.f32 %v21763_v44, %v2869_v36  ;;  %v3650_v58 = vadd.f32 %v21765_v31, %v21764_v2  ;;  %v18654_v28 = vld [vmem:[#allocation3 + $0xd9] sm:$0xff]  ;;  %14737 = vmatprep.mubr.msk.f32.mxu1 %vm251_vm0, %v18652_v54  ;;  %v18664_v32 = vld [vmem:[#allocation3 + $0xe1] sm:$0xff] }
 0x3d0   : > { %21766 = vst [vmem:[#allocation32_spill] sm:$0xff] %v18654_v28  ;;  %v18656_v62 = vld [vmem:[#allocation3 + $0xe0] sm:$0xff]  ;;  %v4038_v1 = vadd.f32 %v21767_v38, %v3647_v61  ;;  %4879 = vst.msk [vmem:[#allocation3 + $0x109] sm:$0xff] %vm251_vm0, %v4846_v25  ;;  %v4429_v30 = vadd.f32 %v14636_v59, %v4039_v11  ;;  %v4849_v15 = vmax.f32 %v4817_v3, 0.0  ;;  %v4816_v45 = vadd.f32 %v4745_v60, %v4426_v0  ;;  %v21770_v22 = vld [vmem:[#allocation52_spill] sm:$0xff]  ;;  %v14639_v61 = vpop.f32.mrf.mxu1  ;;  %v14692_v2 = vpop.f32.mrf.mxu0 }
 0x3d1   : > { %14793 = vmatprep.mubr.msk.f32.mxu0 %vm251_vm0, %v18654_v28  ;;  %21768 = vst [vmem:[#allocation60_spill] sm:$0xff] %v18664_v32  ;;  %v21769_v36 = vld [vmem:[#allocation29_spill] sm:$0xff]  ;;  %v2871_v26 = vadd.f32 %v21770_v22, %v2481_v55  ;;  %v21771_v39 = vld [vmem:[#allocation86_spill] sm:$0xff]  ;;  %14738 = vmatmul.mubr.msk.f32.gmra.mxu1 %vm251_vm0, %v18656_v62  ;;  %v21774_v55 = vld [vmem:[#allocation56_spill] sm:$0xff] }
 0x3d2   : > { %v2093_v29 = vadd.f32 %v21769_v36, %v1703_v37  ;;  %v3649_v44 = vadd.f32 %v21771_v39, %v3259_v27  ;;  %14794 = vmatmul.mubr.msk.f32.gmra.mxu0 %vm251_vm0, %v18664_v32  ;;  %v21772_v59 = vld [vmem:[#allocation89_spill] sm:$0xff]  ;;  %4882 = vst.msk [vmem:[#allocation3 + $0x129] sm:$0xff] %vm251_vm0, %v4849_v15  ;;  %v4428_v0 = vadd.f32 %v4365_v13, %v4038_v1  ;;  %v4848_v25 = vmax.f32 %v4816_v45, 0.0  ;;  %v21773_v37 = vld [vmem:[#allocation31_spill] sm:$0xff]  ;;  %v21775_v27 = vld [vmem:[#allocation54_spill] sm:$0xff]  ;;  %v4375_v22 = vpop.f32.mrf.mxu1  ;;  %v4755_v39 = vpop.f32.mrf.mxu0 }
 0x3d3   : > { %v4041_v11 = vadd.f32 %v21772_v59, %v3650_v58  ;;  %v4819_v3 = vadd.f32 %v14692_v2, %v4429_v30  ;;  %v3261_v60 = vadd.f32 %v21774_v55, %v2871_v26  ;;  %v21776_v38 = vld [vmem:[#allocation88_spill] sm:$0xff]  ;;  %v18679_v28 = vld [vmem:[#allocation3 + $0xf0] sm:$0xff]  ;;  %v21780_v2 = vld [vmem:[#allocation90_spill] sm:$0xff] }
 0x3d4   : > { %v2483_v31 = vadd.f32 %v21773_v37, %v2093_v29  ;;  %v3652_v36 = vadd.f32 %v21776_v38, %v21775_v27  ;;  %v18681_v49 = vld [vmem:[#allocation3 + $0xf1] sm:$0xff]  ;;  %4881 = vst.msk [vmem:[#allocation3 + $0x121] sm:$0xff] %vm251_vm0, %v4848_v25  ;;  %v4818_v30 = vadd.f32 %v4755_v39, %v4428_v0  ;;  %14740 = vmatprep.mubr.msk.f32.mxu1 %vm251_vm0, %v18679_v28  ;;  %v18691_v45 = vld [vmem:[#allocation3 + $0xf9] sm:$0xff]  ;;  %v14642_v37 = vpop.f32.mrf.mxu1  ;;  %v14695_v55 = vpop.f32.mrf.mxu0 }
 0x3d5   : > { %21777 = vst [vmem:[#allocation62_spill] sm:$0xff] %v18681_v49  ;;  %v18683_v32 = vld [vmem:[#allocation3 + $0xf8] sm:$0xff]  ;;  %v21778_v58 = vld [vmem:[#allocation91_spill] sm:$0xff]  ;;  %v4431_v13 = vadd.f32 %v14639_v61, %v4041_v11  ;;  %v4851_v1 = vmax.f32 %v4819_v3, 0.0  ;;  %14796 = vmatprep.mubr.msk.f32.mxu0 %vm251_vm0, %v18681_v49  ;;  %v3651_v59 = vadd.f32 %v21780_v2, %v3261_v60  ;;  %v21782_v3 = vld [vmem:[#allocation58_spill] sm:$0xff] }
 0x3d6   : > { %v4040_v15 = vadd.f32 %v21778_v58, %v3649_v44  ;;  %v21779_v29 = vld [vmem:[#allocation55_spill] sm:$0xff]  ;;  %14741 = vmatmul.mubr.msk.f32.gmra.mxu1 %vm251_vm0, %v18683_v32  ;;  %14797 = vmatmul.mubr.msk.f32.gmra.mxu0 %vm251_vm0, %v18691_v45  ;;  %v21781_v44 = vld [vmem:[#allocation93_spill] sm:$0xff]  ;;  %v4850_v0 = vmax.f32 %v4818_v30, 0.0  ;;  %v21784_v38 = vld [vmem:[#allocation92_spill] sm:$0xff]  ;;  %v4385_v39 = vpop.f32.mrf.mxu1  ;;  %v4765_v58 = vpop.f32.mrf.mxu0 }
 0x3d7   : > { %v2873_v26 = vadd.f32 %v21779_v29, %v2483_v31  ;;  %v4043_v61 = vadd.f32 %v21781_v44, %v3652_v36  ;;  %4884 = vst.msk [vmem:[#allocation3 + $0x141] sm:$0xff] %vm251_vm0, %v4851_v1  ;;  %v4821_v25 = vadd.f32 %v14695_v55, %v4431_v13  ;;  %v21783_v31 = vld [vmem:[#allocation57_spill] sm:$0xff]  ;;  %v18704_v29 = vld [vmem:[#allocation3 + $0x108] sm:$0xff]  ;;  %v18708_v49 = vld [vmem:[#allocation3 + $0x110] sm:$0xff]  ;;  %v4042_v36 = vadd.f32 %v18359_v8, %v3651_v59 }
 0x3d8   : > { %v4430_v11 = vadd.f32 %v4375_v22, %v4040_v15  ;;  %v3654_v60 = vadd.f32 %v21784_v38, %v21783_v31  ;;  %v18706_v2 = vld [vmem:[#allocation3 + $0x109] sm:$0xff]  ;;  %4883 = vst.msk [vmem:[#allocation3 + $0x139] sm:$0xff] %vm251_vm0, %v4850_v0  ;;  %14743 = vmatprep.mubr.msk.f32.mxu1 %vm251_vm0, %v18704_v29  ;;  %v18716_v1 = vld [vmem:[#allocation3 + $0x111] sm:$0xff]  ;;  %v14645_v55 = vpop.f32.mrf.mxu1  ;;  %v14698_v44 = vpop.f32.mrf.mxu0 }
 0x3d9   : > { %v3263_v27 = vadd.f32 %v21782_v3, %v2873_v26  ;;  %v4433_v22 = vadd.f32 %v14642_v37, %v4043_v61  ;;  %v4853_v15 = vmax.f32 %v4821_v25, 0.0  ;;  %14799 = vmatprep.mubr.msk.f32.mxu0 %vm251_vm0, %v18706_v2  ;;  %v21785_v30 = vld [vmem:[#allocation94_spill] sm:$0xff]  ;;  %v21786_v8 = vld [vmem:[#allocation95_spill] sm:$0xff]  ;;  %v4432_v37 = vadd.f32 %v4385_v39, %v4042_v36 }
 0x3da   : > { %v4820_v13 = vadd.f32 %v4765_v58, %v4430_v11  ;;  %14744 = vmatmul.mubr.msk.f32.gmra.mxu1 %vm251_vm0, %v18708_v49  ;;  %14800 = vmatmul.mubr.msk.f32.gmra.mxu0 %vm251_vm0, %v18716_v1  ;;  %v4045_v59 = vadd.f32 %v21786_v8, %v3654_v60  ;;  %v4395_v0 = vpop.f32.mrf.mxu1  ;;  %v4775_v25 = vpop.f32.mrf.mxu0  ;;  %v18737_v39 = vld [vmem:[#allocation3 + $0x129] sm:$0xff] }
 0x3db   : > { %v3653_v26 = vadd.f32 %v21785_v30, %v3263_v27  ;;  %4886 = vst.msk [vmem:[#allocation3 + $0x159] sm:$0xff] %vm251_vm0, %v4853_v15  ;;  %v4823_v11 = vadd.f32 %v14698_v44, %v4433_v22  ;;  %v18725_v3 = vld [vmem:[#allocation3 + $0x120] sm:$0xff]  ;;  %v18729_v31 = vld [vmem:[#allocation3 + $0x128] sm:$0xff]  ;;  %v4822_v60 = vadd.f32 %v4775_v25, %v4432_v37 }
 0x3dc   : > { %v4852_v61 = vmax.f32 %v4820_v13, 0.0  ;;  %v18727_v27 = vld [vmem:[#allocation3 + $0x121] sm:$0xff]  ;;  %v4435_v58 = vadd.f32 %v14645_v55, %v4045_v59  ;;  %14746 = vmatprep.mubr.msk.f32.mxu1 %vm251_vm0, %v18725_v3  ;;  %v14701_v36 = vpop.f32.mrf.mxu0 }
 0x3dd   : > { %v4044_v38 = vadd.f32 %v18370_v12, %v3653_v26  ;;  %v4855_v30 = vmax.f32 %v4823_v11, 0.0  ;;  %14802 = vmatprep.mubr.msk.f32.mxu0 %vm251_vm0, %v18727_v27  ;;  %v4854_v22 = vmax.f32 %v4822_v60, 0.0 }
 0x3de   : > { %4885 = vst.msk [vmem:[#allocation3 + $0x151] sm:$0xff] %vm251_vm0, %v4852_v61  ;;  %14747 = vmatmul.mubr.msk.f32.gmra.mxu1 %vm251_vm0, %v18729_v31  ;;  %14803 = vmatmul.mubr.msk.f32.gmra.mxu0 %vm251_vm0, %v18737_v39  ;;  %v4825_v15 = vadd.f32 %v14701_v36, %v4435_v58  ;;  %v4785_v13 = vpop.f32.mrf.mxu0  ;;  %v18755_v37 = vld [vmem:[#allocation3 + $0x141] sm:$0xff] }
 0x3df   : > { %4888 = vst.msk [vmem:[#allocation3 + $0x171] sm:$0xff] %vm251_vm0, %v4855_v30  ;;  %v4434_v12 = vadd.f32 %v4395_v0, %v4044_v38  ;;  %v18744_v26 = vld [vmem:[#allocation3 + $0x138] sm:$0xff]  ;;  %v18748_v44 = vld [vmem:[#allocation3 + $0x140] sm:$0xff]  ;;  %4887 = vst.msk [vmem:[#allocation3 + $0x169] sm:$0xff] %vm251_vm0, %v4854_v22 }
 0x3e0   : > { %v18746_v55 = vld [vmem:[#allocation3 + $0x139] sm:$0xff]  ;;  %v4857_v8 = vmax.f32 %v4825_v15, 0.0  ;;  %14749 = vmatprep.mubr.msk.f32.mxu1 %vm251_vm0, %v18744_v26  ;;  %v5680_v58 = vld [vmem:[#allocation3 + $0x2] sm:$0xff]  ;;  %v5681_v22 = vld [vmem:[#allocation3 + $0xa] sm:$0xff] }
 0x3e1   : > { %v4824_v59 = vadd.f32 %v4785_v13, %v4434_v12  ;;  %14805 = vmatprep.mubr.msk.f32.mxu0 %vm251_vm0, %v18746_v55  ;;  %v12715_v15 = vld [vmem:[%s21532_s3 + $0x1b0] sm:$0xff] }
 0x3e2   : > { %14750 = vmatmul.mubr.msk.f32.gmra.mxu1 %vm251_vm0, %v18748_v44  ;;  %14806 = vmatmul.mubr.msk.f32.gmra.mxu0 %vm251_vm0, %v18755_v37  ;;  %4890 = vst.msk [vmem:[#allocation3 + $0x189] sm:$0xff] %vm251_vm0, %v4857_v8  ;;  %v18773_v38 = vld [vmem:[#allocation3 + $0x159] sm:$0xff]  ;;  %v21788_v8 = vld [vmem:[#allocation59_spill] sm:$0xff] }
 0x3e3   : > { %v4856_v61 = vmax.f32 %v4824_v59, 0.0  ;;  %v18804_v13 = vld [vmem:[#allocation3 + $0x1a] sm:$0xff]  ;;  %v18816_v59 = vld [vmem:[#allocation3 + $0x22] sm:$0xff] }
 0x3e5   : > { %v18762_v11 = vld [vmem:[#allocation3 + $0x150] sm:$0xff]  ;;  %v18766_v25 = vld [vmem:[#allocation3 + $0x158] sm:$0xff]  ;;  %4889 = vst.msk [vmem:[#allocation3 + $0x181] sm:$0xff] %vm251_vm0, %v4856_v61  ;;  %v12751_v61 = vld [vmem:[%s21532_s3 + $0x1d0] sm:$0xff] }
 0x3e6   : > { %v18764_v0 = vld [vmem:[#allocation3 + $0x151] sm:$0xff]  ;;  %14752 = vmatprep.mubr.msk.f32.mxu1 %vm251_vm0, %v18762_v11  ;;  %v18779_v30 = vld [vmem:[#allocation3 + $0x168] sm:$0xff] }
 0x3e7   : > { %14808 = vmatprep.mubr.msk.f32.mxu0 %vm251_vm0, %v18764_v0  ;;  %14753 = vmatmul.mubr.msk.f32.gmra.mxu1 %vm251_vm0, %v18766_v25  ;;  %v18781_v60 = vld [vmem:[#allocation3 + $0x169] sm:$0xff]  ;;  %v18789_v12 = vld [vmem:[#allocation3 + $0x171] sm:$0xff] }
 0x3e8   : > { %14809 = vmatmul.mubr.msk.f32.gmra.mxu0 %vm251_vm0, %v18773_v38  ;;  %v18783_v36 = vld [vmem:[#allocation3 + $0x170] sm:$0xff]  ;;  %14755 = vmatprep.mubr.msk.f32.mxu1 %vm251_vm0, %v18779_v30  ;;  %21787 = vst [vmem:[#allocation9_spill] sm:$0xff] %v18789_v12 }
 0x3e9   : > { %14811 = vmatprep.mubr.msk.f32.mxu0 %vm251_vm0, %v18781_v60 }
 0x3eb   : > { %14756 = vmatmul.mubr.msk.f32.gmra.mxu1 %vm251_vm0, %v18783_v36 }
 0x3ec   : > { %14812 = vmatmul.mubr.msk.f32.gmra.mxu0 %vm251_vm0, %v18789_v12  ;;  %14822 = vmatprep.mubr.msk.f32.mxu1 %vm251_vm0, %v5680_v58  ;;  %v14712_v58 = vpop.f32.mrf.mxu1 }
 0x3ed   : > { %14878 = vmatprep.mubr.msk.f32.mxu0 %vm251_vm0, %v18418_v41  ;;  %v18814_v41 = vld [vmem:[%s21533_s4 + $0x1] ss:$0 sm:$0xff] }
 0x3ef   : > { %14823 = vmatmul.mubr.msk.f32.vlgmr.msra.gmra.mxu1 %vm251_vm0, %v5681_v22 }
 0x3f0   : > { %14879 = vmatmul.mubr.msk.f32.vlgmr.msra.gmra.mxu0 %vm251_vm0, %v18422_v4  ;;  %14927 = vmatpush3.msra.mxu1 %v21788_v8  ;;  %v12714_v4 = vld [vmem:[%s21532_s3 + $0x1a8] sm:$0xff]  ;;  %v14768_v22 = vpop.f32.mrf.mxu0 }
 0x3f1   : > { %14825 = vmatprep.mubr.msk.f32.mxu1 %vm251_vm0, %v18804_v13  ;;  %14881 = vmatprep.mubr.msk.f32.mxu0 %vm251_vm0, %v18444_v14  ;;  %v18829_v14 = vld [vmem:[#allocation3 + $0x32] sm:$0xff] }
 0x3f2   : > { %14928 = vmatprep.subr.mxu1 %v12715_v15  ;;  %14983 = vmatpush3.msra.mxu0 %v18390_v18  ;;  %v5259_v18 = vadd.f32 %v14712_v58, %v18814_v41  ;;  %v12750_v8 = vld [vmem:[%s21532_s3 + $0x1c8] sm:$0xff]  ;;  %v18877_v58 = vld [vmem:[#allocation3 + $0x6a] sm:$0xff] }
 0x3f3   : > { %14929 = vmatpush3.msra.mxu1 %v12715_v15  ;;  %14984 = vmatprep.subr.mxu0 %v12751_v61  ;;  %v18836_v15 = vld [vmem:[#allocation3 + $0x3a] sm:$0xff] }
 0x3f4   : > { %14826 = vmatmul.mubr.msk.f32.gmra.mxu1 %vm251_vm0, %v18816_v59  ;;  %14882 = vmatmul.mubr.msk.f32.gmra.mxu0 %vm251_vm0, %v18448_v50  ;;  %v12713_v50 = vld [vmem:[%s21532_s3 + $0x1a0] sm:$0xff]  ;;  %v18844_v12 = vadd.f32 %v14768_v22, %v5259_v18  ;;  %v18882_v18 = vld [vmem:[%s21532_s3 + $0x218] sm:$0xff] }
 0x3f5   : > { %14828 = vmatprep.mubr.msk.f32.mxu1 %vm251_vm0, %v18829_v14  ;;  %14884 = vmatprep.mubr.msk.f32.mxu0 %vm251_vm0, %v18477_v40  ;;  %v18850_v40 = vld [vmem:[#allocation3 + $0x4a] sm:$0xff]  ;;  %v18901_v22 = vld [vmem:[#allocation3 + $0x92] sm:$0xff] }
 0x3f6   : > { %14930 = vmatprep.subr.mxu1 %v12714_v4  ;;  %14985 = vmatpush3.msra.mxu0 %v12751_v61  ;;  %v12749_v61 = vld [vmem:[%s21532_s3 + $0x1c0] sm:$0xff] }
 0x3f7   : > { %14931 = vmatpush3.msra.mxu1 %v12714_v4  ;;  %14986 = vmatprep.subr.mxu0 %v12750_v8  ;;  %v18856_v4 = vld [vmem:[#allocation3 + $0x52] sm:$0xff] }
 0x3f8   : > { %14829 = vmatmul.mubr.msk.f32.gmra.mxu1 %vm251_vm0, %v18836_v15  ;;  %14885 = vmatmul.mubr.msk.f32.gmra.mxu0 %vm251_vm0, %v18481_v23  ;;  %v18864_v23 = vld [vmem:[%s21532_s3 + $0x1f8] sm:$0xff] }
 0x3f9   : > { %14831 = vmatprep.mubr.msk.f32.mxu1 %vm251_vm0, %v18850_v40  ;;  %14887 = vmatprep.mubr.msk.f32.mxu0 %vm251_vm0, %v18507_v21  ;;  %v18870_v21 = vld [vmem:[#allocation3 + $0x62] sm:$0xff] }
 0x3fa   : > { %14932 = vmatprep.subr.mxu1 %v12713_v50  ;;  %14987 = vmatpush3.msra.mxu0 %v12750_v8  ;;  %v7245_v8 = vld [vmem:[#allocation3 + $0x60] sm:$0xff] }
 0x3fb   : > { %14933 = vmatpush3.msra.mxu1 %v12713_v50  ;;  %14988 = vmatprep.subr.mxu0 %v12749_v61  ;;  %v19011_v50 = vld [vmem:[#allocation3 + $0x180] sm:$0xff] }
 0x3fc   : > { %14832 = vmatmul.mubr.msk.f32.gmra.mxu1 %vm251_vm0, %v18856_v4  ;;  %14888 = vmatmul.mubr.msk.f32.gmra.mxu0 %vm251_vm0, %v18511_v43  ;;  %v18888_v43 = vld [vmem:[#allocation3 + $0x7a] sm:$0xff] }
 0x3fd   : > { %14834 = vmatprep.mubr.msk.f32.mxu1 %vm251_vm0, %v18870_v21  ;;  %14890 = vmatprep.mubr.msk.f32.mxu0 %vm251_vm0, %v18536_v63  ;;  %v18895_v63 = vld [vmem:[#allocation3 + $0x82] sm:$0xff] }
 0x3fe   : > { %15038 = vmatprep.subr.mxu1 %v18864_v23  ;;  %14989 = vmatpush3.msra.mxu0 %v12749_v61 }
 0x3ff   : > { %15094 = vmatprep.subr.mxu0 %v18882_v18 }
 0x400   : > { %14835 = vmatmul.mubr.msk.f32.gmra.mxu1 %vm251_vm0, %v18877_v58  ;;  %14891 = vmatmul.mubr.msk.f32.gmra.mxu0 %vm251_vm0, %v18540_v56  ;;  %v18907_v56 = vld [vmem:[#allocation3 + $0x9a] sm:$0xff] }
 0x401   : > { %14837 = vmatprep.mubr.msk.f32.mxu1 %vm251_vm0, %v18888_v43  ;;  %14893 = vmatprep.mubr.msk.f32.mxu0 %vm251_vm0, %v18565_v5  ;;  %v18913_v5 = vld [vmem:[#allocation3 + $0xaa] sm:$0xff] }
 0x404   : > { %14838 = vmatmul.mubr.msk.f32.gmra.mxu1 %vm251_vm0, %v18895_v63  ;;  %14894 = vmatmul.mubr.msk.f32.gmra.mxu0 %vm251_vm0, %v18569_v34  ;;  %v18919_v34 = vld [vmem:[#allocation3 + $0xb2] sm:$0xff] }
 0x405   : > { %14840 = vmatprep.mubr.msk.f32.mxu1 %vm251_vm0, %v18901_v22  ;;  %14896 = vmatprep.mubr.msk.f32.mxu0 %vm251_vm0, %v18594_v10  ;;  %v18925_v10 = vld [vmem:[#allocation3 + $0xc2] sm:$0xff] }
 0x408   : > { %14841 = vmatmul.mubr.msk.f32.gmra.mxu1 %vm251_vm0, %v18907_v56  ;;  %14897 = vmatmul.mubr.msk.f32.gmra.mxu0 %vm251_vm0, %v18598_v9  ;;  %v18931_v9 = vld [vmem:[#allocation3 + $0xca] sm:$0xff] }
 0x409   : > { %14843 = vmatprep.mubr.msk.f32.mxu1 %vm251_vm0, %v18913_v5  ;;  %14899 = vmatprep.mubr.msk.f32.mxu0 %vm251_vm0, %v18623_v6  ;;  %v18937_v6 = vld [vmem:[#allocation3 + $0xda] sm:$0xff] }
 0x40c   : > { %14844 = vmatmul.mubr.msk.f32.gmra.mxu1 %vm251_vm0, %v18919_v34  ;;  %14900 = vmatmul.mubr.msk.f32.gmra.mxu0 %vm251_vm0, %v18627_v17  ;;  %v18943_v17 = vld [vmem:[#allocation3 + $0xe2] sm:$0xff] }
 0x40d   : > { %14846 = vmatprep.mubr.msk.f32.mxu1 %vm251_vm0, %v18925_v10  ;;  %14902 = vmatprep.mubr.msk.f32.mxu0 %vm251_vm0, %v18652_v54  ;;  %v18949_v54 = vld [vmem:[#allocation3 + $0xf2] sm:$0xff] }
 0x410   : > { %14847 = vmatmul.mubr.msk.f32.gmra.mxu1 %vm251_vm0, %v18931_v9  ;;  %14903 = vmatmul.mubr.msk.f32.gmra.mxu0 %vm251_vm0, %v18656_v62  ;;  %v18955_v62 = vld [vmem:[#allocation3 + $0xfa] sm:$0xff] }
 0x411   : > { %14849 = vmatprep.mubr.msk.f32.mxu1 %vm251_vm0, %v18937_v6  ;;  %14905 = vmatprep.mubr.msk.f32.mxu0 %vm251_vm0, %v18679_v28  ;;  %v18961_v28 = vld [vmem:[#allocation3 + $0x10a] sm:$0xff] }
 0x414   : > { %14850 = vmatmul.mubr.msk.f32.gmra.mxu1 %vm251_vm0, %v18943_v17  ;;  %14906 = vmatmul.mubr.msk.f32.gmra.mxu0 %vm251_vm0, %v18683_v32  ;;  %v18967_v32 = vld [vmem:[#allocation3 + $0x112] sm:$0xff] }
 0x415   : > { %14852 = vmatprep.mubr.msk.f32.mxu1 %vm251_vm0, %v18949_v54  ;;  %14908 = vmatprep.mubr.msk.f32.mxu0 %vm251_vm0, %v18704_v29  ;;  %v18973_v29 = vld [vmem:[#allocation3 + $0x122] sm:$0xff] }
 0x418   : > { %14853 = vmatmul.mubr.msk.f32.gmra.mxu1 %vm251_vm0, %v18955_v62  ;;  %14909 = vmatmul.mubr.msk.f32.gmra.mxu0 %vm251_vm0, %v18708_v49  ;;  %v18979_v49 = vld [vmem:[#allocation3 + $0x12a] sm:$0xff] }
 0x419   : > { %14855 = vmatprep.mubr.msk.f32.mxu1 %vm251_vm0, %v18961_v28  ;;  %14911 = vmatprep.mubr.msk.f32.mxu0 %vm251_vm0, %v18725_v3  ;;  %v18985_v3 = vld [vmem:[#allocation3 + $0x13a] sm:$0xff] }
 0x41c   : > { %14856 = vmatmul.mubr.msk.f32.gmra.mxu1 %vm251_vm0, %v18967_v32  ;;  %14912 = vmatmul.mubr.msk.f32.gmra.mxu0 %vm251_vm0, %v18729_v31  ;;  %v18991_v31 = vld [vmem:[#allocation3 + $0x142] sm:$0xff] }
 0x41d   : > { %14858 = vmatprep.mubr.msk.f32.mxu1 %vm251_vm0, %v18973_v29  ;;  %14914 = vmatprep.mubr.msk.f32.mxu0 %vm251_vm0, %v18744_v26  ;;  %v18997_v26 = vld [vmem:[#allocation3 + $0x152] sm:$0xff] }
 0x420   : > { %14859 = vmatmul.mubr.msk.f32.gmra.mxu1 %vm251_vm0, %v18979_v49  ;;  %14915 = vmatmul.mubr.msk.f32.gmra.mxu0 %vm251_vm0, %v18748_v44  ;;  %v19003_v44 = vld [vmem:[#allocation3 + $0x15a] sm:$0xff] }
 0x421   : > { %14861 = vmatprep.mubr.msk.f32.mxu1 %vm251_vm0, %v18985_v3  ;;  %14917 = vmatprep.mubr.msk.f32.mxu0 %vm251_vm0, %v18762_v11  ;;  %v19009_v11 = vld [vmem:[#allocation3 + $0x16a] sm:$0xff] }
 0x424   : > { %14862 = vmatmul.mubr.msk.f32.gmra.mxu1 %vm251_vm0, %v18991_v31  ;;  %14918 = vmatmul.mubr.msk.f32.gmra.mxu0 %vm251_vm0, %v18766_v25  ;;  %v19017_v25 = vld [vmem:[#allocation3 + $0x172] sm:$0xff] }
 0x425   : > { %14864 = vmatprep.mubr.msk.f32.mxu1 %vm251_vm0, %v18997_v26  ;;  %14920 = vmatprep.mubr.msk.f32.mxu0 %vm251_vm0, %v18779_v30  ;;  %v19019_v30 = vld [vmem:[#allocation3 + $0x188] sm:$0xff] }
 0x428   : > { %14865 = vmatmul.mubr.msk.f32.gmra.mxu1 %vm251_vm0, %v19003_v44  ;;  %14921 = vmatmul.mubr.msk.f32.gmra.mxu0 %vm251_vm0, %v18783_v36  ;;  %v12787_v36 = vld [vmem:[%s21532_s3 + $0x1f0] sm:$0xff] }
 0x429   : > { %14867 = vmatprep.mubr.msk.f32.mxu1 %vm251_vm0, %v19009_v11  ;;  %14923 = vmatprep.mubr.msk.f32.mxu0 %vm251_vm0, %v19011_v50 }
 0x42c   : > { %14868 = vmatmul.mubr.msk.f32.gmra.mxu1 %vm251_vm0, %v19017_v25  ;;  %14924 = vmatmul.mubr.msk.f32.gmra.mxu0 %vm251_vm0, %v19019_v30 }
 0x42d   : > { %14934 = vmatprep.mubr.msk.f32.mxu1 %vm251_vm0, %v18420_v19  ;;  %14990 = vmatprep.mubr.msk.f32.mxu0 %vm251_vm0, %v18804_v13  ;;  %v12786_v19 = vld [vmem:[%s21532_s3 + $0x1e8] sm:$0xff] }
 0x42e   : > { %v7634_v13 = vld [vmem:[#allocation3 + $0x51] sm:$0xff] }
 0x430   : > { %14935 = vmatmul.mubr.msk.f32.vlgmr.msra.gmra.mxu1 %vm251_vm0, %v18430_v46  ;;  %14991 = vmatmul.mubr.msk.f32.vlgmr.msra.gmra.mxu0 %vm251_vm0, %v18816_v59  ;;  %v12823_v46 = vld [vmem:[%s21532_s3 + $0x210] sm:$0xff]  ;;  %v12858_v59 = vld [vmem:[%s21532_s3 + $0x228] sm:$0xff] }
 0x431   : > { %15039 = vmatpush3.msra.mxu1 %v18864_v23  ;;  %14937 = vmatprep.mubr.msk.f32.mxu1 %vm251_vm0, %v18446_v51  ;;  %v12785_v51 = vld [vmem:[%s21532_s3 + $0x1e0] sm:$0xff] }
 0x432   : > { %14993 = vmatprep.mubr.msk.f32.mxu0 %vm251_vm0, %v18829_v14  ;;  %15040 = vmatprep.subr.mxu1 %v12787_v36 }
 0x433   : > { %15041 = vmatpush3.msra.mxu1 %v12787_v36  ;;  %15095 = vmatpush3.msra.mxu0 %v18882_v18  ;;  %v7246_v18 = vld [vmem:[#allocation3 + $0x68] sm:$0xff] }
 0x434   : > { %14938 = vmatmul.mubr.msk.f32.gmra.mxu1 %vm251_vm0, %v18456_v7  ;;  %14994 = vmatmul.mubr.msk.f32.gmra.mxu0 %vm251_vm0, %v18836_v15  ;;  %v12822_v7 = vld [vmem:[%s21532_s3 + $0x208] sm:$0xff] }
 0x435   : > { %14940 = vmatprep.mubr.msk.f32.mxu1 %vm251_vm0, %v18479_v53  ;;  %14996 = vmatprep.mubr.msk.f32.mxu0 %vm251_vm0, %v18850_v40  ;;  %v12821_v53 = vld [vmem:[%s21532_s3 + $0x200] sm:$0xff]  ;;  %v7635_v40 = vld [vmem:[#allocation3 + $0x61] sm:$0xff] }
 0x436   : > { %15042 = vmatprep.subr.mxu1 %v12786_v19  ;;  %15096 = vmatprep.subr.mxu0 %v12823_v46 }
 0x437   : > { %15043 = vmatpush3.msra.mxu1 %v12786_v19  ;;  %15097 = vmatpush3.msra.mxu0 %v12823_v46  ;;  %v7250_v46 = vld [vmem:[#allocation3 + $0x98] sm:$0xff] }
 0x438   : > { %14941 = vmatmul.mubr.msk.f32.gmra.mxu1 %vm251_vm0, %v18489_v16  ;;  %14997 = vmatmul.mubr.msk.f32.gmra.mxu0 %vm251_vm0, %v18856_v4  ;;  %v19076_v16 = vld [vmem:[%s21532_s3 + $0x238] sm:$0xff] }
 0x439   : > { %14943 = vmatprep.mubr.msk.f32.mxu1 %vm251_vm0, %v18509_v33  ;;  %14999 = vmatprep.mubr.msk.f32.mxu0 %vm251_vm0, %v18870_v21  ;;  %v21789_v33 = vld [vmem:[#allocation16_spill] sm:$0xff] }
 0x43a   : > { %15044 = vmatprep.subr.mxu1 %v12785_v51  ;;  %15098 = vmatprep.subr.mxu0 %v12822_v7 }
 0x43b   : > { %15045 = vmatpush3.msra.mxu1 %v12785_v51  ;;  %15099 = vmatpush3.msra.mxu0 %v12822_v7  ;;  %v7640_v51 = vld [vmem:[#allocation3 + $0x99] sm:$0xff] }
 0x43c   : > { %14944 = vmatmul.mubr.msk.f32.gmra.mxu1 %vm251_vm0, %v18519_v52  ;;  %15000 = vmatmul.mubr.msk.f32.gmra.mxu0 %vm251_vm0, %v18877_v58  ;;  %v21790_v52 = vld [vmem:[#allocation32_spill] sm:$0xff] }
 0x43d   : > { %14946 = vmatprep.mubr.msk.f32.mxu1 %vm251_vm0, %v18538_v57  ;;  %15002 = vmatprep.mubr.msk.f32.mxu0 %vm251_vm0, %v18888_v43  ;;  %v21791_v57 = vld [vmem:[#allocation60_spill] sm:$0xff]  ;;  %v7636_v43 = vld [vmem:[#allocation3 + $0x69] sm:$0xff] }
 0x43e   : > { %15100 = vmatprep.subr.mxu0 %v12821_v53  ;;  %15150 = vmatprep.subr.mxu1 %v19076_v16 }
 0x43f   : > { %15101 = vmatpush3.msra.mxu0 %v12821_v53 }
 0x440   : > { %14947 = vmatmul.mubr.msk.f32.gmra.mxu1 %vm251_vm0, %v18548_v48  ;;  %15003 = vmatmul.mubr.msk.f32.gmra.mxu0 %vm251_vm0, %v18895_v63  ;;  %v21792_v48 = vld [vmem:[#allocation62_spill] sm:$0xff]  ;;  %v12857_v63 = vld [vmem:[%s21532_s3 + $0x220] sm:$0xff] }
 0x441   : > { %14949 = vmatprep.mubr.msk.f32.mxu1 %vm251_vm0, %v18567_v35  ;;  %15005 = vmatprep.mubr.msk.f32.mxu0 %vm251_vm0, %v18901_v22  ;;  %v21793_v35 = vld [vmem:[#allocation9_spill] sm:$0xff] }
 0x444   : > { %14950 = vmatmul.mubr.msk.f32.gmra.mxu1 %vm251_vm0, %v18577_v24  ;;  %15006 = vmatmul.mubr.msk.f32.gmra.mxu0 %vm251_vm0, %v18907_v56  ;;  %v19171_v24 = vld [vmem:[#allocation3 + $0x181] sm:$0xff] }
 0x445   : > { %14952 = vmatprep.mubr.msk.f32.mxu1 %vm251_vm0, %v18596_v42  ;;  %15008 = vmatprep.mubr.msk.f32.mxu0 %vm251_vm0, %v18913_v5  ;;  %v19173_v42 = vld [vmem:[#allocation3 + $0x182] sm:$0xff]  ;;  %v7247_v5 = vld [vmem:[#allocation3 + $0x78] sm:$0xff] }
 0x448   : > { %14953 = vmatmul.mubr.msk.f32.gmra.mxu1 %vm251_vm0, %v18606_v20  ;;  %15009 = vmatmul.mubr.msk.f32.gmra.mxu0 %vm251_vm0, %v18919_v34  ;;  %v19179_v20 = vld [vmem:[#allocation3 + $0x189] sm:$0xff]  ;;  %v7637_v34 = vld [vmem:[#allocation3 + $0x79] sm:$0xff] }
 0x449   : > { %14955 = vmatprep.mubr.msk.f32.mxu1 %vm251_vm0, %v18625_v47  ;;  %15011 = vmatprep.mubr.msk.f32.mxu0 %vm251_vm0, %v18925_v10  ;;  %v19181_v47 = vld [vmem:[#allocation3 + $0x18a] sm:$0xff] }
 0x44c   : > { %14956 = vmatmul.mubr.msk.f32.gmra.mxu1 %vm251_vm0, %v21789_v33  ;;  %15012 = vmatmul.mubr.msk.f32.gmra.mxu0 %vm251_vm0, %v18931_v9  ;;  %v7641_v33 = vld [vmem:[#allocation3 + $0xa9] sm:$0xff] }
 0x44d   : > { %14958 = vmatprep.mubr.msk.f32.mxu1 %vm251_vm0, %v21790_v52  ;;  %15014 = vmatprep.mubr.msk.f32.mxu0 %vm251_vm0, %v18937_v6 }
 0x450   : > { %14959 = vmatmul.mubr.msk.f32.gmra.mxu1 %vm251_vm0, %v21791_v57  ;;  %15015 = vmatmul.mubr.msk.f32.gmra.mxu0 %vm251_vm0, %v18943_v17 }
 0x451   : > { %14961 = vmatprep.mubr.msk.f32.mxu1 %vm251_vm0, %v21792_v48  ;;  %15017 = vmatprep.mubr.msk.f32.mxu0 %vm251_vm0, %v18949_v54 }
 0x454   : > { %14962 = vmatmul.mubr.msk.f32.gmra.mxu1 %vm251_vm0, %v18691_v45  ;;  %15018 = vmatmul.mubr.msk.f32.gmra.mxu0 %vm251_vm0, %v18955_v62  ;;  %v7241_v45 = vld [vmem:[#allocation3 + $0x30] sm:$0xff] }
 0x455   : > { %14964 = vmatprep.mubr.msk.f32.mxu1 %vm251_vm0, %v18706_v2  ;;  %15020 = vmatprep.mubr.msk.f32.mxu0 %vm251_vm0, %v18961_v28  ;;  %v7631_v2 = vld [vmem:[#allocation3 + $0x31] sm:$0xff]  ;;  %v7248_v28 = vld [vmem:[#allocation3 + $0x80] sm:$0xff] }
 0x458   : > { %14965 = vmatmul.mubr.msk.f32.gmra.mxu1 %vm251_vm0, %v18716_v1  ;;  %15021 = vmatmul.mubr.msk.f32.gmra.mxu0 %vm251_vm0, %v18967_v32  ;;  %v7242_v1 = vld [vmem:[#allocation3 + $0x38] sm:$0xff]  ;;  %v7638_v32 = vld [vmem:[#allocation3 + $0x81] sm:$0xff] }
 0x459   : > { %14967 = vmatprep.mubr.msk.f32.mxu1 %vm251_vm0, %v18727_v27  ;;  %15023 = vmatprep.mubr.msk.f32.mxu0 %vm251_vm0, %v18973_v29  ;;  %v7632_v27 = vld [vmem:[#allocation3 + $0x39] sm:$0xff] }
 0x45c   : > { %14968 = vmatmul.mubr.msk.f32.gmra.mxu1 %vm251_vm0, %v18737_v39  ;;  %15024 = vmatmul.mubr.msk.f32.gmra.mxu0 %vm251_vm0, %v18979_v49  ;;  %v12859_v39 = vld [vmem:[%s21532_s3 + $0x230] sm:$0xff] }
 0x45d   : > { %14970 = vmatprep.mubr.msk.f32.mxu1 %vm251_vm0, %v18746_v55  ;;  %15026 = vmatprep.mubr.msk.f32.mxu0 %vm251_vm0, %v18985_v3  ;;  %v7243_v55 = vld [vmem:[#allocation3 + $0x48] sm:$0xff]  ;;  %v7249_v3 = vld [vmem:[#allocation3 + $0x90] sm:$0xff] }
 0x460   : > { %14971 = vmatmul.mubr.msk.f32.gmra.mxu1 %vm251_vm0, %v18755_v37  ;;  %15027 = vmatmul.mubr.msk.f32.gmra.mxu0 %vm251_vm0, %v18991_v31  ;;  %v19194_v37 = vpop.f32.mrf.mxu0  ;;  %v7639_v31 = vld [vmem:[#allocation3 + $0x91] sm:$0xff] }
 0x461   : > { %14973 = vmatprep.mubr.msk.f32.mxu1 %vm251_vm0, %v18764_v0  ;;  %15029 = vmatprep.mubr.msk.f32.mxu0 %vm251_vm0, %v18997_v26  ;;  %v7633_v0 = vld [vmem:[#allocation3 + $0x49] sm:$0xff] }
 0x464   : > { %14974 = vmatmul.mubr.msk.f32.gmra.mxu1 %vm251_vm0, %v18773_v38  ;;  %15030 = vmatmul.mubr.msk.f32.gmra.mxu0 %vm251_vm0, %v19003_v44  ;;  %v19198_v38 = vpop.f32.mrf.mxu1 }
 0x465   : > { %14976 = vmatprep.mubr.msk.f32.mxu1 %vm251_vm0, %v18781_v60  ;;  %15032 = vmatprep.mubr.msk.f32.mxu0 %vm251_vm0, %v19009_v11  ;;  %v7244_v60 = vld [vmem:[#allocation3 + $0x50] sm:$0xff] }
 0x468   : > { %14977 = vmatmul.mubr.msk.f32.gmra.mxu1 %vm251_vm0, %v21793_v35  ;;  %15033 = vmatmul.mubr.msk.f32.gmra.mxu0 %vm251_vm0, %v19017_v25 }
 0x469   : > { %14979 = vmatprep.mubr.msk.f32.mxu1 %vm251_vm0, %v19171_v24  ;;  %15035 = vmatprep.mubr.msk.f32.mxu0 %vm251_vm0, %v19173_v42 }
 0x46c   : > { %14980 = vmatmul.mubr.msk.f32.gmra.mxu1 %vm251_vm0, %v19179_v20  ;;  %15036 = vmatmul.mubr.msk.f32.gmra.mxu0 %vm251_vm0, %v19181_v47 }
 0x46d   : > { %15046 = vmatprep.mubr.msk.f32.mxu1 %vm251_vm0, %v7241_v45  ;;  %15102 = vmatprep.mubr.msk.f32.mxu0 %vm251_vm0, %v7631_v2 }
 0x470   : > { %15047 = vmatmul.mubr.msk.f32.vlgmr.msra.gmra.mxu1 %vm251_vm0, %v7242_v1  ;;  %15103 = vmatmul.mubr.msk.f32.vlgmr.msra.gmra.mxu0 %vm251_vm0, %v7632_v27  ;;  %v14715_v14 = vpop.f32.mrf.mxu1  ;;  %v7252_v1 = vld [vmem:[#allocation3 + $0xb0] sm:$0xff] }
 0x471   : > { %15151 = vmatpush3.msra.mxu1 %v19076_v16  ;;  %15049 = vmatprep.mubr.msk.f32.mxu1 %vm251_vm0, %v7243_v55  ;;  %v14771_v15 = vpop.f32.mrf.mxu0  ;;  %v5261_v4 = vadd.f32 %v14715_v14, %v18814_v41  ;;  %v7251_v16 = vld [vmem:[#allocation3 + $0xa8] sm:$0xff]  ;;  %v7642_v27 = vld [vmem:[#allocation3 + $0xb1] sm:$0xff] }
 0x472   : > { %15105 = vmatprep.mubr.msk.f32.mxu0 %vm251_vm0, %v7633_v0  ;;  %15152 = vmatprep.subr.mxu1 %v12859_v39  ;;  %v5109_v61 = vpop.f32.mrf.mxu1  ;;  %v7253_v0 = vld [vmem:[#allocation3 + $0xc0] sm:$0xff] }
 0x473   : > { %15153 = vmatpush3.msra.mxu1 %v12859_v39  ;;  %v5499_v23 = vpop.f32.mrf.mxu0  ;;  %v19209_v21 = vadd.f32 %v14771_v15, %v5261_v4  ;;  %v5260_v58 = vadd.f32 %v18814_v41, %v5109_v61  ;;  %v7254_v4 = vld [vmem:[#allocation3 + $0xc8] sm:$0xff] }
 0x474   : > { %15050 = vmatmul.mubr.msk.f32.gmra.mxu1 %vm251_vm0, %v7244_v60  ;;  %15106 = vmatmul.mubr.msk.f32.gmra.mxu0 %vm251_vm0, %v7634_v13  ;;  %v14718_v22 = vpop.f32.mrf.mxu1  ;;  %v7643_v60 = vld [vmem:[#allocation3 + $0xc1] sm:$0xff]  ;;  %v7644_v61 = vld [vmem:[#allocation3 + $0xc9] sm:$0xff] }
 0x475   : > { %15052 = vmatprep.mubr.msk.f32.mxu1 %vm251_vm0, %v7245_v8  ;;  %15108 = vmatprep.mubr.msk.f32.mxu0 %vm251_vm0, %v7635_v40  ;;  %v14774_v56 = vpop.f32.mrf.mxu0  ;;  %v19217_v10 = vadd.f32 %v5499_v23, %v5260_v58  ;;  %v5263_v9 = vadd.f32 %v14718_v22, %v18814_v41 }
 0x476   : > { %15154 = vmatprep.subr.mxu1 %v12858_v59  ;;  %v5119_v6 = vpop.f32.mrf.mxu1 }
 0x477   : > { %15155 = vmatpush3.msra.mxu1 %v12858_v59  ;;  %v5509_v17 = vpop.f32.mrf.mxu0  ;;  %v19222_v54 = vadd.f32 %v14774_v56, %v5263_v9  ;;  %v5262_v62 = vadd.f32 %v18814_v41, %v5119_v6  ;;  %v7256_v6 = vld [vmem:[#allocation3 + $0xe0] sm:$0xff] }
 0x478   : > { %15053 = vmatmul.mubr.msk.f32.gmra.mxu1 %vm251_vm0, %v7246_v18  ;;  %15109 = vmatmul.mubr.msk.f32.gmra.mxu0 %vm251_vm0, %v7636_v43  ;;  %v14721_v29 = vpop.f32.mrf.mxu1  ;;  %v7255_v18 = vld [vmem:[#allocation3 + $0xd8] sm:$0xff] }
 0x479   : > { %15055 = vmatprep.mubr.msk.f32.mxu1 %vm251_vm0, %v7247_v5  ;;  %15111 = vmatprep.mubr.msk.f32.mxu0 %vm251_vm0, %v7637_v34  ;;  %v14777_v49 = vpop.f32.mrf.mxu0  ;;  %v19227_v26 = vadd.f32 %v5509_v17, %v5262_v62  ;;  %v5265_v44 = vadd.f32 %v14721_v29, %v18814_v41  ;;  %v7645_v43 = vld [vmem:[#allocation3 + $0xd9] sm:$0xff]  ;;  %v7646_v17 = vld [vmem:[#allocation3 + $0xe1] sm:$0xff]  ;;  %v7647_v29 = vld [vmem:[#allocation3 + $0xf1] sm:$0xff] }
 0x47a   : > { %15156 = vmatprep.subr.mxu1 %v12857_v63  ;;  %v5129_v11 = vpop.f32.mrf.mxu1 }
 0x47b   : > { %15157 = vmatpush3.msra.mxu1 %v12857_v63  ;;  %v5519_v25 = vpop.f32.mrf.mxu0  ;;  %v19232_v36 = vadd.f32 %v14777_v49, %v5265_v44  ;;  %v5264_v19 = vadd.f32 %v18814_v41, %v5129_v11 }
 0x47c   : > { %15056 = vmatmul.mubr.msk.f32.gmra.mxu1 %vm251_vm0, %v7248_v28  ;;  %15112 = vmatmul.mubr.msk.f32.gmra.mxu0 %vm251_vm0, %v7638_v32  ;;  %v14724_v7 = vpop.f32.mrf.mxu1  ;;  %v7257_v32 = vld [vmem:[#allocation3 + $0xf0] sm:$0xff] }
 0x47d   : > { %15058 = vmatprep.mubr.msk.f32.mxu1 %vm251_vm0, %v7249_v3  ;;  %15114 = vmatprep.mubr.msk.f32.mxu0 %vm251_vm0, %v7639_v31  ;;  %v14780_v53 = vpop.f32.mrf.mxu0  ;;  %v19237_v52 = vadd.f32 %v5519_v25, %v5264_v19  ;;  %v5267_v57 = vadd.f32 %v14724_v7, %v18814_v41  ;;  %v7258_v19 = vld [vmem:[#allocation3 + $0xf8] sm:$0xff] }
 0x47e   : > { %v5139_v48 = vpop.f32.mrf.mxu1 }
 0x47f   : > { %v5529_v35 = vpop.f32.mrf.mxu0  ;;  %v19242_v45 = vadd.f32 %v14780_v53, %v5267_v57  ;;  %v5266_v2 = vadd.f32 %v18814_v41, %v5139_v48  ;;  %v7259_v53 = vld [vmem:[#allocation3 + $0x108] sm:$0xff] }
 0x480   : > { %15059 = vmatmul.mubr.msk.f32.gmra.mxu1 %vm251_vm0, %v7250_v46  ;;  %15115 = vmatmul.mubr.msk.f32.gmra.mxu0 %vm251_vm0, %v7640_v51  ;;  %v14727_v39 = vpop.f32.mrf.mxu1  ;;  %v7648_v46 = vld [vmem:[#allocation3 + $0xf9] sm:$0xff] }
 0x481   : > { %15061 = vmatprep.mubr.msk.f32.mxu1 %vm251_vm0, %v7251_v16  ;;  %15117 = vmatprep.mubr.msk.f32.mxu0 %vm251_vm0, %v7641_v33  ;;  %v14783_v55 = vpop.f32.mrf.mxu0  ;;  %v19247_v13 = vadd.f32 %v5529_v35, %v5266_v2  ;;  %v5269_v59 = vadd.f32 %v14727_v39, %v18814_v41  ;;  %v7649_v16 = vld [vmem:[#allocation3 + $0x109] sm:$0xff] }
 0x482   : > { %v5149_v14 = vpop.f32.mrf.mxu1 }
 0x483   : > { %v5539_v15 = vpop.f32.mrf.mxu0  ;;  %v19252_v8 = vadd.f32 %v14783_v55, %v5269_v59  ;;  %v5268_v40 = vadd.f32 %v18814_v41, %v5149_v14 }
 0x484   : > { %15062 = vmatmul.mubr.msk.f32.gmra.mxu1 %vm251_vm0, %v7252_v1  ;;  %15118 = vmatmul.mubr.msk.f32.gmra.mxu0 %vm251_vm0, %v7642_v27  ;;  %v14730_v23 = vpop.f32.mrf.mxu1  ;;  %v7260_v1 = vld [vmem:[#allocation3 + $0x110] sm:$0xff] }
 0x485   : > { %15064 = vmatprep.mubr.msk.f32.mxu1 %vm251_vm0, %v7253_v0  ;;  %15120 = vmatprep.mubr.msk.f32.mxu0 %vm251_vm0, %v7643_v60  ;;  %v14786_v58 = vpop.f32.mrf.mxu0  ;;  %v19257_v63 = vadd.f32 %v5539_v15, %v5268_v40  ;;  %v5271_v22 = vadd.f32 %v14730_v23, %v18814_v41  ;;  %v7650_v27 = vld [vmem:[#allocation3 + $0x111] sm:$0xff]  ;;  %v7261_v0 = vld [vmem:[#allocation3 + $0x120] sm:$0xff] }
 0x486   : > { %v5159_v56 = vpop.f32.mrf.mxu1  ;;  %v7651_v60 = vld [vmem:[#allocation3 + $0x121] sm:$0xff] }
 0x487   : > { %v5549_v5 = vpop.f32.mrf.mxu0  ;;  %v19262_v34 = vadd.f32 %v14786_v58, %v5271_v22  ;;  %v5270_v9 = vadd.f32 %v18814_v41, %v5159_v56 }
 0x488   : > { %15065 = vmatmul.mubr.msk.f32.gmra.mxu1 %vm251_vm0, %v7254_v4  ;;  %15121 = vmatmul.mubr.msk.f32.gmra.mxu0 %vm251_vm0, %v7644_v61  ;;  %v14733_v62 = vpop.f32.mrf.mxu1  ;;  %v7262_v4 = vld [vmem:[#allocation3 + $0x128] sm:$0xff] }
 0x489   : > { %15067 = vmatprep.mubr.msk.f32.mxu1 %vm251_vm0, %v7255_v18  ;;  %15123 = vmatprep.mubr.msk.f32.mxu0 %vm251_vm0, %v7645_v43  ;;  %v14789_v28 = vpop.f32.mrf.mxu0  ;;  %v19267_v49 = vadd.f32 %v5549_v5, %v5270_v9  ;;  %v5273_v3 = vadd.f32 %v14733_v62, %v18814_v41  ;;  %v7652_v61 = vld [vmem:[#allocation3 + $0x129] sm:$0xff]  ;;  %v7263_v18 = vld [vmem:[#allocation3 + $0x138] sm:$0xff] }
 0x48a   : > { %v5169_v31 = vpop.f32.mrf.mxu1  ;;  %v7653_v43 = vld [vmem:[#allocation3 + $0x139] sm:$0xff] }
 0x48b   : > { %v5559_v44 = vpop.f32.mrf.mxu0  ;;  %v19272_v11 = vadd.f32 %v14789_v28, %v5273_v3  ;;  %v5272_v25 = vadd.f32 %v18814_v41, %v5169_v31 }
 0x48c   : > { %15068 = vmatmul.mubr.msk.f32.gmra.mxu1 %vm251_vm0, %v7256_v6  ;;  %15124 = vmatmul.mubr.msk.f32.gmra.mxu0 %vm251_vm0, %v7646_v17  ;;  %v7264_v6 = vld [vmem:[#allocation3 + $0x140] sm:$0xff] }
 0x48d   : > { %15070 = vmatprep.mubr.msk.f32.mxu1 %vm251_vm0, %v7257_v32  ;;  %15126 = vmatprep.mubr.msk.f32.mxu0 %vm251_vm0, %v7647_v29  ;;  %v14736_v51 = vpop.f32.mrf.mxu1  ;;  %v14792_v7 = vpop.f32.mrf.mxu0  ;;  %v19277_v33 = vadd.f32 %v5559_v44, %v5272_v25  ;;  %v7654_v17 = vld [vmem:[#allocation3 + $0x141] sm:$0xff]  ;;  %v7265_v32 = vld [vmem:[#allocation3 + $0x150] sm:$0xff] }
 0x48e   : > { %v5275_v57 = vadd.f32 %v14736_v51, %v18814_v41  ;;  %v7655_v29 = vld [vmem:[#allocation3 + $0x151] sm:$0xff] }
 0x48f   : > { %v19282_v48 = vpop.f32.mrf.mxu1  ;;  %v19284_v35 = vpop.f32.mrf.mxu0 }
 0x490   : > { %15071 = vmatmul.mubr.msk.f32.gmra.mxu1 %vm251_vm0, %v7258_v19  ;;  %15127 = vmatmul.mubr.msk.f32.gmra.mxu0 %vm251_vm0, %v7648_v46  ;;  %v19286_v2 = vadd.f32 %v14792_v7, %v5275_v57  ;;  %v7266_v19 = vld [vmem:[#allocation3 + $0x158] sm:$0xff] }
 0x491   : > { %15073 = vmatprep.mubr.msk.f32.mxu1 %vm251_vm0, %v7259_v53  ;;  %15129 = vmatprep.mubr.msk.f32.mxu0 %vm251_vm0, %v7649_v16  ;;  %v14739_v39 = vpop.f32.mrf.mxu1  ;;  %v7656_v46 = vld [vmem:[#allocation3 + $0x159] sm:$0xff]  ;;  %v7267_v53 = vld [vmem:[#allocation3 + $0x168] sm:$0xff] }
 0x492   : > { %v14795_v55 = vpop.f32.mrf.mxu0  ;;  %v5277_v59 = vadd.f32 %v14739_v39, %v18814_v41  ;;  %v7657_v16 = vld [vmem:[#allocation3 + $0x169] sm:$0xff] }
 0x493   : > { %v19293_v14 = vpop.f32.mrf.mxu1 }
 0x494   : > { %15074 = vmatmul.mubr.msk.f32.gmra.mxu1 %vm251_vm0, %v7260_v1  ;;  %15130 = vmatmul.mubr.msk.f32.gmra.mxu0 %vm251_vm0, %v7650_v27  ;;  %21794 = vst [vmem:[#allocation35_spill] sm:$0xff] %v19293_v14  ;;  %v19295_v15 = vpop.f32.mrf.mxu0  ;;  %v19297_v40 = vadd.f32 %v14795_v55, %v5277_v59  ;;  %v7268_v55 = vld [vmem:[#allocation3 + $0x170] sm:$0xff] }
 0x495   : > { %15076 = vmatprep.mubr.msk.f32.mxu1 %vm251_vm0, %v7261_v0  ;;  %15132 = vmatprep.mubr.msk.f32.mxu0 %vm251_vm0, %v7651_v60  ;;  %21795 = vst [vmem:[#allocation33_spill] sm:$0xff] %v19295_v15  ;;  %v7658_v0 = vld [vmem:[#allocation3 + $0x171] sm:$0xff] }
 0x496   : > { %v14742_v23 = vpop.f32.mrf.mxu1  ;;  %v14798_v58 = vpop.f32.mrf.mxu0 }
 0x497   : > { %v5279_v22 = vadd.f32 %v14742_v23, %v18814_v41 }
 0x498   : > { %15077 = vmatmul.mubr.msk.f32.gmra.mxu1 %vm251_vm0, %v7262_v4  ;;  %15133 = vmatmul.mubr.msk.f32.gmra.mxu0 %vm251_vm0, %v7652_v61  ;;  %v19304_v56 = vpop.f32.mrf.mxu1  ;;  %v19306_v5 = vpop.f32.mrf.mxu0 }
 0x499   : > { %15079 = vmatprep.mubr.msk.f32.mxu1 %vm251_vm0, %v7263_v18  ;;  %15135 = vmatprep.mubr.msk.f32.mxu0 %vm251_vm0, %v7653_v43  ;;  %21796 = vst [vmem:[#allocation61_spill] sm:$0xff] %v19304_v56  ;;  %21797 = vst [vmem:[#allocation64_spill] sm:$0xff] %v19306_v5  ;;  %v19308_v9 = vadd.f32 %v14798_v58, %v5279_v22  ;;  %v7271_v58 = vld [vmem:[#allocation3 + $0x198] sm:$0xff] }
 0x49a   : > { %v14745_v62 = vpop.f32.mrf.mxu1  ;;  %v14801_v28 = vpop.f32.mrf.mxu0  ;;  %v7661_v18 = vld [vmem:[#allocation3 + $0x199] sm:$0xff] }
 0x49b   : > { %v5281_v3 = vadd.f32 %v14745_v62, %v18814_v41 }
 0x49c   : > { %15080 = vmatmul.mubr.msk.f32.gmra.mxu1 %vm251_vm0, %v7264_v6  ;;  %15136 = vmatmul.mubr.msk.f32.gmra.mxu0 %vm251_vm0, %v7654_v17  ;;  %v19315_v31 = vpop.f32.mrf.mxu1  ;;  %v19317_v44 = vpop.f32.mrf.mxu0  ;;  %v7662_v17 = vld [vmem:[#allocation3 + $0x1a1] sm:$0xff] }
 0x49d   : > { %15082 = vmatprep.mubr.msk.f32.mxu1 %vm251_vm0, %v7265_v32  ;;  %15138 = vmatprep.mubr.msk.f32.mxu0 %vm251_vm0, %v7655_v29  ;;  %21798 = vst [vmem:[#allocation17_spill] sm:$0xff] %v19315_v31  ;;  %21799 = vst [vmem:[#allocation18_spill] sm:$0xff] %v19317_v44  ;;  %v19319_v25 = vadd.f32 %v14801_v28, %v5281_v3 }
 0x49e   : > { %v14748_v51 = vpop.f32.mrf.mxu1  ;;  %v14804_v7 = vpop.f32.mrf.mxu0 }
 0x49f   : > { %v5283_v57 = vadd.f32 %v14748_v51, %v18814_v41 }
 0x4a0   : > { %15083 = vmatmul.mubr.msk.f32.gmra.mxu1 %vm251_vm0, %v7266_v19  ;;  %15139 = vmatmul.mubr.msk.f32.gmra.mxu0 %vm251_vm0, %v7656_v46  ;;  %v19326_v1 = vpop.f32.mrf.mxu1  ;;  %v19328_v27 = vpop.f32.mrf.mxu0 }
 0x4a1   : > { %15085 = vmatprep.mubr.msk.f32.mxu1 %vm251_vm0, %v7267_v53  ;;  %15141 = vmatprep.mubr.msk.f32.mxu0 %vm251_vm0, %v7657_v16  ;;  %21800 = vst [vmem:[#allocation34_spill] sm:$0xff] %v19326_v1  ;;  %21801 = vst [vmem:[#allocation63_spill] sm:$0xff] %v19328_v27  ;;  %v19330_v39 = vadd.f32 %v14804_v7, %v5283_v57  ;;  %v8022_v7 = vld [vmem:[#allocation3 + $0x3a] sm:$0xff]  ;;  %v8023_v57 = vld [vmem:[#allocation3 + $0x4a] sm:$0xff] }
 0x4a2   : > { %v14751_v60 = vpop.f32.mrf.mxu1  ;;  %v14807_v59 = vpop.f32.mrf.mxu0  ;;  %v8486_v1 = vld [vmem:[#allocation4 + $0x8] sm:$0xff] }
 0x4a3   : > { %v5285_v4 = vadd.f32 %v14751_v60, %v18814_v41 }
 0x4a4   : > { %15086 = vmatmul.mubr.msk.f32.gmra.mxu1 %vm251_vm0, %v7268_v55  ;;  %15142 = vmatmul.mubr.msk.f32.gmra.mxu0 %vm251_vm0, %v7658_v0  ;;  %v19339_v61 = vpop.f32.mrf.mxu1  ;;  %v19341_v23 = vpop.f32.mrf.mxu0 }
 0x4a5   : > { %15088 = vmatprep.mubr.msk.f32.mxu1 %vm251_vm0, %v19011_v50  ;;  %15144 = vmatprep.mubr.msk.f32.mxu0 %vm251_vm0, %v19171_v24  ;;  %21802 = vst [vmem:[#allocation66_spill] sm:$0xff] %v19339_v61  ;;  %21803 = vst [vmem:[#allocation10_spill] sm:$0xff] %v19341_v23  ;;  %v19343_v43 = vadd.f32 %v14807_v59, %v5285_v4  ;;  %v7272_v24 = vld [vmem:[#allocation3 + $0x1a0] sm:$0xff]  ;;  %v8024_v59 = vld [vmem:[#allocation3 + $0x52] sm:$0xff] }
 0x4a7   : > { %v14754_v22 = vpop.f32.mrf.mxu1 }
 0x4a8   : > { %v14810_v6 = vpop.f32.mrf.mxu0  ;;  %15089 = vmatmul.mubr.msk.f32.gmra.mxu1 %vm251_vm0, %v19019_v30  ;;  %15145 = vmatmul.mubr.msk.f32.gmra.mxu0 %vm251_vm0, %v19179_v20  ;;  %v5287_v50 = vadd.f32 %v14754_v22, %v18814_v41  ;;  %v8021_v30 = vld [vmem:[#allocation3 + $0x32] sm:$0xff] }
 0x4a9   : > { %15091 = vmatprep.mubr.msk.f32.mxu1 %vm251_vm0, %v7271_v58  ;;  %15147 = vmatprep.mubr.msk.f32.mxu0 %vm251_vm0, %v7661_v18  ;;  %v19352_v62 = vpop.f32.mrf.mxu1  ;;  %v8025_v18 = vld [vmem:[#allocation3 + $0x62] sm:$0xff] }
 0x4aa   : > { %21804 = vst [vmem:[#allocation20_spill] sm:$0xff] %v19352_v62  ;;  %v19354_v28 = vpop.f32.mrf.mxu0  ;;  %v19356_v32 = vadd.f32 %v14810_v6, %v5287_v50 }
 0x4ab   : > { %21805 = vst [vmem:[#allocation38_spill] sm:$0xff] %v19354_v28  ;;  %v14757_v29 = vpop.f32.mrf.mxu1 }
 0x4ac   : > { %v14813_v3 = vpop.f32.mrf.mxu0  ;;  %15092 = vmatmul.mubr.msk.f32.gmra.mxu1 %vm251_vm0, %v7272_v24  ;;  %15148 = vmatmul.mubr.msk.f32.gmra.mxu0 %vm251_vm0, %v7662_v17  ;;  %v5289_v20 = vadd.f32 %v14757_v29, %v18814_v41  ;;  %v8026_v17 = vld [vmem:[#allocation3 + $0x6a] sm:$0xff] }
 0x4ad   : > { %15158 = vmatprep.mubr.msk.f32.mxu1 %vm251_vm0, %v8021_v30  ;;  %v19362_v19 = vpop.f32.mrf.mxu1  ;;  %v8027_v30 = vld [vmem:[#allocation3 + $0x7a] sm:$0xff] }
 0x4ae   : > { %21806 = vst [vmem:[#allocation36_spill] sm:$0xff] %v19362_v19  ;;  %v19364_v46 = vpop.f32.mrf.mxu0  ;;  %v19366_v51 = vadd.f32 %v14813_v3, %v5289_v20 }
 0x4af   : > { %21807 = vst [vmem:[#allocation65_spill] sm:$0xff] %v19364_v46  ;;  %v14824_v53 = vpop.f32.mrf.mxu1 }
 0x4b0   : > { %v14880_v16 = vpop.f32.mrf.mxu0  ;;  %15159 = vmatmul.mubr.msk.f32.vlgmr.msra.gmra.mxu1 %vm251_vm0, %v8022_v7  ;;  %v6039_v55 = vadd.f32 %v14824_v53, %v18844_v12 }
 0x4b1   : > { %15161 = vmatprep.mubr.msk.f32.mxu1 %vm251_vm0, %v8023_v57  ;;  %v19371_v0 = vpop.f32.mrf.mxu1 }
 0x4b2   : > { %v19373_v41 = vpop.f32.mrf.mxu0  ;;  %v19375_v60 = vadd.f32 %v14880_v16, %v6039_v55 }
 0x4b4   : > { %v14827_v4 = vpop.f32.mrf.mxu1  ;;  %v14883_v58 = vpop.f32.mrf.mxu0  ;;  %15162 = vmatmul.mubr.msk.f32.gmra.mxu1 %vm251_vm0, %v8024_v59  ;;  %v8029_v59 = vld [vmem:[#allocation3 + $0x92] sm:$0xff] }
 0x4b5   : > { %v6041_v22 = vadd.f32 %v14827_v4, %v19209_v21  ;;  %15164 = vmatprep.mubr.msk.f32.mxu1 %vm251_vm0, %v8025_v18 }
 0x4b6   : > { %v5889_v6 = vpop.f32.mrf.mxu1  ;;  %v19380_v12 = vpop.f32.mrf.mxu0 }
 0x4b7   : > { %v19382_v50 = vadd.f32 %v14883_v58, %v6041_v22  ;;  %v19385_v24 = vadd.f32 %v5889_v6, %v19217_v10  ;;  %v8028_v10 = vld [vmem:[#allocation3 + $0x82] sm:$0xff]  ;;  %v8030_v6 = vld [vmem:[#allocation3 + $0x9a] sm:$0xff] }
 0x4b8   : > { %v14830_v29 = vpop.f32.mrf.mxu1  ;;  %v14886_v3 = vpop.f32.mrf.mxu0  ;;  %15165 = vmatmul.mubr.msk.f32.gmra.mxu1 %vm251_vm0, %v8026_v17 }
 0x4b9   : > { %v6043_v20 = vadd.f32 %v14830_v29, %v19222_v54  ;;  %15167 = vmatprep.mubr.msk.f32.mxu1 %vm251_vm0, %v8027_v30  ;;  %v12898_v54 = vld [vmem:[%s21532_s3 + $0x258] sm:$0xff] }
 0x4ba   : > { %v5899_v21 = vpop.f32.mrf.mxu1  ;;  %v19390_v7 = vpop.f32.mrf.mxu0  ;;  %15206 = vmatprep.subr.mxu0 %v12898_v54 }
 0x4bb   : > { %v19392_v53 = vadd.f32 %v14886_v3, %v6043_v20  ;;  %v19395_v16 = vadd.f32 %v5899_v21, %v19227_v26  ;;  %15207 = vmatpush3.msra.mxu0 %v12898_v54 }
 0x4bc   : > { %v14833_v57 = vpop.f32.mrf.mxu1  ;;  %v14889_v55 = vpop.f32.mrf.mxu0  ;;  %15168 = vmatmul.mubr.msk.f32.gmra.mxu1 %vm251_vm0, %v8028_v10 }
 0x4bd   : > { %v6045_v4 = vadd.f32 %v14833_v57, %v19232_v36  ;;  %15170 = vmatprep.mubr.msk.f32.mxu1 %vm251_vm0, %v8029_v59  ;;  %v8031_v36 = vld [vmem:[#allocation3 + $0xaa] sm:$0xff]  ;;  %v8033_v59 = vld [vmem:[#allocation3 + $0xc2] sm:$0xff] }
 0x4be   : > { %v5909_v58 = vpop.f32.mrf.mxu1  ;;  %v19403_v18 = vpop.f32.mrf.mxu0 }
 0x4bf   : > { %v19405_v26 = vadd.f32 %v14889_v55, %v6045_v4  ;;  %v19408_v22 = vadd.f32 %v5909_v58, %v19237_v52  ;;  %v8032_v52 = vld [vmem:[#allocation3 + $0xb2] sm:$0xff] }
 0x4c0   : > { %v14836_v17 = vpop.f32.mrf.mxu1  ;;  %v14892_v29 = vpop.f32.mrf.mxu0  ;;  %15171 = vmatmul.mubr.msk.f32.gmra.mxu1 %vm251_vm0, %v8030_v6 }
 0x4c1   : > { %v6047_v3 = vadd.f32 %v14836_v17, %v19242_v45  ;;  %15173 = vmatprep.mubr.msk.f32.mxu1 %vm251_vm0, %v8031_v36  ;;  %v8035_v36 = vld [vmem:[#allocation3 + $0xda] sm:$0xff] }
 0x4c2   : > { %v5919_v30 = vpop.f32.mrf.mxu1  ;;  %v19413_v20 = vpop.f32.mrf.mxu0 }
 0x4c3   : > { %v19415_v21 = vadd.f32 %v14892_v29, %v6047_v3  ;;  %v19418_v10 = vadd.f32 %v5919_v30, %v19247_v13  ;;  %v8034_v13 = vld [vmem:[#allocation3 + $0xca] sm:$0xff] }
 0x4c4   : > { %v14839_v57 = vpop.f32.mrf.mxu1  ;;  %v14895_v55 = vpop.f32.mrf.mxu0  ;;  %15174 = vmatmul.mubr.msk.f32.gmra.mxu1 %vm251_vm0, %v8032_v52 }
 0x4c5   : > { %v6049_v4 = vadd.f32 %v14839_v57, %v19252_v8  ;;  %15176 = vmatprep.mubr.msk.f32.mxu1 %vm251_vm0, %v8033_v59 }
 0x4c6   : > { %v5929_v45 = vpop.f32.mrf.mxu1  ;;  %v19423_v54 = vpop.f32.mrf.mxu0 }
 0x4c7   : > { %v19425_v58 = vadd.f32 %v14895_v55, %v6049_v4  ;;  %v19428_v6 = vadd.f32 %v5929_v45, %v19257_v63  ;;  %v8036_v63 = vld [vmem:[#allocation3 + $0xe2] sm:$0xff]  ;;  %v8037_v4 = vld [vmem:[#allocation3 + $0xf2] sm:$0xff] }
 0x4c8   : > { %v14842_v17 = vpop.f32.mrf.mxu1  ;;  %v14898_v29 = vpop.f32.mrf.mxu0  ;;  %15177 = vmatmul.mubr.msk.f32.gmra.mxu1 %vm251_vm0, %v8034_v13 }
 0x4c9   : > { %v6051_v3 = vadd.f32 %v14842_v17, %v19262_v34  ;;  %15179 = vmatprep.mubr.msk.f32.mxu1 %vm251_vm0, %v8035_v36  ;;  %v19444_v34 = vld [vmem:[%s21533_s4 + $0x1] ss:$0 sm:$0xff] }
 0x4ca   : > { %v5939_v8 = vpop.f32.mrf.mxu1  ;;  %v19433_v30 = vpop.f32.mrf.mxu0  ;;  %v5274_v45 = vadd.f32 %v19444_v34, %v19282_v48 }
 0x4cb   : > { %21808 = vst [vmem:[#allocation68_spill] sm:$0xff] %v19433_v30  ;;  %v19435_v52 = vadd.f32 %v14898_v29, %v6051_v3  ;;  %v19438_v57 = vadd.f32 %v5939_v8, %v19267_v49  ;;  %v12897_v49 = vld [vmem:[%s21532_s3 + $0x250] sm:$0xff] }
 0x4cc   : > { %v14845_v55 = vpop.f32.mrf.mxu1  ;;  %v14901_v59 = vpop.f32.mrf.mxu0  ;;  %15180 = vmatmul.mubr.msk.f32.gmra.mxu1 %vm251_vm0, %v8036_v63  ;;  %15208 = vmatprep.subr.mxu0 %v12897_v49  ;;  %v8038_v8 = vld [vmem:[#allocation3 + $0xfa] sm:$0xff] }
 0x4cd   : > { %v6053_v13 = vadd.f32 %v14845_v55, %v19272_v11  ;;  %15182 = vmatprep.mubr.msk.f32.mxu1 %vm251_vm0, %v8037_v4  ;;  %15209 = vmatpush3.msra.mxu0 %v12897_v49  ;;  %v8039_v11 = vld [vmem:[#allocation3 + $0x10a] sm:$0xff]  ;;  %v5664_v55 = vadd.f32 %v19284_v35, %v5274_v45 }
 0x4ce   : > { %v5949_v17 = vpop.f32.mrf.mxu1  ;;  %v19453_v29 = vpop.f32.mrf.mxu0 }
 0x4cf   : > { %21809 = vst [vmem:[#allocation19_spill] sm:$0xff] %v19453_v29  ;;  %v19455_v36 = vadd.f32 %v14901_v59, %v6053_v13  ;;  %v19458_v3 = vadd.f32 %v5949_v17, %v19277_v33  ;;  %v8040_v13 = vld [vmem:[#allocation3 + $0x112] sm:$0xff] }
 0x4d0   : > { %v14848_v48 = vpop.f32.mrf.mxu1  ;;  %v14904_v63 = vpop.f32.mrf.mxu0  ;;  %15183 = vmatmul.mubr.msk.f32.gmra.mxu1 %vm251_vm0, %v8038_v8  ;;  %v8041_v8 = vld [vmem:[#allocation3 + $0x122] sm:$0xff] }
 0x4d1   : > { %21810 = vst [vmem:[#allocation37_spill] sm:$0xff] %v19458_v3  ;;  %v6055_v4 = vadd.f32 %v14848_v48, %v19286_v2  ;;  %15185 = vmatprep.mubr.msk.f32.mxu1 %vm251_vm0, %v8039_v11  ;;  %v8042_v48 = vld [vmem:[#allocation3 + $0x12a] sm:$0xff]  ;;  %v8043_v11 = vld [vmem:[#allocation3 + $0x13a] sm:$0xff] }
 0x4d2   : > { %v5959_v46 = vpop.f32.mrf.mxu1  ;;  %v19464_v19 = vpop.f32.mrf.mxu0 }
 0x4d3   : > { %21811 = vst [vmem:[#allocation67_spill] sm:$0xff] %v19464_v19  ;;  %v19466_v59 = vadd.f32 %v14904_v63, %v6055_v4  ;;  %v19468_v33 = vadd.f32 %v5959_v46, %v5664_v55 }
 0x4d4   : > { %v14851_v49 = vpop.f32.mrf.mxu1  ;;  %v14907_v17 = vpop.f32.mrf.mxu0  ;;  %15186 = vmatmul.mubr.msk.f32.gmra.mxu1 %vm251_vm0, %v8040_v13 }
 0x4d5   : > { %21812 = vst [vmem:[#allocation70_spill] sm:$0xff] %v19468_v33  ;;  %v6057_v28 = vadd.f32 %v14851_v49, %v19297_v40  ;;  %15188 = vmatprep.mubr.msk.f32.mxu1 %vm251_vm0, %v8041_v8  ;;  %v8044_v49 = vld [vmem:[#allocation3 + $0x142] sm:$0xff] }
 0x4d6   : > { %v19473_v35 = vpop.f32.mrf.mxu1  ;;  %v19475_v2 = vpop.f32.mrf.mxu0 }
 0x4d7   : > { %21813 = vst [vmem:[#allocation11_spill] sm:$0xff] %v19473_v35  ;;  %21814 = vst [vmem:[#allocation22_spill] sm:$0xff] %v19475_v2  ;;  %v19477_v45 = vadd.f32 %v14907_v17, %v6057_v28  ;;  %v8045_v17 = vld [vmem:[#allocation3 + $0x152] sm:$0xff] }
 0x4d8   : > { %v14854_v63 = vpop.f32.mrf.mxu1  ;;  %v14910_v46 = vpop.f32.mrf.mxu0  ;;  %15189 = vmatmul.mubr.msk.f32.gmra.mxu1 %vm251_vm0, %v8042_v48 }
 0x4d9   : > { %v6059_v55 = vadd.f32 %v14854_v63, %v19308_v9  ;;  %15191 = vmatprep.mubr.msk.f32.mxu1 %vm251_vm0, %v8043_v11  ;;  %v12896_v9 = vld [vmem:[%s21532_s3 + $0x248] sm:$0xff] }
 0x4da   : > { %v19482_v4 = vpop.f32.mrf.mxu1  ;;  %v19484_v40 = vpop.f32.mrf.mxu0  ;;  %15210 = vmatprep.subr.mxu0 %v12896_v9  ;;  %v8046_v11 = vld [vmem:[#allocation3 + $0x15a] sm:$0xff] }
 0x4db   : > { %21815 = vst [vmem:[#allocation41_spill] sm:$0xff] %v19482_v4  ;;  %21816 = vst [vmem:[#allocation39_spill] sm:$0xff] %v19484_v40  ;;  %v19486_v13 = vadd.f32 %v14910_v46, %v6059_v55  ;;  %15211 = vmatpush3.msra.mxu0 %v12896_v9  ;;  %v12970_v4 = vld [vmem:[%s21532_s3 + $0x298] sm:$0xff] }
 0x4dc   : > { %v14857_v8 = vpop.f32.mrf.mxu1  ;;  %v14913_v28 = vpop.f32.mrf.mxu0  ;;  %15192 = vmatmul.mubr.msk.f32.gmra.mxu1 %vm251_vm0, %v8044_v49 }
 0x4dd   : > { %v6061_v62 = vadd.f32 %v14857_v8, %v19319_v25  ;;  %15194 = vmatprep.mubr.msk.f32.mxu1 %vm251_vm0, %v8045_v17  ;;  %v8047_v25 = vld [vmem:[#allocation3 + $0x16a] sm:$0xff] }
 0x4de   : > { %v19494_v48 = vpop.f32.mrf.mxu1  ;;  %v19496_v63 = vpop.f32.mrf.mxu0 }
 0x4df   : > { %21817 = vst [vmem:[#allocation69_spill] sm:$0xff] %v19494_v48  ;;  %21818 = vst [vmem:[#allocation72_spill] sm:$0xff] %v19496_v63  ;;  %v19498_v46 = vadd.f32 %v14913_v28, %v6061_v62  ;;  %v8048_v63 = vld [vmem:[#allocation3 + $0x172] sm:$0xff] }
 0x4e0   : > { %v14860_v55 = vpop.f32.mrf.mxu1  ;;  %v14916_v49 = vpop.f32.mrf.mxu0  ;;  %15195 = vmatmul.mubr.msk.f32.gmra.mxu1 %vm251_vm0, %v8046_v11  ;;  %v8485_v48 = vld [vmem:[#allocation4] sm:$0xff] }
 0x4e1   : > { %v6063_v8 = vadd.f32 %v14860_v55, %v19330_v39  ;;  %15197 = vmatprep.mubr.msk.f32.mxu1 %vm251_vm0, %v8047_v25  ;;  %v8051_v55 = vld [vmem:[#allocation3 + $0x19a] sm:$0xff]  ;;  %15214 = vmatprep.mubr.msk.f32.mxu0 %vm251_vm0, %v8485_v48 }
 0x4e2   : > { %v19503_v17 = vpop.f32.mrf.mxu1  ;;  %v19505_v23 = vpop.f32.mrf.mxu0  ;;  %v8876_v48 = vld [vmem:[#allocation4 + $0x9] sm:$0xff] }
 0x4e3   : > { %21819 = vst [vmem:[#allocation21_spill] sm:$0xff] %v19503_v17  ;;  %21820 = vst [vmem:[#allocation40_spill] sm:$0xff] %v19505_v23  ;;  %v19507_v61 = vadd.f32 %v14916_v49, %v6063_v8 }
 0x4e4   : > { %v14863_v62 = vpop.f32.mrf.mxu1  ;;  %v14919_v28 = vpop.f32.mrf.mxu0  ;;  %15198 = vmatmul.mubr.msk.f32.gmra.mxu1 %vm251_vm0, %v8048_v63 }
 0x4e5   : > { %v6065_v9 = vadd.f32 %v14863_v62, %v19343_v43  ;;  %15200 = vmatprep.mubr.msk.f32.mxu1 %vm251_vm0, %v19173_v42  ;;  %v8052_v43 = vld [vmem:[#allocation3 + $0x1a2] sm:$0xff] }
 0x4e6   : > { %v19513_v11 = vpop.f32.mrf.mxu1  ;;  %v19515_v39 = vpop.f32.mrf.mxu0 }
 0x4e7   : > { %21821 = vst [vmem:[#allocation71_spill] sm:$0xff] %v19513_v11  ;;  %21822 = vst [vmem:[#allocation74_spill] sm:$0xff] %v19515_v39  ;;  %v19517_v25 = vadd.f32 %v14919_v28, %v6065_v9 }
 0x4e8   : > { %v14866_v23 = vpop.f32.mrf.mxu1  ;;  %v14922_v49 = vpop.f32.mrf.mxu0  ;;  %15201 = vmatmul.mubr.msk.f32.gmra.mxu1 %vm251_vm0, %v19181_v47  ;;  %v12895_v47 = vld [vmem:[%s21532_s3 + $0x240] sm:$0xff] }
 0x4e9   : > { %v6067_v8 = vadd.f32 %v14866_v23, %v19356_v32  ;;  %15203 = vmatprep.mubr.msk.f32.mxu1 %vm251_vm0, %v8051_v55  ;;  %15212 = vmatprep.subr.mxu0 %v12895_v47 }
 0x4ea   : > { %v19523_v63 = vpop.f32.mrf.mxu1  ;;  %v19525_v42 = vpop.f32.mrf.mxu0  ;;  %15213 = vmatpush3.msra.mxu0 %v12895_v47 }
 0x4eb   : > { %21823 = vst [vmem:[#allocation12_spill] sm:$0xff] %v19523_v63  ;;  %21824 = vst [vmem:[#allocation24_spill] sm:$0xff] %v19525_v42  ;;  %v19527_v62 = vadd.f32 %v14922_v49, %v6067_v8  ;;  %15215 = vmatmul.mubr.msk.f32.vlgmr.msra.gmra.mxu0 %vm251_vm0, %v8486_v1  ;;  %15318 = vmatprep.subr.mxu0 %v12970_v4 }
 0x4ec   : > { %v14869_v39 = vpop.f32.mrf.mxu1  ;;  %v14925_v11 = vpop.f32.mrf.mxu0  ;;  %15204 = vmatmul.mubr.msk.f32.gmra.mxu1 %vm251_vm0, %v8052_v43  ;;  %15319 = vmatpush3.msra.mxu0 %v12970_v4 }
 0x4ed   : > { %v6069_v28 = vadd.f32 %v14869_v39, %v19366_v51 }
 0x4ee   : > { %v19534_v23 = vpop.f32.mrf.mxu1  ;;  %v19536_v32 = vpop.f32.mrf.mxu0 }
 0x4ef   : > { %21825 = vst [vmem:[#allocation44_spill] sm:$0xff] %v19534_v23  ;;  %21826 = vst [vmem:[#allocation42_spill] sm:$0xff] %v19536_v32  ;;  %v19538_v9 = vadd.f32 %v14925_v11, %v6069_v28 }
 0x4f0   : > { %v14936_v55 = vpop.f32.mrf.mxu1  ;;  %v19540_v49 = vpop.f32.mrf.mxu0 }
 0x4f1   : > { %v19543_v8 = vadd.f32 %v14936_v55, %v19375_v60  ;;  %v12934_v55 = vld [vmem:[%s21532_s3 + $0x278] sm:$0xff] }
 0x4f2   : > { %v19545_v43 = vpop.f32.mrf.mxu1  ;;  %v19547_v51 = vpop.f32.mrf.mxu0  ;;  %15262 = vmatprep.subr.mxu1 %v12934_v55 }
 0x4f3   : > { %15263 = vmatpush3.msra.mxu1 %v12934_v55 }
 0x4f4   : > { %v14939_v39 = vpop.f32.mrf.mxu1  ;;  %v19549_v42 = vpop.f32.mrf.mxu0 }
 0x4f5   : > { %v19552_v23 = vadd.f32 %v14939_v39, %v19382_v50  ;;  %v12933_v50 = vld [vmem:[%s21532_s3 + $0x270] sm:$0xff] }
 0x4f6   : > { %v19554_v32 = vpop.f32.mrf.mxu1  ;;  %v19556_v11 = vpop.f32.mrf.mxu0  ;;  %15264 = vmatprep.subr.mxu1 %v12933_v50 }
 0x4f7   : > { %15265 = vmatpush3.msra.mxu1 %v12933_v50 }
 0x4f8   : > { %v14942_v28 = vpop.f32.mrf.mxu1  ;;  %v19558_v47 = vpop.f32.mrf.mxu0 }
 0x4f9   : > { %v19561_v60 = vadd.f32 %v14942_v28, %v19392_v53  ;;  %v12932_v28 = vld [vmem:[%s21532_s3 + $0x268] sm:$0xff] }
 0x4fa   : > { %v19566_v63 = vpop.f32.mrf.mxu1  ;;  %v19568_v17 = vpop.f32.mrf.mxu0  ;;  %15266 = vmatprep.subr.mxu1 %v12932_v28 }
 0x4fb   : > { %15267 = vmatpush3.msra.mxu1 %v12932_v28 }
 0x4fc   : > { %v14945_v39 = vpop.f32.mrf.mxu1  ;;  %v19573_v27 = vpop.f32.mrf.mxu0 }
 0x4fd   : > { %v19576_v53 = vadd.f32 %v14945_v39, %v19405_v26  ;;  %v12931_v26 = vld [vmem:[%s21532_s3 + $0x260] sm:$0xff] }
 0x4fe   : > { %v19581_v40 = vpop.f32.mrf.mxu1  ;;  %v19583_v55 = vpop.f32.mrf.mxu0  ;;  %v8875_v39 = vld [vmem:[#allocation4 + $0x1] sm:$0xff]  ;;  %15268 = vmatprep.subr.mxu1 %v12931_v26 }
 0x4ff   : > { %15269 = vmatpush3.msra.mxu1 %v12931_v26  ;;  %15270 = vmatprep.mubr.msk.f32.mxu1 %vm251_vm0, %v8875_v39 }
 0x500   : > { %v14948_v50 = vpop.f32.mrf.mxu1  ;;  %v19589_v44 = vpop.f32.mrf.mxu0  ;;  %15271 = vmatmul.mubr.msk.f32.vlgmr.msra.gmra.mxu1 %vm251_vm0, %v8876_v48 }
 0x501   : > { %v19596_v2 = vadd.f32 %v14948_v50, %v19415_v21 }
 0x502   : > { %v19599_v28 = vpop.f32.mrf.mxu1  ;;  %v19601_v31 = vpop.f32.mrf.mxu0 }
 0x504   : > { %v14951_v1 = vpop.f32.mrf.mxu1  ;;  %v19604_v5 = vpop.f32.mrf.mxu0 }
 0x505   : > { %21827 = vst [vmem:[#allocation73_spill] sm:$0xff] %v19604_v5  ;;  %v19607_v35 = vadd.f32 %v14951_v1, %v19425_v58 }
 0x506   : > { %v19609_v21 = vpop.f32.mrf.mxu1  ;;  %v19611_v26 = vpop.f32.mrf.mxu0 }
 0x507   : > { %21828 = vst [vmem:[#allocation76_spill] sm:$0xff] %v19607_v35  ;;  %21829 = vst [vmem:[#allocation23_spill] sm:$0xff] %v19611_v26 }
 0x508   : > { %v14954_v39 = vpop.f32.mrf.mxu1  ;;  %v19613_v50 = vpop.f32.mrf.mxu0 }
 0x509   : > { %21830 = vst [vmem:[#allocation43_spill] sm:$0xff] %v19613_v50  ;;  %v19616_v19 = vadd.f32 %v14954_v39, %v19435_v52  ;;  %v12969_v50 = vld [vmem:[%s21532_s3 + $0x290] sm:$0xff] }
 0x50a   : > { %v19618_v33 = vpop.f32.mrf.mxu1  ;;  %v19620_v48 = vpop.f32.mrf.mxu0  ;;  %15320 = vmatprep.subr.mxu0 %v12969_v50 }
 0x50b   : > { %21831 = vst [vmem:[#allocation75_spill] sm:$0xff] %v19616_v19  ;;  %21832 = vst [vmem:[#allocation78_spill] sm:$0xff] %v19618_v33  ;;  %15321 = vmatpush3.msra.mxu0 %v12969_v50 }
 0x50c   : > { %21833 = vst [vmem:[#allocation13_spill] sm:$0xff] %v19620_v48  ;;  %v14957_v4 = vpop.f32.mrf.mxu1  ;;  %v19622_v56 = vpop.f32.mrf.mxu0 }
 0x50d   : > { %21834 = vst [vmem:[#allocation26_spill] sm:$0xff] %v19622_v56  ;;  %v19625_v58 = vadd.f32 %v14957_v4, %v19455_v36 }
 0x50e   : > { %v19627_v1 = vpop.f32.mrf.mxu1  ;;  %v19629_v15 = vpop.f32.mrf.mxu0 }
 0x50f   : > { %21835 = vst [vmem:[#allocation47_spill] sm:$0xff] %v19625_v58  ;;  %21836 = vst [vmem:[#allocation45_spill] sm:$0xff] %v19627_v1 }
 0x510   : > { %21837 = vst [vmem:[#allocation77_spill] sm:$0xff] %v19629_v15  ;;  %v14960_v52 = vpop.f32.mrf.mxu1  ;;  %v19634_v39 = vpop.f32.mrf.mxu0 }
 0x511   : > { %21838 = vst [vmem:[#allocation80_spill] sm:$0xff] %v19634_v39  ;;  %v19637_v48 = vadd.f32 %v14960_v52, %v19466_v59 }
 0x512   : > { %v19639_v56 = vpop.f32.mrf.mxu1  ;;  %v19641_v36 = vpop.f32.mrf.mxu0 }
 0x513   : > { %21839 = vst [vmem:[#allocation25_spill] sm:$0xff] %v19637_v48  ;;  %21840 = vst [vmem:[#allocation46_spill] sm:$0xff] %v19639_v56 }
 0x514   : > { %21841 = vst [vmem:[#allocation79_spill] sm:$0xff] %v19641_v36  ;;  %v14963_v4 = vpop.f32.mrf.mxu1  ;;  %v19643_v58 = vpop.f32.mrf.mxu0 }
 0x515   : > { %21842 = vst [vmem:[#allocation82_spill] sm:$0xff] %v19643_v58  ;;  %v19646_v15 = vadd.f32 %v14963_v4, %v19477_v45 }
 0x516   : > { %v19648_v1 = vpop.f32.mrf.mxu1  ;;  %v19650_v19 = vpop.f32.mrf.mxu0 }
 0x517   : > { %21843 = vst [vmem:[#allocation14_spill] sm:$0xff] %v19646_v15  ;;  %21844 = vst [vmem:[#allocation28_spill] sm:$0xff] %v19648_v1 }
 0x518   : > { %21845 = vst [vmem:[#allocation50_spill] sm:$0xff] %v19650_v19  ;;  %v14966_v39 = vpop.f32.mrf.mxu1  ;;  %v19652_v29 = vpop.f32.mrf.mxu0 }
 0x519   : > { %21846 = vst [vmem:[#allocation48_spill] sm:$0xff] %v19652_v29  ;;  %v19655_v59 = vadd.f32 %v14966_v39, %v19486_v13  ;;  %v12968_v29 = vld [vmem:[%s21532_s3 + $0x288] sm:$0xff] }
 0x51a   : > { %v19657_v50 = vpop.f32.mrf.mxu1  ;;  %v19659_v52 = vpop.f32.mrf.mxu0  ;;  %15322 = vmatprep.subr.mxu0 %v12968_v29 }
 0x51b   : > { %21847 = vst [vmem:[#allocation81_spill] sm:$0xff] %v19655_v59  ;;  %21848 = vst [vmem:[#allocation27_spill] sm:$0xff] %v19657_v50  ;;  %15323 = vmatpush3.msra.mxu0 %v12968_v29 }
 0x51c   : > { %21849 = vst [vmem:[#allocation49_spill] sm:$0xff] %v19659_v52  ;;  %v14969_v36 = vpop.f32.mrf.mxu1  ;;  %v19661_v48 = vpop.f32.mrf.mxu0 }
 0x51d   : > { %21850 = vst [vmem:[#allocation83_spill] sm:$0xff] %v19661_v48  ;;  %v19664_v45 = vadd.f32 %v14969_v36, %v19498_v46 }
 0x51e   : > { %v19666_v4 = vpop.f32.mrf.mxu1  ;;  %v19668_v58 = vpop.f32.mrf.mxu0 }
 0x51f   : > { %21851 = vst [vmem:[#allocation85_spill] sm:$0xff] %v19664_v45  ;;  %21852 = vst [vmem:[#allocation15_spill] sm:$0xff] %v19666_v4 }
 0x520   : > { %21853 = vst [vmem:[#allocation30_spill] sm:$0xff] %v19668_v58  ;;  %v14972_v13 = vpop.f32.mrf.mxu1  ;;  %v19673_v39 = vpop.f32.mrf.mxu0 }
 0x521   : > { %21854 = vst [vmem:[#allocation53_spill] sm:$0xff] %v19673_v39  ;;  %v19676_v52 = vadd.f32 %v14972_v13, %v19507_v61 }
 0x522   : > { %v19678_v48 = vpop.f32.mrf.mxu1  ;;  %v19680_v46 = vpop.f32.mrf.mxu0 }
 0x523   : > { %21855 = vst [vmem:[#allocation51_spill] sm:$0xff] %v19676_v52  ;;  %21856 = vst [vmem:[#allocation84_spill] sm:$0xff] %v19678_v48 }
 0x524   : > { %21857 = vst [vmem:[#allocation87_spill] sm:$0xff] %v19680_v46  ;;  %v14975_v36 = vpop.f32.mrf.mxu1  ;;  %v19682_v45 = vpop.f32.mrf.mxu0 }
 0x525   : > { %21858 = vst [vmem:[#allocation29_spill] sm:$0xff] %v19682_v45  ;;  %v19685_v58 = vadd.f32 %v14975_v36, %v19517_v25 }
 0x526   : > { %v19687_v4 = vpop.f32.mrf.mxu1  ;;  %v19689_v59 = vpop.f32.mrf.mxu0 }
 0x527   : > { %21859 = vst [vmem:[#allocation52_spill] sm:$0xff] %v19685_v58  ;;  %21860 = vst [vmem:[#allocation86_spill] sm:$0xff] %v19687_v4 }
 0x528   : > { %21861 = vst [vmem:[#allocation89_spill] sm:$0xff] %v19689_v59  ;;  %v14978_v39 = vpop.f32.mrf.mxu1  ;;  %v19691_v50 = vpop.f32.mrf.mxu0  ;;  %v19743_v59 = vld [vmem:[%s21532_s3 + $0x2d8] sm:$0xff] }
 0x529   : > { %21862 = vst [vmem:[#allocation31_spill] sm:$0xff] %v19691_v50  ;;  %v19694_v61 = vadd.f32 %v14978_v39, %v19527_v62  ;;  %v12967_v50 = vld [vmem:[%s21532_s3 + $0x280] sm:$0xff]  ;;  %21870 = vst [vmem:[#allocation58_spill] sm:$0xff] %v19743_v59 }
 0x52a   : > { %v19696_v29 = vpop.f32.mrf.mxu1  ;;  %v19698_v13 = vpop.f32.mrf.mxu0  ;;  %15324 = vmatprep.subr.mxu0 %v12967_v50 }
 0x52b   : > { %21863 = vst [vmem:[#allocation56_spill] sm:$0xff] %v19694_v61  ;;  %21864 = vst [vmem:[#allocation54_spill] sm:$0xff] %v19696_v29  ;;  %15325 = vmatpush3.msra.mxu0 %v12967_v50  ;;  %v13004_v61 = vld [vmem:[%s21532_s3 + $0x2a8] sm:$0xff]  ;;  %v13003_v29 = vld [vmem:[%s21532_s3 + $0x2a0] sm:$0xff] }
 0x52c   : > { %21865 = vst [vmem:[#allocation88_spill] sm:$0xff] %v19698_v13  ;;  %v14981_v46 = vpop.f32.mrf.mxu1  ;;  %v19700_v52 = vpop.f32.mrf.mxu0  ;;  %15430 = vmatprep.subr.mxu0 %v19743_v59 }
 0x52d   : > { %21866 = vst [vmem:[#allocation91_spill] sm:$0xff] %v19700_v52  ;;  %v19703_v25 = vadd.f32 %v14981_v46, %v19538_v9  ;;  %v13006_v46 = vld [vmem:[%s21532_s3 + $0x2b8] sm:$0xff] }
 0x52e   : > { %v19705_v36 = vpop.f32.mrf.mxu1  ;;  %v19707_v45 = vpop.f32.mrf.mxu0  ;;  %15374 = vmatprep.subr.mxu1 %v13006_v46 }
 0x52f   : > { %21867 = vst [vmem:[#allocation55_spill] sm:$0xff] %v19703_v25  ;;  %21868 = vst [vmem:[#allocation90_spill] sm:$0xff] %v19705_v36  ;;  %15375 = vmatpush3.msra.mxu1 %v13006_v46 }
 0x530   : > { %21869 = vst [vmem:[#allocation93_spill] sm:$0xff] %v19707_v45  ;;  %v19712_v62 = vpop.f32.mrf.mxu1  ;;  %v19714_v39 = vpop.f32.mrf.mxu0  ;;  %v13005_v45 = vld [vmem:[%s21532_s3 + $0x2b0] sm:$0xff] }
 0x531   : > { %15376 = vmatprep.subr.mxu1 %v13005_v45 }
 0x532   : > { %v19716_v13 = vpop.f32.mrf.mxu1  ;;  %v19718_v52 = vpop.f32.mrf.mxu0  ;;  %15377 = vmatpush3.msra.mxu1 %v13005_v45 }
 0x533   : > { %15378 = vmatprep.subr.mxu1 %v13004_v61 }
 0x534   : > { %v19720_v9 = vpop.f32.mrf.mxu1  ;;  %v19730_v50 = vpop.f32.mrf.mxu0  ;;  %15379 = vmatpush3.msra.mxu1 %v13004_v61 }
 0x535   : > { %15380 = vmatprep.subr.mxu1 %v13003_v29 }
 0x536   : > { %v19728_v25 = vpop.f32.mrf.mxu1  ;;  %v19748_v45 = vpop.f32.mrf.mxu0  ;;  %15381 = vmatpush3.msra.mxu1 %v13003_v29 }
 0x538   : > { %v19732_v36 = vpop.f32.mrf.mxu1  ;;  %v19754_v48 = vpop.f32.mrf.mxu0 }
 0x53a   : > { %v19745_v46 = vpop.f32.mrf.mxu1  ;;  %v19760_v1 = vpop.f32.mrf.mxu0 }
 0x53c   : > { %v19750_v58 = vpop.f32.mrf.mxu1  ;;  %v19766_v59 = vpop.f32.mrf.mxu0 }
 0x53e   : > { %v19752_v4 = vpop.f32.mrf.mxu1  ;;  %v19772_v29 = vpop.f32.mrf.mxu0 }
 0x53f   : > { %21876 = vst [vmem:[#allocation16_spill] sm:$0xff] %v19772_v29 }
 0x540   : > { %v19756_v19 = vpop.f32.mrf.mxu1  ;;  %v19778_v5 = vpop.f32.mrf.mxu0 }
 0x541   : > { %21879 = vst [vmem:[#allocation62_spill] sm:$0xff] %v19778_v5 }
 0x542   : > { %v19758_v15 = vpop.f32.mrf.mxu1 }
 0x543   : > { %21871 = vst [vmem:[#allocation57_spill] sm:$0xff] %v19758_v15 }
 0x544   : > { %v19762_v56 = vpop.f32.mrf.mxu1 }
 0x545   : > { %21872 = vst [vmem:[#allocation92_spill] sm:$0xff] %v19762_v56  ;;  %v19784_v56 = vpop.f32.mrf.mxu0 }
 0x546   : > { %v19764_v61 = vpop.f32.mrf.mxu1  ;;  %21882 = vst [vmem:[#allocation97_spill] sm:$0xff] %v19784_v56 }
 0x547   : > { %21873 = vst [vmem:[#allocation94_spill] sm:$0xff] %v19764_v61 }
 0x548   : > { %v19768_v3 = vpop.f32.mrf.mxu1 }
 0x549   : > { %21874 = vst [vmem:[#allocation95_spill] sm:$0xff] %v19768_v3  ;;  %v19790_v3 = vpop.f32.mrf.mxu0 }
 0x54a   : > { %v19770_v33 = vpop.f32.mrf.mxu1  ;;  %21885 = vst [vmem:[#allocation100_spill] sm:$0xff] %v19790_v3 }
 0x54b   : > { %21875 = vst [vmem:[#allocation59_spill] sm:$0xff] %v19770_v33 }
 0x54c   : > { %v19774_v26 = vpop.f32.mrf.mxu1 }
 0x54d   : > { %21877 = vst [vmem:[#allocation32_spill] sm:$0xff] %v19774_v26  ;;  %v19798_v26 = vpop.f32.mrf.mxu0 }
 0x54e   : > { %v19776_v14 = vpop.f32.mrf.mxu1  ;;  %21888 = vst [vmem:[#allocation103_spill] sm:$0xff] %v19798_v26 }
 0x54f   : > { %21878 = vst [vmem:[#allocation60_spill] sm:$0xff] %v19776_v14  ;;  %v5258_v14 = vadd.f32 %v19444_v34, %v19198_v38 }
 0x550   : > { %v19780_v15 = vpop.f32.mrf.mxu1 }
 0x551   : > { %21880 = vst [vmem:[#allocation9_spill] sm:$0xff] %v19780_v15  ;;  %v5648_v56 = vadd.f32 %v19194_v37, %v5258_v14  ;;  %v6430_v14 = vadd.f32 %v19380_v12, %v19385_v24  ;;  %v7211_v12 = vadd.f32 %v19549_v42, %v19552_v23  ;;  %v7213_v42 = vadd.f32 %v19558_v47, %v19561_v60 }
 0x552   : > { %v19782_v35 = vpop.f32.mrf.mxu1  ;;  %v7215_v47 = vadd.f32 %v19573_v27, %v19576_v53 }
 0x553   : > { %21881 = vst [vmem:[#allocation96_spill] sm:$0xff] %v19782_v35  ;;  %v6038_v3 = vadd.f32 %v19371_v0, %v5648_v56  ;;  %v7209_v56 = vadd.f32 %v19540_v49, %v19543_v8 }
 0x554   : > { %v19786_v61 = vpop.f32.mrf.mxu1 }
 0x555   : > { %21883 = vst [vmem:[#allocation98_spill] sm:$0xff] %v19786_v61  ;;  %v19805_v61 = vpop.f32.mrf.mxu0  ;;  %v6428_v38 = vadd.f32 %v19373_v41, %v6038_v3  ;;  %v6820_v41 = vadd.f32 %v19554_v32, %v6430_v14  ;;  %v7600_v3 = vadd.f32 %v19712_v62, %v7209_v56  ;;  %v6436_v56 = vadd.f32 %v19413_v20, %v19418_v10 }
 0x556   : > { %v19788_v30 = vpop.f32.mrf.mxu1 }
 0x557   : > { %21884 = vst [vmem:[#allocation99_spill] sm:$0xff] %v19788_v30  ;;  %v7990_v32 = vadd.f32 %v19714_v39, %v7600_v3  ;;  %v6826_v20 = vadd.f32 %v19599_v28, %v6436_v56 }
 0x558   : > { %v19792_v33 = vpop.f32.mrf.mxu1 }
 0x559   : > { %21886 = vst [vmem:[#allocation101_spill] sm:$0xff] %v19792_v33 }
 0x55a   : > { %v19794_v29 = vpop.f32.mrf.mxu1 }
 0x55b   : > { %21887 = vst [vmem:[#allocation102_spill] sm:$0xff] %v19794_v29  ;;  %v19812_v29 = vpop.f32.mrf.mxu0 }
 0x55c   : > { %v19800_v15 = vpop.f32.mrf.mxu1 }
 0x55d   : > { %21889 = vst [vmem:[#allocation104_spill] sm:$0xff] %v19800_v15  ;;  %v19820_v15 = vpop.f32.mrf.mxu0 }
 0x55e   : > { %v19802_v35 = vpop.f32.mrf.mxu1 }
 0x55f   : > { %21890 = vst [vmem:[#allocation105_spill] sm:$0xff] %v19802_v35  ;;  %v6818_v35 = vadd.f32 %v19545_v43, %v6428_v38  ;;  %v6432_v43 = vadd.f32 %v19390_v7, %v19395_v16  ;;  %v19835_v38 = vpop.f32.mrf.mxu0  ;;  %v6434_v7 = vadd.f32 %v19403_v18, %v19408_v22  ;;  %v7604_v18 = vadd.f32 %v19732_v36, %v7213_v42 }
 0x560   : > { %v19807_v30 = vpop.f32.mrf.mxu1 }
 0x561   : > { %v6822_v49 = vadd.f32 %v19566_v63, %v6432_v43  ;;  %v19850_v16 = vpop.f32.mrf.mxu0  ;;  %v7994_v53 = vadd.f32 %v19754_v48, %v7604_v18  ;;  %v7217_v43 = vadd.f32 %v19589_v44, %v19596_v2 }
 0x562   : > { %v19810_v33 = vpop.f32.mrf.mxu1 }
 0x563   : > { %v19864_v60 = vpop.f32.mrf.mxu0  ;;  %v7608_v44 = vadd.f32 %v19756_v19, %v7217_v43 }
 0x564   : > { %v19814_v5 = vpop.f32.mrf.mxu1 }
 0x565   : > { %21891 = vst [vmem:[#allocation106_spill] sm:$0xff] %v19814_v5  ;;  %v7208_v5 = vadd.f32 %v19547_v51, %v6818_v35  ;;  %v7210_v35 = vadd.f32 %v19556_v11, %v6820_v41  ;;  %v7602_v51 = vadd.f32 %v19720_v9, %v7211_v12  ;;  %v7212_v11 = vadd.f32 %v19568_v17, %v6822_v49  ;;  %v19884_v12 = vpop.f32.mrf.mxu0 }
 0x566   : > { %v19817_v26 = vpop.f32.mrf.mxu1  ;;  %v7606_v41 = vadd.f32 %v19750_v58, %v7215_v47  ;;  %v7216_v49 = vadd.f32 %v19601_v31, %v6826_v20 }
 0x567   : > { %v7599_v24 = vadd.f32 %v19716_v13, %v7208_v5  ;;  %v7601_v63 = vadd.f32 %v19728_v25, %v7210_v35  ;;  %v6824_v13 = vadd.f32 %v19581_v40, %v6434_v7  ;;  %v7992_v9 = vadd.f32 %v19730_v50, %v7602_v51  ;;  %v19869_v40 = vld [vmem:[%s21532_s3 + $0x2f8] sm:$0xff]  ;;  %v21894_v51 = vld [vmem:[#allocation76_spill] sm:$0xff]  ;;  %v21895_v7 = vld [vmem:[#allocation73_spill] sm:$0xff]  ;;  %v19898_v42 = vpop.f32.mrf.mxu0 }
 0x568   : > { %v19822_v37 = vpop.f32.mrf.mxu1  ;;  %v7603_v25 = vadd.f32 %v19745_v46, %v7212_v11  ;;  %15486 = vmatprep.subr.mxu1 %v19869_v40  ;;  %v6438_v46 = vadd.f32 %v19423_v54, %v19428_v6  ;;  %v7996_v54 = vadd.f32 %v19766_v59, %v7606_v41  ;;  %v21898_v11 = vld [vmem:[#allocation35_spill] sm:$0xff] }
 0x569   : > { %21892 = vst [vmem:[#allocation107_spill] sm:$0xff] %v19822_v37  ;;  %v7989_v5 = vadd.f32 %v19718_v52, %v7599_v24  ;;  %v7991_v17 = vadd.f32 %v19748_v45, %v7601_v63  ;;  %v7214_v27 = vadd.f32 %v19583_v55, %v6824_v13  ;;  %v21897_v63 = vld [vmem:[#allocation57_spill] sm:$0xff]  ;;  %v5276_v13 = vadd.f32 %v19444_v34, %v21898_v11  ;;  %v19926_v43 = vpop.f32.mrf.mxu0 }
 0x56a   : > { %v19828_v0 = vpop.f32.mrf.mxu1  ;;  %v7993_v28 = vadd.f32 %v19760_v1, %v7603_v25  ;;  %v6828_v35 = vadd.f32 %v19609_v21, %v6438_v46  ;;  %v21893_v1 = vld [vmem:[#allocation68_spill] sm:$0xff] }
 0x56b   : > { %v7605_v24 = vadd.f32 %v19752_v4, %v7214_v27  ;;  %v6440_v4 = vadd.f32 %v21893_v1, %v19438_v57  ;;  %v21900_v57 = vld [vmem:[#allocation78_spill] sm:$0xff]  ;;  %v21902_v25 = vld [vmem:[#allocation92_spill] sm:$0xff] }
 0x56c   : > { %v19837_v37 = vpop.f32.mrf.mxu1 }
 0x56d   : > { %v6830_v18 = vadd.f32 %v21900_v57, %v6440_v4  ;;  %v21912_v4 = vld [vmem:[#allocation45_spill] sm:$0xff] }
 0x56e   : > { %v19843_v8 = vpop.f32.mrf.mxu1 }
 0x570   : > { %v15160_v62 = vpop.f32.mrf.mxu1 }
 0x571   : > { %v8380_v23 = vadd.f32 %v15160_v62, %v7990_v32  ;;  %v7219_v62 = vadd.f32 %v21895_v7, %v21894_v51 }
 0x572   : > { %v8220_v39 = vpop.f32.mrf.mxu1 }
 0x573   : > { %v8412_v22 = vmax.f32 %v8380_v23, 0.0  ;;  %v8379_v14 = vadd.f32 %v8220_v39, %v7989_v5  ;;  %v21896_v5 = vld [vmem:[#allocation16_spill] sm:$0xff]  ;;  %v7607_v23 = vadd.f32 %v21897_v63, %v7216_v49  ;;  %v21899_v39 = vld [vmem:[#allocation23_spill] sm:$0xff] }
 0x574   : > { %v15163_v52 = vpop.f32.mrf.mxu1  ;;  %v7995_v21 = vadd.f32 %v21896_v5, %v7605_v24 }
 0x575   : > { %8445 = vst.msk [vmem:[#allocation4 + $0x21] sm:$0xff] %vm251_vm0, %v8412_v22  ;;  %v8411_v36 = vmax.f32 %v8379_v14, 0.0  ;;  %v8382_v50 = vadd.f32 %v15163_v52, %v7992_v9  ;;  %v7218_v9 = vadd.f32 %v21899_v39, %v6828_v35  ;;  %v21901_v52 = vld [vmem:[#allocation62_spill] sm:$0xff] }
 0x576   : > { %v8230_v10 = vpop.f32.mrf.mxu1  ;;  %v21915_v39 = vld [vmem:[#allocation70_spill] sm:$0xff] }
 0x577   : > { %8444 = vst.msk [vmem:[#allocation4 + $0x19] sm:$0xff] %vm251_vm0, %v8411_v36  ;;  %v8414_v45 = vmax.f32 %v8382_v50, 0.0  ;;  %v8381_v3 = vadd.f32 %v8230_v10, %v7991_v17  ;;  %v7998_v17 = vadd.f32 %v21901_v52, %v7608_v44  ;;  %v7610_v36 = vadd.f32 %v21902_v25, %v7219_v62  ;;  %v21903_v10 = vld [vmem:[#allocation37_spill] sm:$0xff]  ;;  %v21918_v52 = vld [vmem:[#allocation47_spill] sm:$0xff] }
 0x578   : > { %v15166_v55 = vpop.f32.mrf.mxu1  ;;  %v21910_v44 = vld [vmem:[#allocation61_spill] sm:$0xff] }
 0x579   : > { %8447 = vst.msk [vmem:[#allocation4 + $0x39] sm:$0xff] %vm251_vm0, %v8414_v45  ;;  %v8413_v48 = vmax.f32 %v8381_v3, 0.0  ;;  %v8384_v58 = vadd.f32 %v15166_v55, %v7994_v53  ;;  %v21904_v53 = vld [vmem:[#allocation19_spill] sm:$0xff] }
 0x57a   : > { %v8240_v32 = vpop.f32.mrf.mxu1  ;;  %v6442_v41 = vadd.f32 %v21904_v53, %v21903_v10  ;;  %v21905_v45 = vld [vmem:[#allocation75_spill] sm:$0xff] }
 0x57b   : > { %8446 = vst.msk [vmem:[#allocation4 + $0x31] sm:$0xff] %vm251_vm0, %v8413_v48  ;;  %v8416_v6 = vmax.f32 %v8384_v58, 0.0  ;;  %v8383_v2 = vadd.f32 %v8240_v32, %v7993_v28  ;;  %v21906_v3 = vld [vmem:[#allocation43_spill] sm:$0xff]  ;;  %v21907_v28 = vld [vmem:[#allocation97_spill] sm:$0xff]  ;;  %v21908_v48 = vld [vmem:[#allocation94_spill] sm:$0xff] }
 0x57c   : > { %v15169_v31 = vpop.f32.mrf.mxu1  ;;  %v19920_v20 = vld [vmem:[#allocation4 + $0x21] sm:$0xff]  ;;  %v7221_v46 = vadd.f32 %v21906_v3, %v21905_v45  ;;  %v7997_v24 = vadd.f32 %v21907_v28, %v7607_v23  ;;  %v7609_v58 = vadd.f32 %v21908_v48, %v7218_v9  ;;  %v21909_v32 = vld [vmem:[#allocation33_spill] sm:$0xff]  ;;  %v6832_v51 = vadd.f32 %v21912_v4, %v6442_v41 }
 0x57d   : > { %8449 = vst.msk [vmem:[#allocation4 + $0x51] sm:$0xff] %vm251_vm0, %v8416_v6  ;;  %v8415_v19 = vmax.f32 %v8383_v2, 0.0  ;;  %v8386_v59 = vadd.f32 %v15169_v31, %v7996_v54  ;;  %v5666_v54 = vadd.f32 %v21909_v32, %v5276_v13  ;;  %v5278_v6 = vadd.f32 %v19444_v34, %v21910_v44  ;;  %v21911_v2 = vld [vmem:[#allocation13_spill] sm:$0xff]  ;;  %v21914_v23 = vld [vmem:[#allocation95_spill] sm:$0xff]  ;;  %v21926_v4 = vld [vmem:[#allocation32_spill] sm:$0xff] }
 0x57e   : > { %v8250_v22 = vpop.f32.mrf.mxu1  ;;  %v19907_v14 = vld [vmem:[#allocation4 + $0x18] sm:$0xff]  ;;  %v19911_v47 = vld [vmem:[#allocation4 + $0x20] sm:$0xff]  ;;  %v7220_v1 = vadd.f32 %v21911_v2, %v6830_v18  ;;  %v21923_v28 = vld [vmem:[#allocation17_spill] sm:$0xff] }
 0x57f   : > { %v19909_v56 = vld [vmem:[#allocation4 + $0x19] sm:$0xff]  ;;  %8448 = vst.msk [vmem:[#allocation4 + $0x49] sm:$0xff] %vm251_vm0, %v8415_v19  ;;  %v8418_v50 = vmax.f32 %v8386_v59, 0.0  ;;  %v8385_v27 = vadd.f32 %v8250_v22, %v7995_v21  ;;  %15217 = vmatprep.mubr.msk.f32.mxu0 %vm251_vm0, %v19907_v14  ;;  %v21913_v21 = vld [vmem:[#allocation100_spill] sm:$0xff]  ;;  %v7612_v19 = vadd.f32 %v21914_v23, %v7221_v46  ;;  %v21924_v48 = vld [vmem:[#allocation77_spill] sm:$0xff] }
 0x580   : > { %15273 = vmatprep.mubr.msk.f32.mxu1 %vm251_vm0, %v19909_v56  ;;  %v15172_v55 = vpop.f32.mrf.mxu1  ;;  %15218 = vmatmul.mubr.msk.f32.gmra.mxu0 %vm251_vm0, %v19911_v47  ;;  %v8000_v63 = vadd.f32 %v21913_v21, %v7610_v36  ;;  %v19953_v13 = vld [vmem:[#allocation4 + $0x39] sm:$0xff]  ;;  %v19960_v36 = vpop.f32.mrf.mxu0  ;;  %v21922_v46 = vld [vmem:[#allocation64_spill] sm:$0xff] }
 0x581   : > { %15274 = vmatmul.mubr.msk.f32.gmra.mxu1 %vm251_vm0, %v19920_v20  ;;  %8451 = vst.msk [vmem:[#allocation4 + $0x69] sm:$0xff] %vm251_vm0, %v8418_v50  ;;  %v8417_v49 = vmax.f32 %v8385_v27, 0.0  ;;  %v8388_v35 = vadd.f32 %v15172_v55, %v7998_v17  ;;  %v21916_v9 = vld [vmem:[#allocation67_spill] sm:$0xff]  ;;  %v21919_v17 = vld [vmem:[#allocation26_spill] sm:$0xff]  ;;  %v5668_v55 = vadd.f32 %v21922_v46, %v5278_v6  ;;  %v21935_v46 = vld [vmem:[#allocation28_spill] sm:$0xff] }
 0x582   : > { %v8260_v7 = vpop.f32.mrf.mxu1  ;;  %v19940_v62 = vld [vmem:[#allocation4 + $0x30] sm:$0xff]  ;;  %v19944_v5 = vld [vmem:[#allocation4 + $0x38] sm:$0xff]  ;;  %v6444_v57 = vadd.f32 %v21916_v9, %v21915_v39  ;;  %v21917_v18 = vld [vmem:[#allocation11_spill] sm:$0xff]  ;;  %v7223_v25 = vadd.f32 %v21919_v17, %v21918_v52  ;;  %v19993_v9 = vpop.f32.mrf.mxu0 }
 0x583   : > { %v19942_v31 = vld [vmem:[#allocation4 + $0x31] sm:$0xff]  ;;  %8450 = vst.msk [vmem:[#allocation4 + $0x61] sm:$0xff] %vm251_vm0, %v8417_v49  ;;  %v8420_v59 = vmax.f32 %v8388_v35, 0.0  ;;  %v8387_v11 = vadd.f32 %v8260_v7, %v7997_v24  ;;  %15220 = vmatprep.mubr.msk.f32.mxu0 %vm251_vm0, %v19940_v62  ;;  %v6056_v22 = vadd.f32 %v21917_v18, %v5666_v54  ;;  %v21920_v27 = vld [vmem:[#allocation103_spill] sm:$0xff]  ;;  %v5280_v24 = vadd.f32 %v19444_v34, %v21923_v28  ;;  %v21931_v52 = vld [vmem:[#allocation60_spill] sm:$0xff] }
 0x584   : > { %15276 = vmatprep.mubr.msk.f32.mxu1 %vm251_vm0, %v19942_v31  ;;  %v15175_v50 = vpop.f32.mrf.mxu1  ;;  %15221 = vmatmul.mubr.msk.f32.gmra.mxu0 %vm251_vm0, %v19944_v5  ;;  %v7999_v10 = vadd.f32 %v21920_v27, %v7609_v58  ;;  %v21921_v53 = vld [vmem:[#allocation59_spill] sm:$0xff]  ;;  %v7222_v49 = vadd.f32 %v21924_v48, %v6832_v51  ;;  %v21925_v35 = vld [vmem:[#allocation46_spill] sm:$0xff]  ;;  %v7614_v7 = vadd.f32 %v21926_v4, %v7223_v25  ;;  %v21929_v39 = vld [vmem:[#allocation25_spill] sm:$0xff] }
 0x585   : > { %15277 = vmatmul.mubr.msk.f32.gmra.mxu1 %vm251_vm0, %v19953_v13  ;;  %v7611_v41 = vadd.f32 %v21921_v53, %v7220_v1  ;;  %8453 = vst.msk [vmem:[#allocation4 + $0x81] sm:$0xff] %vm251_vm0, %v8420_v59  ;;  %v8419_v45 = vmax.f32 %v8387_v11, 0.0  ;;  %v8390_v3 = vadd.f32 %v15175_v50, %v8000_v63  ;;  %v6834_v32 = vadd.f32 %v21925_v35, %v6444_v57  ;;  %v19987_v51 = vld [vmem:[#allocation4 + $0x51] sm:$0xff]  ;;  %v21937_v4 = vld [vmem:[#allocation39_spill] sm:$0xff] }
 0x586   : > { %v8270_v54 = vpop.f32.mrf.mxu1  ;;  %v19974_v44 = vld [vmem:[#allocation4 + $0x48] sm:$0xff]  ;;  %v19978_v58 = vld [vmem:[#allocation4 + $0x50] sm:$0xff]  ;;  %v8002_v1 = vadd.f32 %v19805_v61, %v7612_v19  ;;  %v21927_v63 = vld [vmem:[#allocation22_spill] sm:$0xff]  ;;  %v7613_v17 = vadd.f32 %v21931_v52, %v7222_v49 }
 0x587   : > { %v19976_v2 = vld [vmem:[#allocation4 + $0x49] sm:$0xff]  ;;  %8452 = vst.msk [vmem:[#allocation4 + $0x79] sm:$0xff] %vm251_vm0, %v8419_v45  ;;  %v8422_v6 = vmax.f32 %v8390_v3, 0.0  ;;  %v8389_v21 = vadd.f32 %v8270_v54, %v7999_v10  ;;  %15223 = vmatprep.mubr.msk.f32.mxu0 %vm251_vm0, %v19974_v44  ;;  %v6446_v23 = vadd.f32 %v21927_v63, %v6056_v22  ;;  %v8001_v18 = vadd.f32 %v19812_v29, %v7611_v41  ;;  %v21932_v50 = vld [vmem:[#allocation18_spill] sm:$0xff]  ;;  %v21934_v45 = vld [vmem:[#allocation79_spill] sm:$0xff] }
 0x588   : > { %15279 = vmatprep.mubr.msk.f32.mxu1 %vm251_vm0, %v19976_v2  ;;  %v21928_v59 = vld [vmem:[#allocation41_spill] sm:$0xff]  ;;  %v21930_v61 = vld [vmem:[#allocation80_spill] sm:$0xff]  ;;  %v15178_v57 = vpop.f32.mrf.mxu1  ;;  %15224 = vmatmul.mubr.msk.f32.gmra.mxu0 %vm251_vm0, %v19978_v58  ;;  %v5670_v27 = vadd.f32 %v21932_v50, %v5280_v24  ;;  %v21933_v10 = vld [vmem:[#allocation34_spill] sm:$0xff]  ;;  %v7224_v3 = vadd.f32 %v21934_v45, %v6834_v32  ;;  %v8004_v41 = vadd.f32 %v19820_v15, %v7614_v7 }
 0x589   : > { %v6058_v11 = vadd.f32 %v21928_v59, %v5668_v55  ;;  %v7225_v19 = vadd.f32 %v21930_v61, %v21929_v39  ;;  %15280 = vmatmul.mubr.msk.f32.gmra.mxu1 %vm251_vm0, %v19987_v51  ;;  %8455 = vst.msk [vmem:[#allocation4 + $0x99] sm:$0xff] %vm251_vm0, %v8422_v6  ;;  %v8421_v22 = vmax.f32 %v8389_v21, 0.0  ;;  %v8392_v25 = vadd.f32 %v15178_v57, %v8002_v1  ;;  %v21936_v49 = vld [vmem:[#allocation9_spill] sm:$0xff]  ;;  %v21940_v15 = vld [vmem:[#allocation82_spill] sm:$0xff]  ;;  %v20026_v59 = vpop.f32.mrf.mxu0  ;;  %v21942_v52 = vld [vmem:[#allocation63_spill] sm:$0xff] }
 0x58a   : > { %v5282_v53 = vadd.f32 %v19444_v34, %v21933_v10  ;;  %v6836_v55 = vadd.f32 %v21935_v46, %v6446_v23  ;;  %v8280_v28 = vpop.f32.mrf.mxu1  ;;  %v20007_v48 = vld [vmem:[#allocation4 + $0x60] sm:$0xff]  ;;  %v20011_v29 = vld [vmem:[#allocation4 + $0x68] sm:$0xff]  ;;  %v21938_v21 = vld [vmem:[#allocation69_spill] sm:$0xff]  ;;  %v8003_v61 = vadd.f32 %v19835_v38, %v7613_v17 }
 0x58b   : > { %v20009_v35 = vld [vmem:[#allocation4 + $0x61] sm:$0xff]  ;;  %v7616_v54 = vadd.f32 %v21936_v49, %v7225_v19  ;;  %8454 = vst.msk [vmem:[#allocation4 + $0x91] sm:$0xff] %vm251_vm0, %v8421_v22  ;;  %v8424_v24 = vmax.f32 %v8392_v25, 0.0  ;;  %v8391_v1 = vadd.f32 %v8280_v28, %v8001_v18  ;;  %15226 = vmatprep.mubr.msk.f32.mxu0 %vm251_vm0, %v20007_v48  ;;  %v20020_v32 = vld [vmem:[#allocation4 + $0x69] sm:$0xff]  ;;  %v6448_v6 = vadd.f32 %v21937_v4, %v6058_v11  ;;  %v21939_v23 = vld [vmem:[#allocation14_spill] sm:$0xff] }
 0x58c   : > { %15282 = vmatprep.mubr.msk.f32.mxu1 %vm251_vm0, %v20009_v35  ;;  %v6060_v63 = vadd.f32 %v21938_v21, %v5670_v27  ;;  %v7227_v7 = vadd.f32 %v21940_v15, %v21939_v23  ;;  %v15181_v39 = vpop.f32.mrf.mxu1  ;;  %15227 = vmatmul.mubr.msk.f32.gmra.mxu0 %vm251_vm0, %v20011_v29  ;;  %v21941_v19 = vld [vmem:[#allocation96_spill] sm:$0xff]  ;;  %v5672_v22 = vadd.f32 %v21942_v52, %v5282_v53  ;;  %v21943_v25 = vld [vmem:[#allocation66_spill] sm:$0xff]  ;;  %v21945_v45 = vld [vmem:[#allocation27_spill] sm:$0xff] }
 0x58d   : > { %15283 = vmatmul.mubr.msk.f32.gmra.mxu1 %vm251_vm0, %v20020_v32  ;;  %v7615_v57 = vadd.f32 %v21941_v19, %v7224_v3  ;;  %8457 = vst.msk [vmem:[#allocation4 + $0xb1] sm:$0xff] %vm251_vm0, %v8424_v24  ;;  %v8423_v11 = vmax.f32 %v8391_v1, 0.0  ;;  %v8394_v18 = vadd.f32 %v15181_v39, %v8004_v41  ;;  %v5284_v50 = vadd.f32 %v19444_v34, %v21943_v25  ;;  %v21944_v27 = vld [vmem:[#allocation50_spill] sm:$0xff]  ;;  %v21948_v1 = vld [vmem:[#allocation72_spill] sm:$0xff]  ;;  %v21949_v21 = vld [vmem:[#allocation21_spill] sm:$0xff] }
 0x58e   : > { %v7226_v10 = vadd.f32 %v21944_v27, %v6836_v55  ;;  %v6838_v46 = vadd.f32 %v21945_v45, %v6448_v6  ;;  %v8290_v28 = vpop.f32.mrf.mxu1  ;;  %v20040_v49 = vld [vmem:[#allocation4 + $0x78] sm:$0xff]  ;;  %v20044_v38 = vld [vmem:[#allocation4 + $0x80] sm:$0xff]  ;;  %v8006_v17 = vadd.f32 %v19850_v16, %v7616_v54  ;;  %v6450_v6 = vadd.f32 %v21948_v1, %v6060_v63  ;;  %v21950_v15 = vld [vmem:[#allocation81_spill] sm:$0xff] }
 0x58f   : > { %v20042_v4 = vld [vmem:[#allocation4 + $0x79] sm:$0xff]  ;;  %8456 = vst.msk [vmem:[#allocation4 + $0xa9] sm:$0xff] %vm251_vm0, %v8423_v11  ;;  %v8426_v53 = vmax.f32 %v8394_v18, 0.0  ;;  %v8393_v24 = vadd.f32 %v8290_v28, %v8003_v61  ;;  %15229 = vmatprep.mubr.msk.f32.mxu0 %vm251_vm0, %v20040_v49  ;;  %v20053_v55 = vld [vmem:[#allocation4 + $0x81] sm:$0xff]  ;;  %v6062_v23 = vadd.f32 %v21949_v21, %v5672_v22  ;;  %v8005_v61 = vadd.f32 %v19864_v60, %v7615_v57  ;;  %v21955_v45 = vld [vmem:[#allocation49_spill] sm:$0xff] }
 0x590   : > { %v21946_v3 = vld [vmem:[#allocation98_spill] sm:$0xff]  ;;  %15285 = vmatprep.mubr.msk.f32.mxu1 %vm251_vm0, %v20042_v4  ;;  %21947 = vst [vmem:[#allocation68_spill] sm:$0xff] %v20053_v55  ;;  %v21951_v16 = vld [vmem:[#allocation48_spill] sm:$0xff]  ;;  %v15184_v39 = vpop.f32.mrf.mxu1  ;;  %15230 = vmatmul.mubr.msk.f32.gmra.mxu0 %vm251_vm0, %v20044_v38  ;;  %v21952_v19 = vld [vmem:[#allocation99_spill] sm:$0xff]  ;;  %v7228_v28 = vadd.f32 %v21955_v45, %v6838_v46 }
 0x591   : > { %v7618_v41 = vadd.f32 %v21946_v3, %v7227_v7  ;;  %v7229_v54 = vadd.f32 %v21951_v16, %v21950_v15  ;;  %v20059_v7 = vpop.f32.mrf.mxu0  ;;  %15286 = vmatmul.mubr.msk.f32.gmra.mxu1 %vm251_vm0, %v20053_v55  ;;  %v7617_v11 = vadd.f32 %v21952_v19, %v7226_v10  ;;  %8459 = vst.msk [vmem:[#allocation4 + $0xc9] sm:$0xff] %vm251_vm0, %v8426_v53  ;;  %v8425_v63 = vmax.f32 %v8393_v24, 0.0  ;;  %v21953_v52 = vld [vmem:[#allocation10_spill] sm:$0xff]  ;;  %v21954_v25 = vld [vmem:[#allocation20_spill] sm:$0xff]  ;;  %v21956_v3 = vld [vmem:[#allocation15_spill] sm:$0xff] }
 0x592   : > { %v8396_v18 = vadd.f32 %v15184_v39, %v8006_v17  ;;  %v5674_v22 = vadd.f32 %v21953_v52, %v5284_v50  ;;  %v5286_v27 = vadd.f32 %v19444_v34, %v21954_v25  ;;  %v6840_v1 = vadd.f32 %v21956_v3, %v6450_v6  ;;  %v8300_v21 = vpop.f32.mrf.mxu1  ;;  %v20073_v15 = vld [vmem:[#allocation4 + $0x90] sm:$0xff]  ;;  %v20077_v60 = vld [vmem:[#allocation4 + $0x98] sm:$0xff]  ;;  %v21960_v24 = vld [vmem:[#allocation40_spill] sm:$0xff] }
 0x593   : > { %v20075_v16 = vld [vmem:[#allocation4 + $0x91] sm:$0xff]  ;;  %v8008_v57 = vadd.f32 %v19884_v12, %v7618_v41  ;;  %8458 = vst.msk [vmem:[#allocation4 + $0xc1] sm:$0xff] %vm251_vm0, %v8425_v63  ;;  %v8395_v53 = vadd.f32 %v8300_v21, %v8005_v61  ;;  %15232 = vmatprep.mubr.msk.f32.mxu0 %vm251_vm0, %v20073_v15  ;;  %v20086_v46 = vld [vmem:[#allocation4 + $0x99] sm:$0xff]  ;;  %v6452_v6 = vadd.f32 %v21960_v24, %v6062_v23  ;;  %v21966_v21 = vld [vmem:[#allocation36_spill] sm:$0xff] }
 0x594   : > { %21957 = vst [vmem:[#allocation76_spill] sm:$0xff] %v20075_v16  ;;  %v21958_v10 = vld [vmem:[#allocation101_spill] sm:$0xff]  ;;  %v8428_v50 = vmax.f32 %v8396_v18, 0.0  ;;  %15288 = vmatprep.mubr.msk.f32.mxu1 %vm251_vm0, %v20075_v16  ;;  %21959 = vst [vmem:[#allocation73_spill] sm:$0xff] %v20086_v46  ;;  %v21961_v39 = vld [vmem:[#allocation71_spill] sm:$0xff]  ;;  %v15187_v63 = vpop.f32.mrf.mxu1  ;;  %15233 = vmatmul.mubr.msk.f32.gmra.mxu0 %vm251_vm0, %v20077_v60  ;;  %v8007_v61 = vadd.f32 %v19898_v42, %v7617_v11 }
 0x595   : > { %v7620_v17 = vadd.f32 %v21958_v10, %v7229_v54  ;;  %v6064_v19 = vadd.f32 %v21961_v39, %v5674_v22  ;;  %v21962_v52 = vld [vmem:[#allocation85_spill] sm:$0xff]  ;;  %v21963_v12 = vld [vmem:[#allocation83_spill] sm:$0xff]  ;;  %v20092_v54 = vpop.f32.mrf.mxu0  ;;  %15289 = vmatmul.mubr.msk.f32.gmra.mxu1 %vm251_vm0, %v20086_v46  ;;  %v21964_v18 = vld [vmem:[#allocation102_spill] sm:$0xff]  ;;  %v8427_v23 = vmax.f32 %v8395_v53, 0.0  ;;  %v8398_v22 = vadd.f32 %v15187_v63, %v8008_v57 }
 0x596   : > { %v7231_v41 = vadd.f32 %v21963_v12, %v21962_v52  ;;  %v7619_v25 = vadd.f32 %v21964_v18, %v7228_v28  ;;  %8461 = vst.msk [vmem:[#allocation4 + $0xe1] sm:$0xff] %vm251_vm0, %v8428_v50  ;;  %v21965_v45 = vld [vmem:[#allocation38_spill] sm:$0xff]  ;;  %v5288_v10 = vadd.f32 %v19444_v34, %v21966_v21  ;;  %v21968_v52 = vld [vmem:[#allocation84_spill] sm:$0xff]  ;;  %v8310_v16 = vpop.f32.mrf.mxu1  ;;  %v20110_v42 = vld [vmem:[#allocation4 + $0xb0] sm:$0xff] }
 0x597   : > { %v5676_v3 = vadd.f32 %v21965_v45, %v5286_v27  ;;  %v21967_v24 = vld [vmem:[#allocation30_spill] sm:$0xff]  ;;  %v6842_v12 = vadd.f32 %v21968_v52, %v6452_v6  ;;  %v20106_v55 = vld [vmem:[#allocation4 + $0xa8] sm:$0xff]  ;;  %v8010_v11 = vadd.f32 %v19926_v43, %v7620_v17  ;;  %8460 = vst.msk [vmem:[#allocation4 + $0xd9] sm:$0xff] %vm251_vm0, %v8427_v23  ;;  %v8430_v27 = vmax.f32 %v8398_v22, 0.0  ;;  %v21973_v18 = vld [vmem:[#allocation51_spill] sm:$0xff] }
 0x598   : > { %v7230_v39 = vadd.f32 %v21967_v24, %v6840_v1  ;;  %v20108_v46 = vld [vmem:[#allocation4 + $0xa9] sm:$0xff]  ;;  %v8397_v50 = vadd.f32 %v8310_v16, %v8007_v61  ;;  %15235 = vmatprep.mubr.msk.f32.mxu0 %vm251_vm0, %v20106_v55  ;;  %v20119_v34 = vld [vmem:[#allocation4 + $0xb1] sm:$0xff]  ;;  %v15190_v23 = vpop.f32.mrf.mxu1  ;;  %v8009_v16 = vadd.f32 %v19960_v36, %v7619_v25  ;;  %v21977_v24 = vld [vmem:[#allocation87_spill] sm:$0xff] }
 0x599   : > { %v21969_v28 = vld [vmem:[#allocation104_spill] sm:$0xff]  ;;  %15291 = vmatprep.mubr.msk.f32.mxu1 %vm251_vm0, %v20108_v46  ;;  %21970 = vst [vmem:[#allocation16_spill] sm:$0xff] %v20119_v34  ;;  %v21971_v1 = vld [vmem:[#allocation74_spill] sm:$0xff]  ;;  %v21974_v43 = vld [vmem:[#allocation53_spill] sm:$0xff]  ;;  %15236 = vmatmul.mubr.msk.f32.gmra.mxu0 %vm251_vm0, %v20110_v42  ;;  %v8400_v45 = vadd.f32 %v15190_v23, %v8010_v11  ;;  %v7232_v52 = vadd.f32 %v21977_v24, %v6842_v12 }
 0x59a   : > { %v7622_v57 = vadd.f32 %v21969_v28, %v7231_v41  ;;  %v6454_v53 = vadd.f32 %v21971_v1, %v6064_v19  ;;  %v21972_v6 = vld [vmem:[#allocation12_spill] sm:$0xff]  ;;  %v7233_v17 = vadd.f32 %v21974_v43, %v21973_v18  ;;  %v20125_v41 = vpop.f32.mrf.mxu0  ;;  %15292 = vmatmul.mubr.msk.f32.gmra.mxu1 %vm251_vm0, %v20119_v34  ;;  %v21975_v61 = vld [vmem:[#allocation105_spill] sm:$0xff]  ;;  %8463 = vst.msk [vmem:[#allocation4 + $0xf9] sm:$0xff] %vm251_vm0, %v8430_v27  ;;  %v8429_v19 = vmax.f32 %v8397_v50, 0.0  ;;  %v21978_v28 = vld [vmem:[#allocation86_spill] sm:$0xff] }
 0x59b   : > { %v6066_v63 = vadd.f32 %v21972_v6, %v5676_v3  ;;  %v7621_v22 = vadd.f32 %v21975_v61, %v7230_v39  ;;  %v21976_v3 = vld [vmem:[#allocation65_spill] sm:$0xff]  ;;  %v8320_v6 = vpop.f32.mrf.mxu1  ;;  %v20137_v18 = vld [vmem:[#allocation4 + $0xc0] sm:$0xff]  ;;  %v20141_v34 = vld [vmem:[#allocation4 + $0xc8] sm:$0xff]  ;;  %v8432_v39 = vmax.f32 %v8400_v45, 0.0  ;;  %v7623_v61 = vadd.f32 %v19810_v33, %v7232_v52 }
 0x59c   : > { %v5678_v21 = vadd.f32 %v21976_v3, %v5288_v10  ;;  %v6844_v1 = vadd.f32 %v21978_v28, %v6454_v53  ;;  %v20139_v43 = vld [vmem:[#allocation4 + $0xc1] sm:$0xff]  ;;  %v8012_v36 = vadd.f32 %v19993_v9, %v7622_v57  ;;  %v7624_v25 = vadd.f32 %v19807_v30, %v7233_v17  ;;  %8462 = vst.msk [vmem:[#allocation4 + $0xf1] sm:$0xff] %vm251_vm0, %v8429_v19  ;;  %v20150_v10 = vld [vmem:[#allocation4 + $0xc9] sm:$0xff]  ;;  %v7960_v30 = vpop.f32.mrf.mxu0 }
 0x59d   : > { %v8399_v11 = vadd.f32 %v8320_v6, %v8009_v16  ;;  %15238 = vmatprep.mubr.msk.f32.mxu0 %vm251_vm0, %v20137_v18  ;;  %15294 = vmatprep.mubr.msk.f32.mxu1 %vm251_vm0, %v20139_v43  ;;  %v21979_v12 = vld [vmem:[#allocation24_spill] sm:$0xff]  ;;  %v21982_v9 = vld [vmem:[#allocation29_spill] sm:$0xff]  ;;  %v15193_v17 = vpop.f32.mrf.mxu1  ;;  %v8011_v16 = vadd.f32 %v20026_v59, %v7621_v22  ;;  %8465 = vst.msk [vmem:[#allocation4 + $0x111] sm:$0xff] %vm251_vm0, %v8432_v39  ;;  %v21985_v59 = vld [vmem:[#allocation106_spill] sm:$0xff] }
 0x59e   : > { %v6456_v27 = vadd.f32 %v21979_v12, %v6066_v63  ;;  %v21980_v50 = vld [vmem:[#allocation44_spill] sm:$0xff]  ;;  %15239 = vmatmul.mubr.msk.f32.gmra.mxu0 %vm251_vm0, %v20141_v34  ;;  %15295 = vmatmul.mubr.msk.f32.gmra.mxu1 %vm251_vm0, %v20150_v10  ;;  %v8402_v19 = vadd.f32 %v15193_v17, %v8012_v36  ;;  %v21983_v45 = vld [vmem:[#allocation89_spill] sm:$0xff]  ;;  %v20165_v6 = vld [vmem:[#allocation4 + $0xd8] sm:$0xff] }
 0x59f   : > { %v6068_v53 = vadd.f32 %v21980_v50, %v5678_v21  ;;  %v21981_v23 = vld [vmem:[#allocation52_spill] sm:$0xff]  ;;  %v8431_v63 = vmax.f32 %v8399_v11, 0.0  ;;  %v7234_v3 = vadd.f32 %v21983_v45, %v6844_v1  ;;  %v21984_v21 = vld [vmem:[#allocation54_spill] sm:$0xff]  ;;  %v8330_v28 = vpop.f32.mrf.mxu1  ;;  %v20169_v50 = vld [vmem:[#allocation4 + $0xe0] sm:$0xff]  ;;  %15241 = vmatprep.mubr.msk.f32.mxu0 %vm251_vm0, %v20165_v6 }
 0x5a0   : > { %v7235_v57 = vadd.f32 %v21982_v9, %v21981_v23  ;;  %v6846_v24 = vadd.f32 %v21984_v21, %v6456_v27  ;;  %v20167_v12 = vld [vmem:[#allocation4 + $0xd9] sm:$0xff]  ;;  %v8014_v23 = vadd.f32 %v20059_v7, %v7624_v25  ;;  %v8434_v33 = vmax.f32 %v8402_v19, 0.0  ;;  %v20178_v1 = vld [vmem:[#allocation4 + $0xe1] sm:$0xff]  ;;  %v15146_v7 = vpop.f32.mrf.mxu0 }
 0x5a1   : > { %8464 = vst.msk [vmem:[#allocation4 + $0x109] sm:$0xff] %vm251_vm0, %v8431_v63  ;;  %v8401_v52 = vadd.f32 %v8330_v28, %v8011_v16  ;;  %15297 = vmatprep.mubr.msk.f32.mxu1 %vm251_vm0, %v20167_v12  ;;  %v21986_v36 = vld [vmem:[#allocation42_spill] sm:$0xff]  ;;  %v21987_v11 = vld [vmem:[#allocation56_spill] sm:$0xff]  ;;  %v21988_v27 = vld [vmem:[#allocation31_spill] sm:$0xff]  ;;  %v15196_v25 = vpop.f32.mrf.mxu1  ;;  %v7625_v17 = vadd.f32 %v19817_v26, %v7234_v3 }
 0x5a2   : > { %v7626_v22 = vadd.f32 %v21985_v59, %v7235_v57  ;;  %v6458_v39 = vadd.f32 %v21986_v36, %v6068_v53  ;;  %v7237_v9 = vadd.f32 %v21988_v27, %v21987_v11  ;;  %15242 = vmatmul.mubr.msk.f32.gmra.mxu0 %vm251_vm0, %v20169_v50  ;;  %15298 = vmatmul.mubr.msk.f32.gmra.mxu1 %vm251_vm0, %v20178_v1  ;;  %v21989_v53 = vld [vmem:[#allocation88_spill] sm:$0xff]  ;;  %v21990_v45 = vld [vmem:[#allocation90_spill] sm:$0xff] }
 0x5a3   : > { %v8013_v57 = vadd.f32 %v20092_v54, %v7623_v61  ;;  %8467 = vst.msk [vmem:[#allocation4 + $0x129] sm:$0xff] %vm251_vm0, %v8434_v33  ;;  %v8433_v16 = vmax.f32 %v8401_v52, 0.0  ;;  %v8404_v63 = vadd.f32 %v15196_v25, %v8014_v23  ;;  %v7236_v19 = vadd.f32 %v21989_v53, %v6846_v24  ;;  %v8340_v28 = vpop.f32.mrf.mxu1  ;;  %v20192_v59 = vld [vmem:[#allocation4 + $0xf0] sm:$0xff]  ;;  %v20196_v11 = vld [vmem:[#allocation4 + $0xf8] sm:$0xff]  ;;  %v21991_v54 = vld [vmem:[#allocation107_spill] sm:$0xff] }
 0x5a4   : > { %v6848_v21 = vadd.f32 %v21990_v45, %v6458_v39  ;;  %v20194_v36 = vld [vmem:[#allocation4 + $0xf1] sm:$0xff]  ;;  %v8016_v27 = vadd.f32 %v20125_v41, %v7626_v22  ;;  %v7628_v61 = vadd.f32 %v21991_v54, %v7237_v9  ;;  %15244 = vmatprep.mubr.msk.f32.mxu0 %vm251_vm0, %v20192_v59  ;;  %v20205_v24 = vld [vmem:[#allocation4 + $0xf9] sm:$0xff]  ;;  %v7970_v39 = vpop.f32.mrf.mxu0  ;;  %v8015_v41 = vadd.f32 %v7960_v30, %v7625_v17 }
 0x5a5   : > { %8466 = vst.msk [vmem:[#allocation4 + $0x121] sm:$0xff] %vm251_vm0, %v8433_v16  ;;  %v8436_v26 = vmax.f32 %v8404_v63, 0.0  ;;  %v8403_v3 = vadd.f32 %v8340_v28, %v8013_v57  ;;  %15300 = vmatprep.mubr.msk.f32.mxu1 %vm251_vm0, %v20194_v36  ;;  %21992 = vst [vmem:[#allocation57_spill] sm:$0xff] %v20205_v24  ;;  %v21993_v23 = vld [vmem:[#allocation55_spill] sm:$0xff]  ;;  %v15199_v25 = vpop.f32.mrf.mxu1  ;;  %v7627_v22 = vadd.f32 %v19828_v0, %v7236_v19  ;;  %v21995_v16 = vld [vmem:[#allocation93_spill] sm:$0xff] }
 0x5a6   : > { %v21994_v33 = vld [vmem:[#allocation91_spill] sm:$0xff]  ;;  %15245 = vmatmul.mubr.msk.f32.gmra.mxu0 %vm251_vm0, %v20196_v11  ;;  %15301 = vmatmul.mubr.msk.f32.gmra.mxu1 %vm251_vm0, %v20205_v24  ;;  %v8406_v57 = vadd.f32 %v15199_v25, %v8016_v27  ;;  %v7238_v63 = vadd.f32 %v21995_v16, %v6848_v21  ;;  %v15149_v53 = vpop.f32.mrf.mxu0  ;;  %v20228_v17 = vld [vmem:[#allocation4 + $0x111] sm:$0xff] }
 0x5a7   : > { %v7239_v52 = vadd.f32 %v21994_v33, %v21993_v23  ;;  %8469 = vst.msk [vmem:[#allocation4 + $0x141] sm:$0xff] %vm251_vm0, %v8436_v26  ;;  %v8435_v9 = vmax.f32 %v8403_v3, 0.0  ;;  %v8350_v45 = vpop.f32.mrf.mxu1  ;;  %v8018_v33 = vadd.f32 %v15146_v7, %v7628_v61 }
 0x5a8   : > { %v20216_v28 = vld [vmem:[#allocation4 + $0x108] sm:$0xff]  ;;  %v20220_v23 = vld [vmem:[#allocation4 + $0x110] sm:$0xff]  ;;  %v8438_v0 = vmax.f32 %v8406_v57, 0.0  ;;  %v8405_v30 = vadd.f32 %v8350_v45, %v8015_v41  ;;  %v7629_v7 = vadd.f32 %v19843_v8, %v7238_v63  ;;  %v7980_v61 = vpop.f32.mrf.mxu0 }
 0x5a9   : > { %v20218_v54 = vld [vmem:[#allocation4 + $0x109] sm:$0xff]  ;;  %v7630_v24 = vadd.f32 %v19837_v37, %v7239_v52  ;;  %8468 = vst.msk [vmem:[#allocation4 + $0x139] sm:$0xff] %vm251_vm0, %v8435_v9  ;;  %15247 = vmatprep.mubr.msk.f32.mxu0 %vm251_vm0, %v20216_v28  ;;  %v15202_v19 = vpop.f32.mrf.mxu1  ;;  %v8017_v37 = vadd.f32 %v7970_v39, %v7627_v22 }
 0x5aa   : > { %15303 = vmatprep.mubr.msk.f32.mxu1 %vm251_vm0, %v20218_v54  ;;  %15248 = vmatmul.mubr.msk.f32.gmra.mxu0 %vm251_vm0, %v20220_v23  ;;  %8471 = vst.msk [vmem:[#allocation4 + $0x159] sm:$0xff] %vm251_vm0, %v8438_v0  ;;  %v8437_v21 = vmax.f32 %v8405_v30, 0.0  ;;  %v8408_v27 = vadd.f32 %v15202_v19, %v8018_v33  ;;  %v20247_v8 = vld [vmem:[#allocation4 + $0x129] sm:$0xff] }
 0x5ab   : > { %15304 = vmatmul.mubr.msk.f32.gmra.mxu1 %vm251_vm0, %v20228_v17  ;;  %v8360_v26 = vpop.f32.mrf.mxu1  ;;  %v8020_v41 = vadd.f32 %v15149_v53, %v7630_v24  ;;  %v8019_v24 = vadd.f32 %v7980_v61, %v7629_v7 }
 0x5ac   : > { %v20236_v3 = vld [vmem:[#allocation4 + $0x120] sm:$0xff]  ;;  %v20240_v25 = vld [vmem:[#allocation4 + $0x128] sm:$0xff]  ;;  %8470 = vst.msk [vmem:[#allocation4 + $0x151] sm:$0xff] %vm251_vm0, %v8437_v21  ;;  %v8440_v9 = vmax.f32 %v8408_v27, 0.0  ;;  %v8407_v57 = vadd.f32 %v8360_v26, %v8017_v37 }
 0x5ad   : > { %v20238_v52 = vld [vmem:[#allocation4 + $0x121] sm:$0xff]  ;;  %15250 = vmatprep.mubr.msk.f32.mxu0 %vm251_vm0, %v20236_v3  ;;  %v15205_v39 = vpop.f32.mrf.mxu1 }
 0x5ae   : > { %15306 = vmatprep.mubr.msk.f32.mxu1 %vm251_vm0, %v20238_v52  ;;  %15251 = vmatmul.mubr.msk.f32.gmra.mxu0 %vm251_vm0, %v20240_v25  ;;  %8473 = vst.msk [vmem:[#allocation4 + $0x171] sm:$0xff] %vm251_vm0, %v8440_v9  ;;  %v8439_v22 = vmax.f32 %v8407_v57, 0.0  ;;  %v8410_v16 = vadd.f32 %v15205_v39, %v8020_v41  ;;  %v20265_v19 = vld [vmem:[#allocation4 + $0x141] sm:$0xff] }
 0x5af   : > { %15307 = vmatmul.mubr.msk.f32.gmra.mxu1 %vm251_vm0, %v20247_v8  ;;  %v8370_v63 = vpop.f32.mrf.mxu1  ;;  %v9265_v26 = vld [vmem:[#allocation4 + $0x2] sm:$0xff] }
 0x5b0   : > { %v20254_v53 = vld [vmem:[#allocation4 + $0x138] sm:$0xff]  ;;  %v20258_v33 = vld [vmem:[#allocation4 + $0x140] sm:$0xff]  ;;  %8472 = vst.msk [vmem:[#allocation4 + $0x169] sm:$0xff] %vm251_vm0, %v8439_v22  ;;  %v8442_v0 = vmax.f32 %v8410_v16, 0.0  ;;  %v8409_v30 = vadd.f32 %v8370_v63, %v8019_v24  ;;  %v9266_v24 = vld [vmem:[#allocation4 + $0xa] sm:$0xff] }
 0x5b1   : > { %v20256_v45 = vld [vmem:[#allocation4 + $0x139] sm:$0xff]  ;;  %15253 = vmatprep.mubr.msk.f32.mxu0 %vm251_vm0, %v20254_v53  ;;  %v13041_v22 = vld [vmem:[%s21532_s3 + $0x2d0] sm:$0xff] }
 0x5b2   : > { %15309 = vmatprep.mubr.msk.f32.mxu1 %vm251_vm0, %v20256_v45  ;;  %15254 = vmatmul.mubr.msk.f32.gmra.mxu0 %vm251_vm0, %v20258_v33  ;;  %8475 = vst.msk [vmem:[#allocation4 + $0x189] sm:$0xff] %vm251_vm0, %v8442_v0  ;;  %v8441_v37 = vmax.f32 %v8409_v30, 0.0  ;;  %v20283_v61 = vld [vmem:[#allocation4 + $0x159] sm:$0xff]  ;;  %v20326_v0 = vld [vmem:[#allocation4 + $0x22] sm:$0xff]  ;;  %v13077_v30 = vld [vmem:[%s21532_s3 + $0x2f0] sm:$0xff] }
 0x5b3   : > { %15310 = vmatmul.mubr.msk.f32.gmra.mxu1 %vm251_vm0, %v20265_v19  ;;  %v20272_v7 = vld [vmem:[#allocation4 + $0x150] sm:$0xff]  ;;  %v20276_v27 = vld [vmem:[#allocation4 + $0x158] sm:$0xff] }
 0x5b4   : > { %v20274_v21 = vld [vmem:[#allocation4 + $0x151] sm:$0xff]  ;;  %8474 = vst.msk [vmem:[#allocation4 + $0x181] sm:$0xff] %vm251_vm0, %v8441_v37  ;;  %15256 = vmatprep.mubr.msk.f32.mxu0 %vm251_vm0, %v20272_v7  ;;  %v20314_v16 = vld [vmem:[#allocation4 + $0x1a] sm:$0xff]  ;;  %v15216_v37 = vpop.f32.mrf.mxu0 }
 0x5b5   : > { %15312 = vmatprep.mubr.msk.f32.mxu1 %vm251_vm0, %v20274_v21  ;;  %v20299_v39 = vld [vmem:[#allocation4 + $0x171] sm:$0xff] }
 0x5b6   : > { %15257 = vmatmul.mubr.msk.f32.gmra.mxu0 %vm251_vm0, %v20276_v27  ;;  %v21996_v63 = vld [vmem:[#allocation58_spill] sm:$0xff] }
 0x5b7   : > { %15313 = vmatmul.mubr.msk.f32.gmra.mxu1 %vm251_vm0, %v20283_v61  ;;  %v20289_v41 = vld [vmem:[#allocation4 + $0x168] sm:$0xff]  ;;  %v20293_v57 = vld [vmem:[#allocation4 + $0x170] sm:$0xff] }
 0x5b8   : > { %v20291_v9 = vld [vmem:[#allocation4 + $0x169] sm:$0xff]  ;;  %15259 = vmatprep.mubr.msk.f32.mxu0 %vm251_vm0, %v20289_v41 }
 0x5b9   : > { %15315 = vmatprep.mubr.msk.f32.mxu1 %vm251_vm0, %v20291_v9 }
 0x5ba   : > { %15260 = vmatmul.mubr.msk.f32.gmra.mxu0 %vm251_vm0, %v20293_v57 }
 0x5bb   : > { %15316 = vmatmul.mubr.msk.f32.gmra.mxu1 %vm251_vm0, %v20299_v39  ;;  %15326 = vmatprep.mubr.msk.f32.mxu0 %vm251_vm0, %v9265_v26 }
 0x5bc   : > { %15382 = vmatprep.mubr.msk.f32.mxu1 %vm251_vm0, %v19907_v14  ;;  %v20324_v14 = vld [vmem:[%s21533_s4 + $0x2] ss:$0 sm:$0xff] }
 0x5be   : > { %15327 = vmatmul.mubr.msk.f32.vlgmr.msra.gmra.mxu0 %vm251_vm0, %v9266_v24  ;;  %v20346_v24 = vld [vmem:[#allocation4 + $0x3a] sm:$0xff] }
 0x5bf   : > { %15383 = vmatmul.mubr.msk.f32.vlgmr.msra.gmra.mxu1 %vm251_vm0, %v19911_v47  ;;  %15431 = vmatpush3.msra.mxu0 %v21996_v63  ;;  %v13040_v47 = vld [vmem:[%s21532_s3 + $0x2c8] sm:$0xff] }
 0x5c0   : > { %15329 = vmatprep.mubr.msk.f32.mxu0 %vm251_vm0, %v20314_v16  ;;  %15385 = vmatprep.mubr.msk.f32.mxu1 %vm251_vm0, %v19940_v62  ;;  %v20339_v62 = vld [vmem:[#allocation4 + $0x32] sm:$0xff]  ;;  %v15272_v26 = vpop.f32.mrf.mxu1 }
 0x5c1   : > { %15432 = vmatprep.subr.mxu0 %v13041_v22  ;;  %15487 = vmatpush3.msra.mxu1 %v19869_v40  ;;  %v8844_v40 = vadd.f32 %v15216_v37, %v20324_v14  ;;  %v20387_v37 = vld [vmem:[#allocation4 + $0x6a] sm:$0xff] }
 0x5c2   : > { %15433 = vmatpush3.msra.mxu0 %v13041_v22  ;;  %15488 = vmatprep.subr.mxu1 %v13077_v30  ;;  %v13076_v22 = vld [vmem:[%s21532_s3 + $0x2e8] sm:$0xff] }
 0x5c3   : > { %15330 = vmatmul.mubr.msk.f32.gmra.mxu0 %vm251_vm0, %v20326_v0  ;;  %15386 = vmatmul.mubr.msk.f32.gmra.mxu1 %vm251_vm0, %v19944_v5  ;;  %v13039_v5 = vld [vmem:[%s21532_s3 + $0x2c0] sm:$0xff]  ;;  %v20354_v63 = vadd.f32 %v15272_v26, %v8844_v40  ;;  %v20392_v40 = vld [vmem:[%s21532_s3 + $0x338] sm:$0xff] }
 0x5c4   : > { %15332 = vmatprep.mubr.msk.f32.mxu0 %vm251_vm0, %v20339_v62  ;;  %15388 = vmatprep.mubr.msk.f32.mxu1 %vm251_vm0, %v19974_v44  ;;  %v20360_v44 = vld [vmem:[#allocation4 + $0x4a] sm:$0xff]  ;;  %v20411_v26 = vld [vmem:[#allocation4 + $0x92] sm:$0xff] }
 0x5c5   : > { %15434 = vmatprep.subr.mxu0 %v13040_v47  ;;  %15489 = vmatpush3.msra.mxu1 %v13077_v30  ;;  %v13075_v30 = vld [vmem:[%s21532_s3 + $0x2e0] sm:$0xff] }
 0x5c6   : > { %15435 = vmatpush3.msra.mxu0 %v13040_v47  ;;  %15490 = vmatprep.subr.mxu1 %v13076_v22  ;;  %v20366_v47 = vld [vmem:[#allocation4 + $0x52] sm:$0xff] }
 0x5c7   : > { %15333 = vmatmul.mubr.msk.f32.gmra.mxu0 %vm251_vm0, %v20346_v24  ;;  %15389 = vmatmul.mubr.msk.f32.gmra.mxu1 %vm251_vm0, %v19978_v58  ;;  %v20374_v58 = vld [vmem:[%s21532_s3 + $0x318] sm:$0xff] }
 0x5c8   : > { %15335 = vmatprep.mubr.msk.f32.mxu0 %vm251_vm0, %v20360_v44  ;;  %15391 = vmatprep.mubr.msk.f32.mxu1 %vm251_vm0, %v20007_v48  ;;  %v20380_v48 = vld [vmem:[#allocation4 + $0x62] sm:$0xff] }
 0x5c9   : > { %15436 = vmatprep.subr.mxu0 %v13039_v5  ;;  %15491 = vmatpush3.msra.mxu1 %v13076_v22  ;;  %v10830_v22 = vld [vmem:[#allocation4 + $0x60] sm:$0xff] }
 0x5ca   : > { %15437 = vmatpush3.msra.mxu0 %v13039_v5  ;;  %15492 = vmatprep.subr.mxu1 %v13075_v30  ;;  %v20521_v5 = vld [vmem:[#allocation4 + $0x180] sm:$0xff] }
 0x5cb   : > { %15336 = vmatmul.mubr.msk.f32.gmra.mxu0 %vm251_vm0, %v20366_v47  ;;  %15392 = vmatmul.mubr.msk.f32.gmra.mxu1 %vm251_vm0, %v20011_v29  ;;  %v20398_v29 = vld [vmem:[#allocation4 + $0x7a] sm:$0xff] }
 0x5cc   : > { %15338 = vmatprep.mubr.msk.f32.mxu0 %vm251_vm0, %v20380_v48  ;;  %15394 = vmatprep.mubr.msk.f32.mxu1 %vm251_vm0, %v20040_v49  ;;  %v20405_v49 = vld [vmem:[#allocation4 + $0x82] sm:$0xff] }
 0x5cd   : > { %15542 = vmatprep.subr.mxu0 %v20374_v58  ;;  %15493 = vmatpush3.msra.mxu1 %v13075_v30 }
 0x5ce   : > { %15598 = vmatprep.subr.mxu1 %v20392_v40 }
 0x5cf   : > { %15339 = vmatmul.mubr.msk.f32.gmra.mxu0 %vm251_vm0, %v20387_v37  ;;  %15395 = vmatmul.mubr.msk.f32.gmra.mxu1 %vm251_vm0, %v20044_v38  ;;  %v20417_v38 = vld [vmem:[#allocation4 + $0x9a] sm:$0xff] }
 0x5d0   : > { %15341 = vmatprep.mubr.msk.f32.mxu0 %vm251_vm0, %v20398_v29  ;;  %15397 = vmatprep.mubr.msk.f32.mxu1 %vm251_vm0, %v20073_v15  ;;  %v20423_v15 = vld [vmem:[#allocation4 + $0xaa] sm:$0xff] }
 0x5d3   : > { %15342 = vmatmul.mubr.msk.f32.gmra.mxu0 %vm251_vm0, %v20405_v49  ;;  %15398 = vmatmul.mubr.msk.f32.gmra.mxu1 %vm251_vm0, %v20077_v60  ;;  %v20429_v60 = vld [vmem:[#allocation4 + $0xb2] sm:$0xff] }
 0x5d4   : > { %15344 = vmatprep.mubr.msk.f32.mxu0 %vm251_vm0, %v20411_v26  ;;  %15400 = vmatprep.mubr.msk.f32.mxu1 %vm251_vm0, %v20106_v55  ;;  %v20435_v55 = vld [vmem:[#allocation4 + $0xc2] sm:$0xff] }
 0x5d7   : > { %15345 = vmatmul.mubr.msk.f32.gmra.mxu0 %vm251_vm0, %v20417_v38  ;;  %15401 = vmatmul.mubr.msk.f32.gmra.mxu1 %vm251_vm0, %v20110_v42  ;;  %v20441_v42 = vld [vmem:[#allocation4 + $0xca] sm:$0xff] }
 0x5d8   : > { %15347 = vmatprep.mubr.msk.f32.mxu0 %vm251_vm0, %v20423_v15  ;;  %15403 = vmatprep.mubr.msk.f32.mxu1 %vm251_vm0, %v20137_v18  ;;  %v20447_v18 = vld [vmem:[#allocation4 + $0xda] sm:$0xff] }
 0x5db   : > { %15348 = vmatmul.mubr.msk.f32.gmra.mxu0 %vm251_vm0, %v20429_v60  ;;  %15404 = vmatmul.mubr.msk.f32.gmra.mxu1 %vm251_vm0, %v20141_v34  ;;  %v20453_v34 = vld [vmem:[#allocation4 + $0xe2] sm:$0xff] }
 0x5dc   : > { %15350 = vmatprep.mubr.msk.f32.mxu0 %vm251_vm0, %v20435_v55  ;;  %15406 = vmatprep.mubr.msk.f32.mxu1 %vm251_vm0, %v20165_v6  ;;  %v20459_v6 = vld [vmem:[#allocation4 + $0xf2] sm:$0xff] }
 0x5df   : > { %15351 = vmatmul.mubr.msk.f32.gmra.mxu0 %vm251_vm0, %v20441_v42  ;;  %15407 = vmatmul.mubr.msk.f32.gmra.mxu1 %vm251_vm0, %v20169_v50  ;;  %v20465_v50 = vld [vmem:[#allocation4 + $0xfa] sm:$0xff] }
 0x5e0   : > { %15353 = vmatprep.mubr.msk.f32.mxu0 %vm251_vm0, %v20447_v18  ;;  %15409 = vmatprep.mubr.msk.f32.mxu1 %vm251_vm0, %v20192_v59  ;;  %v20471_v59 = vld [vmem:[#allocation4 + $0x10a] sm:$0xff] }
 0x5e3   : > { %15354 = vmatmul.mubr.msk.f32.gmra.mxu0 %vm251_vm0, %v20453_v34  ;;  %15410 = vmatmul.mubr.msk.f32.gmra.mxu1 %vm251_vm0, %v20196_v11  ;;  %v20477_v11 = vld [vmem:[#allocation4 + $0x112] sm:$0xff] }
 0x5e4   : > { %15356 = vmatprep.mubr.msk.f32.mxu0 %vm251_vm0, %v20459_v6  ;;  %15412 = vmatprep.mubr.msk.f32.mxu1 %vm251_vm0, %v20216_v28  ;;  %v20483_v28 = vld [vmem:[#allocation4 + $0x122] sm:$0xff] }
 0x5e7   : > { %15357 = vmatmul.mubr.msk.f32.gmra.mxu0 %vm251_vm0, %v20465_v50  ;;  %15413 = vmatmul.mubr.msk.f32.gmra.mxu1 %vm251_vm0, %v20220_v23  ;;  %v20489_v23 = vld [vmem:[#allocation4 + $0x12a] sm:$0xff] }
 0x5e8   : > { %15359 = vmatprep.mubr.msk.f32.mxu0 %vm251_vm0, %v20471_v59  ;;  %15415 = vmatprep.mubr.msk.f32.mxu1 %vm251_vm0, %v20236_v3  ;;  %v20495_v3 = vld [vmem:[#allocation4 + $0x13a] sm:$0xff] }
 0x5eb   : > { %15360 = vmatmul.mubr.msk.f32.gmra.mxu0 %vm251_vm0, %v20477_v11  ;;  %15416 = vmatmul.mubr.msk.f32.gmra.mxu1 %vm251_vm0, %v20240_v25  ;;  %v20501_v25 = vld [vmem:[#allocation4 + $0x142] sm:$0xff] }
 0x5ec   : > { %15362 = vmatprep.mubr.msk.f32.mxu0 %vm251_vm0, %v20483_v28  ;;  %15418 = vmatprep.mubr.msk.f32.mxu1 %vm251_vm0, %v20254_v53  ;;  %v20507_v53 = vld [vmem:[#allocation4 + $0x152] sm:$0xff] }
 0x5ef   : > { %15363 = vmatmul.mubr.msk.f32.gmra.mxu0 %vm251_vm0, %v20489_v23  ;;  %15419 = vmatmul.mubr.msk.f32.gmra.mxu1 %vm251_vm0, %v20258_v33  ;;  %v20513_v33 = vld [vmem:[#allocation4 + $0x15a] sm:$0xff] }
 0x5f0   : > { %15365 = vmatprep.mubr.msk.f32.mxu0 %vm251_vm0, %v20495_v3  ;;  %15421 = vmatprep.mubr.msk.f32.mxu1 %vm251_vm0, %v20272_v7  ;;  %v20519_v7 = vld [vmem:[#allocation4 + $0x16a] sm:$0xff] }
 0x5f3   : > { %15366 = vmatmul.mubr.msk.f32.gmra.mxu0 %vm251_vm0, %v20501_v25  ;;  %15422 = vmatmul.mubr.msk.f32.gmra.mxu1 %vm251_vm0, %v20276_v27  ;;  %v20527_v27 = vld [vmem:[#allocation4 + $0x172] sm:$0xff] }
 0x5f4   : > { %15368 = vmatprep.mubr.msk.f32.mxu0 %vm251_vm0, %v20507_v53  ;;  %15424 = vmatprep.mubr.msk.f32.mxu1 %vm251_vm0, %v20289_v41  ;;  %v20529_v41 = vld [vmem:[#allocation4 + $0x188] sm:$0xff] }
 0x5f7   : > { %15369 = vmatmul.mubr.msk.f32.gmra.mxu0 %vm251_vm0, %v20513_v33  ;;  %15425 = vmatmul.mubr.msk.f32.gmra.mxu1 %vm251_vm0, %v20293_v57  ;;  %v13113_v57 = vld [vmem:[%s21532_s3 + $0x310] sm:$0xff] }
 0x5f8   : > { %15371 = vmatprep.mubr.msk.f32.mxu0 %vm251_vm0, %v20519_v7  ;;  %15427 = vmatprep.mubr.msk.f32.mxu1 %vm251_vm0, %v20521_v5 }
 0x5fb   : > { %15372 = vmatmul.mubr.msk.f32.gmra.mxu0 %vm251_vm0, %v20527_v27  ;;  %15428 = vmatmul.mubr.msk.f32.gmra.mxu1 %vm251_vm0, %v20529_v41 }
 0x5fc   : > { %15438 = vmatprep.mubr.msk.f32.mxu0 %vm251_vm0, %v19909_v56  ;;  %15494 = vmatprep.mubr.msk.f32.mxu1 %vm251_vm0, %v20314_v16  ;;  %v13112_v56 = vld [vmem:[%s21532_s3 + $0x308] sm:$0xff] }
 0x5fd   : > { %v22000_v16 = vld [vmem:[#allocation16_spill] sm:$0xff] }
 0x5ff   : > { %15439 = vmatmul.mubr.msk.f32.vlgmr.msra.gmra.mxu0 %vm251_vm0, %v19920_v20  ;;  %15495 = vmatmul.mubr.msk.f32.vlgmr.msra.gmra.mxu1 %vm251_vm0, %v20326_v0  ;;  %v13149_v20 = vld [vmem:[%s21532_s3 + $0x330] sm:$0xff]  ;;  %v13184_v0 = vld [vmem:[%s21532_s3 + $0x348] sm:$0xff] }
 0x600   : > { %15543 = vmatpush3.msra.mxu0 %v20374_v58  ;;  %15441 = vmatprep.mubr.msk.f32.mxu0 %vm251_vm0, %v19942_v31  ;;  %v13111_v31 = vld [vmem:[%s21532_s3 + $0x300] sm:$0xff] }
 0x601   : > { %15497 = vmatprep.mubr.msk.f32.mxu1 %vm251_vm0, %v20339_v62  ;;  %15544 = vmatprep.subr.mxu0 %v13113_v57 }
 0x602   : > { %15545 = vmatpush3.msra.mxu0 %v13113_v57  ;;  %15599 = vmatpush3.msra.mxu1 %v20392_v40  ;;  %v10831_v40 = vld [vmem:[#allocation4 + $0x68] sm:$0xff] }
 0x603   : > { %15442 = vmatmul.mubr.msk.f32.gmra.mxu0 %vm251_vm0, %v19953_v13  ;;  %15498 = vmatmul.mubr.msk.f32.gmra.mxu1 %vm251_vm0, %v20346_v24  ;;  %v13148_v13 = vld [vmem:[%s21532_s3 + $0x328] sm:$0xff] }
 0x604   : > { %15444 = vmatprep.mubr.msk.f32.mxu0 %vm251_vm0, %v19976_v2  ;;  %15500 = vmatprep.mubr.msk.f32.mxu1 %vm251_vm0, %v20360_v44  ;;  %v13147_v2 = vld [vmem:[%s21532_s3 + $0x320] sm:$0xff] }
 0x605   : > { %15546 = vmatprep.subr.mxu0 %v13112_v56  ;;  %15600 = vmatprep.subr.mxu1 %v13149_v20  ;;  %v11220_v44 = vld [vmem:[#allocation4 + $0x61] sm:$0xff] }
 0x606   : > { %15547 = vmatpush3.msra.mxu0 %v13112_v56  ;;  %15601 = vmatpush3.msra.mxu1 %v13149_v20  ;;  %v10835_v20 = vld [vmem:[#allocation4 + $0x98] sm:$0xff] }
 0x607   : > { %15445 = vmatmul.mubr.msk.f32.gmra.mxu0 %vm251_vm0, %v19987_v51  ;;  %15501 = vmatmul.mubr.msk.f32.gmra.mxu1 %vm251_vm0, %v20366_v47  ;;  %v20586_v51 = vld [vmem:[%s21532_s3 + $0x358] sm:$0xff] }
 0x608   : > { %15447 = vmatprep.mubr.msk.f32.mxu0 %vm251_vm0, %v20009_v35  ;;  %15503 = vmatprep.mubr.msk.f32.mxu1 %vm251_vm0, %v20380_v48  ;;  %v21997_v35 = vld [vmem:[#allocation68_spill] sm:$0xff] }
 0x609   : > { %15548 = vmatprep.subr.mxu0 %v13111_v31  ;;  %15602 = vmatprep.subr.mxu1 %v13148_v13 }
 0x60a   : > { %15549 = vmatpush3.msra.mxu0 %v13111_v31  ;;  %15603 = vmatpush3.msra.mxu1 %v13148_v13  ;;  %v11225_v31 = vld [vmem:[#allocation4 + $0x99] sm:$0xff] }
 0x60b   : > { %15448 = vmatmul.mubr.msk.f32.gmra.mxu0 %vm251_vm0, %v20020_v32  ;;  %15504 = vmatmul.mubr.msk.f32.gmra.mxu1 %vm251_vm0, %v20387_v37  ;;  %v21998_v32 = vld [vmem:[#allocation76_spill] sm:$0xff] }
 0x60c   : > { %15450 = vmatprep.mubr.msk.f32.mxu0 %vm251_vm0, %v20042_v4  ;;  %15506 = vmatprep.mubr.msk.f32.mxu1 %vm251_vm0, %v20398_v29  ;;  %v21999_v4 = vld [vmem:[#allocation73_spill] sm:$0xff] }
 0x60d   : > { %15604 = vmatprep.subr.mxu1 %v13147_v2  ;;  %15654 = vmatprep.subr.mxu0 %v20586_v51  ;;  %v11221_v29 = vld [vmem:[#allocation4 + $0x69] sm:$0xff] }
 0x60e   : > { %15605 = vmatpush3.msra.mxu1 %v13147_v2 }
 0x60f   : > { %15451 = vmatmul.mubr.msk.f32.gmra.mxu0 %vm251_vm0, %v21997_v35  ;;  %15507 = vmatmul.mubr.msk.f32.gmra.mxu1 %vm251_vm0, %v20405_v49  ;;  %v13183_v49 = vld [vmem:[%s21532_s3 + $0x340] sm:$0xff]  ;;  %v11226_v35 = vld [vmem:[#allocation4 + $0xa9] sm:$0xff] }
 0x610   : > { %15453 = vmatprep.mubr.msk.f32.mxu0 %vm251_vm0, %v21998_v32  ;;  %15509 = vmatprep.mubr.msk.f32.mxu1 %vm251_vm0, %v20411_v26 }
 0x613   : > { %15454 = vmatmul.mubr.msk.f32.gmra.mxu0 %vm251_vm0, %v21999_v4  ;;  %15510 = vmatmul.mubr.msk.f32.gmra.mxu1 %vm251_vm0, %v20417_v38 }
 0x614   : > { %15456 = vmatprep.mubr.msk.f32.mxu0 %vm251_vm0, %v20108_v46  ;;  %15512 = vmatprep.mubr.msk.f32.mxu1 %vm251_vm0, %v20423_v15  ;;  %v22001_v46 = vld [vmem:[#allocation57_spill] sm:$0xff]  ;;  %v10832_v15 = vld [vmem:[#allocation4 + $0x78] sm:$0xff] }
 0x617   : > { %15457 = vmatmul.mubr.msk.f32.gmra.mxu0 %vm251_vm0, %v22000_v16  ;;  %15513 = vmatmul.mubr.msk.f32.gmra.mxu1 %vm251_vm0, %v20429_v60  ;;  %v11222_v60 = vld [vmem:[#allocation4 + $0x79] sm:$0xff] }
 0x618   : > { %15459 = vmatprep.mubr.msk.f32.mxu0 %vm251_vm0, %v20139_v43  ;;  %15515 = vmatprep.mubr.msk.f32.mxu1 %vm251_vm0, %v20435_v55  ;;  %v20681_v43 = vld [vmem:[#allocation4 + $0x181] sm:$0xff] }
 0x61b   : > { %15460 = vmatmul.mubr.msk.f32.gmra.mxu0 %vm251_vm0, %v20150_v10  ;;  %15516 = vmatmul.mubr.msk.f32.gmra.mxu1 %vm251_vm0, %v20441_v42  ;;  %v20683_v10 = vld [vmem:[#allocation4 + $0x182] sm:$0xff] }
 0x61c   : > { %15462 = vmatprep.mubr.msk.f32.mxu0 %vm251_vm0, %v20167_v12  ;;  %15518 = vmatprep.mubr.msk.f32.mxu1 %vm251_vm0, %v20447_v18  ;;  %v20689_v12 = vld [vmem:[#allocation4 + $0x189] sm:$0xff] }
 0x61f   : > { %15463 = vmatmul.mubr.msk.f32.gmra.mxu0 %vm251_vm0, %v20178_v1  ;;  %15519 = vmatmul.mubr.msk.f32.gmra.mxu1 %vm251_vm0, %v20453_v34  ;;  %v20691_v1 = vld [vmem:[#allocation4 + $0x18a] sm:$0xff] }
 0x620   : > { %15465 = vmatprep.mubr.msk.f32.mxu0 %vm251_vm0, %v20194_v36  ;;  %15521 = vmatprep.mubr.msk.f32.mxu1 %vm251_vm0, %v20459_v6  ;;  %v10826_v36 = vld [vmem:[#allocation4 + $0x30] sm:$0xff] }
 0x623   : > { %15466 = vmatmul.mubr.msk.f32.gmra.mxu0 %vm251_vm0, %v22001_v46  ;;  %15522 = vmatmul.mubr.msk.f32.gmra.mxu1 %vm251_vm0, %v20465_v50 }
 0x624   : > { %15468 = vmatprep.mubr.msk.f32.mxu0 %vm251_vm0, %v20218_v54  ;;  %15524 = vmatprep.mubr.msk.f32.mxu1 %vm251_vm0, %v20471_v59  ;;  %v11216_v54 = vld [vmem:[#allocation4 + $0x31] sm:$0xff]  ;;  %v10833_v59 = vld [vmem:[#allocation4 + $0x80] sm:$0xff] }
 0x627   : > { %15469 = vmatmul.mubr.msk.f32.gmra.mxu0 %vm251_vm0, %v20228_v17  ;;  %15525 = vmatmul.mubr.msk.f32.gmra.mxu1 %vm251_vm0, %v20477_v11  ;;  %v10827_v17 = vld [vmem:[#allocation4 + $0x38] sm:$0xff]  ;;  %v11223_v11 = vld [vmem:[#allocation4 + $0x81] sm:$0xff] }
 0x628   : > { %15471 = vmatprep.mubr.msk.f32.mxu0 %vm251_vm0, %v20238_v52  ;;  %15527 = vmatprep.mubr.msk.f32.mxu1 %vm251_vm0, %v20483_v28  ;;  %v11217_v52 = vld [vmem:[#allocation4 + $0x39] sm:$0xff] }
 0x62b   : > { %15472 = vmatmul.mubr.msk.f32.gmra.mxu0 %vm251_vm0, %v20247_v8  ;;  %15528 = vmatmul.mubr.msk.f32.gmra.mxu1 %vm251_vm0, %v20489_v23  ;;  %v13185_v8 = vld [vmem:[%s21532_s3 + $0x350] sm:$0xff] }
 0x62c   : > { %15474 = vmatprep.mubr.msk.f32.mxu0 %vm251_vm0, %v20256_v45  ;;  %15530 = vmatprep.mubr.msk.f32.mxu1 %vm251_vm0, %v20495_v3  ;;  %v10828_v45 = vld [vmem:[#allocation4 + $0x48] sm:$0xff]  ;;  %v10834_v3 = vld [vmem:[#allocation4 + $0x90] sm:$0xff] }
 0x62f   : > { %15475 = vmatmul.mubr.msk.f32.gmra.mxu0 %vm251_vm0, %v20265_v19  ;;  %15531 = vmatmul.mubr.msk.f32.gmra.mxu1 %vm251_vm0, %v20501_v25  ;;  %v20704_v19 = vpop.f32.mrf.mxu1  ;;  %v11224_v25 = vld [vmem:[#allocation4 + $0x91] sm:$0xff] }
 0x630   : > { %15477 = vmatprep.mubr.msk.f32.mxu0 %vm251_vm0, %v20274_v21  ;;  %15533 = vmatprep.mubr.msk.f32.mxu1 %vm251_vm0, %v20507_v53  ;;  %v11218_v21 = vld [vmem:[#allocation4 + $0x49] sm:$0xff] }
 0x633   : > { %15478 = vmatmul.mubr.msk.f32.gmra.mxu0 %vm251_vm0, %v20283_v61  ;;  %15534 = vmatmul.mubr.msk.f32.gmra.mxu1 %vm251_vm0, %v20513_v33  ;;  %v20708_v61 = vpop.f32.mrf.mxu0 }
 0x634   : > { %15480 = vmatprep.mubr.msk.f32.mxu0 %vm251_vm0, %v20291_v9  ;;  %15536 = vmatprep.mubr.msk.f32.mxu1 %vm251_vm0, %v20519_v7  ;;  %v10829_v9 = vld [vmem:[#allocation4 + $0x50] sm:$0xff] }
 0x637   : > { %15481 = vmatmul.mubr.msk.f32.gmra.mxu0 %vm251_vm0, %v20299_v39  ;;  %15537 = vmatmul.mubr.msk.f32.gmra.mxu1 %vm251_vm0, %v20527_v27  ;;  %v11219_v39 = vld [vmem:[#allocation4 + $0x51] sm:$0xff] }
 0x638   : > { %15483 = vmatprep.mubr.msk.f32.mxu0 %vm251_vm0, %v20681_v43  ;;  %15539 = vmatprep.mubr.msk.f32.mxu1 %vm251_vm0, %v20683_v10 }
 0x63b   : > { %15484 = vmatmul.mubr.msk.f32.gmra.mxu0 %vm251_vm0, %v20689_v12  ;;  %15540 = vmatmul.mubr.msk.f32.gmra.mxu1 %vm251_vm0, %v20691_v1 }
 0x63c   : > { %15550 = vmatprep.mubr.msk.f32.mxu0 %vm251_vm0, %v10826_v36  ;;  %15606 = vmatprep.mubr.msk.f32.mxu1 %vm251_vm0, %v11216_v54 }
 0x63f   : > { %15551 = vmatmul.mubr.msk.f32.vlgmr.msra.gmra.mxu0 %vm251_vm0, %v10827_v17  ;;  %15607 = vmatmul.mubr.msk.f32.vlgmr.msra.gmra.mxu1 %vm251_vm0, %v11217_v52  ;;  %v10837_v17 = vld [vmem:[#allocation4 + $0xb0] sm:$0xff] }
 0x640   : > { %15655 = vmatpush3.msra.mxu0 %v20586_v51  ;;  %15553 = vmatprep.mubr.msk.f32.mxu0 %vm251_vm0, %v10828_v45  ;;  %v15219_v62 = vpop.f32.mrf.mxu0  ;;  %v10836_v51 = vld [vmem:[#allocation4 + $0xa8] sm:$0xff]  ;;  %v11227_v52 = vld [vmem:[#allocation4 + $0xb1] sm:$0xff] }
 0x641   : > { %15609 = vmatprep.mubr.msk.f32.mxu1 %vm251_vm0, %v11218_v21  ;;  %15656 = vmatprep.subr.mxu0 %v13185_v8  ;;  %v15275_v24 = vpop.f32.mrf.mxu1  ;;  %v8846_v47 = vadd.f32 %v15219_v62, %v20324_v14  ;;  %v10838_v21 = vld [vmem:[#allocation4 + $0xc0] sm:$0xff] }
 0x642   : > { %15657 = vmatpush3.msra.mxu0 %v13185_v8  ;;  %v8694_v30 = vpop.f32.mrf.mxu0 }
 0x643   : > { %15554 = vmatmul.mubr.msk.f32.gmra.mxu0 %vm251_vm0, %v10829_v9  ;;  %15610 = vmatmul.mubr.msk.f32.gmra.mxu1 %vm251_vm0, %v11219_v39  ;;  %v9084_v58 = vpop.f32.mrf.mxu1  ;;  %v20719_v48 = vadd.f32 %v15275_v24, %v8846_v47  ;;  %v8845_v37 = vadd.f32 %v20324_v14, %v8694_v30  ;;  %v11228_v9 = vld [vmem:[#allocation4 + $0xc1] sm:$0xff]  ;;  %v11229_v30 = vld [vmem:[#allocation4 + $0xc9] sm:$0xff] }
 0x644   : > { %15556 = vmatprep.mubr.msk.f32.mxu0 %vm251_vm0, %v10830_v22  ;;  %15612 = vmatprep.mubr.msk.f32.mxu1 %vm251_vm0, %v11220_v44  ;;  %v15222_v26 = vpop.f32.mrf.mxu0  ;;  %v10839_v47 = vld [vmem:[#allocation4 + $0xc8] sm:$0xff] }
 0x645   : > { %15658 = vmatprep.subr.mxu0 %v13184_v0  ;;  %v15278_v38 = vpop.f32.mrf.mxu1  ;;  %v20727_v55 = vadd.f32 %v9084_v58, %v8845_v37  ;;  %v8848_v42 = vadd.f32 %v15222_v26, %v20324_v14 }
 0x646   : > { %15659 = vmatpush3.msra.mxu0 %v13184_v0  ;;  %v8704_v18 = vpop.f32.mrf.mxu0 }
 0x647   : > { %15557 = vmatmul.mubr.msk.f32.gmra.mxu0 %vm251_vm0, %v10831_v40  ;;  %15613 = vmatmul.mubr.msk.f32.gmra.mxu1 %vm251_vm0, %v11221_v29  ;;  %v9094_v34 = vpop.f32.mrf.mxu1  ;;  %v20732_v6 = vadd.f32 %v15278_v38, %v8848_v42  ;;  %v8847_v50 = vadd.f32 %v20324_v14, %v8704_v18  ;;  %v10840_v40 = vld [vmem:[#allocation4 + $0xd8] sm:$0xff]  ;;  %v10841_v18 = vld [vmem:[#allocation4 + $0xe0] sm:$0xff] }
 0x648   : > { %15559 = vmatprep.mubr.msk.f32.mxu0 %vm251_vm0, %v10832_v15  ;;  %15615 = vmatprep.mubr.msk.f32.mxu1 %vm251_vm0, %v11222_v60  ;;  %v15225_v28 = vpop.f32.mrf.mxu0  ;;  %v11230_v29 = vld [vmem:[#allocation4 + $0xd9] sm:$0xff] }
 0x649   : > { %15660 = vmatprep.subr.mxu0 %v13183_v49  ;;  %v15281_v23 = vpop.f32.mrf.mxu1  ;;  %v20737_v53 = vadd.f32 %v9094_v34, %v8847_v50  ;;  %v8850_v33 = vadd.f32 %v15225_v28, %v20324_v14  ;;  %v11231_v34 = vld [vmem:[#allocation4 + $0xe1] sm:$0xff]  ;;  %v11232_v28 = vld [vmem:[#allocation4 + $0xf1] sm:$0xff] }
 0x64a   : > { %15661 = vmatpush3.msra.mxu0 %v13183_v49  ;;  %v8714_v7 = vpop.f32.mrf.mxu0 }
 0x64b   : > { %15560 = vmatmul.mubr.msk.f32.gmra.mxu0 %vm251_vm0, %v10833_v59  ;;  %15616 = vmatmul.mubr.msk.f32.gmra.mxu1 %vm251_vm0, %v11223_v11  ;;  %v9104_v27 = vpop.f32.mrf.mxu1  ;;  %v20742_v57 = vadd.f32 %v15281_v23, %v8850_v33  ;;  %v8849_v56 = vadd.f32 %v20324_v14, %v8714_v7  ;;  %v10842_v11 = vld [vmem:[#allocation4 + $0xf0] sm:$0xff] }
 0x64c   : > { %15562 = vmatprep.mubr.msk.f32.mxu0 %vm251_vm0, %v10834_v3  ;;  %15618 = vmatprep.mubr.msk.f32.mxu1 %vm251_vm0, %v11224_v25  ;;  %v15228_v13 = vpop.f32.mrf.mxu0 }
 0x64d   : > { %v15284_v2 = vpop.f32.mrf.mxu1  ;;  %v20747_v32 = vadd.f32 %v9104_v27, %v8849_v56  ;;  %v8852_v4 = vadd.f32 %v15228_v13, %v20324_v14  ;;  %v10843_v56 = vld [vmem:[#allocation4 + $0xf8] sm:$0xff] }
 0x64e   : > { %v8724_v16 = vpop.f32.mrf.mxu0 }
 0x64f   : > { %15563 = vmatmul.mubr.msk.f32.gmra.mxu0 %vm251_vm0, %v10835_v20  ;;  %15619 = vmatmul.mubr.msk.f32.gmra.mxu1 %vm251_vm0, %v11225_v31  ;;  %v9114_v46 = vpop.f32.mrf.mxu1  ;;  %v20752_v36 = vadd.f32 %v15284_v2, %v8852_v4  ;;  %v8851_v54 = vadd.f32 %v20324_v14, %v8724_v16  ;;  %v11233_v20 = vld [vmem:[#allocation4 + $0xf9] sm:$0xff]  ;;  %v10844_v2 = vld [vmem:[#allocation4 + $0x108] sm:$0xff] }
 0x650   : > { %15565 = vmatprep.mubr.msk.f32.mxu0 %vm251_vm0, %v10836_v51  ;;  %15621 = vmatprep.mubr.msk.f32.mxu1 %vm251_vm0, %v11226_v35  ;;  %v15231_v8 = vpop.f32.mrf.mxu0  ;;  %v11234_v51 = vld [vmem:[#allocation4 + $0x109] sm:$0xff] }
 0x651   : > { %v15287_v45 = vpop.f32.mrf.mxu1  ;;  %v20757_v39 = vadd.f32 %v9114_v46, %v8851_v54  ;;  %v8854_v0 = vadd.f32 %v15231_v8, %v20324_v14  ;;  %v11235_v8 = vld [vmem:[#allocation4 + $0x111] sm:$0xff] }
 0x652   : > { %v8734_v62 = vpop.f32.mrf.mxu0 }
 0x653   : > { %15566 = vmatmul.mubr.msk.f32.gmra.mxu0 %vm251_vm0, %v10837_v17  ;;  %15622 = vmatmul.mubr.msk.f32.gmra.mxu1 %vm251_vm0, %v11227_v52  ;;  %v9124_v24 = vpop.f32.mrf.mxu1  ;;  %v20762_v22 = vadd.f32 %v15287_v45, %v8854_v0  ;;  %v8853_v44 = vadd.f32 %v20324_v14, %v8734_v62  ;;  %v10845_v52 = vld [vmem:[#allocation4 + $0x110] sm:$0xff]  ;;  %v11236_v0 = vld [vmem:[#allocation4 + $0x121] sm:$0xff] }
 0x654   : > { %15568 = vmatprep.mubr.msk.f32.mxu0 %vm251_vm0, %v10838_v21  ;;  %15624 = vmatprep.mubr.msk.f32.mxu1 %vm251_vm0, %v11228_v9  ;;  %v15234_v58 = vpop.f32.mrf.mxu0  ;;  %v10846_v9 = vld [vmem:[#allocation4 + $0x120] sm:$0xff] }
 0x655   : > { %v15290_v37 = vpop.f32.mrf.mxu1  ;;  %v20767_v49 = vadd.f32 %v9124_v24, %v8853_v44  ;;  %v8856_v26 = vadd.f32 %v15234_v58, %v20324_v14 }
 0x656   : > { %v8744_v38 = vpop.f32.mrf.mxu0 }
 0x657   : > { %15569 = vmatmul.mubr.msk.f32.gmra.mxu0 %vm251_vm0, %v10839_v47  ;;  %15625 = vmatmul.mubr.msk.f32.gmra.mxu1 %vm251_vm0, %v11229_v30  ;;  %v9134_v15 = vpop.f32.mrf.mxu1  ;;  %v20772_v60 = vadd.f32 %v15290_v37, %v8856_v26  ;;  %v8855_v42 = vadd.f32 %v20324_v14, %v8744_v38  ;;  %v10847_v37 = vld [vmem:[#allocation4 + $0x128] sm:$0xff]  ;;  %v10848_v38 = vld [vmem:[#allocation4 + $0x138] sm:$0xff] }
 0x658   : > { %15571 = vmatprep.mubr.msk.f32.mxu0 %vm251_vm0, %v10840_v40  ;;  %15627 = vmatprep.mubr.msk.f32.mxu1 %vm251_vm0, %v11230_v29  ;;  %v11237_v40 = vld [vmem:[#allocation4 + $0x129] sm:$0xff] }
 0x659   : > { %v15237_v50 = vpop.f32.mrf.mxu0  ;;  %v20777_v23 = vadd.f32 %v9134_v15, %v8855_v42  ;;  %v11238_v15 = vld [vmem:[#allocation4 + $0x139] sm:$0xff] }
 0x65a   : > { %v15293_v59 = vpop.f32.mrf.mxu1  ;;  %v8858_v3 = vadd.f32 %v15237_v50, %v20324_v14 }
 0x65b   : > { %15572 = vmatmul.mubr.msk.f32.gmra.mxu0 %vm251_vm0, %v10841_v18  ;;  %15628 = vmatmul.mubr.msk.f32.gmra.mxu1 %vm251_vm0, %v11231_v34  ;;  %v8754_v25 = vpop.f32.mrf.mxu0 }
 0x65c   : > { %15574 = vmatprep.mubr.msk.f32.mxu0 %vm251_vm0, %v10842_v11  ;;  %15630 = vmatprep.mubr.msk.f32.mxu1 %vm251_vm0, %v11232_v28  ;;  %v9144_v33 = vpop.f32.mrf.mxu1  ;;  %v20782_v7 = vadd.f32 %v15293_v59, %v8858_v3  ;;  %v8857_v27 = vadd.f32 %v20324_v14, %v8754_v25  ;;  %v10849_v28 = vld [vmem:[#allocation4 + $0x140] sm:$0xff] }
 0x65d   : > { %v11239_v3 = vld [vmem:[#allocation4 + $0x141] sm:$0xff] }
 0x65e   : > { %v15240_v31 = vpop.f32.mrf.mxu0  ;;  %v15296_v13 = vpop.f32.mrf.mxu1  ;;  %v20787_v35 = vadd.f32 %v9144_v33, %v8857_v27  ;;  %v10850_v27 = vld [vmem:[#allocation4 + $0x150] sm:$0xff] }
 0x65f   : > { %15575 = vmatmul.mubr.msk.f32.gmra.mxu0 %vm251_vm0, %v10843_v56  ;;  %15631 = vmatmul.mubr.msk.f32.gmra.mxu1 %vm251_vm0, %v11233_v20  ;;  %v8860_v4 = vadd.f32 %v15240_v31, %v20324_v14  ;;  %v11240_v56 = vld [vmem:[#allocation4 + $0x151] sm:$0xff] }
 0x660   : > { %15577 = vmatprep.mubr.msk.f32.mxu0 %vm251_vm0, %v10844_v2  ;;  %15633 = vmatprep.mubr.msk.f32.mxu1 %vm251_vm0, %v11234_v51  ;;  %v8764_v16 = vpop.f32.mrf.mxu0  ;;  %v9154_v46 = vpop.f32.mrf.mxu1 }
 0x661   : > { %v20792_v54 = vadd.f32 %v15296_v13, %v8860_v4  ;;  %v8859_v17 = vadd.f32 %v20324_v14, %v8764_v16  ;;  %v10851_v16 = vld [vmem:[#allocation4 + $0x158] sm:$0xff] }
 0x662   : > { %v15243_v45 = vpop.f32.mrf.mxu0  ;;  %v15299_v21 = vpop.f32.mrf.mxu1 }
 0x663   : > { %15578 = vmatmul.mubr.msk.f32.gmra.mxu0 %vm251_vm0, %v10845_v52  ;;  %15634 = vmatmul.mubr.msk.f32.gmra.mxu1 %vm251_vm0, %v11235_v8  ;;  %v20797_v62 = vadd.f32 %v9154_v46, %v8859_v17  ;;  %v8862_v24 = vadd.f32 %v15243_v45, %v20324_v14  ;;  %v11241_v46 = vld [vmem:[#allocation4 + $0x159] sm:$0xff]  ;;  %v10852_v8 = vld [vmem:[#allocation4 + $0x168] sm:$0xff] }
 0x664   : > { %15580 = vmatprep.mubr.msk.f32.mxu0 %vm251_vm0, %v10846_v9  ;;  %15636 = vmatprep.mubr.msk.f32.mxu1 %vm251_vm0, %v11236_v0  ;;  %v8774_v44 = vpop.f32.mrf.mxu0  ;;  %v9164_v47 = vpop.f32.mrf.mxu1  ;;  %v11242_v45 = vld [vmem:[#allocation4 + $0x169] sm:$0xff] }
 0x665   : > { %v20802_v30 = vadd.f32 %v15299_v21, %v8862_v24  ;;  %v8861_v58 = vadd.f32 %v20324_v14, %v8774_v44 }
 0x666   : > { %v15246_v29 = vpop.f32.mrf.mxu0  ;;  %v15302_v26 = vpop.f32.mrf.mxu1 }
 0x667   : > { %15581 = vmatmul.mubr.msk.f32.gmra.mxu0 %vm251_vm0, %v10847_v37  ;;  %15637 = vmatmul.mubr.msk.f32.gmra.mxu1 %vm251_vm0, %v11237_v40  ;;  %v20807_v42 = vadd.f32 %v9164_v47, %v8861_v58  ;;  %v8864_v18 = vadd.f32 %v15246_v29, %v20324_v14  ;;  %v10853_v58 = vld [vmem:[#allocation4 + $0x170] sm:$0xff] }
 0x668   : > { %15583 = vmatprep.mubr.msk.f32.mxu0 %vm251_vm0, %v10848_v38  ;;  %15639 = vmatprep.mubr.msk.f32.mxu1 %vm251_vm0, %v11238_v15  ;;  %v8784_v34 = vpop.f32.mrf.mxu0  ;;  %v9174_v50 = vpop.f32.mrf.mxu1  ;;  %v11243_v37 = vld [vmem:[#allocation4 + $0x171] sm:$0xff] }
 0x669   : > { %v20812_v59 = vadd.f32 %v15302_v26, %v8864_v18  ;;  %v8863_v11 = vadd.f32 %v20324_v14, %v8784_v34  ;;  %v10856_v34 = vld [vmem:[#allocation4 + $0x198] sm:$0xff] }
 0x66a   : > { %v15249_v25 = vpop.f32.mrf.mxu0 }
 0x66b   : > { %v15305_v33 = vpop.f32.mrf.mxu1  ;;  %15584 = vmatmul.mubr.msk.f32.gmra.mxu0 %vm251_vm0, %v10849_v28  ;;  %15640 = vmatmul.mubr.msk.f32.gmra.mxu1 %vm251_vm0, %v11239_v3  ;;  %v20817_v20 = vadd.f32 %v9174_v50, %v8863_v11  ;;  %v8866_v31 = vadd.f32 %v15249_v25, %v20324_v14  ;;  %v11246_v50 = vld [vmem:[#allocation4 + $0x199] sm:$0xff] }
 0x66c   : > { %15586 = vmatprep.mubr.msk.f32.mxu0 %vm251_vm0, %v10850_v27  ;;  %15642 = vmatprep.mubr.msk.f32.mxu1 %vm251_vm0, %v11240_v56  ;;  %v8794_v13 = vpop.f32.mrf.mxu0  ;;  %v11247_v27 = vld [vmem:[#allocation4 + $0x1a1] sm:$0xff] }
 0x66d   : > { %v9184_v2 = vpop.f32.mrf.mxu1  ;;  %v20822_v51 = vadd.f32 %v15305_v33, %v8866_v31  ;;  %v8865_v4 = vadd.f32 %v20324_v14, %v8794_v13  ;;  %v10857_v33 = vld [vmem:[#allocation4 + $0x1a0] sm:$0xff] }
 0x66e   : > { %v15252_v17 = vpop.f32.mrf.mxu0 }
 0x66f   : > { %v15308_v52 = vpop.f32.mrf.mxu1  ;;  %15587 = vmatmul.mubr.msk.f32.gmra.mxu0 %vm251_vm0, %v10851_v16  ;;  %15643 = vmatmul.mubr.msk.f32.gmra.mxu1 %vm251_vm0, %v11241_v46  ;;  %v20827_v21 = vadd.f32 %v9184_v2, %v8865_v4  ;;  %v8868_v9 = vadd.f32 %v15252_v17, %v20324_v14  ;;  %v8843_v16 = vadd.f32 %v20324_v14, %v20708_v61 }
 0x670   : > { %15589 = vmatprep.mubr.msk.f32.mxu0 %vm251_vm0, %v10852_v8  ;;  %15645 = vmatprep.mubr.msk.f32.mxu1 %vm251_vm0, %v11242_v45  ;;  %v8804_v0 = vpop.f32.mrf.mxu0 }
 0x671   : > { %v9194_v24 = vpop.f32.mrf.mxu1  ;;  %v20832_v44 = vadd.f32 %v15308_v52, %v8868_v9  ;;  %v8867_v47 = vadd.f32 %v20324_v14, %v8804_v0  ;;  %v11607_v0 = vld [vmem:[#allocation4 + $0x3a] sm:$0xff]  ;;  %v9233_v61 = vadd.f32 %v20704_v19, %v8843_v16 }
 0x672   : > { %v15255_v40 = vpop.f32.mrf.mxu0 }
 0x673   : > { %v15311_v29 = vpop.f32.mrf.mxu1  ;;  %15590 = vmatmul.mubr.msk.f32.gmra.mxu0 %vm251_vm0, %v10853_v58  ;;  %15646 = vmatmul.mubr.msk.f32.gmra.mxu1 %vm251_vm0, %v11243_v37  ;;  %v20837_v26 = vadd.f32 %v9194_v24, %v8867_v47  ;;  %v8870_v38 = vadd.f32 %v15255_v40, %v20324_v14  ;;  %v11608_v58 = vld [vmem:[#allocation4 + $0x4a] sm:$0xff] }
 0x674   : > { %15592 = vmatprep.mubr.msk.f32.mxu0 %vm251_vm0, %v20521_v5  ;;  %15648 = vmatprep.mubr.msk.f32.mxu1 %vm251_vm0, %v20681_v43  ;;  %v8814_v15 = vpop.f32.mrf.mxu0 }
 0x675   : > { %v9204_v18 = vpop.f32.mrf.mxu1  ;;  %v20844_v11 = vadd.f32 %v15311_v29, %v8870_v38  ;;  %v8869_v28 = vadd.f32 %v20324_v14, %v8814_v15 }
 0x676   : > { %v15258_v3 = vpop.f32.mrf.mxu0 }
 0x677   : > { %v15314_v25 = vpop.f32.mrf.mxu1  ;;  %15593 = vmatmul.mubr.msk.f32.gmra.mxu0 %vm251_vm0, %v20529_v41  ;;  %15649 = vmatmul.mubr.msk.f32.gmra.mxu1 %vm251_vm0, %v20689_v12  ;;  %v20851_v5 = vadd.f32 %v9204_v18, %v8869_v28  ;;  %v8872_v43 = vadd.f32 %v15258_v3, %v20324_v14  ;;  %v11606_v12 = vld [vmem:[#allocation4 + $0x32] sm:$0xff]  ;;  %v11610_v28 = vld [vmem:[#allocation4 + $0x62] sm:$0xff] }
 0x678   : > { %15595 = vmatprep.mubr.msk.f32.mxu0 %vm251_vm0, %v10856_v34  ;;  %15651 = vmatprep.mubr.msk.f32.mxu1 %vm251_vm0, %v11246_v50  ;;  %v8824_v56 = vpop.f32.mrf.mxu0 }
 0x679   : > { %v9214_v31 = vpop.f32.mrf.mxu1  ;;  %v20856_v13 = vadd.f32 %v15314_v25, %v8872_v43  ;;  %v8871_v2 = vadd.f32 %v20324_v14, %v8824_v56 }
 0x67a   : > { %v15261_v41 = vpop.f32.mrf.mxu0 }
 0x67b   : > { %v15317_v4 = vpop.f32.mrf.mxu1  ;;  %15596 = vmatmul.mubr.msk.f32.gmra.mxu0 %vm251_vm0, %v10857_v33  ;;  %15652 = vmatmul.mubr.msk.f32.gmra.mxu1 %vm251_vm0, %v11247_v27  ;;  %v20863_v46 = vadd.f32 %v9214_v31, %v8871_v2  ;;  %v8874_v17 = vadd.f32 %v15261_v41, %v20324_v14  ;;  %v11611_v27 = vld [vmem:[#allocation4 + $0x6a] sm:$0xff]  ;;  %v11612_v2 = vld [vmem:[#allocation4 + $0x7a] sm:$0xff] }
 0x67c   : > { %15662 = vmatprep.mubr.msk.f32.mxu0 %vm251_vm0, %v11606_v12  ;;  %v8834_v52 = vpop.f32.mrf.mxu0 }
 0x67d   : > { %v9224_v8 = vpop.f32.mrf.mxu1  ;;  %v20867_v45 = vadd.f32 %v15317_v4, %v8874_v17  ;;  %v8873_v9 = vadd.f32 %v20324_v14, %v8834_v52  ;;  %v11609_v14 = vld [vmem:[#allocation4 + $0x52] sm:$0xff]  ;;  %v11613_v52 = vld [vmem:[#allocation4 + $0x82] sm:$0xff] }
 0x67e   : > { %v15328_v24 = vpop.f32.mrf.mxu0 }
 0x67f   : > { %v15384_v47 = vpop.f32.mrf.mxu1  ;;  %15663 = vmatmul.mubr.msk.f32.vlgmr.msra.gmra.mxu0 %vm251_vm0, %v11607_v0  ;;  %v20872_v37 = vadd.f32 %v9224_v8, %v8873_v9  ;;  %v9624_v40 = vadd.f32 %v15328_v24, %v20354_v63  ;;  %v11614_v9 = vld [vmem:[#allocation4 + $0x92] sm:$0xff] }
 0x680   : > { %15665 = vmatprep.mubr.msk.f32.mxu0 %vm251_vm0, %v11608_v58  ;;  %v9464_v29 = vpop.f32.mrf.mxu0 }
 0x681   : > { %v9854_v38 = vpop.f32.mrf.mxu1  ;;  %v20876_v15 = vadd.f32 %v15384_v47, %v9624_v40  ;;  %v9623_v18 = vadd.f32 %v9464_v29, %v9233_v61  ;;  %v11615_v40 = vld [vmem:[#allocation4 + $0x9a] sm:$0xff] }
 0x683   : > { %v15331_v34 = vpop.f32.mrf.mxu0  ;;  %v15387_v50 = vpop.f32.mrf.mxu1  ;;  %15666 = vmatmul.mubr.msk.f32.gmra.mxu0 %vm251_vm0, %v11609_v14  ;;  %v20879_v3 = vadd.f32 %v9854_v38, %v9623_v18  ;;  %v11616_v38 = vld [vmem:[#allocation4 + $0xaa] sm:$0xff] }
 0x684   : > { %v9626_v19 = vadd.f32 %v15331_v34, %v20719_v48  ;;  %15668 = vmatprep.mubr.msk.f32.mxu0 %vm251_vm0, %v11610_v28 }
 0x685   : > { %v9474_v63 = vpop.f32.mrf.mxu0  ;;  %v9864_v25 = vpop.f32.mrf.mxu1 }
 0x686   : > { %v20883_v43 = vadd.f32 %v15387_v50, %v9626_v19  ;;  %v9625_v33 = vadd.f32 %v9474_v63, %v20727_v55  ;;  %v11617_v19 = vld [vmem:[#allocation4 + $0xb2] sm:$0xff] }
 0x687   : > { %v15334_v56 = vpop.f32.mrf.mxu0  ;;  %v15390_v31 = vpop.f32.mrf.mxu1  ;;  %15669 = vmatmul.mubr.msk.f32.gmra.mxu0 %vm251_vm0, %v11611_v27 }
 0x688   : > { %v20887_v41 = vadd.f32 %v9864_v25, %v9625_v33  ;;  %v9628_v4 = vadd.f32 %v15334_v56, %v20732_v6  ;;  %15671 = vmatprep.mubr.msk.f32.mxu0 %vm251_vm0, %v11612_v2  ;;  %v11618_v25 = vld [vmem:[#allocation4 + $0xc2] sm:$0xff] }
 0x689   : > { %v9484_v48 = vpop.f32.mrf.mxu0  ;;  %v9874_v12 = vpop.f32.mrf.mxu1 }
 0x68a   : > { %v20891_v16 = vadd.f32 %v15390_v31, %v9628_v4  ;;  %v9627_v17 = vadd.f32 %v9484_v48, %v20737_v53  ;;  %v11619_v4 = vld [vmem:[#allocation4 + $0xca] sm:$0xff] }
 0x68b   : > { %v15337_v55 = vpop.f32.mrf.mxu0  ;;  %v15393_v8 = vpop.f32.mrf.mxu1  ;;  %15672 = vmatmul.mubr.msk.f32.gmra.mxu0 %vm251_vm0, %v11613_v52 }
 0x68c   : > { %v20895_v0 = vadd.f32 %v9874_v12, %v9627_v17  ;;  %v9630_v24 = vadd.f32 %v15337_v55, %v20742_v57  ;;  %15674 = vmatprep.mubr.msk.f32.mxu0 %vm251_vm0, %v11614_v9  ;;  %v11620_v12 = vld [vmem:[#allocation4 + $0xda] sm:$0xff] }
 0x68d   : > { %v9494_v6 = vpop.f32.mrf.mxu0  ;;  %v9884_v47 = vpop.f32.mrf.mxu1 }
 0x68e   : > { %v20899_v58 = vadd.f32 %v15393_v8, %v9630_v24  ;;  %v9629_v61 = vadd.f32 %v9494_v6, %v20747_v32  ;;  %v11621_v24 = vld [vmem:[#allocation4 + $0xe2] sm:$0xff] }
 0x68f   : > { %v15340_v53 = vpop.f32.mrf.mxu0  ;;  %v15396_v29 = vpop.f32.mrf.mxu1  ;;  %15675 = vmatmul.mubr.msk.f32.gmra.mxu0 %vm251_vm0, %v11615_v40 }
 0x690   : > { %v20903_v18 = vadd.f32 %v9884_v47, %v9629_v61  ;;  %v9632_v14 = vadd.f32 %v15340_v53, %v20752_v36  ;;  %15677 = vmatprep.mubr.msk.f32.mxu0 %vm251_vm0, %v11616_v38  ;;  %v11622_v47 = vld [vmem:[#allocation4 + $0xf2] sm:$0xff] }
 0x691   : > { %v9504_v57 = vpop.f32.mrf.mxu0  ;;  %v9894_v34 = vpop.f32.mrf.mxu1 }
 0x692   : > { %v20907_v50 = vadd.f32 %v15396_v29, %v9632_v14  ;;  %v9631_v28 = vadd.f32 %v9504_v57, %v20757_v39  ;;  %v11623_v14 = vld [vmem:[#allocation4 + $0xfa] sm:$0xff] }
 0x693   : > { %v15343_v32 = vpop.f32.mrf.mxu0  ;;  %v15399_v63 = vpop.f32.mrf.mxu1  ;;  %15678 = vmatmul.mubr.msk.f32.gmra.mxu0 %vm251_vm0, %v11617_v19 }
 0x694   : > { %v20911_v33 = vadd.f32 %v9894_v34, %v9631_v28  ;;  %v9634_v27 = vadd.f32 %v15343_v32, %v20762_v22  ;;  %15680 = vmatprep.mubr.msk.f32.mxu0 %vm251_vm0, %v11618_v25  ;;  %v11624_v34 = vld [vmem:[#allocation4 + $0x10a] sm:$0xff] }
 0x695   : > { %v9514_v36 = vpop.f32.mrf.mxu0  ;;  %v9904_v56 = vpop.f32.mrf.mxu1 }
 0x696   : > { %v20915_v31 = vadd.f32 %v15399_v63, %v9634_v27  ;;  %v9633_v2 = vadd.f32 %v9514_v36, %v20767_v49  ;;  %v11625_v27 = vld [vmem:[#allocation4 + $0x112] sm:$0xff] }
 0x697   : > { %v15346_v39 = vpop.f32.mrf.mxu0  ;;  %v15402_v48 = vpop.f32.mrf.mxu1  ;;  %15681 = vmatmul.mubr.msk.f32.gmra.mxu0 %vm251_vm0, %v11619_v4 }
 0x698   : > { %v20919_v17 = vadd.f32 %v9904_v56, %v9633_v2  ;;  %v9636_v52 = vadd.f32 %v15346_v39, %v20772_v60  ;;  %15683 = vmatprep.mubr.msk.f32.mxu0 %vm251_vm0, %v11620_v12  ;;  %v11626_v56 = vld [vmem:[#allocation4 + $0x122] sm:$0xff] }
 0x699   : > { %v9524_v22 = vpop.f32.mrf.mxu0  ;;  %v9914_v55 = vpop.f32.mrf.mxu1 }
 0x69a   : > { %v20923_v8 = vadd.f32 %v15402_v48, %v9636_v52  ;;  %v9635_v9 = vadd.f32 %v9524_v22, %v20777_v23  ;;  %v11627_v52 = vld [vmem:[#allocation4 + $0x12a] sm:$0xff] }
 0x69b   : > { %v15349_v49 = vpop.f32.mrf.mxu0  ;;  %v15405_v6 = vpop.f32.mrf.mxu1  ;;  %15684 = vmatmul.mubr.msk.f32.gmra.mxu0 %vm251_vm0, %v11621_v24 }
 0x69c   : > { %v20927_v61 = vadd.f32 %v9914_v55, %v9635_v9  ;;  %v9638_v40 = vadd.f32 %v15349_v49, %v20782_v7  ;;  %15686 = vmatprep.mubr.msk.f32.mxu0 %vm251_vm0, %v11622_v47  ;;  %v11628_v55 = vld [vmem:[#allocation4 + $0x13a] sm:$0xff] }
 0x69d   : > { %v9534_v60 = vpop.f32.mrf.mxu0  ;;  %v9924_v53 = vpop.f32.mrf.mxu1 }
 0x69e   : > { %v20931_v29 = vadd.f32 %v15405_v6, %v9638_v40  ;;  %v9637_v38 = vadd.f32 %v9534_v60, %v20787_v35  ;;  %v11629_v40 = vld [vmem:[#allocation4 + $0x142] sm:$0xff] }
 0x69f   : > { %v15352_v23 = vpop.f32.mrf.mxu0  ;;  %v15408_v57 = vpop.f32.mrf.mxu1  ;;  %15687 = vmatmul.mubr.msk.f32.gmra.mxu0 %vm251_vm0, %v11623_v14 }
 0x6a0   : > { %v20935_v28 = vadd.f32 %v9924_v53, %v9637_v38  ;;  %v9640_v19 = vadd.f32 %v15352_v23, %v20792_v54  ;;  %15689 = vmatprep.mubr.msk.f32.mxu0 %vm251_vm0, %v11624_v34  ;;  %v11630_v53 = vld [vmem:[#allocation4 + $0x152] sm:$0xff] }
 0x6a1   : > { %v9544_v7 = vpop.f32.mrf.mxu0  ;;  %v9934_v32 = vpop.f32.mrf.mxu1 }
 0x6a2   : > { %v20939_v63 = vadd.f32 %v15408_v57, %v9640_v19  ;;  %v9639_v25 = vadd.f32 %v9544_v7, %v20797_v62  ;;  %v11631_v19 = vld [vmem:[#allocation4 + $0x15a] sm:$0xff] }
 0x6a3   : > { %v15355_v35 = vpop.f32.mrf.mxu0  ;;  %v15411_v36 = vpop.f32.mrf.mxu1  ;;  %15690 = vmatmul.mubr.msk.f32.gmra.mxu0 %vm251_vm0, %v11625_v27 }
 0x6a4   : > { %v20943_v2 = vadd.f32 %v9934_v32, %v9639_v25  ;;  %v9642_v4 = vadd.f32 %v15355_v35, %v20802_v30  ;;  %15692 = vmatprep.mubr.msk.f32.mxu0 %vm251_vm0, %v11626_v56  ;;  %v11632_v32 = vld [vmem:[#allocation4 + $0x16a] sm:$0xff] }
 0x6a5   : > { %v9554_v54 = vpop.f32.mrf.mxu0  ;;  %v9944_v39 = vpop.f32.mrf.mxu1 }
 0x6a6   : > { %v20947_v48 = vadd.f32 %v15411_v36, %v9642_v4  ;;  %v9641_v12 = vadd.f32 %v9554_v54, %v20807_v42  ;;  %v11633_v4 = vld [vmem:[#allocation4 + $0x172] sm:$0xff] }
 0x6a7   : > { %v15358_v62 = vpop.f32.mrf.mxu0  ;;  %v15414_v22 = vpop.f32.mrf.mxu1  ;;  %15693 = vmatmul.mubr.msk.f32.gmra.mxu0 %vm251_vm0, %v11627_v52 }
 0x6a8   : > { %v20951_v9 = vadd.f32 %v9944_v39, %v9641_v12  ;;  %v9644_v24 = vadd.f32 %v15358_v62, %v20812_v59  ;;  %15695 = vmatprep.mubr.msk.f32.mxu0 %vm251_vm0, %v11628_v55  ;;  %v11636_v62 = vld [vmem:[#allocation4 + $0x19a] sm:$0xff] }
 0x6a9   : > { %v9564_v30 = vpop.f32.mrf.mxu0  ;;  %v9954_v49 = vpop.f32.mrf.mxu1 }
 0x6aa   : > { %v20955_v6 = vadd.f32 %v15414_v22, %v9644_v24  ;;  %v9643_v47 = vadd.f32 %v9564_v30, %v20817_v20 }
 0x6ab   : > { %v15361_v42 = vpop.f32.mrf.mxu0  ;;  %v15417_v60 = vpop.f32.mrf.mxu1  ;;  %15696 = vmatmul.mubr.msk.f32.gmra.mxu0 %vm251_vm0, %v11629_v40 }
 0x6ac   : > { %v20959_v38 = vadd.f32 %v9954_v49, %v9643_v47  ;;  %v9646_v14 = vadd.f32 %v15361_v42, %v20822_v51  ;;  %15698 = vmatprep.mubr.msk.f32.mxu0 %vm251_vm0, %v11630_v53 }
 0x6ad   : > { %v9574_v59 = vpop.f32.mrf.mxu0  ;;  %v9964_v23 = vpop.f32.mrf.mxu1 }
 0x6ae   : > { %v20963_v57 = vadd.f32 %v15417_v60, %v9646_v14  ;;  %v9645_v34 = vadd.f32 %v9574_v59, %v20827_v21 }
 0x6af   : > { %v15364_v20 = vpop.f32.mrf.mxu0  ;;  %v15420_v7 = vpop.f32.mrf.mxu1  ;;  %15699 = vmatmul.mubr.msk.f32.gmra.mxu0 %vm251_vm0, %v11631_v19 }
 0x6b0   : > { %v20967_v25 = vadd.f32 %v9964_v23, %v9645_v34  ;;  %v9648_v27 = vadd.f32 %v15364_v20, %v20832_v44  ;;  %15701 = vmatprep.mubr.msk.f32.mxu0 %vm251_vm0, %v11632_v32 }
 0x6b1   : > { %v9584_v51 = vpop.f32.mrf.mxu0  ;;  %v9974_v35 = vpop.f32.mrf.mxu1 }
 0x6b2   : > { %v20971_v36 = vadd.f32 %v15420_v7, %v9648_v27  ;;  %v9647_v56 = vadd.f32 %v9584_v51, %v20837_v26 }
 0x6b3   : > { %v15367_v21 = vpop.f32.mrf.mxu0  ;;  %v15423_v54 = vpop.f32.mrf.mxu1  ;;  %15702 = vmatmul.mubr.msk.f32.gmra.mxu0 %vm251_vm0, %v11633_v4 }
 0x6b4   : > { %v20975_v39 = vadd.f32 %v9974_v35, %v9647_v56  ;;  %v9650_v12 = vadd.f32 %v15367_v21, %v20844_v11  ;;  %15704 = vmatprep.mubr.msk.f32.mxu0 %vm251_vm0, %v20683_v10  ;;  %v11637_v11 = vld [vmem:[#allocation4 + $0x1a2] sm:$0xff] }
 0x6b5   : > { %v9594_v44 = vpop.f32.mrf.mxu0  ;;  %v9984_v52 = vpop.f32.mrf.mxu1 }
 0x6b6   : > { %v20980_v22 = vadd.f32 %v15423_v54, %v9650_v12  ;;  %v9649_v55 = vadd.f32 %v9594_v44, %v20851_v5 }
 0x6b7   : > { %v15370_v26 = vpop.f32.mrf.mxu0  ;;  %v15426_v24 = vpop.f32.mrf.mxu1  ;;  %15705 = vmatmul.mubr.msk.f32.gmra.mxu0 %vm251_vm0, %v20691_v1 }
 0x6b8   : > { %v20985_v30 = vadd.f32 %v9984_v52, %v9649_v55  ;;  %v9652_v49 = vadd.f32 %v15370_v26, %v20856_v13  ;;  %15707 = vmatprep.mubr.msk.f32.mxu0 %vm251_vm0, %v11636_v62 }
 0x6b9   : > { %v9604_v10 = vpop.f32.mrf.mxu0  ;;  %v9994_v47 = vpop.f32.mrf.mxu1 }
 0x6ba   : > { %v20989_v40 = vadd.f32 %v15426_v24, %v9652_v49  ;;  %v9651_v42 = vadd.f32 %v9604_v10, %v20863_v46 }
 0x6bb   : > { %v15373_v60 = vpop.f32.mrf.mxu0  ;;  %v15429_v5 = vpop.f32.mrf.mxu1  ;;  %15708 = vmatmul.mubr.msk.f32.gmra.mxu0 %vm251_vm0, %v11637_v11 }
 0x6bc   : > { %v20993_v53 = vadd.f32 %v9994_v47, %v9651_v42  ;;  %v9654_v1 = vadd.f32 %v15373_v60, %v20867_v45 }
 0x6bd   : > { %v9614_v14 = vpop.f32.mrf.mxu0  ;;  %v10004_v59 = vpop.f32.mrf.mxu1 }
 0x6be   : > { %v20996_v13 = vadd.f32 %v15429_v5, %v9654_v1  ;;  %v9653_v23 = vadd.f32 %v9614_v14, %v20872_v37 }
 0x6bf   : > { %v15440_v34 = vpop.f32.mrf.mxu0  ;;  %v20999_v19 = vpop.f32.mrf.mxu1 }
 0x6c0   : > { %v21001_v20 = vadd.f32 %v10004_v59, %v9653_v23  ;;  %v21004_v46 = vadd.f32 %v15440_v34, %v20876_v15 }
 0x6c1   : > { %v10244_v7 = vpop.f32.mrf.mxu0  ;;  %v21006_v32 = vpop.f32.mrf.mxu1 }
 0x6c2   : > { %v21009_v27 = vadd.f32 %v10244_v7, %v20879_v3 }
 0x6c3   : > { %v15443_v45 = vpop.f32.mrf.mxu0  ;;  %v21011_v51 = vpop.f32.mrf.mxu1 }
 0x6c4   : > { %v21014_v35 = vadd.f32 %v15443_v45, %v20883_v43 }
 0x6c5   : > { %v10254_v37 = vpop.f32.mrf.mxu0  ;;  %v21016_v56 = vpop.f32.mrf.mxu1 }
 0x6c6   : > { %v21019_v4 = vadd.f32 %v10254_v37, %v20887_v41 }
 0x6c7   : > { %v15446_v15 = vpop.f32.mrf.mxu0  ;;  %v21021_v21 = vpop.f32.mrf.mxu1 }
 0x6c8   : > { %v21024_v54 = vadd.f32 %v15446_v15, %v20891_v16 }
 0x6c9   : > { %v10264_v3 = vpop.f32.mrf.mxu0  ;;  %v21026_v12 = vpop.f32.mrf.mxu1 }
 0x6ca   : > { %v21029_v44 = vadd.f32 %v10264_v3, %v20895_v0 }
 0x6cb   : > { %v15449_v43 = vpop.f32.mrf.mxu0  ;;  %v21031_v52 = vpop.f32.mrf.mxu1 }
 0x6cc   : > { %v21034_v62 = vadd.f32 %v15449_v43, %v20899_v58 }
 0x6cd   : > { %v10274_v41 = vpop.f32.mrf.mxu0  ;;  %v21036_v55 = vpop.f32.mrf.mxu1 }
 0x6ce   : > { %v21039_v26 = vadd.f32 %v10274_v41, %v20903_v18 }
 0x6cf   : > { %v15452_v16 = vpop.f32.mrf.mxu0  ;;  %v21041_v24 = vpop.f32.mrf.mxu1 }
 0x6d0   : > { %v21044_v49 = vadd.f32 %v15452_v16, %v20907_v50 }
 0x6d1   : > { %v10284_v0 = vpop.f32.mrf.mxu0  ;;  %v21046_v11 = vpop.f32.mrf.mxu1 }
 0x6d2   : > { %v21049_v10 = vadd.f32 %v10284_v0, %v20911_v33 }
 0x6d3   : > { %v15455_v58 = vpop.f32.mrf.mxu0  ;;  %v21051_v47 = vpop.f32.mrf.mxu1 }
 0x6d4   : > { %v21054_v42 = vadd.f32 %v15455_v58, %v20915_v31 }
 0x6d5   : > { %v10294_v18 = vpop.f32.mrf.mxu0  ;;  %v21056_v60 = vpop.f32.mrf.mxu1 }
 0x6d6   : > { %v21059_v5 = vadd.f32 %v10294_v18, %v20919_v17 }
 0x6d7   : > { %v15458_v50 = vpop.f32.mrf.mxu0  ;;  %v21061_v1 = vpop.f32.mrf.mxu1 }
 0x6d8   : > { %v21064_v14 = vadd.f32 %v15458_v50, %v20923_v8 }
 0x6d9   : > { %v10304_v33 = vpop.f32.mrf.mxu0  ;;  %v21066_v59 = vpop.f32.mrf.mxu1 }
 0x6da   : > { %v21069_v23 = vadd.f32 %v10304_v33, %v20927_v61 }
 0x6db   : > { %v15461_v31 = vpop.f32.mrf.mxu0  ;;  %v21071_v34 = vpop.f32.mrf.mxu1 }
 0x6dc   : > { %v21074_v7 = vadd.f32 %v15461_v31, %v20931_v29 }
 0x6dd   : > { %v10314_v17 = vpop.f32.mrf.mxu0  ;;  %v21076_v45 = vpop.f32.mrf.mxu1 }
 0x6de   : > { %22002 = vst [vmem:[#allocation35_spill] sm:$0xff] %v21076_v45  ;;  %v21079_v37 = vadd.f32 %v10314_v17, %v20935_v28 }
 0x6df   : > { %v15464_v8 = vpop.f32.mrf.mxu0  ;;  %v21081_v15 = vpop.f32.mrf.mxu1 }
 0x6e0   : > { %22003 = vst [vmem:[#allocation23_spill] sm:$0xff] %v21079_v37  ;;  %22004 = vst [vmem:[#allocation78_spill] sm:$0xff] %v21081_v15  ;;  %v21084_v3 = vadd.f32 %v15464_v8, %v20939_v63 }
 0x6e1   : > { %v10324_v61 = vpop.f32.mrf.mxu0  ;;  %v21086_v43 = vpop.f32.mrf.mxu1 }
 0x6e2   : > { %22005 = vst [vmem:[#allocation62_spill] sm:$0xff] %v21084_v3  ;;  %22006 = vst [vmem:[#allocation92_spill] sm:$0xff] %v21086_v43  ;;  %v21089_v41 = vadd.f32 %v10324_v61, %v20943_v2 }
 0x6e3   : > { %v15467_v29 = vpop.f32.mrf.mxu0  ;;  %v21091_v16 = vpop.f32.mrf.mxu1 }
 0x6e4   : > { %22007 = vst [vmem:[#allocation37_spill] sm:$0xff] %v21089_v41  ;;  %22008 = vst [vmem:[#allocation19_spill] sm:$0xff] %v21091_v16  ;;  %v21094_v0 = vadd.f32 %v15467_v29, %v20947_v48 }
 0x6e5   : > { %v10334_v28 = vpop.f32.mrf.mxu0  ;;  %v21096_v58 = vpop.f32.mrf.mxu1 }
 0x6e6   : > { %22009 = vst [vmem:[#allocation75_spill] sm:$0xff] %v21094_v0  ;;  %22010 = vst [vmem:[#allocation43_spill] sm:$0xff] %v21096_v58  ;;  %v21099_v18 = vadd.f32 %v10334_v28, %v20951_v9 }
 0x6e7   : > { %v15470_v63 = vpop.f32.mrf.mxu0  ;;  %v21101_v50 = vpop.f32.mrf.mxu1 }
 0x6e8   : > { %22011 = vst [vmem:[#allocation97_spill] sm:$0xff] %v21099_v18  ;;  %22012 = vst [vmem:[#allocation94_spill] sm:$0xff] %v21101_v50  ;;  %v21104_v33 = vadd.f32 %v15470_v63, %v20955_v6 }
 0x6e9   : > { %v10344_v2 = vpop.f32.mrf.mxu0  ;;  %v21106_v31 = vpop.f32.mrf.mxu1 }
 0x6ea   : > { %22013 = vst [vmem:[#allocation33_spill] sm:$0xff] %v21104_v33  ;;  %22014 = vst [vmem:[#allocation61_spill] sm:$0xff] %v21106_v31  ;;  %v21109_v17 = vadd.f32 %v10344_v2, %v20959_v38 }
 0x6eb   : > { %v15473_v48 = vpop.f32.mrf.mxu0  ;;  %v21111_v8 = vpop.f32.mrf.mxu1 }
 0x6ec   : > { %22015 = vst [vmem:[#allocation13_spill] sm:$0xff] %v21109_v17  ;;  %22016 = vst [vmem:[#allocation45_spill] sm:$0xff] %v21111_v8  ;;  %v21114_v61 = vadd.f32 %v15473_v48, %v20963_v57 }
 0x6ed   : > { %v10354_v9 = vpop.f32.mrf.mxu0  ;;  %v21116_v29 = vpop.f32.mrf.mxu1 }
 0x6ee   : > { %22017 = vst [vmem:[#allocation100_spill] sm:$0xff] %v21114_v61  ;;  %22018 = vst [vmem:[#allocation95_spill] sm:$0xff] %v21116_v29  ;;  %v21119_v28 = vadd.f32 %v10354_v9, %v20967_v25 }
 0x6ef   : > { %v15476_v6 = vpop.f32.mrf.mxu0  ;;  %v21121_v63 = vpop.f32.mrf.mxu1 }
 0x6f0   : > { %22019 = vst [vmem:[#allocation70_spill] sm:$0xff] %v21119_v28  ;;  %22020 = vst [vmem:[#allocation67_spill] sm:$0xff] %v21121_v63  ;;  %v21124_v31 = vadd.f32 %v15476_v6, %v20971_v36 }
 0x6f1   : > { %v10364_v38 = vpop.f32.mrf.mxu0  ;;  %v21126_v2 = vpop.f32.mrf.mxu1 }
 0x6f2   : > { %22021 = vst [vmem:[#allocation11_spill] sm:$0xff] %v21124_v31  ;;  %22022 = vst [vmem:[#allocation47_spill] sm:$0xff] %v21126_v2  ;;  %v21129_v8 = vadd.f32 %v10364_v38, %v20975_v39 }
 0x6f3   : > { %v15479_v57 = vpop.f32.mrf.mxu0  ;;  %v21131_v48 = vpop.f32.mrf.mxu1 }
 0x6f4   : > { %22023 = vst [vmem:[#allocation26_spill] sm:$0xff] %v21129_v8  ;;  %22024 = vst [vmem:[#allocation103_spill] sm:$0xff] %v21131_v48  ;;  %v21134_v29 = vadd.f32 %v15479_v57, %v20980_v22 }
 0x6f5   : > { %v10374_v25 = vpop.f32.mrf.mxu0  ;;  %v21136_v9 = vpop.f32.mrf.mxu1 }
 0x6f6   : > { %22025 = vst [vmem:[#allocation59_spill] sm:$0xff] %v21134_v29  ;;  %22026 = vst [vmem:[#allocation64_spill] sm:$0xff] %v21136_v9  ;;  %v21139_v63 = vadd.f32 %v10374_v25, %v20985_v30 }
 0x6f7   : > { %v15482_v36 = vpop.f32.mrf.mxu0  ;;  %v21141_v6 = vpop.f32.mrf.mxu1 }
 0x6f8   : > { %22027 = vst [vmem:[#allocation17_spill] sm:$0xff] %v21139_v63  ;;  %22028 = vst [vmem:[#allocation77_spill] sm:$0xff] %v21141_v6  ;;  %v21144_v2 = vadd.f32 %v15482_v36, %v20989_v40 }
 0x6f9   : > { %v10384_v39 = vpop.f32.mrf.mxu0  ;;  %v21146_v38 = vpop.f32.mrf.mxu1 }
 0x6fa   : > { %22029 = vst [vmem:[#allocation46_spill] sm:$0xff] %v21144_v2  ;;  %22030 = vst [vmem:[#allocation32_spill] sm:$0xff] %v21146_v38  ;;  %v21149_v48 = vadd.f32 %v10384_v39, %v20993_v53 }
 0x6fb   : > { %v15485_v22 = vpop.f32.mrf.mxu0  ;;  %v21151_v57 = vpop.f32.mrf.mxu1 }
 0x6fc   : > { %22031 = vst [vmem:[#allocation22_spill] sm:$0xff] %v21149_v48  ;;  %22032 = vst [vmem:[#allocation41_spill] sm:$0xff] %v21151_v57  ;;  %v21154_v9 = vadd.f32 %v15485_v22, %v20996_v13 }
 0x6fd   : > { %v10394_v30 = vpop.f32.mrf.mxu0  ;;  %v21156_v25 = vpop.f32.mrf.mxu1 }
 0x6fe   : > { %22033 = vst [vmem:[#allocation25_spill] sm:$0xff] %v21154_v9  ;;  %22034 = vst [vmem:[#allocation80_spill] sm:$0xff] %v21156_v25  ;;  %v21159_v6 = vadd.f32 %v10394_v30, %v21001_v20 }
 0x6ff   : > { %v15552_v40 = vpop.f32.mrf.mxu0  ;;  %v15608_v36 = vpop.f32.mrf.mxu1 }
 0x700   : > { %22035 = vst [vmem:[#allocation60_spill] sm:$0xff] %v21159_v6 }
 0x701   : > { %v11025_v2 = vpop.f32.mrf.mxu0  ;;  %v11415_v63 = vpop.f32.mrf.mxu1 }
 0x703   : > { %v15555_v38 = vpop.f32.mrf.mxu0  ;;  %v21161_v53 = vpop.f32.mrf.mxu1 }
 0x705   : > { %v11035_v29 = vpop.f32.mrf.mxu0  ;;  %v21165_v57 = vpop.f32.mrf.mxu1 }
 0x707   : > { %v15558_v39 = vpop.f32.mrf.mxu0  ;;  %v21171_v25 = vpop.f32.mrf.mxu1 }
 0x709   : > { %v21163_v48 = vpop.f32.mrf.mxu0  ;;  %v21177_v6 = vpop.f32.mrf.mxu1 }
 0x70b   : > { %v21167_v13 = vpop.f32.mrf.mxu0  ;;  %v21183_v31 = vpop.f32.mrf.mxu1 }
 0x70d   : > { %v21169_v22 = vpop.f32.mrf.mxu0  ;;  %v21189_v17 = vpop.f32.mrf.mxu1 }
 0x70f   : > { %v21173_v20 = vpop.f32.mrf.mxu0  ;;  %v21195_v58 = vpop.f32.mrf.mxu1 }
 0x711   : > { %v21175_v30 = vpop.f32.mrf.mxu0  ;;  %v21201_v0 = vpop.f32.mrf.mxu1 }
 0x713   : > { %v21179_v9 = vpop.f32.mrf.mxu0  ;;  %v21207_v15 = vpop.f32.mrf.mxu1 }
 0x715   : > { %v21181_v8 = vpop.f32.mrf.mxu0 }
 0x717   : > { %v21185_v28 = vpop.f32.mrf.mxu0 }
 0x719   : > { %v21187_v61 = vpop.f32.mrf.mxu0 }
 0x71a   : > { %22036 = vst [vmem:[#allocation18_spill] sm:$0xff] %v21187_v61 }
 0x71b   : > { %v21191_v50 = vpop.f32.mrf.mxu0 }
 0x71c   : > { %22037 = vst [vmem:[#allocation34_spill] sm:$0xff] %v21191_v50  ;;  %v21213_v50 = vpop.f32.mrf.mxu1 }
 0x71d   : > { %v21193_v33 = vpop.f32.mrf.mxu0  ;;  %22045 = vst [vmem:[#allocation96_spill] sm:$0xff] %v21213_v50 }
 0x71e   : > { %22038 = vst [vmem:[#allocation79_spill] sm:$0xff] %v21193_v33 }
 0x71f   : > { %v21197_v18 = vpop.f32.mrf.mxu0 }
 0x720   : > { %22039 = vst [vmem:[#allocation28_spill] sm:$0xff] %v21197_v18  ;;  %v21219_v18 = vpop.f32.mrf.mxu1 }
 0x721   : > { %v21199_v16 = vpop.f32.mrf.mxu0 }
 0x722   : > { %22040 = vst [vmem:[#allocation9_spill] sm:$0xff] %v21199_v16 }
 0x723   : > { %v21203_v43 = vpop.f32.mrf.mxu0 }
 0x724   : > { %22041 = vst [vmem:[#allocation39_spill] sm:$0xff] %v21203_v43 }
 0x725   : > { %v21205_v41 = vpop.f32.mrf.mxu0 }
 0x726   : > { %22042 = vst [vmem:[#allocation69_spill] sm:$0xff] %v21205_v41  ;;  %v21225_v41 = vpop.f32.mrf.mxu1 }
 0x727   : > { %v21209_v3 = vpop.f32.mrf.mxu0  ;;  %22050 = vst [vmem:[#allocation98_spill] sm:$0xff] %v21225_v41 }
 0x728   : > { %22043 = vst [vmem:[#allocation14_spill] sm:$0xff] %v21209_v3 }
 0x729   : > { %v21211_v45 = vpop.f32.mrf.mxu0 }
 0x72a   : > { %22044 = vst [vmem:[#allocation82_spill] sm:$0xff] %v21211_v45  ;;  %v21231_v45 = vpop.f32.mrf.mxu1 }
 0x72b   : > { %v21215_v33 = vpop.f32.mrf.mxu0  ;;  %22053 = vst [vmem:[#allocation81_spill] sm:$0xff] %v21231_v45 }
 0x72c   : > { %22046 = vst [vmem:[#allocation63_spill] sm:$0xff] %v21215_v33  ;;  %v21241_v41 = vpop.f32.mrf.mxu1 }
 0x72d   : > { %v21217_v37 = vpop.f32.mrf.mxu0  ;;  %22056 = vst [vmem:[#allocation10_spill] sm:$0xff] %v21241_v41 }
 0x72e   : > { %22047 = vst [vmem:[#allocation66_spill] sm:$0xff] %v21217_v37  ;;  %v10794_v37 = vadd.f32 %v20999_v19, %v21004_v46  ;;  %v10795_v19 = vadd.f32 %v21016_v56, %v21019_v4  ;;  %v21260_v56 = vstv %s12028_s22 }
 0x72f   : > { %v21221_v16 = vpop.f32.mrf.mxu0 }
 0x730   : > { %22048 = vst [vmem:[#allocation50_spill] sm:$0xff] %v21221_v16  ;;  %v11185_v16 = vadd.f32 %v15552_v40, %v10794_v37  ;;  %v12030_v40 = vld [vmem:[#allocation2 + $0x21] sm:$0xff]  ;;  %v11186_v41 = vadd.f32 %v11035_v29, %v10795_v19 }
 0x731   : > { %v21223_v61 = vpop.f32.mrf.mxu0 }
 0x732   : > { %22049 = vst [vmem:[#allocation27_spill] sm:$0xff] %v21223_v61  ;;  %v10793_v61 = vadd.f32 %v21006_v32, %v21009_v27  ;;  %v11575_v46 = vadd.f32 %v15608_v36, %v11185_v16  ;;  %v10798_v32 = vadd.f32 %v21021_v21, %v21024_v54  ;;  %v21254_v27 = vpop.f32.mrf.mxu1  ;;  %v12063_v54 = vmul.f32 %v21260_v56, %v12030_v40 }
 0x733   : > { %v21227_v43 = vpop.f32.mrf.mxu0  ;;  %v11576_v36 = vadd.f32 %v21165_v57, %v11186_v41 }
 0x734   : > { %22051 = vst [vmem:[#allocation72_spill] sm:$0xff] %v21227_v43  ;;  %v11184_v45 = vadd.f32 %v11025_v2, %v10793_v61  ;;  %v10797_v61 = vadd.f32 %v21026_v12, %v21029_v44  ;;  %v11189_v2 = vadd.f32 %v15558_v39, %v10798_v32 }
 0x735   : > { %v21229_v3 = vpop.f32.mrf.mxu0 }
 0x736   : > { %22052 = vst [vmem:[#allocation21_spill] sm:$0xff] %v21229_v3  ;;  %v10796_v3 = vadd.f32 %v21011_v51, %v21014_v35  ;;  %v12029_v35 = vld [vmem:[#allocation2 + $0x19] sm:$0xff]  ;;  %v11188_v29 = vadd.f32 %v21163_v48, %v10797_v61 }
 0x737   : > { %v21233_v50 = vpop.f32.mrf.mxu0  ;;  %v12062_v12 = vmul.f32 %v21260_v56, %v12029_v35 }
 0x738   : > { %22054 = vst [vmem:[#allocation48_spill] sm:$0xff] %v21233_v50 }
 0x739   : > { %v21237_v33 = vpop.f32.mrf.mxu0 }
 0x73a   : > { %22055 = vst [vmem:[#allocation99_spill] sm:$0xff] %v21237_v33  ;;  %v11187_v33 = vadd.f32 %v15555_v38, %v10796_v3  ;;  %v12032_v38 = vld [vmem:[#allocation2 + $0x39] sm:$0xff] }
 0x73b   : > { %v21243_v43 = vpop.f32.mrf.mxu0 }
 0x73c   : > { %22057 = vst [vmem:[#allocation20_spill] sm:$0xff] %v21243_v43  ;;  %v11574_v43 = vadd.f32 %v11415_v63, %v11184_v45  ;;  %v11577_v3 = vadd.f32 %v21161_v53, %v11187_v33  ;;  %v10800_v45 = vadd.f32 %v21031_v52, %v21034_v62  ;;  %v21267_v63 = vpop.f32.mrf.mxu1  ;;  %v12031_v53 = vld [vmem:[#allocation2 + $0x31] sm:$0xff]  ;;  %v12065_v52 = vmul.f32 %v21260_v56, %v12032_v38  ;;  %v12036_v38 = vld [vmem:[#allocation2 + $0x69] sm:$0xff] }
 0x73d   : > { %v21247_v50 = vpop.f32.mrf.mxu0 }
 0x73e   : > { %v11191_v48 = vadd.f32 %v21167_v13, %v10800_v45  ;;  %v12064_v13 = vmul.f32 %v21260_v56, %v12031_v53  ;;  %v10804_v45 = vadd.f32 %v21051_v47, %v21054_v42  ;;  %v12069_v42 = vmul.f32 %v21260_v56, %v12036_v38 }
 0x73f   : > { %v15664_v37 = vpop.f32.mrf.mxu0 }
 0x740   : > { %v11965_v51 = vadd.f32 %v15664_v37, %v11575_v46  ;;  %v11579_v46 = vadd.f32 %v21171_v25, %v11189_v2  ;;  %v12034_v37 = vld [vmem:[#allocation2 + $0x51] sm:$0xff]  ;;  %v21283_v25 = vpop.f32.mrf.mxu1 }
 0x741   : > { %v11805_v4 = vpop.f32.mrf.mxu0 }
 0x742   : > { %v11997_v21 = vmax.f32 %v11965_v51, 0.0  ;;  %v11964_v16 = vadd.f32 %v11805_v4, %v11574_v43  ;;  %v10799_v43 = vadd.f32 %v21036_v55, %v21039_v26  ;;  %v10802_v55 = vadd.f32 %v21041_v24, %v21044_v49  ;;  %v12033_v4 = vld [vmem:[#allocation2 + $0x49] sm:$0xff] }
 0x743   : > { %v15667_v44 = vpop.f32.mrf.mxu0  ;;  %v11578_v26 = vadd.f32 %v21177_v6, %v11188_v29  ;;  %v12067_v49 = vmul.f32 %v21260_v56, %v12034_v37  ;;  %v10805_v37 = vadd.f32 %v21066_v59, %v21069_v23 }
 0x744   : > { %v12095_v39 = vadd.f32 %v12063_v54, %v11997_v21  ;;  %v11996_v19 = vmax.f32 %v11964_v16, 0.0  ;;  %v11967_v33 = vadd.f32 %v15667_v44, %v11577_v3  ;;  %v11190_v51 = vadd.f32 %v21169_v22, %v10799_v43 }
 0x745   : > { %v11815_v62 = vpop.f32.mrf.mxu0  ;;  %v10801_v3 = vadd.f32 %v21046_v11, %v21049_v10  ;;  %v11193_v24 = vadd.f32 %v21173_v20, %v10802_v55  ;;  %v11581_v21 = vadd.f32 %v21183_v31, %v11191_v48  ;;  %v21299_v10 = vpop.f32.mrf.mxu1  ;;  %v12066_v20 = vmul.f32 %v21260_v56, %v12033_v4 }
 0x746   : > { %12127 = vst.msk [vmem:[%s21276_s30 + $0x8] sm:$0xff] %vm251_vm0, %v12095_v39  ;;  %v12094_v41 = vadd.f32 %v12062_v12, %v11996_v19  ;;  %v11999_v57 = vmax.f32 %v11967_v33, 0.0  ;;  %v11966_v32 = vadd.f32 %v11815_v62, %v11576_v36  ;;  %v11580_v12 = vadd.f32 %v21189_v17, %v11190_v51  ;;  %v12035_v39 = vld [vmem:[#allocation2 + $0x61] sm:$0xff] }
 0x747   : > { %v15670_v40 = vpop.f32.mrf.mxu0  ;;  %v11192_v11 = vadd.f32 %v21175_v30, %v10801_v3  ;;  %v10803_v19 = vadd.f32 %v21056_v60, %v21059_v5  ;;  %v11583_v47 = vadd.f32 %v21195_v58, %v11193_v24  ;;  %v11195_v33 = vadd.f32 %v21179_v9, %v10804_v45  ;;  %v21315_v5 = vpop.f32.mrf.mxu1 }
 0x748   : > { %12126 = vst.msk [vmem:[%s21276_s30] sm:$0xff] %vm251_vm0, %v12094_v41  ;;  %v12097_v35 = vadd.f32 %v12065_v52, %v11999_v57  ;;  %v11998_v61 = vmax.f32 %v11966_v32, 0.0  ;;  %v11969_v2 = vadd.f32 %v15670_v40, %v11579_v46  ;;  %v12038_v46 = vld [vmem:[#allocation2 + $0x81] sm:$0xff]  ;;  %v10806_v52 = vadd.f32 %v21061_v1, %v21064_v14  ;;  %v12037_v32 = vld [vmem:[#allocation2 + $0x79] sm:$0xff] }
 0x749   : > { %v11825_v6 = vpop.f32.mrf.mxu0  ;;  %v11582_v60 = vadd.f32 %v21201_v0, %v11192_v11  ;;  %v12068_v58 = vmul.f32 %v21260_v56, %v12035_v39  ;;  %v11194_v48 = vadd.f32 %v21181_v8, %v10803_v19  ;;  %v12071_v14 = vmul.f32 %v21260_v56, %v12038_v46  ;;  %v12040_v40 = vld [vmem:[#allocation2 + $0x99] sm:$0xff]  ;;  %v21331_v23 = vpop.f32.mrf.mxu1  ;;  %v22067_v46 = vld [vmem:[#allocation37_spill] sm:$0xff] }
 0x74a   : > { %12129 = vst.msk [vmem:[%s21276_s30 + $0x18] sm:$0xff] %vm251_vm0, %v12097_v35  ;;  %v12096_v22 = vadd.f32 %v12064_v13, %v11998_v61  ;;  %v12001_v54 = vmax.f32 %v11969_v2, 0.0  ;;  %v11968_v16 = vadd.f32 %v11825_v6, %v11578_v26  ;;  %v11197_v1 = vadd.f32 %v21185_v28, %v10806_v52  ;;  %v22058_v35 = vld [vmem:[#allocation18_spill] sm:$0xff]  ;;  %v22059_v2 = vld [vmem:[#allocation96_spill] sm:$0xff]  ;;  %v22060_v6 = vld [vmem:[#allocation23_spill] sm:$0xff] }
 0x74b   : > { %v15673_v29 = vpop.f32.mrf.mxu0  ;;  %v11585_v55 = vadd.f32 %v21207_v15, %v11195_v33  ;;  %v10808_v51 = vadd.f32 %v21071_v34, %v21074_v7  ;;  %v11196_v59 = vadd.f32 %v22058_v35, %v10805_v37  ;;  %v12070_v28 = vmul.f32 %v21260_v56, %v12037_v32  ;;  %v21347_v19 = vpop.f32.mrf.mxu1  ;;  %v22068_v52 = vld [vmem:[#allocation92_spill] sm:$0xff] }
 0x74c   : > { %12128 = vst.msk [vmem:[%s21276_s30 + $0x10] sm:$0xff] %vm251_vm0, %v12096_v22  ;;  %v12099_v31 = vadd.f32 %v12067_v49, %v12001_v54  ;;  %v12000_v44 = vmax.f32 %v11968_v16, 0.0  ;;  %v11971_v36 = vadd.f32 %v15673_v29, %v11581_v21  ;;  %v11584_v4 = vadd.f32 %v22059_v2, %v11194_v48  ;;  %v12039_v49 = vld [vmem:[#allocation2 + $0x91] sm:$0xff]  ;;  %v22061_v21 = vld [vmem:[#allocation35_spill] sm:$0xff] }
 0x74d   : > { %v11835_v30 = vpop.f32.mrf.mxu0  ;;  %v10807_v22 = vadd.f32 %v22061_v21, %v22060_v6  ;;  %v11587_v34 = vadd.f32 %v21219_v18, %v11197_v1  ;;  %v12073_v7 = vmul.f32 %v21260_v56, %v12040_v40  ;;  %v22062_v16 = vld [vmem:[#allocation34_spill] sm:$0xff]  ;;  %v12072_v18 = vmul.f32 %v21260_v56, %v12039_v49  ;;  %v21363_v40 = vpop.f32.mrf.mxu1 }
 0x74e   : > { %12131 = vst.msk [vmem:[%s21276_s30 + $0x28] sm:$0xff] %vm251_vm0, %v12099_v31  ;;  %v12098_v17 = vadd.f32 %v12066_v20, %v12000_v44  ;;  %v12003_v53 = vmax.f32 %v11971_v36, 0.0  ;;  %v11970_v43 = vadd.f32 %v11835_v30, %v11580_v12  ;;  %v11199_v38 = vadd.f32 %v22062_v16, %v10808_v51  ;;  %v12042_v29 = vld [vmem:[#allocation2 + $0xb1] sm:$0xff] }
 0x74f   : > { %v15676_v62 = vpop.f32.mrf.mxu0  ;;  %v22063_v12 = vld [vmem:[#allocation62_spill] sm:$0xff]  ;;  %v12075_v48 = vmul.f32 %v21260_v56, %v12042_v29 }
 0x750   : > { %12130 = vst.msk [vmem:[%s21276_s30 + $0x20] sm:$0xff] %vm251_vm0, %v12098_v17  ;;  %v12101_v9 = vadd.f32 %v12069_v42, %v12003_v53  ;;  %v12002_v41 = vmax.f32 %v11970_v43, 0.0  ;;  %v11973_v57 = vadd.f32 %v15676_v62, %v11583_v47  ;;  %v22064_v31 = vld [vmem:[#allocation78_spill] sm:$0xff]  ;;  %v22066_v42 = vld [vmem:[#allocation79_spill] sm:$0xff]  ;;  %v12041_v43 = vld [vmem:[#allocation2 + $0xa9] sm:$0xff] }
 0x751   : > { %v11845_v0 = vpop.f32.mrf.mxu0  ;;  %v10810_v44 = vadd.f32 %v22064_v31, %v22063_v12  ;;  %v22065_v36 = vld [vmem:[#allocation98_spill] sm:$0xff]  ;;  %v11198_v30 = vadd.f32 %v22066_v42, %v10807_v22  ;;  %v12074_v51 = vmul.f32 %v21260_v56, %v12041_v43  ;;  %v21379_v31 = vpop.f32.mrf.mxu1 }
 0x752   : > { %12133 = vst.msk [vmem:[%s21276_s30 + $0x38] sm:$0xff] %vm251_vm0, %v12101_v9  ;;  %v12100_v8 = vadd.f32 %v12068_v58, %v12002_v41  ;;  %v12005_v26 = vmax.f32 %v11973_v57, 0.0  ;;  %v11972_v13 = vadd.f32 %v11845_v0, %v11582_v60  ;;  %v11586_v39 = vadd.f32 %v22065_v36, %v11196_v59  ;;  %v22069_v58 = vld [vmem:[#allocation28_spill] sm:$0xff]  ;;  %v22070_v41 = vld [vmem:[#allocation81_spill] sm:$0xff]  ;;  %v22071_v0 = vld [vmem:[#allocation75_spill] sm:$0xff] }
 0x753   : > { %v15679_v61 = vpop.f32.mrf.mxu0  ;;  %v10809_v60 = vadd.f32 %v22068_v52, %v22067_v46  ;;  %v11201_v62 = vadd.f32 %v22069_v58, %v10810_v44  ;;  %v11589_v57 = vadd.f32 %v22070_v41, %v11199_v38  ;;  %v22074_v59 = vld [vmem:[#allocation10_spill] sm:$0xff]  ;;  %v22080_v36 = vld [vmem:[#allocation69_spill] sm:$0xff]  ;;  %v22084_v41 = vld [vmem:[#allocation100_spill] sm:$0xff] }
 0x754   : > { %12132 = vst.msk [vmem:[%s21276_s30 + $0x30] sm:$0xff] %vm251_vm0, %v12100_v8  ;;  %v12103_v15 = vadd.f32 %v12071_v14, %v12005_v26  ;;  %v12004_v3 = vmax.f32 %v11972_v13, 0.0  ;;  %v11975_v24 = vadd.f32 %v15679_v61, %v11585_v55  ;;  %v12044_v14 = vld [vmem:[#allocation2 + $0xc9] sm:$0xff]  ;;  %v22072_v55 = vld [vmem:[#allocation19_spill] sm:$0xff]  ;;  %v22083_v43 = vld [vmem:[#allocation14_spill] sm:$0xff] }
 0x755   : > { %v11855_v54 = vpop.f32.mrf.mxu0  ;;  %v10812_v8 = vadd.f32 %v22072_v55, %v22071_v0  ;;  %v22073_v26 = vld [vmem:[#allocation9_spill] sm:$0xff]  ;;  %v11591_v6 = vadd.f32 %v21254_v27, %v11201_v62  ;;  %v12077_v21 = vmul.f32 %v21260_v56, %v12044_v14  ;;  %v11535_v14 = vpop.f32.mrf.mxu1 }
 0x756   : > { %12135 = vst.msk [vmem:[%s21276_s30 + $0x48] sm:$0xff] %vm251_vm0, %v12103_v15  ;;  %v12102_v45 = vadd.f32 %v12070_v28, %v12004_v3  ;;  %v12007_v11 = vmax.f32 %v11975_v24, 0.0  ;;  %v11974_v20 = vadd.f32 %v11855_v54, %v11584_v4  ;;  %v11200_v13 = vadd.f32 %v22073_v26, %v10809_v60  ;;  %v12043_v15 = vld [vmem:[#allocation2 + $0xc1] sm:$0xff]  ;;  %v22075_v3 = vld [vmem:[#allocation97_spill] sm:$0xff] }
 0x757   : > { %v15682_v47 = vpop.f32.mrf.mxu0  ;;  %v11588_v28 = vadd.f32 %v22074_v59, %v11198_v30  ;;  %v22076_v24 = vld [vmem:[#allocation43_spill] sm:$0xff]  ;;  %v12076_v27 = vmul.f32 %v21260_v56, %v12043_v15 }
 0x758   : > { %12134 = vst.msk [vmem:[%s21276_s30 + $0x40] sm:$0xff] %vm251_vm0, %v12102_v45  ;;  %v12105_v33 = vadd.f32 %v12073_v7, %v12007_v11  ;;  %v12006_v17 = vmax.f32 %v11974_v20, 0.0  ;;  %v11977_v53 = vadd.f32 %v15682_v47, %v11587_v34  ;;  %v10811_v49 = vadd.f32 %v22076_v24, %v22075_v3  ;;  %v22077_v34 = vld [vmem:[#allocation39_spill] sm:$0xff]  ;;  %v22078_v11 = vld [vmem:[#allocation33_spill] sm:$0xff]  ;;  %v22079_v20 = vld [vmem:[#allocation94_spill] sm:$0xff] }
 0x759   : > { %v11865_v9 = vpop.f32.mrf.mxu0  ;;  %v11203_v7 = vadd.f32 %v22077_v34, %v10812_v8  ;;  %v12046_v45 = vld [vmem:[#allocation2 + $0xe1] sm:$0xff]  ;;  %v10814_v29 = vadd.f32 %v22079_v20, %v22078_v11  ;;  %v11590_v12 = vadd.f32 %v21267_v63, %v11200_v13  ;;  %v12045_v30 = vld [vmem:[#allocation2 + $0xd9] sm:$0xff] }
 0x75a   : > { %12137 = vst.msk [vmem:[%s21276_s30 + $0x58] sm:$0xff] %vm251_vm0, %v12105_v33  ;;  %v12104_v32 = vadd.f32 %v12072_v18, %v12006_v17  ;;  %v12009_v37 = vmax.f32 %v11977_v53, 0.0  ;;  %v11976_v1 = vadd.f32 %v11865_v9, %v11586_v39  ;;  %v11202_v39 = vadd.f32 %v22080_v36, %v10811_v49  ;;  %v22081_v33 = vld [vmem:[#allocation13_spill] sm:$0xff]  ;;  %v12048_v9 = vld [vmem:[#allocation2 + $0xf9] sm:$0xff] }
 0x75b   : > { %v15685_v35 = vpop.f32.mrf.mxu0  ;;  %v22082_v17 = vld [vmem:[#allocation61_spill] sm:$0xff]  ;;  %v11205_v46 = vadd.f32 %v22083_v43, %v10814_v29  ;;  %v12079_v63 = vmul.f32 %v21260_v56, %v12046_v45  ;;  %v11593_v60 = vadd.f32 %v21283_v25, %v11203_v7  ;;  %v12078_v0 = vmul.f32 %v21260_v56, %v12045_v30  ;;  %v22088_v59 = vld [vmem:[#allocation95_spill] sm:$0xff] }
 0x75c   : > { %12136 = vst.msk [vmem:[%s21276_s30 + $0x50] sm:$0xff] %vm251_vm0, %v12104_v32  ;;  %v12107_v61 = vadd.f32 %v12075_v48, %v12009_v37  ;;  %v12008_v2 = vmax.f32 %v11976_v1, 0.0  ;;  %v11979_v4 = vadd.f32 %v15685_v35, %v11589_v57  ;;  %v10813_v53 = vadd.f32 %v22082_v17, %v22081_v33  ;;  %v22085_v57 = vld [vmem:[#allocation45_spill] sm:$0xff]  ;;  %v22086_v37 = vld [vmem:[#allocation82_spill] sm:$0xff]  ;;  %v22089_v15 = vld [vmem:[#allocation63_spill] sm:$0xff] }
 0x75d   : > { %v11875_v22 = vpop.f32.mrf.mxu0  ;;  %v10816_v32 = vadd.f32 %v22085_v57, %v22084_v41  ;;  %v11592_v8 = vadd.f32 %v21299_v10, %v11202_v39  ;;  %v22087_v35 = vld [vmem:[#allocation70_spill] sm:$0xff]  ;;  %v22096_v43 = vld [vmem:[#allocation59_spill] sm:$0xff] }
 0x75e   : > { %12139 = vst.msk [vmem:[%s21276_s30 + $0x68] sm:$0xff] %vm251_vm0, %v12107_v61  ;;  %v12106_v54 = vadd.f32 %v12074_v51, %v12008_v2  ;;  %v12011_v16 = vmax.f32 %v11979_v4, 0.0  ;;  %v11978_v38 = vadd.f32 %v11875_v22, %v11588_v28  ;;  %v11204_v1 = vadd.f32 %v22086_v37, %v10813_v53  ;;  %v12047_v51 = vld [vmem:[#allocation2 + $0xf1] sm:$0xff]  ;;  %v22091_v22 = vld [vmem:[#allocation67_spill] sm:$0xff]  ;;  %v12052_v53 = vld [vmem:[#allocation2 + $0x129] sm:$0xff] }
 0x75f   : > { %v15688_v44 = vpop.f32.mrf.mxu0  ;;  %v10815_v28 = vadd.f32 %v22088_v59, %v22087_v35  ;;  %v11595_v61 = vadd.f32 %v21315_v5, %v11205_v46  ;;  %v12081_v2 = vmul.f32 %v21260_v56, %v12048_v9  ;;  %v11207_v3 = vadd.f32 %v22089_v15, %v10816_v32  ;;  %v22095_v39 = vld [vmem:[#allocation50_spill] sm:$0xff]  ;;  %v22097_v46 = vld [vmem:[#allocation103_spill] sm:$0xff]  ;;  %v22099_v37 = vld [vmem:[#allocation17_spill] sm:$0xff] }
 0x760   : > { %12138 = vst.msk [vmem:[%s21276_s30 + $0x60] sm:$0xff] %vm251_vm0, %v12106_v54  ;;  %v12109_v18 = vadd.f32 %v12077_v21, %v12011_v16  ;;  %v12010_v47 = vmax.f32 %v11978_v38, 0.0  ;;  %v11981_v42 = vadd.f32 %v15688_v44, %v11591_v6  ;;  %v12050_v6 = vld [vmem:[#allocation2 + $0x111] sm:$0xff]  ;;  %v22090_v21 = vld [vmem:[#allocation11_spill] sm:$0xff]  ;;  %v11594_v7 = vadd.f32 %v21331_v23, %v11204_v1  ;;  %v15647_v54 = vpop.f32.mrf.mxu1  ;;  %v22100_v1 = vld [vmem:[#allocation64_spill] sm:$0xff] }
 0x761   : > { %v11885_v52 = vpop.f32.mrf.mxu0  ;;  %v10818_v34 = vadd.f32 %v22091_v22, %v22090_v21  ;;  %v12080_v5 = vmul.f32 %v21260_v56, %v12047_v51  ;;  %v22092_v38 = vld [vmem:[#allocation66_spill] sm:$0xff]  ;;  %v22094_v44 = vld [vmem:[#allocation47_spill] sm:$0xff]  ;;  %v12083_v23 = vmul.f32 %v21260_v56, %v12050_v6 }
 0x762   : > { %12141 = vst.msk [vmem:[%s21276_s30 + $0x78] sm:$0xff] %vm251_vm0, %v12109_v18  ;;  %v12108_v58 = vadd.f32 %v12076_v27, %v12010_v47  ;;  %v12013_v62 = vmax.f32 %v11981_v42, 0.0  ;;  %v11980_v48 = vadd.f32 %v11885_v52, %v11590_v12  ;;  %v11206_v45 = vadd.f32 %v22092_v38, %v10815_v28  ;;  %v12049_v12 = vld [vmem:[#allocation2 + $0x109] sm:$0xff]  ;;  %v22093_v27 = vld [vmem:[#allocation26_spill] sm:$0xff]  ;;  %v22098_v52 = vld [vmem:[#allocation27_spill] sm:$0xff] }
 0x763   : > { %v15691_v55 = vpop.f32.mrf.mxu0  ;;  %v10817_v36 = vadd.f32 %v22094_v44, %v22093_v27  ;;  %v11209_v18 = vadd.f32 %v22095_v39, %v10818_v34  ;;  %v11597_v42 = vadd.f32 %v21347_v19, %v11207_v3  ;;  %v12051_v32 = vld [vmem:[#allocation2 + $0x121] sm:$0xff]  ;;  %v22102_v28 = vld [vmem:[#allocation46_spill] sm:$0xff]  ;;  %v22108_v44 = vld [vmem:[#allocation25_spill] sm:$0xff] }
 0x764   : > { %12140 = vst.msk [vmem:[%s21276_s30 + $0x70] sm:$0xff] %vm251_vm0, %v12108_v58  ;;  %v12111_v25 = vadd.f32 %v12079_v63, %v12013_v62  ;;  %v12012_v26 = vmax.f32 %v11980_v48, 0.0  ;;  %v11983_v13 = vadd.f32 %v15691_v55, %v11593_v60  ;;  %v10820_v63 = vadd.f32 %v22097_v46, %v22096_v43  ;;  %v11545_v58 = vpop.f32.mrf.mxu1  ;;  %v12054_v59 = vld [vmem:[#allocation2 + $0x141] sm:$0xff]  ;;  %v12053_v22 = vld [vmem:[#allocation2 + $0x139] sm:$0xff]  ;;  %v12055_v43 = vld [vmem:[#allocation2 + $0x151] sm:$0xff] }
 0x765   : > { %v11895_v4 = vpop.f32.mrf.mxu0  ;;  %v11208_v60 = vadd.f32 %v22098_v52, %v10817_v36  ;;  %v12082_v62 = vmul.f32 %v21260_v56, %v12049_v12  ;;  %v11596_v9 = vadd.f32 %v21363_v40, %v11206_v45  ;;  %v11599_v55 = vadd.f32 %v21379_v31, %v11209_v18  ;;  %v22105_v34 = vld [vmem:[#allocation22_spill] sm:$0xff]  ;;  %v22109_v36 = vld [vmem:[#allocation41_spill] sm:$0xff]  ;;  %v22110_v18 = vld [vmem:[#allocation99_spill] sm:$0xff] }
 0x766   : > { %12143 = vst.msk [vmem:[%s21276_s30 + $0x88] sm:$0xff] %vm251_vm0, %v12111_v25  ;;  %v12110_v10 = vadd.f32 %v12078_v0, %v12012_v26  ;;  %v12015_v24 = vmax.f32 %v11983_v13, 0.0  ;;  %v11982_v49 = vadd.f32 %v11895_v4, %v11592_v8  ;;  %v10819_v0 = vadd.f32 %v22100_v1, %v22099_v37  ;;  %v22101_v26 = vld [vmem:[#allocation72_spill] sm:$0xff]  ;;  %v15650_v15 = vpop.f32.mrf.mxu1  ;;  %v12056_v27 = vld [vmem:[#allocation2 + $0x159] sm:$0xff]  ;;  %v12058_v37 = vld [vmem:[#allocation2 + $0x171] sm:$0xff] }
 0x767   : > { %v15694_v16 = vpop.f32.mrf.mxu0  ;;  %v12085_v8 = vmul.f32 %v21260_v56, %v12052_v53  ;;  %v11211_v13 = vadd.f32 %v22101_v26, %v10820_v63  ;;  %v11598_v4 = vadd.f32 %v11535_v14, %v11208_v60  ;;  %v12084_v3 = vmul.f32 %v21260_v56, %v12051_v32  ;;  %v22111_v46 = vld [vmem:[#allocation60_spill] sm:$0xff] }
 0x768   : > { %12142 = vst.msk [vmem:[%s21276_s30 + $0x80] sm:$0xff] %vm251_vm0, %v12110_v10  ;;  %v12113_v11 = vadd.f32 %v12081_v2, %v12015_v24  ;;  %v12014_v20 = vmax.f32 %v11982_v49, 0.0  ;;  %v11985_v29 = vadd.f32 %v15694_v16, %v11595_v61  ;;  %v22103_v61 = vld [vmem:[#allocation77_spill] sm:$0xff]  ;;  %v22107_v16 = vld [vmem:[#allocation48_spill] sm:$0xff]  ;;  %v12087_v14 = vmul.f32 %v21260_v56, %v12054_v59 }
 0x769   : > { %v11905_v47 = vpop.f32.mrf.mxu0  ;;  %v10822_v2 = vadd.f32 %v22103_v61, %v22102_v28  ;;  %v22104_v10 = vld [vmem:[#allocation21_spill] sm:$0xff]  ;;  %v10824_v39 = vadd.f32 %v22109_v36, %v22108_v44  ;;  %v22112_v63 = vld [vmem:[#allocation80_spill] sm:$0xff] }
 0x76a   : > { %12145 = vst.msk [vmem:[%s21276_s30 + $0x98] sm:$0xff] %vm251_vm0, %v12113_v11  ;;  %v12112_v30 = vadd.f32 %v12080_v5, %v12014_v20  ;;  %v12017_v33 = vmax.f32 %v11985_v29, 0.0  ;;  %v11984_v17 = vadd.f32 %v11905_v47, %v11594_v7  ;;  %v11210_v24 = vadd.f32 %v22104_v10, %v10819_v0  ;;  %v22106_v7 = vld [vmem:[#allocation32_spill] sm:$0xff]  ;;  %v11555_v47 = vpop.f32.mrf.mxu1 }
 0x76b   : > { %v15697_v48 = vpop.f32.mrf.mxu0  ;;  %v10821_v5 = vadd.f32 %v22106_v7, %v22105_v34  ;;  %v11213_v38 = vadd.f32 %v22107_v16, %v10822_v2  ;;  %v11601_v11 = vadd.f32 %v15647_v54, %v11211_v13  ;;  %v10823_v52 = vadd.f32 %v22112_v63, %v22111_v46 }
 0x76c   : > { %12144 = vst.msk [vmem:[%s21276_s30 + $0x90] sm:$0xff] %vm251_vm0, %v12112_v30  ;;  %v12115_v19 = vadd.f32 %v12083_v23, %v12017_v33  ;;  %v12016_v41 = vmax.f32 %v11984_v17, 0.0  ;;  %v11987_v57 = vadd.f32 %v15697_v48, %v11597_v42  ;;  %v12086_v42 = vmul.f32 %v21260_v56, %v12053_v22 }
 0x76d   : > { %v11915_v25 = vpop.f32.mrf.mxu0  ;;  %v11212_v23 = vadd.f32 %v22110_v18, %v10821_v5  ;;  %v11600_v33 = vadd.f32 %v11545_v58, %v11210_v24  ;;  %v11603_v60 = vadd.f32 %v15650_v15, %v11213_v38  ;;  %v12089_v48 = vmul.f32 %v21260_v56, %v12056_v27 }
 0x76e   : > { %12147 = vst.msk [vmem:[%s21276_s30 + $0xa8] sm:$0xff] %vm251_vm0, %v12115_v19  ;;  %v12114_v40 = vadd.f32 %v12082_v62, %v12016_v41  ;;  %v12019_v51 = vmax.f32 %v11987_v57, 0.0  ;;  %v11986_v35 = vadd.f32 %v11915_v25, %v11596_v9  ;;  %v15653_v62 = vpop.f32.mrf.mxu1  ;;  %v22113_v19 = vld [vmem:[#allocation20_spill] sm:$0xff]  ;;  %v12088_v0 = vmul.f32 %v21260_v56, %v12055_v43 }
 0x76f   : > { %v15700_v31 = vpop.f32.mrf.mxu0  ;;  %v11215_v41 = vadd.f32 %v22113_v19, %v10824_v39  ;;  %v11602_v1 = vadd.f32 %v11555_v47, %v11212_v23 }
 0x770   : > { %12146 = vst.msk [vmem:[%s21276_s30 + $0xa0] sm:$0xff] %vm251_vm0, %v12114_v40  ;;  %v12117_v49 = vadd.f32 %v12085_v8, %v12019_v51  ;;  %v12018_v6 = vmax.f32 %v11986_v35, 0.0  ;;  %v11989_v21 = vadd.f32 %v15700_v31, %v11599_v55  ;;  %v11214_v8 = vadd.f32 %v21247_v50, %v10823_v52  ;;  %v12057_v40 = vld [vmem:[#allocation2 + $0x169] sm:$0xff]  ;;  %v11565_v51 = vpop.f32.mrf.mxu1 }
 0x771   : > { %v11925_v45 = vpop.f32.mrf.mxu0  ;;  %v12091_v35 = vmul.f32 %v21260_v56, %v12058_v37  ;;  %v11605_v28 = vadd.f32 %v15653_v62, %v11215_v41  ;;  %v12090_v50 = vmul.f32 %v21260_v56, %v12057_v40 }
 0x772   : > { %12149 = vst.msk [vmem:[%s21276_s30 + $0xb8] sm:$0xff] %vm251_vm0, %v12117_v49  ;;  %v12116_v20 = vadd.f32 %v12084_v3, %v12018_v6  ;;  %v12021_v29 = vmax.f32 %v11989_v21, 0.0  ;;  %v11988_v12 = vadd.f32 %v11925_v45, %v11598_v4  ;;  %v12060_v3 = vld [vmem:[#allocation2 + $0x189] sm:$0xff]  ;;  %v11604_v31 = vadd.f32 %v11565_v51, %v11214_v8  ;;  %v12059_v21 = vld [vmem:[#allocation2 + $0x181] sm:$0xff] }
 0x773   : > { %v15703_v30 = vpop.f32.mrf.mxu0  ;;  %v12093_v7 = vmul.f32 %v21260_v56, %v12060_v3 }
 0x774   : > { %12148 = vst.msk [vmem:[%s21276_s30 + $0xb0] sm:$0xff] %vm251_vm0, %v12116_v20  ;;  %v12119_v54 = vadd.f32 %v12087_v14, %v12021_v29  ;;  %v12020_v17 = vmax.f32 %v11988_v12, 0.0  ;;  %v11991_v53 = vadd.f32 %v15703_v30, %v11601_v11  ;;  %v12092_v14 = vmul.f32 %v21260_v56, %v12059_v21 }
 0x775   : > { %v11935_v9 = vpop.f32.mrf.mxu0 }
 0x776   : > { %12151 = vst.msk [vmem:[%s21276_s30 + $0xc8] sm:$0xff] %vm251_vm0, %v12119_v54  ;;  %v12118_v58 = vadd.f32 %v12086_v42, %v12020_v17  ;;  %v12023_v57 = vmax.f32 %v11991_v53, 0.0  ;;  %v11990_v32 = vadd.f32 %v11935_v9, %v11600_v33 }
 0x777   : > { %v15706_v55 = vpop.f32.mrf.mxu0 }
 0x778   : > { %12150 = vst.msk [vmem:[%s21276_s30 + $0xc0] sm:$0xff] %vm251_vm0, %v12118_v58  ;;  %v12121_v25 = vadd.f32 %v12089_v48, %v12023_v57  ;;  %v12022_v26 = vmax.f32 %v11990_v32, 0.0  ;;  %v11993_v13 = vadd.f32 %v15706_v55, %v11603_v60 }
 0x779   : > { %v11945_v59 = vpop.f32.mrf.mxu0 }
 0x77a   : > { %12153 = vst.msk [vmem:[%s21276_s30 + $0xd8] sm:$0xff] %vm251_vm0, %v12121_v25  ;;  %v12120_v61 = vadd.f32 %v12088_v0, %v12022_v26  ;;  %v12025_v2 = vmax.f32 %v11993_v13, 0.0  ;;  %v11992_v4 = vadd.f32 %v11945_v59, %v11602_v1 }
 0x77b   : > { %v15709_v15 = vpop.f32.mrf.mxu0 }
 0x77c   : > { %12152 = vst.msk [vmem:[%s21276_s30 + $0xd0] sm:$0xff] %vm251_vm0, %v12120_v61  ;;  %v12123_v10 = vadd.f32 %v12091_v35, %v12025_v2  ;;  %v12024_v24 = vmax.f32 %v11992_v4, 0.0  ;;  %v11995_v49 = vadd.f32 %v15709_v15, %v11605_v28 }
 0x77d   : > { %v11955_v6 = vpop.f32.mrf.mxu0 }
 0x77e   : > { %12155 = vst.msk [vmem:[%s21276_s30 + $0xe8] sm:$0xff] %vm251_vm0, %v12123_v10  ;;  %v12122_v22 = vadd.f32 %v12090_v50, %v12024_v24  ;;  %v12027_v34 = vmax.f32 %v11995_v49, 0.0  ;;  %v11994_v5 = vadd.f32 %v11955_v6, %v11604_v31 }
 0x780   : > { %12154 = vst.msk [vmem:[%s21276_s30 + $0xe0] sm:$0xff] %vm251_vm0, %v12122_v22  ;;  %v12125_v16 = vadd.f32 %v12093_v7, %v12027_v34  ;;  %v12026_v38 = vmax.f32 %v11994_v5, 0.0 }
 0x782   : > { %12157 = vst.msk [vmem:[%s21276_s30 + $0xf8] sm:$0xff] %vm251_vm0, %v12125_v16  ;;  %v12124_v45 = vadd.f32 %v12092_v14, %v12026_v38 }
 0x784   : > { %12156 = vst.msk [vmem:[%s21276_s30 + $0xf0] sm:$0xff] %vm251_vm0, %v12124_v45 }
 0x785   : > { %15871 = shalt.err (!%p15868_p3)
}
 0x786   : > { %s15872_s19 = scalar_lea.hbm %s21479_s15, 4096  ;;  %s15876_s22 = scalar_lea.hbm %s21535_s6, 8192 }
 0x787   : > { %p15873_p4 = scmp.ne.s32.totalorder %s21479_s15, %s15872_s19  ;;  %p15877_p9 = scmp.lt.s32.totalorder %s21479_s15, %s21535_s6 }
 0x788   : > { %p15878_p10 = scmp.lt.s32.totalorder %s15876_s22, %s15872_s19 }
 0x789   : > { %p15874_p7 = pnand %p15873_p4, %p16004_p5 }
 0x78a   : > { %p15879_p11 = por %p15878_p10, %p15877_p9 }
 0x78b   : > { %p15875_p8 = pneg %p15874_p7 }
 0x78d   : > { %p15880_p12 = pnand %p15879_p11, %p15875_p8 }
 0x78f   : > { %15883 = shalt.err (!%p15880_p12)
}
 0x790   : > { %s15926_s30 = smov 128   ;;  %s15927_s10 = smov 8  }
 0x791   : > { %15718 = dma.vmem_to_hbm [thread:$0]  (%p16004_p5), %s21481_s11, 4096, %s21479_s15, %s21489_s5, %s15926_s30, %s15926_s30, %s15927_s10  }
 0x792 PF: > { %p15724_p13 = scmp.ge.s32.totalorder %s15918_s26, 2  ;;  %s12187_s12 = sand.u32 1, %s15906_s23  }
 0x793   : > { %s12188_s13 = scalar_lea.sflag [#allocation7], %s12187_s12 }
 0x794   : > { %p15721_p0 = pnand %p15724_p13, %p16008_p6 }
 0x796   : > { %p15722_p1 = pneg %p15721_p0 }
 0x798   : > { %15901 = dma.done.wait (%p15722_p1), %s12188_s13, 4096  }
 0x799   : > { %15903 = vsyncadd (%p15722_p1), %s12188_s13, 4294963200  ;;  %p17_p2 = scmp.ge.s32.totalorder %s15991_s28, 4   ;;  %s22114_s23 = smov %s15910_s24 }
 0x79a   : > { %s22115_s24 = smov %s15914_s25  ;;  %s22116_s25 = smov %s16002_s7 }
 0x79b   : > { %s22117_s26 = smov %s15991_s28  ;;  %19 = sbr.rel (!%p17_p2) target bundleno = 5 (0x5), region = 113 }
 0x7a0   :  { %12193 = vsyncpa [#allocation7], 1 }
 0x7a1   :  { %12195 = vsyncpa [#allocation7 + $0x1], 1 }

</bundles_post_ra>
